<compile_context>
chip_gen: v5e
topology: v5e:2x2
jax: 0.10.0
libtpu: 0.0.40
codegen_flags: <defaults>
</compile_context>

<pallas_src>
import functools

import jax
import jax.numpy as jnp
from jax.experimental import pallas as pl
from jax.experimental.pallas import tpu as pltpu


def _round_up(x, m):
    return ((x + m - 1) // m) * m


# --------------------------------------------------------------------------
# Kernel
# --------------------------------------------------------------------------
def _fused_lstm2_kernel(x_ref, w1_ref, b1_ref, w2_ref, b2_ref, out_ref,
                        h1_scr, c1_scr, h2_scr, c2_scr, *, h_pad, t_blk):
    """Runs t_blk time steps of a fused 2-layer LSTM.

    x_ref:   (t_blk, N, Dp)      current time block of the (padded) input
    w1_ref:  (Dp + Hp, 4*Hp)     layer 1: [W_ih^T ; W_hh^T], gate order i,f,g,o
    b1_ref:  (1, 4*Hp)           layer 1: b_ih + b_hh
    w2_ref:  (Hp + Hp, 4*Hp)     layer 2 stacked weights
    b2_ref:  (1, 4*Hp)           layer 2 bias
    out_ref: (t_blk, N, Hp)      top-layer hidden states for this block
    *_scr:   (N, Hp)             recurrent state, persists across grid steps
    """
    # Zero initial hidden/cell state at the first time block (PyTorch default
    # when no initial state is passed to lstm(x)).
    @pl.when(pl.program_id(0) == 0)
    def _():
        h1_scr[...] = jnp.zeros_like(h1_scr)
        c1_scr[...] = jnp.zeros_like(c1_scr)
        h2_scr[...] = jnp.zeros_like(h2_scr)
        c2_scr[...] = jnp.zeros_like(c2_scr)

    # Load the resident weights once per block (hoisted out of the time loop).
    w1 = w1_ref[...]
    b1 = b1_ref[...]
    w2 = w2_ref[...]
    b2 = b2_ref[...]

    def cell(inp, w, b, c):
        # Single MXU matmul per layer per step; f32 accumulation.
        gates = jnp.dot(inp, w, preferred_element_type=jnp.float32) + b
        # Lane-aligned (128-wide) gate slices; PyTorch gate order i, f, g, o.
        i_g = jax.nn.sigmoid(gates[:, 0 * h_pad:1 * h_pad])
        f_g = jax.nn.sigmoid(gates[:, 1 * h_pad:2 * h_pad])
        g_g = jnp.tanh(gates[:, 2 * h_pad:3 * h_pad])
        o_g = jax.nn.sigmoid(gates[:, 3 * h_pad:4 * h_pad])
        c_new = f_g * c + i_g * g_g
        h_new = o_g * jnp.tanh(c_new)
        return h_new, c_new

    def step(t, carry):
        h1, c1, h2, c2 = carry
        x_t = x_ref[t]                                           # (N, Dp)
        # Layer 1: gates = [x_t | h1] @ [W_ih1^T ; W_hh1^T] + b1
        h1, c1 = cell(jnp.concatenate([x_t, h1], axis=-1), w1, b1, c1)
        # Layer 2 (nn.LSTM has no inter-layer dropout with default dropout=0):
        # gates = [h1 | h2] @ [W_ih2^T ; W_hh2^T] + b2
        h2, c2 = cell(jnp.concatenate([h1, h2], axis=-1), w2, b2, c2)
        out_ref[t] = h2.astype(out_ref.dtype)                    # lane-dense store
        return (h1, c1, h2, c2)

    carry = (h1_scr[...], c1_scr[...], h2_scr[...], c2_scr[...])
    h1, c1, h2, c2 = jax.lax.fori_loop(0, t_blk, step, carry, unroll=True)
    h1_scr[...] = h1
    c1_scr[...] = c1
    h2_scr[...] = h2
    c2_scr[...] = c2


# --------------------------------------------------------------------------
# Parameter handling
# --------------------------------------------------------------------------
def init_lstm_params(key, input_dim, hidden_dim, num_layers=2):
    """PyTorch-style init: U(-1/sqrt(H), 1/sqrt(H)), torch weight layout."""
    params = []
    bound = 1.0 / (hidden_dim ** 0.5)
    for layer in range(num_layers):
        d_in = input_dim if layer == 0 else hidden_dim
        key, k1, k2, k3, k4 = jax.random.split(key, 5)
        params.append({
            "w_ih": jax.random.uniform(k1, (4 * hidden_dim, d_in),
                                       minval=-bound, maxval=bound, dtype=jnp.float32),
            "w_hh": jax.random.uniform(k2, (4 * hidden_dim, hidden_dim),
                                       minval=-bound, maxval=bound, dtype=jnp.float32),
            "b_ih": jax.random.uniform(k3, (4 * hidden_dim,),
                                       minval=-bound, maxval=bound, dtype=jnp.float32),
            "b_hh": jax.random.uniform(k4, (4 * hidden_dim,),
                                       minval=-bound, maxval=bound, dtype=jnp.float32),
        })
    return params


def _pack_layer(p, d_in, h, d_in_pad, h_pad):
    """Lane-padded stacked weight (d_in_pad + h_pad, 4*h_pad) and bias (1, 4*h_pad).

    Gate g (PyTorch order i,f,g,o) occupies padded columns [g*h_pad, g*h_pad + h);
    all padding is exact zero, so padded hidden lanes stay zero forever.
    """
    w = jnp.zeros((d_in_pad + h_pad, 4 * h_pad), jnp.float32)
    b = jnp.zeros((1, 4 * h_pad), jnp.float32)
    for g in range(4):
        w = w.at[:d_in, g * h_pad:g * h_pad + h].set(p["w_ih"][g * h:(g + 1) * h, :].T)
        w = w.at[d_in_pad:d_in_pad + h, g * h_pad:g * h_pad + h].set(
            p["w_hh"][g * h:(g + 1) * h, :].T)
        b = b.at[0, g * h_pad:g * h_pad + h].set(
            p["b_ih"][g * h:(g + 1) * h] + p["b_hh"][g * h:(g + 1) * h])
    return w, b


# --------------------------------------------------------------------------
# Wrapper (module forward)
# --------------------------------------------------------------------------
def lstm_forward(x, params, *, t_blk=None):
    """Module forward: dropout (eval-mode identity) + fused 2-layer LSTM.

    x: (T, N, D) float32 -> (T, N, H) float32.
    """
    assert len(params) == 2, "fused kernel implements the module default num_layers=2"
    T, N, D = x.shape
    H = params[0]["w_hh"].shape[1]
    Dp = _round_up(D, 128)
    Hp = _round_up(H, 128)

    if t_blk is None:
        for cand in (16, 8, 4, 2, 1):
            if T % cand == 0:
                t_blk = cand
                break

    w1, b1 = _pack_layer(params[0], D, H, Dp, Hp)
    w2, b2 = _pack_layer(params[1], H, H, Hp, Hp)

    x_pad = jnp.zeros((T, N, Dp), jnp.float32).at[:, :, :D].set(x.astype(jnp.float32))

    kernel = functools.partial(_fused_lstm2_kernel, h_pad=Hp, t_blk=t_blk)
    out_pad = pl.pallas_call(
        kernel,
        out_shape=jax.ShapeDtypeStruct((T, N, Hp), jnp.float32),
        grid_spec=pltpu.PrefetchScalarGridSpec(
            num_scalar_prefetch=0,
            grid=(T // t_blk,),
            in_specs=[
                pl.BlockSpec((t_blk, N, Dp), lambda i: (i, 0, 0)),      # x block
                pl.BlockSpec((Dp + Hp, 4 * Hp), lambda i: (0, 0)),      # W1 stacked
                pl.BlockSpec((1, 4 * Hp), lambda i: (0, 0)),            # b1
                pl.BlockSpec((Hp + Hp, 4 * Hp), lambda i: (0, 0)),      # W2 stacked
                pl.BlockSpec((1, 4 * Hp), lambda i: (0, 0)),            # b2
            ],
            out_specs=pl.BlockSpec((t_blk, N, Hp), lambda i: (i, 0, 0)),
            scratch_shapes=[pltpu.VMEM((N, Hp), jnp.float32)] * 4,      # h1,c1,h2,c2
        ),
        # Time is a true recurrence -> sequential grid axis.
        compiler_params=pltpu.CompilerParams(dimension_semantics=("arbitrary",)),
    )(x_pad, w1, b1, w2, b2)

    return out_pad[:, :, :H]


# --------------------------------------------------------------------------
# Pure-JAX reference (PyTorch nn.LSTM semantics) for correctness checking
# --------------------------------------------------------------------------
def lstm_reference(x, params):
    h_seq = x
    for p in params:
        H = p["w_hh"].shape[1]
        N = h_seq.shape[1]
        w_ih_t = p["w_ih"].T
        w_hh_t = p["w_hh"].T
        b = (p["b_ih"] + p["b_hh"])[None, :]

        def step(carry, x_t, w_ih_t=w_ih_t, w_hh_t=w_hh_t, b=b, H=H):
            h, c = carry
            gates = x_t @ w_ih_t + h @ w_hh_t + b
            i = jax.nn.sigmoid(gates[:, 0 * H:1 * H])
            f = jax.nn.sigmoid(gates[:, 1 * H:2 * H])
            g = jnp.tanh(gates[:, 2 * H:3 * H])
            o = jax.nn.sigmoid(gates[:, 3 * H:4 * H])
            c_new = f * c + i * g
            h_new = o * jnp.tanh(c_new)
            return (h_new, c_new), h_new

        init = (jnp.zeros((N, H), jnp.float32), jnp.zeros((N, H), jnp.float32))
        _, h_seq = jax.lax.scan(step, init, h_seq)
    return h_seq


if __name__ == "__main__":
    T, N = 8, 2            # seq_len, batch
    INPUT_DIM = 16
    HIDDEN_DIM = 32
    NUM_LAYERS = 2

    key = jax.random.PRNGKey(0)
    kx, kp = jax.random.split(key)
    x = jax.random.normal(kx, (T, N, INPUT_DIM), dtype=jnp.float32)
    params = init_lstm_params(kp, INPUT_DIM, HIDDEN_DIM, NUM_LAYERS)

    out = lstm_forward(x, params)
    out = jax.block_until_ready(out)

    ref = lstm_reference(x, params)
    assert out.shape == (T, N, HIDDEN_DIM)
    assert jnp.allclose(out, ref, atol=1e-4, rtol=1e-4), \
        float(jnp.max(jnp.abs(out - ref)))

    print("KERNEL_OK")
</pallas_src>

<mosaic_0001>
module attributes {stable_mosaic.version = 11 : i64} {
  func.func @_fused_lstm2_kernel(%arg0: i32, %arg1: memref<8x2x128xf32, #tpu.memory_space<vmem>>, %arg2: memref<256x512xf32, #tpu.memory_space<vmem>>, %arg3: memref<1x512xf32, #tpu.memory_space<vmem>>, %arg4: memref<256x512xf32, #tpu.memory_space<vmem>>, %arg5: memref<1x512xf32, #tpu.memory_space<vmem>>, %arg6: memref<8x2x128xf32, #tpu.memory_space<vmem>>, %arg7: memref<2x128xf32, #tpu.memory_space<vmem>>, %arg8: memref<2x128xf32, #tpu.memory_space<vmem>>, %arg9: memref<2x128xf32, #tpu.memory_space<vmem>>, %arg10: memref<2x128xf32, #tpu.memory_space<vmem>>) attributes {dimension_semantics = [#tpu.dimension_semantics<arbitrary>], iteration_bounds = array<i64: 1>, scalar_prefetch = 0 : i64, scratch_operands = 4 : i64, tpu.core_type = #tpu.core_type<tc>, window_params = [{transform_indices = @transform_0, window_bounds = array<i64: 8, 2, 128>}, {pipeline_mode = #tpu.pipeline_mode<synchronous>, transform_indices = @transform_1, window_bounds = array<i64: 256, 512>}, {pipeline_mode = #tpu.pipeline_mode<synchronous>, transform_indices = @transform_2, window_bounds = array<i64: 1, 512>}, {pipeline_mode = #tpu.pipeline_mode<synchronous>, transform_indices = @transform_3, window_bounds = array<i64: 256, 512>}, {pipeline_mode = #tpu.pipeline_mode<synchronous>, transform_indices = @transform_4, window_bounds = array<i64: 1, 512>}, {transform_indices = @transform_5, window_bounds = array<i64: 8, 2, 128>}]} {
    %c0_i32 = arith.constant 0 : i32
    %0 = arith.cmpi eq, %arg0, %c0_i32 : i32
    %1 = arith.extui %0 : i1 to i32
    %c0_i32_0 = arith.constant 0 : i32
    %2 = arith.cmpi ne, %1, %c0_i32_0 : i32
    scf.if %2 {
      %cst_120 = arith.constant 0.000000e+00 : f32
      %535 = vector.broadcast %cst_120 : f32 to vector<2x128xf32>
      %c0_121 = arith.constant 0 : index
      %c0_122 = arith.constant 0 : index
      %536 = vector.load %arg7[%c0_121, %c0_122] : memref<2x128xf32, #tpu.memory_space<vmem>>, vector<2x128xf32>
      tpu.vector_store %arg7[%c0_121, %c0_122], %535 {strides = array<i32>} : memref<2x128xf32, #tpu.memory_space<vmem>>, vector<2x128xf32>,
      %cst_123 = arith.constant 0.000000e+00 : f32
      %537 = vector.broadcast %cst_123 : f32 to vector<2x128xf32>
      %c0_124 = arith.constant 0 : index
      %c0_125 = arith.constant 0 : index
      %538 = vector.load %arg8[%c0_124, %c0_125] : memref<2x128xf32, #tpu.memory_space<vmem>>, vector<2x128xf32>
      tpu.vector_store %arg8[%c0_124, %c0_125], %537 {strides = array<i32>} : memref<2x128xf32, #tpu.memory_space<vmem>>, vector<2x128xf32>,
      %cst_126 = arith.constant 0.000000e+00 : f32
      %539 = vector.broadcast %cst_126 : f32 to vector<2x128xf32>
      %c0_127 = arith.constant 0 : index
      %c0_128 = arith.constant 0 : index
      %540 = vector.load %arg9[%c0_127, %c0_128] : memref<2x128xf32, #tpu.memory_space<vmem>>, vector<2x128xf32>
      tpu.vector_store %arg9[%c0_127, %c0_128], %539 {strides = array<i32>} : memref<2x128xf32, #tpu.memory_space<vmem>>, vector<2x128xf32>,
      %cst_129 = arith.constant 0.000000e+00 : f32
      %541 = vector.broadcast %cst_129 : f32 to vector<2x128xf32>
      %c0_130 = arith.constant 0 : index
      %c0_131 = arith.constant 0 : index
      %542 = vector.load %arg10[%c0_130, %c0_131] : memref<2x128xf32, #tpu.memory_space<vmem>>, vector<2x128xf32>
      tpu.vector_store %arg10[%c0_130, %c0_131], %541 {strides = array<i32>} : memref<2x128xf32, #tpu.memory_space<vmem>>, vector<2x128xf32>,
    } else {
    }
    %c0 = arith.constant 0 : index
    %c0_1 = arith.constant 0 : index
    %3 = vector.load %arg2[%c0, %c0_1] : memref<256x512xf32, #tpu.memory_space<vmem>>, vector<256x512xf32>
    %c0_2 = arith.constant 0 : index
    %c0_3 = arith.constant 0 : index
    %4 = vector.load %arg3[%c0_2, %c0_3] : memref<1x512xf32, #tpu.memory_space<vmem>>, vector<1x512xf32>
    %c0_4 = arith.constant 0 : index
    %c0_5 = arith.constant 0 : index
    %5 = vector.load %arg4[%c0_4, %c0_5] : memref<256x512xf32, #tpu.memory_space<vmem>>, vector<256x512xf32>
    %c0_6 = arith.constant 0 : index
    %c0_7 = arith.constant 0 : index
    %6 = vector.load %arg5[%c0_6, %c0_7] : memref<1x512xf32, #tpu.memory_space<vmem>>, vector<1x512xf32>
    %c0_8 = arith.constant 0 : index
    %c0_9 = arith.constant 0 : index
    %7 = vector.load %arg7[%c0_8, %c0_9] : memref<2x128xf32, #tpu.memory_space<vmem>>, vector<2x128xf32>
    %c0_10 = arith.constant 0 : index
    %c0_11 = arith.constant 0 : index
    %8 = vector.load %arg8[%c0_10, %c0_11] : memref<2x128xf32, #tpu.memory_space<vmem>>, vector<2x128xf32>
    %c0_12 = arith.constant 0 : index
    %c0_13 = arith.constant 0 : index
    %9 = vector.load %arg9[%c0_12, %c0_13] : memref<2x128xf32, #tpu.memory_space<vmem>>, vector<2x128xf32>
    %c0_14 = arith.constant 0 : index
    %c0_15 = arith.constant 0 : index
    %10 = vector.load %arg10[%c0_14, %c0_15] : memref<2x128xf32, #tpu.memory_space<vmem>>, vector<2x128xf32>
    %c0_i32_16 = arith.constant 0 : i32
    %11 = arith.index_cast %c0_i32_16 : i32 to index
    %c0_17 = arith.constant 0 : index
    %c0_18 = arith.constant 0 : index
    %12 = vector.load %arg1[%11, %c0_17, %c0_18] : memref<8x2x128xf32, #tpu.memory_space<vmem>>, vector<1x2x128xf32>
    %13 = vector.shape_cast %12 : vector<1x2x128xf32> to vector<2x128xf32>
    %14 = tpu.concatenate %13, %7 in 1 : vector<2x128xf32>, vector<2x128xf32> -> vector<2x256xf32>
    %cst = arith.constant dense<0.000000e+00> : vector<2x512xf32>
    %15 = tpu.matmul %14, %3, %cst {dimension_numbers = #tpu.dot_dimension_numbers<[1], [0], [0], [1], [0, 0, 1, 1], [], []>} : vector<2x256xf32>, vector<256x512xf32>, vector<2x512xf32> -> vector<2x512xf32>
    %16 = vector.broadcast %4 : vector<1x512xf32> to vector<2x512xf32>
    %17 = arith.addf %15, %16 : vector<2x512xf32>
    %18 = vector.extract_strided_slice %17 {offsets = [0, 0], sizes = [2, 128], strides = [1, 1]} : vector<2x512xf32> to vector<2x128xf32>
    %19 = arith.negf %18 : vector<2x128xf32>
    %20 = math.exp %19 : vector<2x128xf32>
    %cst_19 = arith.constant 1.000000e+00 : f32
    %21 = vector.broadcast %cst_19 : f32 to vector<2x128xf32>
    %22 = arith.addf %21, %20 : vector<2x128xf32>
    %23 = arith.divf %21, %22 : vector<2x128xf32>
    %24 = vector.extract_strided_slice %17 {offsets = [0, 128], sizes = [2, 128], strides = [1, 1]} : vector<2x512xf32> to vector<2x128xf32>
    %25 = arith.negf %24 : vector<2x128xf32>
    %26 = math.exp %25 : vector<2x128xf32>
    %cst_20 = arith.constant 1.000000e+00 : f32
    %27 = vector.broadcast %cst_20 : f32 to vector<2x128xf32>
    %28 = arith.addf %27, %26 : vector<2x128xf32>
    %29 = arith.divf %27, %28 : vector<2x128xf32>
    %30 = vector.extract_strided_slice %17 {offsets = [0, 256], sizes = [2, 128], strides = [1, 1]} : vector<2x512xf32> to vector<2x128xf32>
    %31 = math.tanh %30 : vector<2x128xf32>
    %32 = vector.extract_strided_slice %17 {offsets = [0, 384], sizes = [2, 128], strides = [1, 1]} : vector<2x512xf32> to vector<2x128xf32>
    %33 = arith.negf %32 : vector<2x128xf32>
    %34 = math.exp %33 : vector<2x128xf32>
    %cst_21 = arith.constant 1.000000e+00 : f32
    %35 = vector.broadcast %cst_21 : f32 to vector<2x128xf32>
    %36 = arith.addf %35, %34 : vector<2x128xf32>
    %37 = arith.divf %35, %36 : vector<2x128xf32>
    %38 = arith.mulf %29, %8 : vector<2x128xf32>
    %39 = arith.mulf %23, %31 : vector<2x128xf32>
    %40 = arith.addf %38, %39 : vector<2x128xf32>
    %41 = math.tanh %40 : vector<2x128xf32>
    %42 = arith.mulf %37, %41 : vector<2x128xf32>
    %43 = tpu.concatenate %42, %9 in 1 : vector<2x128xf32>, vector<2x128xf32> -> vector<2x256xf32>
    %cst_22 = arith.constant dense<0.000000e+00> : vector<2x512xf32>
    %44 = tpu.matmul %43, %5, %cst_22 {dimension_numbers = #tpu.dot_dimension_numbers<[1], [0], [0], [1], [0, 0, 1, 1], [], []>} : vector<2x256xf32>, vector<256x512xf32>, vector<2x512xf32> -> vector<2x512xf32>
    %45 = vector.broadcast %6 : vector<1x512xf32> to vector<2x512xf32>
    %46 = arith.addf %44, %45 : vector<2x512xf32>
    %47 = vector.extract_strided_slice %46 {offsets = [0, 0], sizes = [2, 128], strides = [1, 1]} : vector<2x512xf32> to vector<2x128xf32>
    %48 = arith.negf %47 : vector<2x128xf32>
    %49 = math.exp %48 : vector<2x128xf32>
    %cst_23 = arith.constant 1.000000e+00 : f32
    %50 = vector.broadcast %cst_23 : f32 to vector<2x128xf32>
    %51 = arith.addf %50, %49 : vector<2x128xf32>
    %52 = arith.divf %50, %51 : vector<2x128xf32>
    %53 = vector.extract_strided_slice %46 {offsets = [0, 128], sizes = [2, 128], strides = [1, 1]} : vector<2x512xf32> to vector<2x128xf32>
    %54 = arith.negf %53 : vector<2x128xf32>
    %55 = math.exp %54 : vector<2x128xf32>
    %cst_24 = arith.constant 1.000000e+00 : f32
    %56 = vector.broadcast %cst_24 : f32 to vector<2x128xf32>
    %57 = arith.addf %56, %55 : vector<2x128xf32>
    %58 = arith.divf %56, %57 : vector<2x128xf32>
    %59 = vector.extract_strided_slice %46 {offsets = [0, 256], sizes = [2, 128], strides = [1, 1]} : vector<2x512xf32> to vector<2x128xf32>
    %60 = math.tanh %59 : vector<2x128xf32>
    %61 = vector.extract_strided_slice %46 {offsets = [0, 384], sizes = [2, 128], strides = [1, 1]} : vector<2x512xf32> to vector<2x128xf32>
    %62 = arith.negf %61 : vector<2x128xf32>
    %63 = math.exp %62 : vector<2x128xf32>
    %cst_25 = arith.constant 1.000000e+00 : f32
    %64 = vector.broadcast %cst_25 : f32 to vector<2x128xf32>
    %65 = arith.addf %64, %63 : vector<2x128xf32>
    %66 = arith.divf %64, %65 : vector<2x128xf32>
    %67 = arith.mulf %58, %10 : vector<2x128xf32>
    %68 = arith.mulf %52, %60 : vector<2x128xf32>
    %69 = arith.addf %67, %68 : vector<2x128xf32>
    %70 = math.tanh %69 : vector<2x128xf32>
    %71 = arith.mulf %66, %70 : vector<2x128xf32>
    %72 = arith.index_cast %c0_i32_16 : i32 to index
    %c0_26 = arith.constant 0 : index
    %c0_27 = arith.constant 0 : index
    %73 = vector.load %arg6[%72, %c0_26, %c0_27] : memref<8x2x128xf32, #tpu.memory_space<vmem>>, vector<1x2x128xf32>
    %74 = vector.shape_cast %73 : vector<1x2x128xf32> to vector<2x128xf32>
    %75 = vector.shape_cast %71 : vector<2x128xf32> to vector<1x2x128xf32>
    tpu.vector_store %arg6[%72, %c0_26, %c0_27], %75 {strides = array<i32>} : memref<8x2x128xf32, #tpu.memory_space<vmem>>, vector<1x2x128xf32>,
    %c1_i32 = arith.constant 1 : i32
    %76 = arith.index_cast %c1_i32 : i32 to index
    %c0_28 = arith.constant 0 : index
    %c0_29 = arith.constant 0 : index
    %77 = vector.load %arg1[%76, %c0_28, %c0_29] : memref<8x2x128xf32, #tpu.memory_space<vmem>>, vector<1x2x128xf32>
    %78 = vector.shape_cast %77 : vector<1x2x128xf32> to vector<2x128xf32>
    %79 = tpu.concatenate %78, %42 in 1 : vector<2x128xf32>, vector<2x128xf32> -> vector<2x256xf32>
    %cst_30 = arith.constant dense<0.000000e+00> : vector<2x512xf32>
    %80 = tpu.matmul %79, %3, %cst_30 {dimension_numbers = #tpu.dot_dimension_numbers<[1], [0], [0], [1], [0, 0, 1, 1], [], []>} : vector<2x256xf32>, vector<256x512xf32>, vector<2x512xf32> -> vector<2x512xf32>
    %81 = vector.broadcast %4 : vector<1x512xf32> to vector<2x512xf32>
    %82 = arith.addf %80, %81 : vector<2x512xf32>
    %83 = vector.extract_strided_slice %82 {offsets = [0, 0], sizes = [2, 128], strides = [1, 1]} : vector<2x512xf32> to vector<2x128xf32>
    %84 = arith.negf %83 : vector<2x128xf32>
    %85 = math.exp %84 : vector<2x128xf32>
    %cst_31 = arith.constant 1.000000e+00 : f32
    %86 = vector.broadcast %cst_31 : f32 to vector<2x128xf32>
    %87 = arith.addf %86, %85 : vector<2x128xf32>
    %88 = arith.divf %86, %87 : vector<2x128xf32>
    %89 = vector.extract_strided_slice %82 {offsets = [0, 128], sizes = [2, 128], strides = [1, 1]} : vector<2x512xf32> to vector<2x128xf32>
    %90 = arith.negf %89 : vector<2x128xf32>
    %91 = math.exp %90 : vector<2x128xf32>
    %cst_32 = arith.constant 1.000000e+00 : f32
    %92 = vector.broadcast %cst_32 : f32 to vector<2x128xf32>
    %93 = arith.addf %92, %91 : vector<2x128xf32>
    %94 = arith.divf %92, %93 : vector<2x128xf32>
    %95 = vector.extract_strided_slice %82 {offsets = [0, 256], sizes = [2, 128], strides = [1, 1]} : vector<2x512xf32> to vector<2x128xf32>
    %96 = math.tanh %95 : vector<2x128xf32>
    %97 = vector.extract_strided_slice %82 {offsets = [0, 384], sizes = [2, 128], strides = [1, 1]} : vector<2x512xf32> to vector<2x128xf32>
    %98 = arith.negf %97 : vector<2x128xf32>
    %99 = math.exp %98 : vector<2x128xf32>
    %cst_33 = arith.constant 1.000000e+00 : f32
    %100 = vector.broadcast %cst_33 : f32 to vector<2x128xf32>
    %101 = arith.addf %100, %99 : vector<2x128xf32>
    %102 = arith.divf %100, %101 : vector<2x128xf32>
    %103 = arith.mulf %94, %40 : vector<2x128xf32>
    %104 = arith.mulf %88, %96 : vector<2x128xf32>
    %105 = arith.addf %103, %104 : vector<2x128xf32>
    %106 = math.tanh %105 : vector<2x128xf32>
    %107 = arith.mulf %102, %106 : vector<2x128xf32>
    %108 = tpu.concatenate %107, %71 in 1 : vector<2x128xf32>, vector<2x128xf32> -> vector<2x256xf32>
    %cst_34 = arith.constant dense<0.000000e+00> : vector<2x512xf32>
    %109 = tpu.matmul %108, %5, %cst_34 {dimension_numbers = #tpu.dot_dimension_numbers<[1], [0], [0], [1], [0, 0, 1, 1], [], []>} : vector<2x256xf32>, vector<256x512xf32>, vector<2x512xf32> -> vector<2x512xf32>
    %110 = vector.broadcast %6 : vector<1x512xf32> to vector<2x512xf32>
    %111 = arith.addf %109, %110 : vector<2x512xf32>
    %112 = vector.extract_strided_slice %111 {offsets = [0, 0], sizes = [2, 128], strides = [1, 1]} : vector<2x512xf32> to vector<2x128xf32>
    %113 = arith.negf %112 : vector<2x128xf32>
    %114 = math.exp %113 : vector<2x128xf32>
    %cst_35 = arith.constant 1.000000e+00 : f32
    %115 = vector.broadcast %cst_35 : f32 to vector<2x128xf32>
    %116 = arith.addf %115, %114 : vector<2x128xf32>
    %117 = arith.divf %115, %116 : vector<2x128xf32>
    %118 = vector.extract_strided_slice %111 {offsets = [0, 128], sizes = [2, 128], strides = [1, 1]} : vector<2x512xf32> to vector<2x128xf32>
    %119 = arith.negf %118 : vector<2x128xf32>
    %120 = math.exp %119 : vector<2x128xf32>
    %cst_36 = arith.constant 1.000000e+00 : f32
    %121 = vector.broadcast %cst_36 : f32 to vector<2x128xf32>
    %122 = arith.addf %121, %120 : vector<2x128xf32>
    %123 = arith.divf %121, %122 : vector<2x128xf32>
    %124 = vector.extract_strided_slice %111 {offsets = [0, 256], sizes = [2, 128], strides = [1, 1]} : vector<2x512xf32> to vector<2x128xf32>
    %125 = math.tanh %124 : vector<2x128xf32>
    %126 = vector.extract_strided_slice %111 {offsets = [0, 384], sizes = [2, 128], strides = [1, 1]} : vector<2x512xf32> to vector<2x128xf32>
    %127 = arith.negf %126 : vector<2x128xf32>
    %128 = math.exp %127 : vector<2x128xf32>
    %cst_37 = arith.constant 1.000000e+00 : f32
    %129 = vector.broadcast %cst_37 : f32 to vector<2x128xf32>
    %130 = arith.addf %129, %128 : vector<2x128xf32>
    %131 = arith.divf %129, %130 : vector<2x128xf32>
    %132 = arith.mulf %123, %69 : vector<2x128xf32>
    %133 = arith.mulf %117, %125 : vector<2x128xf32>
    %134 = arith.addf %132, %133 : vector<2x128xf32>
    %135 = math.tanh %134 : vector<2x128xf32>
    %136 = arith.mulf %131, %135 : vector<2x128xf32>
    %137 = arith.index_cast %c1_i32 : i32 to index
    %c0_38 = arith.constant 0 : index
    %c0_39 = arith.constant 0 : index
    %138 = vector.load %arg6[%137, %c0_38, %c0_39] : memref<8x2x128xf32, #tpu.memory_space<vmem>>, vector<1x2x128xf32>
    %139 = vector.shape_cast %138 : vector<1x2x128xf32> to vector<2x128xf32>
    %140 = vector.shape_cast %136 : vector<2x128xf32> to vector<1x2x128xf32>
    tpu.vector_store %arg6[%137, %c0_38, %c0_39], %140 {strides = array<i32>} : memref<8x2x128xf32, #tpu.memory_space<vmem>>, vector<1x2x128xf32>,
    %c2_i32 = arith.constant 2 : i32
    %141 = arith.index_cast %c2_i32 : i32 to index
    %c0_40 = arith.constant 0 : index
    %c0_41 = arith.constant 0 : index
    %142 = vector.load %arg1[%141, %c0_40, %c0_41] : memref<8x2x128xf32, #tpu.memory_space<vmem>>, vector<1x2x128xf32>
    %143 = vector.shape_cast %142 : vector<1x2x128xf32> to vector<2x128xf32>
    %144 = tpu.concatenate %143, %107 in 1 : vector<2x128xf32>, vector<2x128xf32> -> vector<2x256xf32>
    %cst_42 = arith.constant dense<0.000000e+00> : vector<2x512xf32>
    %145 = tpu.matmul %144, %3, %cst_42 {dimension_numbers = #tpu.dot_dimension_numbers<[1], [0], [0], [1], [0, 0, 1, 1], [], []>} : vector<2x256xf32>, vector<256x512xf32>, vector<2x512xf32> -> vector<2x512xf32>
    %146 = vector.broadcast %4 : vector<1x512xf32> to vector<2x512xf32>
    %147 = arith.addf %145, %146 : vector<2x512xf32>
    %148 = vector.extract_strided_slice %147 {offsets = [0, 0], sizes = [2, 128], strides = [1, 1]} : vector<2x512xf32> to vector<2x128xf32>
    %149 = arith.negf %148 : vector<2x128xf32>
    %150 = math.exp %149 : vector<2x128xf32>
    %cst_43 = arith.constant 1.000000e+00 : f32
    %151 = vector.broadcast %cst_43 : f32 to vector<2x128xf32>
    %152 = arith.addf %151, %150 : vector<2x128xf32>
    %153 = arith.divf %151, %152 : vector<2x128xf32>
    %154 = vector.extract_strided_slice %147 {offsets = [0, 128], sizes = [2, 128], strides = [1, 1]} : vector<2x512xf32> to vector<2x128xf32>
    %155 = arith.negf %154 : vector<2x128xf32>
    %156 = math.exp %155 : vector<2x128xf32>
    %cst_44 = arith.constant 1.000000e+00 : f32
    %157 = vector.broadcast %cst_44 : f32 to vector<2x128xf32>
    %158 = arith.addf %157, %156 : vector<2x128xf32>
    %159 = arith.divf %157, %158 : vector<2x128xf32>
    %160 = vector.extract_strided_slice %147 {offsets = [0, 256], sizes = [2, 128], strides = [1, 1]} : vector<2x512xf32> to vector<2x128xf32>
    %161 = math.tanh %160 : vector<2x128xf32>
    %162 = vector.extract_strided_slice %147 {offsets = [0, 384], sizes = [2, 128], strides = [1, 1]} : vector<2x512xf32> to vector<2x128xf32>
    %163 = arith.negf %162 : vector<2x128xf32>
    %164 = math.exp %163 : vector<2x128xf32>
    %cst_45 = arith.constant 1.000000e+00 : f32
    %165 = vector.broadcast %cst_45 : f32 to vector<2x128xf32>
    %166 = arith.addf %165, %164 : vector<2x128xf32>
    %167 = arith.divf %165, %166 : vector<2x128xf32>
    %168 = arith.mulf %159, %105 : vector<2x128xf32>
    %169 = arith.mulf %153, %161 : vector<2x128xf32>
    %170 = arith.addf %168, %169 : vector<2x128xf32>
    %171 = math.tanh %170 : vector<2x128xf32>
    %172 = arith.mulf %167, %171 : vector<2x128xf32>
    %173 = tpu.concatenate %172, %136 in 1 : vector<2x128xf32>, vector<2x128xf32> -> vector<2x256xf32>
    %cst_46 = arith.constant dense<0.000000e+00> : vector<2x512xf32>
    %174 = tpu.matmul %173, %5, %cst_46 {dimension_numbers = #tpu.dot_dimension_numbers<[1], [0], [0], [1], [0, 0, 1, 1], [], []>} : vector<2x256xf32>, vector<256x512xf32>, vector<2x512xf32> -> vector<2x512xf32>
    %175 = vector.broadcast %6 : vector<1x512xf32> to vector<2x512xf32>
    %176 = arith.addf %174, %175 : vector<2x512xf32>
    %177 = vector.extract_strided_slice %176 {offsets = [0, 0], sizes = [2, 128], strides = [1, 1]} : vector<2x512xf32> to vector<2x128xf32>
    %178 = arith.negf %177 : vector<2x128xf32>
    %179 = math.exp %178 : vector<2x128xf32>
    %cst_47 = arith.constant 1.000000e+00 : f32
    %180 = vector.broadcast %cst_47 : f32 to vector<2x128xf32>
    %181 = arith.addf %180, %179 : vector<2x128xf32>
    %182 = arith.divf %180, %181 : vector<2x128xf32>
    %183 = vector.extract_strided_slice %176 {offsets = [0, 128], sizes = [2, 128], strides = [1, 1]} : vector<2x512xf32> to vector<2x128xf32>
    %184 = arith.negf %183 : vector<2x128xf32>
    %185 = math.exp %184 : vector<2x128xf32>
    %cst_48 = arith.constant 1.000000e+00 : f32
    %186 = vector.broadcast %cst_48 : f32 to vector<2x128xf32>
    %187 = arith.addf %186, %185 : vector<2x128xf32>
    %188 = arith.divf %186, %187 : vector<2x128xf32>
    %189 = vector.extract_strided_slice %176 {offsets = [0, 256], sizes = [2, 128], strides = [1, 1]} : vector<2x512xf32> to vector<2x128xf32>
    %190 = math.tanh %189 : vector<2x128xf32>
    %191 = vector.extract_strided_slice %176 {offsets = [0, 384], sizes = [2, 128], strides = [1, 1]} : vector<2x512xf32> to vector<2x128xf32>
    %192 = arith.negf %191 : vector<2x128xf32>
    %193 = math.exp %192 : vector<2x128xf32>
    %cst_49 = arith.constant 1.000000e+00 : f32
    %194 = vector.broadcast %cst_49 : f32 to vector<2x128xf32>
    %195 = arith.addf %194, %193 : vector<2x128xf32>
    %196 = arith.divf %194, %195 : vector<2x128xf32>
    %197 = arith.mulf %188, %134 : vector<2x128xf32>
    %198 = arith.mulf %182, %190 : vector<2x128xf32>
    %199 = arith.addf %197, %198 : vector<2x128xf32>
    %200 = math.tanh %199 : vector<2x128xf32>
    %201 = arith.mulf %196, %200 : vector<2x128xf32>
    %202 = arith.index_cast %c2_i32 : i32 to index
    %c0_50 = arith.constant 0 : index
    %c0_51 = arith.constant 0 : index
    %203 = vector.load %arg6[%202, %c0_50, %c0_51] : memref<8x2x128xf32, #tpu.memory_space<vmem>>, vector<1x2x128xf32>
    %204 = vector.shape_cast %203 : vector<1x2x128xf32> to vector<2x128xf32>
    %205 = vector.shape_cast %201 : vector<2x128xf32> to vector<1x2x128xf32>
    tpu.vector_store %arg6[%202, %c0_50, %c0_51], %205 {strides = array<i32>} : memref<8x2x128xf32, #tpu.memory_space<vmem>>, vector<1x2x128xf32>,
    %c3_i32 = arith.constant 3 : i32
    %206 = arith.index_cast %c3_i32 : i32 to index
    %c0_52 = arith.constant 0 : index
    %c0_53 = arith.constant 0 : index
    %207 = vector.load %arg1[%206, %c0_52, %c0_53] : memref<8x2x128xf32, #tpu.memory_space<vmem>>, vector<1x2x128xf32>
    %208 = vector.shape_cast %207 : vector<1x2x128xf32> to vector<2x128xf32>
    %209 = tpu.concatenate %208, %172 in 1 : vector<2x128xf32>, vector<2x128xf32> -> vector<2x256xf32>
    %cst_54 = arith.constant dense<0.000000e+00> : vector<2x512xf32>
    %210 = tpu.matmul %209, %3, %cst_54 {dimension_numbers = #tpu.dot_dimension_numbers<[1], [0], [0], [1], [0, 0, 1, 1], [], []>} : vector<2x256xf32>, vector<256x512xf32>, vector<2x512xf32> -> vector<2x512xf32>
    %211 = vector.broadcast %4 : vector<1x512xf32> to vector<2x512xf32>
    %212 = arith.addf %210, %211 : vector<2x512xf32>
    %213 = vector.extract_strided_slice %212 {offsets = [0, 0], sizes = [2, 128], strides = [1, 1]} : vector<2x512xf32> to vector<2x128xf32>
    %214 = arith.negf %213 : vector<2x128xf32>
    %215 = math.exp %214 : vector<2x128xf32>
    %cst_55 = arith.constant 1.000000e+00 : f32
    %216 = vector.broadcast %cst_55 : f32 to vector<2x128xf32>
    %217 = arith.addf %216, %215 : vector<2x128xf32>
    %218 = arith.divf %216, %217 : vector<2x128xf32>
    %219 = vector.extract_strided_slice %212 {offsets = [0, 128], sizes = [2, 128], strides = [1, 1]} : vector<2x512xf32> to vector<2x128xf32>
    %220 = arith.negf %219 : vector<2x128xf32>
    %221 = math.exp %220 : vector<2x128xf32>
    %cst_56 = arith.constant 1.000000e+00 : f32
    %222 = vector.broadcast %cst_56 : f32 to vector<2x128xf32>
    %223 = arith.addf %222, %221 : vector<2x128xf32>
    %224 = arith.divf %222, %223 : vector<2x128xf32>
    %225 = vector.extract_strided_slice %212 {offsets = [0, 256], sizes = [2, 128], strides = [1, 1]} : vector<2x512xf32> to vector<2x128xf32>
    %226 = math.tanh %225 : vector<2x128xf32>
    %227 = vector.extract_strided_slice %212 {offsets = [0, 384], sizes = [2, 128], strides = [1, 1]} : vector<2x512xf32> to vector<2x128xf32>
    %228 = arith.negf %227 : vector<2x128xf32>
    %229 = math.exp %228 : vector<2x128xf32>
    %cst_57 = arith.constant 1.000000e+00 : f32
    %230 = vector.broadcast %cst_57 : f32 to vector<2x128xf32>
    %231 = arith.addf %230, %229 : vector<2x128xf32>
    %232 = arith.divf %230, %231 : vector<2x128xf32>
    %233 = arith.mulf %224, %170 : vector<2x128xf32>
    %234 = arith.mulf %218, %226 : vector<2x128xf32>
    %235 = arith.addf %233, %234 : vector<2x128xf32>
    %236 = math.tanh %235 : vector<2x128xf32>
    %237 = arith.mulf %232, %236 : vector<2x128xf32>
    %238 = tpu.concatenate %237, %201 in 1 : vector<2x128xf32>, vector<2x128xf32> -> vector<2x256xf32>
    %cst_58 = arith.constant dense<0.000000e+00> : vector<2x512xf32>
    %239 = tpu.matmul %238, %5, %cst_58 {dimension_numbers = #tpu.dot_dimension_numbers<[1], [0], [0], [1], [0, 0, 1, 1], [], []>} : vector<2x256xf32>, vector<256x512xf32>, vector<2x512xf32> -> vector<2x512xf32>
    %240 = vector.broadcast %6 : vector<1x512xf32> to vector<2x512xf32>
    %241 = arith.addf %239, %240 : vector<2x512xf32>
    %242 = vector.extract_strided_slice %241 {offsets = [0, 0], sizes = [2, 128], strides = [1, 1]} : vector<2x512xf32> to vector<2x128xf32>
    %243 = arith.negf %242 : vector<2x128xf32>
    %244 = math.exp %243 : vector<2x128xf32>
    %cst_59 = arith.constant 1.000000e+00 : f32
    %245 = vector.broadcast %cst_59 : f32 to vector<2x128xf32>
    %246 = arith.addf %245, %244 : vector<2x128xf32>
    %247 = arith.divf %245, %246 : vector<2x128xf32>
    %248 = vector.extract_strided_slice %241 {offsets = [0, 128], sizes = [2, 128], strides = [1, 1]} : vector<2x512xf32> to vector<2x128xf32>
    %249 = arith.negf %248 : vector<2x128xf32>
    %250 = math.exp %249 : vector<2x128xf32>
    %cst_60 = arith.constant 1.000000e+00 : f32
    %251 = vector.broadcast %cst_60 : f32 to vector<2x128xf32>
    %252 = arith.addf %251, %250 : vector<2x128xf32>
    %253 = arith.divf %251, %252 : vector<2x128xf32>
    %254 = vector.extract_strided_slice %241 {offsets = [0, 256], sizes = [2, 128], strides = [1, 1]} : vector<2x512xf32> to vector<2x128xf32>
    %255 = math.tanh %254 : vector<2x128xf32>
    %256 = vector.extract_strided_slice %241 {offsets = [0, 384], sizes = [2, 128], strides = [1, 1]} : vector<2x512xf32> to vector<2x128xf32>
    %257 = arith.negf %256 : vector<2x128xf32>
    %258 = math.exp %257 : vector<2x128xf32>
    %cst_61 = arith.constant 1.000000e+00 : f32
    %259 = vector.broadcast %cst_61 : f32 to vector<2x128xf32>
    %260 = arith.addf %259, %258 : vector<2x128xf32>
    %261 = arith.divf %259, %260 : vector<2x128xf32>
    %262 = arith.mulf %253, %199 : vector<2x128xf32>
    %263 = arith.mulf %247, %255 : vector<2x128xf32>
    %264 = arith.addf %262, %263 : vector<2x128xf32>
    %265 = math.tanh %264 : vector<2x128xf32>
    %266 = arith.mulf %261, %265 : vector<2x128xf32>
    %267 = arith.index_cast %c3_i32 : i32 to index
    %c0_62 = arith.constant 0 : index
    %c0_63 = arith.constant 0 : index
    %268 = vector.load %arg6[%267, %c0_62, %c0_63] : memref<8x2x128xf32, #tpu.memory_space<vmem>>, vector<1x2x128xf32>
    %269 = vector.shape_cast %268 : vector<1x2x128xf32> to vector<2x128xf32>
    %270 = vector.shape_cast %266 : vector<2x128xf32> to vector<1x2x128xf32>
    tpu.vector_store %arg6[%267, %c0_62, %c0_63], %270 {strides = array<i32>} : memref<8x2x128xf32, #tpu.memory_space<vmem>>, vector<1x2x128xf32>,
    %c4_i32 = arith.constant 4 : i32
    %271 = arith.index_cast %c4_i32 : i32 to index
    %c0_64 = arith.constant 0 : index
    %c0_65 = arith.constant 0 : index
    %272 = vector.load %arg1[%271, %c0_64, %c0_65] : memref<8x2x128xf32, #tpu.memory_space<vmem>>, vector<1x2x128xf32>
    %273 = vector.shape_cast %272 : vector<1x2x128xf32> to vector<2x128xf32>
    %274 = tpu.concatenate %273, %237 in 1 : vector<2x128xf32>, vector<2x128xf32> -> vector<2x256xf32>
    %cst_66 = arith.constant dense<0.000000e+00> : vector<2x512xf32>
    %275 = tpu.matmul %274, %3, %cst_66 {dimension_numbers = #tpu.dot_dimension_numbers<[1], [0], [0], [1], [0, 0, 1, 1], [], []>} : vector<2x256xf32>, vector<256x512xf32>, vector<2x512xf32> -> vector<2x512xf32>
    %276 = vector.broadcast %4 : vector<1x512xf32> to vector<2x512xf32>
    %277 = arith.addf %275, %276 : vector<2x512xf32>
    %278 = vector.extract_strided_slice %277 {offsets = [0, 0], sizes = [2, 128], strides = [1, 1]} : vector<2x512xf32> to vector<2x128xf32>
    %279 = arith.negf %278 : vector<2x128xf32>
    %280 = math.exp %279 : vector<2x128xf32>
    %cst_67 = arith.constant 1.000000e+00 : f32
    %281 = vector.broadcast %cst_67 : f32 to vector<2x128xf32>
    %282 = arith.addf %281, %280 : vector<2x128xf32>
    %283 = arith.divf %281, %282 : vector<2x128xf32>
    %284 = vector.extract_strided_slice %277 {offsets = [0, 128], sizes = [2, 128], strides = [1, 1]} : vector<2x512xf32> to vector<2x128xf32>
    %285 = arith.negf %284 : vector<2x128xf32>
    %286 = math.exp %285 : vector<2x128xf32>
    %cst_68 = arith.constant 1.000000e+00 : f32
    %287 = vector.broadcast %cst_68 : f32 to vector<2x128xf32>
    %288 = arith.addf %287, %286 : vector<2x128xf32>
    %289 = arith.divf %287, %288 : vector<2x128xf32>
    %290 = vector.extract_strided_slice %277 {offsets = [0, 256], sizes = [2, 128], strides = [1, 1]} : vector<2x512xf32> to vector<2x128xf32>
    %291 = math.tanh %290 : vector<2x128xf32>
    %292 = vector.extract_strided_slice %277 {offsets = [0, 384], sizes = [2, 128], strides = [1, 1]} : vector<2x512xf32> to vector<2x128xf32>
    %293 = arith.negf %292 : vector<2x128xf32>
    %294 = math.exp %293 : vector<2x128xf32>
    %cst_69 = arith.constant 1.000000e+00 : f32
    %295 = vector.broadcast %cst_69 : f32 to vector<2x128xf32>
    %296 = arith.addf %295, %294 : vector<2x128xf32>
    %297 = arith.divf %295, %296 : vector<2x128xf32>
    %298 = arith.mulf %289, %235 : vector<2x128xf32>
    %299 = arith.mulf %283, %291 : vector<2x128xf32>
    %300 = arith.addf %298, %299 : vector<2x128xf32>
    %301 = math.tanh %300 : vector<2x128xf32>
    %302 = arith.mulf %297, %301 : vector<2x128xf32>
    %303 = tpu.concatenate %302, %266 in 1 : vector<2x128xf32>, vector<2x128xf32> -> vector<2x256xf32>
    %cst_70 = arith.constant dense<0.000000e+00> : vector<2x512xf32>
    %304 = tpu.matmul %303, %5, %cst_70 {dimension_numbers = #tpu.dot_dimension_numbers<[1], [0], [0], [1], [0, 0, 1, 1], [], []>} : vector<2x256xf32>, vector<256x512xf32>, vector<2x512xf32> -> vector<2x512xf32>
    %305 = vector.broadcast %6 : vector<1x512xf32> to vector<2x512xf32>
    %306 = arith.addf %304, %305 : vector<2x512xf32>
    %307 = vector.extract_strided_slice %306 {offsets = [0, 0], sizes = [2, 128], strides = [1, 1]} : vector<2x512xf32> to vector<2x128xf32>
    %308 = arith.negf %307 : vector<2x128xf32>
    %309 = math.exp %308 : vector<2x128xf32>
    %cst_71 = arith.constant 1.000000e+00 : f32
    %310 = vector.broadcast %cst_71 : f32 to vector<2x128xf32>
    %311 = arith.addf %310, %309 : vector<2x128xf32>
    %312 = arith.divf %310, %311 : vector<2x128xf32>
    %313 = vector.extract_strided_slice %306 {offsets = [0, 128], sizes = [2, 128], strides = [1, 1]} : vector<2x512xf32> to vector<2x128xf32>
    %314 = arith.negf %313 : vector<2x128xf32>
    %315 = math.exp %314 : vector<2x128xf32>
    %cst_72 = arith.constant 1.000000e+00 : f32
    %316 = vector.broadcast %cst_72 : f32 to vector<2x128xf32>
    %317 = arith.addf %316, %315 : vector<2x128xf32>
    %318 = arith.divf %316, %317 : vector<2x128xf32>
    %319 = vector.extract_strided_slice %306 {offsets = [0, 256], sizes = [2, 128], strides = [1, 1]} : vector<2x512xf32> to vector<2x128xf32>
    %320 = math.tanh %319 : vector<2x128xf32>
    %321 = vector.extract_strided_slice %306 {offsets = [0, 384], sizes = [2, 128], strides = [1, 1]} : vector<2x512xf32> to vector<2x128xf32>
    %322 = arith.negf %321 : vector<2x128xf32>
    %323 = math.exp %322 : vector<2x128xf32>
    %cst_73 = arith.constant 1.000000e+00 : f32
    %324 = vector.broadcast %cst_73 : f32 to vector<2x128xf32>
    %325 = arith.addf %324, %323 : vector<2x128xf32>
    %326 = arith.divf %324, %325 : vector<2x128xf32>
    %327 = arith.mulf %318, %264 : vector<2x128xf32>
    %328 = arith.mulf %312, %320 : vector<2x128xf32>
    %329 = arith.addf %327, %328 : vector<2x128xf32>
    %330 = math.tanh %329 : vector<2x128xf32>
    %331 = arith.mulf %326, %330 : vector<2x128xf32>
    %332 = arith.index_cast %c4_i32 : i32 to index
    %c0_74 = arith.constant 0 : index
    %c0_75 = arith.constant 0 : index
    %333 = vector.load %arg6[%332, %c0_74, %c0_75] : memref<8x2x128xf32, #tpu.memory_space<vmem>>, vector<1x2x128xf32>
    %334 = vector.shape_cast %333 : vector<1x2x128xf32> to vector<2x128xf32>
    %335 = vector.shape_cast %331 : vector<2x128xf32> to vector<1x2x128xf32>
    tpu.vector_store %arg6[%332, %c0_74, %c0_75], %335 {strides = array<i32>} : memref<8x2x128xf32, #tpu.memory_space<vmem>>, vector<1x2x128xf32>,
    %c5_i32 = arith.constant 5 : i32
    %336 = arith.index_cast %c5_i32 : i32 to index
    %c0_76 = arith.constant 0 : index
    %c0_77 = arith.constant 0 : index
    %337 = vector.load %arg1[%336, %c0_76, %c0_77] : memref<8x2x128xf32, #tpu.memory_space<vmem>>, vector<1x2x128xf32>
    %338 = vector.shape_cast %337 : vector<1x2x128xf32> to vector<2x128xf32>
    %339 = tpu.concatenate %338, %302 in 1 : vector<2x128xf32>, vector<2x128xf32> -> vector<2x256xf32>
    %cst_78 = arith.constant dense<0.000000e+00> : vector<2x512xf32>
    %340 = tpu.matmul %339, %3, %cst_78 {dimension_numbers = #tpu.dot_dimension_numbers<[1], [0], [0], [1], [0, 0, 1, 1], [], []>} : vector<2x256xf32>, vector<256x512xf32>, vector<2x512xf32> -> vector<2x512xf32>
    %341 = vector.broadcast %4 : vector<1x512xf32> to vector<2x512xf32>
    %342 = arith.addf %340, %341 : vector<2x512xf32>
    %343 = vector.extract_strided_slice %342 {offsets = [0, 0], sizes = [2, 128], strides = [1, 1]} : vector<2x512xf32> to vector<2x128xf32>
    %344 = arith.negf %343 : vector<2x128xf32>
    %345 = math.exp %344 : vector<2x128xf32>
    %cst_79 = arith.constant 1.000000e+00 : f32
    %346 = vector.broadcast %cst_79 : f32 to vector<2x128xf32>
    %347 = arith.addf %346, %345 : vector<2x128xf32>
    %348 = arith.divf %346, %347 : vector<2x128xf32>
    %349 = vector.extract_strided_slice %342 {offsets = [0, 128], sizes = [2, 128], strides = [1, 1]} : vector<2x512xf32> to vector<2x128xf32>
    %350 = arith.negf %349 : vector<2x128xf32>
    %351 = math.exp %350 : vector<2x128xf32>
    %cst_80 = arith.constant 1.000000e+00 : f32
    %352 = vector.broadcast %cst_80 : f32 to vector<2x128xf32>
    %353 = arith.addf %352, %351 : vector<2x128xf32>
    %354 = arith.divf %352, %353 : vector<2x128xf32>
    %355 = vector.extract_strided_slice %342 {offsets = [0, 256], sizes = [2, 128], strides = [1, 1]} : vector<2x512xf32> to vector<2x128xf32>
    %356 = math.tanh %355 : vector<2x128xf32>
    %357 = vector.extract_strided_slice %342 {offsets = [0, 384], sizes = [2, 128], strides = [1, 1]} : vector<2x512xf32> to vector<2x128xf32>
    %358 = arith.negf %357 : vector<2x128xf32>
    %359 = math.exp %358 : vector<2x128xf32>
    %cst_81 = arith.constant 1.000000e+00 : f32
    %360 = vector.broadcast %cst_81 : f32 to vector<2x128xf32>
    %361 = arith.addf %360, %359 : vector<2x128xf32>
    %362 = arith.divf %360, %361 : vector<2x128xf32>
    %363 = arith.mulf %354, %300 : vector<2x128xf32>
    %364 = arith.mulf %348, %356 : vector<2x128xf32>
    %365 = arith.addf %363, %364 : vector<2x128xf32>
    %366 = math.tanh %365 : vector<2x128xf32>
    %367 = arith.mulf %362, %366 : vector<2x128xf32>
    %368 = tpu.concatenate %367, %331 in 1 : vector<2x128xf32>, vector<2x128xf32> -> vector<2x256xf32>
    %cst_82 = arith.constant dense<0.000000e+00> : vector<2x512xf32>
    %369 = tpu.matmul %368, %5, %cst_82 {dimension_numbers = #tpu.dot_dimension_numbers<[1], [0], [0], [1], [0, 0, 1, 1], [], []>} : vector<2x256xf32>, vector<256x512xf32>, vector<2x512xf32> -> vector<2x512xf32>
    %370 = vector.broadcast %6 : vector<1x512xf32> to vector<2x512xf32>
    %371 = arith.addf %369, %370 : vector<2x512xf32>
    %372 = vector.extract_strided_slice %371 {offsets = [0, 0], sizes = [2, 128], strides = [1, 1]} : vector<2x512xf32> to vector<2x128xf32>
    %373 = arith.negf %372 : vector<2x128xf32>
    %374 = math.exp %373 : vector<2x128xf32>
    %cst_83 = arith.constant 1.000000e+00 : f32
    %375 = vector.broadcast %cst_83 : f32 to vector<2x128xf32>
    %376 = arith.addf %375, %374 : vector<2x128xf32>
    %377 = arith.divf %375, %376 : vector<2x128xf32>
    %378 = vector.extract_strided_slice %371 {offsets = [0, 128], sizes = [2, 128], strides = [1, 1]} : vector<2x512xf32> to vector<2x128xf32>
    %379 = arith.negf %378 : vector<2x128xf32>
    %380 = math.exp %379 : vector<2x128xf32>
    %cst_84 = arith.constant 1.000000e+00 : f32
    %381 = vector.broadcast %cst_84 : f32 to vector<2x128xf32>
    %382 = arith.addf %381, %380 : vector<2x128xf32>
    %383 = arith.divf %381, %382 : vector<2x128xf32>
    %384 = vector.extract_strided_slice %371 {offsets = [0, 256], sizes = [2, 128], strides = [1, 1]} : vector<2x512xf32> to vector<2x128xf32>
    %385 = math.tanh %384 : vector<2x128xf32>
    %386 = vector.extract_strided_slice %371 {offsets = [0, 384], sizes = [2, 128], strides = [1, 1]} : vector<2x512xf32> to vector<2x128xf32>
    %387 = arith.negf %386 : vector<2x128xf32>
    %388 = math.exp %387 : vector<2x128xf32>
    %cst_85 = arith.constant 1.000000e+00 : f32
    %389 = vector.broadcast %cst_85 : f32 to vector<2x128xf32>
    %390 = arith.addf %389, %388 : vector<2x128xf32>
    %391 = arith.divf %389, %390 : vector<2x128xf32>
    %392 = arith.mulf %383, %329 : vector<2x128xf32>
    %393 = arith.mulf %377, %385 : vector<2x128xf32>
    %394 = arith.addf %392, %393 : vector<2x128xf32>
    %395 = math.tanh %394 : vector<2x128xf32>
    %396 = arith.mulf %391, %395 : vector<2x128xf32>
    %397 = arith.index_cast %c5_i32 : i32 to index
    %c0_86 = arith.constant 0 : index
    %c0_87 = arith.constant 0 : index
    %398 = vector.load %arg6[%397, %c0_86, %c0_87] : memref<8x2x128xf32, #tpu.memory_space<vmem>>, vector<1x2x128xf32>
    %399 = vector.shape_cast %398 : vector<1x2x128xf32> to vector<2x128xf32>
    %400 = vector.shape_cast %396 : vector<2x128xf32> to vector<1x2x128xf32>
    tpu.vector_store %arg6[%397, %c0_86, %c0_87], %400 {strides = array<i32>} : memref<8x2x128xf32, #tpu.memory_space<vmem>>, vector<1x2x128xf32>,
    %c6_i32 = arith.constant 6 : i32
    %401 = arith.index_cast %c6_i32 : i32 to index
    %c0_88 = arith.constant 0 : index
    %c0_89 = arith.constant 0 : index
    %402 = vector.load %arg1[%401, %c0_88, %c0_89] : memref<8x2x128xf32, #tpu.memory_space<vmem>>, vector<1x2x128xf32>
    %403 = vector.shape_cast %402 : vector<1x2x128xf32> to vector<2x128xf32>
    %404 = tpu.concatenate %403, %367 in 1 : vector<2x128xf32>, vector<2x128xf32> -> vector<2x256xf32>
    %cst_90 = arith.constant dense<0.000000e+00> : vector<2x512xf32>
    %405 = tpu.matmul %404, %3, %cst_90 {dimension_numbers = #tpu.dot_dimension_numbers<[1], [0], [0], [1], [0, 0, 1, 1], [], []>} : vector<2x256xf32>, vector<256x512xf32>, vector<2x512xf32> -> vector<2x512xf32>
    %406 = vector.broadcast %4 : vector<1x512xf32> to vector<2x512xf32>
    %407 = arith.addf %405, %406 : vector<2x512xf32>
    %408 = vector.extract_strided_slice %407 {offsets = [0, 0], sizes = [2, 128], strides = [1, 1]} : vector<2x512xf32> to vector<2x128xf32>
    %409 = arith.negf %408 : vector<2x128xf32>
    %410 = math.exp %409 : vector<2x128xf32>
    %cst_91 = arith.constant 1.000000e+00 : f32
    %411 = vector.broadcast %cst_91 : f32 to vector<2x128xf32>
    %412 = arith.addf %411, %410 : vector<2x128xf32>
    %413 = arith.divf %411, %412 : vector<2x128xf32>
    %414 = vector.extract_strided_slice %407 {offsets = [0, 128], sizes = [2, 128], strides = [1, 1]} : vector<2x512xf32> to vector<2x128xf32>
    %415 = arith.negf %414 : vector<2x128xf32>
    %416 = math.exp %415 : vector<2x128xf32>
    %cst_92 = arith.constant 1.000000e+00 : f32
    %417 = vector.broadcast %cst_92 : f32 to vector<2x128xf32>
    %418 = arith.addf %417, %416 : vector<2x128xf32>
    %419 = arith.divf %417, %418 : vector<2x128xf32>
    %420 = vector.extract_strided_slice %407 {offsets = [0, 256], sizes = [2, 128], strides = [1, 1]} : vector<2x512xf32> to vector<2x128xf32>
    %421 = math.tanh %420 : vector<2x128xf32>
    %422 = vector.extract_strided_slice %407 {offsets = [0, 384], sizes = [2, 128], strides = [1, 1]} : vector<2x512xf32> to vector<2x128xf32>
    %423 = arith.negf %422 : vector<2x128xf32>
    %424 = math.exp %423 : vector<2x128xf32>
    %cst_93 = arith.constant 1.000000e+00 : f32
    %425 = vector.broadcast %cst_93 : f32 to vector<2x128xf32>
    %426 = arith.addf %425, %424 : vector<2x128xf32>
    %427 = arith.divf %425, %426 : vector<2x128xf32>
    %428 = arith.mulf %419, %365 : vector<2x128xf32>
    %429 = arith.mulf %413, %421 : vector<2x128xf32>
    %430 = arith.addf %428, %429 : vector<2x128xf32>
    %431 = math.tanh %430 : vector<2x128xf32>
    %432 = arith.mulf %427, %431 : vector<2x128xf32>
    %433 = tpu.concatenate %432, %396 in 1 : vector<2x128xf32>, vector<2x128xf32> -> vector<2x256xf32>
    %cst_94 = arith.constant dense<0.000000e+00> : vector<2x512xf32>
    %434 = tpu.matmul %433, %5, %cst_94 {dimension_numbers = #tpu.dot_dimension_numbers<[1], [0], [0], [1], [0, 0, 1, 1], [], []>} : vector<2x256xf32>, vector<256x512xf32>, vector<2x512xf32> -> vector<2x512xf32>
    %435 = vector.broadcast %6 : vector<1x512xf32> to vector<2x512xf32>
    %436 = arith.addf %434, %435 : vector<2x512xf32>
    %437 = vector.extract_strided_slice %436 {offsets = [0, 0], sizes = [2, 128], strides = [1, 1]} : vector<2x512xf32> to vector<2x128xf32>
    %438 = arith.negf %437 : vector<2x128xf32>
    %439 = math.exp %438 : vector<2x128xf32>
    %cst_95 = arith.constant 1.000000e+00 : f32
    %440 = vector.broadcast %cst_95 : f32 to vector<2x128xf32>
    %441 = arith.addf %440, %439 : vector<2x128xf32>
    %442 = arith.divf %440, %441 : vector<2x128xf32>
    %443 = vector.extract_strided_slice %436 {offsets = [0, 128], sizes = [2, 128], strides = [1, 1]} : vector<2x512xf32> to vector<2x128xf32>
    %444 = arith.negf %443 : vector<2x128xf32>
    %445 = math.exp %444 : vector<2x128xf32>
    %cst_96 = arith.constant 1.000000e+00 : f32
    %446 = vector.broadcast %cst_96 : f32 to vector<2x128xf32>
    %447 = arith.addf %446, %445 : vector<2x128xf32>
    %448 = arith.divf %446, %447 : vector<2x128xf32>
    %449 = vector.extract_strided_slice %436 {offsets = [0, 256], sizes = [2, 128], strides = [1, 1]} : vector<2x512xf32> to vector<2x128xf32>
    %450 = math.tanh %449 : vector<2x128xf32>
    %451 = vector.extract_strided_slice %436 {offsets = [0, 384], sizes = [2, 128], strides = [1, 1]} : vector<2x512xf32> to vector<2x128xf32>
    %452 = arith.negf %451 : vector<2x128xf32>
    %453 = math.exp %452 : vector<2x128xf32>
    %cst_97 = arith.constant 1.000000e+00 : f32
    %454 = vector.broadcast %cst_97 : f32 to vector<2x128xf32>
    %455 = arith.addf %454, %453 : vector<2x128xf32>
    %456 = arith.divf %454, %455 : vector<2x128xf32>
    %457 = arith.mulf %448, %394 : vector<2x128xf32>
    %458 = arith.mulf %442, %450 : vector<2x128xf32>
    %459 = arith.addf %457, %458 : vector<2x128xf32>
    %460 = math.tanh %459 : vector<2x128xf32>
    %461 = arith.mulf %456, %460 : vector<2x128xf32>
    %462 = arith.index_cast %c6_i32 : i32 to index
    %c0_98 = arith.constant 0 : index
    %c0_99 = arith.constant 0 : index
    %463 = vector.load %arg6[%462, %c0_98, %c0_99] : memref<8x2x128xf32, #tpu.memory_space<vmem>>, vector<1x2x128xf32>
    %464 = vector.shape_cast %463 : vector<1x2x128xf32> to vector<2x128xf32>
    %465 = vector.shape_cast %461 : vector<2x128xf32> to vector<1x2x128xf32>
    tpu.vector_store %arg6[%462, %c0_98, %c0_99], %465 {strides = array<i32>} : memref<8x2x128xf32, #tpu.memory_space<vmem>>, vector<1x2x128xf32>,
    %c7_i32 = arith.constant 7 : i32
    %466 = arith.index_cast %c7_i32 : i32 to index
    %c0_100 = arith.constant 0 : index
    %c0_101 = arith.constant 0 : index
    %467 = vector.load %arg1[%466, %c0_100, %c0_101] : memref<8x2x128xf32, #tpu.memory_space<vmem>>, vector<1x2x128xf32>
    %468 = vector.shape_cast %467 : vector<1x2x128xf32> to vector<2x128xf32>
    %469 = tpu.concatenate %468, %432 in 1 : vector<2x128xf32>, vector<2x128xf32> -> vector<2x256xf32>
    %cst_102 = arith.constant dense<0.000000e+00> : vector<2x512xf32>
    %470 = tpu.matmul %469, %3, %cst_102 {dimension_numbers = #tpu.dot_dimension_numbers<[1], [0], [0], [1], [0, 0, 1, 1], [], []>} : vector<2x256xf32>, vector<256x512xf32>, vector<2x512xf32> -> vector<2x512xf32>
    %471 = vector.broadcast %4 : vector<1x512xf32> to vector<2x512xf32>
    %472 = arith.addf %470, %471 : vector<2x512xf32>
    %473 = vector.extract_strided_slice %472 {offsets = [0, 0], sizes = [2, 128], strides = [1, 1]} : vector<2x512xf32> to vector<2x128xf32>
    %474 = arith.negf %473 : vector<2x128xf32>
    %475 = math.exp %474 : vector<2x128xf32>
    %cst_103 = arith.constant 1.000000e+00 : f32
    %476 = vector.broadcast %cst_103 : f32 to vector<2x128xf32>
    %477 = arith.addf %476, %475 : vector<2x128xf32>
    %478 = arith.divf %476, %477 : vector<2x128xf32>
    %479 = vector.extract_strided_slice %472 {offsets = [0, 128], sizes = [2, 128], strides = [1, 1]} : vector<2x512xf32> to vector<2x128xf32>
    %480 = arith.negf %479 : vector<2x128xf32>
    %481 = math.exp %480 : vector<2x128xf32>
    %cst_104 = arith.constant 1.000000e+00 : f32
    %482 = vector.broadcast %cst_104 : f32 to vector<2x128xf32>
    %483 = arith.addf %482, %481 : vector<2x128xf32>
    %484 = arith.divf %482, %483 : vector<2x128xf32>
    %485 = vector.extract_strided_slice %472 {offsets = [0, 256], sizes = [2, 128], strides = [1, 1]} : vector<2x512xf32> to vector<2x128xf32>
    %486 = math.tanh %485 : vector<2x128xf32>
    %487 = vector.extract_strided_slice %472 {offsets = [0, 384], sizes = [2, 128], strides = [1, 1]} : vector<2x512xf32> to vector<2x128xf32>
    %488 = arith.negf %487 : vector<2x128xf32>
    %489 = math.exp %488 : vector<2x128xf32>
    %cst_105 = arith.constant 1.000000e+00 : f32
    %490 = vector.broadcast %cst_105 : f32 to vector<2x128xf32>
    %491 = arith.addf %490, %489 : vector<2x128xf32>
    %492 = arith.divf %490, %491 : vector<2x128xf32>
    %493 = arith.mulf %484, %430 : vector<2x128xf32>
    %494 = arith.mulf %478, %486 : vector<2x128xf32>
    %495 = arith.addf %493, %494 : vector<2x128xf32>
    %496 = math.tanh %495 : vector<2x128xf32>
    %497 = arith.mulf %492, %496 : vector<2x128xf32>
    %498 = tpu.concatenate %497, %461 in 1 : vector<2x128xf32>, vector<2x128xf32> -> vector<2x256xf32>
    %cst_106 = arith.constant dense<0.000000e+00> : vector<2x512xf32>
    %499 = tpu.matmul %498, %5, %cst_106 {dimension_numbers = #tpu.dot_dimension_numbers<[1], [0], [0], [1], [0, 0, 1, 1], [], []>} : vector<2x256xf32>, vector<256x512xf32>, vector<2x512xf32> -> vector<2x512xf32>
    %500 = vector.broadcast %6 : vector<1x512xf32> to vector<2x512xf32>
    %501 = arith.addf %499, %500 : vector<2x512xf32>
    %502 = vector.extract_strided_slice %501 {offsets = [0, 0], sizes = [2, 128], strides = [1, 1]} : vector<2x512xf32> to vector<2x128xf32>
    %503 = arith.negf %502 : vector<2x128xf32>
    %504 = math.exp %503 : vector<2x128xf32>
    %cst_107 = arith.constant 1.000000e+00 : f32
    %505 = vector.broadcast %cst_107 : f32 to vector<2x128xf32>
    %506 = arith.addf %505, %504 : vector<2x128xf32>
    %507 = arith.divf %505, %506 : vector<2x128xf32>
    %508 = vector.extract_strided_slice %501 {offsets = [0, 128], sizes = [2, 128], strides = [1, 1]} : vector<2x512xf32> to vector<2x128xf32>
    %509 = arith.negf %508 : vector<2x128xf32>
    %510 = math.exp %509 : vector<2x128xf32>
    %cst_108 = arith.constant 1.000000e+00 : f32
    %511 = vector.broadcast %cst_108 : f32 to vector<2x128xf32>
    %512 = arith.addf %511, %510 : vector<2x128xf32>
    %513 = arith.divf %511, %512 : vector<2x128xf32>
    %514 = vector.extract_strided_slice %501 {offsets = [0, 256], sizes = [2, 128], strides = [1, 1]} : vector<2x512xf32> to vector<2x128xf32>
    %515 = math.tanh %514 : vector<2x128xf32>
    %516 = vector.extract_strided_slice %501 {offsets = [0, 384], sizes = [2, 128], strides = [1, 1]} : vector<2x512xf32> to vector<2x128xf32>
    %517 = arith.negf %516 : vector<2x128xf32>
    %518 = math.exp %517 : vector<2x128xf32>
    %cst_109 = arith.constant 1.000000e+00 : f32
    %519 = vector.broadcast %cst_109 : f32 to vector<2x128xf32>
    %520 = arith.addf %519, %518 : vector<2x128xf32>
    %521 = arith.divf %519, %520 : vector<2x128xf32>
    %522 = arith.mulf %513, %459 : vector<2x128xf32>
    %523 = arith.mulf %507, %515 : vector<2x128xf32>
    %524 = arith.addf %522, %523 : vector<2x128xf32>
    %525 = math.tanh %524 : vector<2x128xf32>
    %526 = arith.mulf %521, %525 : vector<2x128xf32>
    %527 = arith.index_cast %c7_i32 : i32 to index
    %c0_110 = arith.constant 0 : index
    %c0_111 = arith.constant 0 : index
    %528 = vector.load %arg6[%527, %c0_110, %c0_111] : memref<8x2x128xf32, #tpu.memory_space<vmem>>, vector<1x2x128xf32>
    %529 = vector.shape_cast %528 : vector<1x2x128xf32> to vector<2x128xf32>
    %530 = vector.shape_cast %526 : vector<2x128xf32> to vector<1x2x128xf32>
    tpu.vector_store %arg6[%527, %c0_110, %c0_111], %530 {strides = array<i32>} : memref<8x2x128xf32, #tpu.memory_space<vmem>>, vector<1x2x128xf32>,
    %c8_i32 = arith.constant 8 : i32
    %c0_112 = arith.constant 0 : index
    %c0_113 = arith.constant 0 : index
    %531 = vector.load %arg7[%c0_112, %c0_113] : memref<2x128xf32, #tpu.memory_space<vmem>>, vector<2x128xf32>
    tpu.vector_store %arg7[%c0_112, %c0_113], %497 {strides = array<i32>} : memref<2x128xf32, #tpu.memory_space<vmem>>, vector<2x128xf32>,
    %c0_114 = arith.constant 0 : index
    %c0_115 = arith.constant 0 : index
    %532 = vector.load %arg8[%c0_114, %c0_115] : memref<2x128xf32, #tpu.memory_space<vmem>>, vector<2x128xf32>
    tpu.vector_store %arg8[%c0_114, %c0_115], %495 {strides = array<i32>} : memref<2x128xf32, #tpu.memory_space<vmem>>, vector<2x128xf32>,
    %c0_116 = arith.constant 0 : index
    %c0_117 = arith.constant 0 : index
    %533 = vector.load %arg9[%c0_116, %c0_117] : memref<2x128xf32, #tpu.memory_space<vmem>>, vector<2x128xf32>
    tpu.vector_store %arg9[%c0_116, %c0_117], %526 {strides = array<i32>} : memref<2x128xf32, #tpu.memory_space<vmem>>, vector<2x128xf32>,
    %c0_118 = arith.constant 0 : index
    %c0_119 = arith.constant 0 : index
    %534 = vector.load %arg10[%c0_118, %c0_119] : memref<2x128xf32, #tpu.memory_space<vmem>>, vector<2x128xf32>
    tpu.vector_store %arg10[%c0_118, %c0_119], %524 {strides = array<i32>} : memref<2x128xf32, #tpu.memory_space<vmem>>, vector<2x128xf32>,
    return
  }
  func.func @transform_0(%arg0: i32) -> (i32, i32, i32) {
    %c0_i32 = arith.constant 0 : i32
    %c0_i32_0 = arith.constant 0 : i32
    %c0_i32_1 = arith.constant 0 : i32
    return %arg0, %c0_i32, %c0_i32_0 : i32, i32, i32
  }
  func.func @transform_1(%arg0: i32) -> (i32, i32) {
    %c0_i32 = arith.constant 0 : i32
    %c0_i32_0 = arith.constant 0 : i32
    %c0_i32_1 = arith.constant 0 : i32
    return %c0_i32, %c0_i32_0 : i32, i32
  }
  func.func @transform_2(%arg0: i32) -> (i32, i32) {
    %c0_i32 = arith.constant 0 : i32
    %c0_i32_0 = arith.constant 0 : i32
    %c0_i32_1 = arith.constant 0 : i32
    return %c0_i32, %c0_i32_0 : i32, i32
  }
  func.func @transform_3(%arg0: i32) -> (i32, i32) {
    %c0_i32 = arith.constant 0 : i32
    %c0_i32_0 = arith.constant 0 : i32
    %c0_i32_1 = arith.constant 0 : i32
    return %c0_i32, %c0_i32_0 : i32, i32
  }
  func.func @transform_4(%arg0: i32) -> (i32, i32) {
    %c0_i32 = arith.constant 0 : i32
    %c0_i32_0 = arith.constant 0 : i32
    %c0_i32_1 = arith.constant 0 : i32
    return %c0_i32, %c0_i32_0 : i32, i32
  }
  func.func @transform_5(%arg0: i32) -> (i32, i32, i32) {
    %c0_i32 = arith.constant 0 : i32
    %c0_i32_0 = arith.constant 0 : i32
    %c0_i32_1 = arith.constant 0 : i32
    return %arg0, %c0_i32, %c0_i32_0 : i32, i32, i32
  }
}

</mosaic_0001>

<bundles_post_ra>
// kernel: tpu_custom_call.1
= control target key start
LH: loop header
LB: loop body
LE: loop exit
PB: predicated region body
PF: predicated region fallthrough
CT: control target
= control target key end

     0   :  { %10 = vsyncpa [#allocation7], 0  ;;  %s9716_s0 = inlined_call_operand.hbm [shape: f32[8,2,128], index: 0, kind: input, shape index: {}]   ;;  %s9717_s1 = inlined_call_operand.hbm [shape: f32[256,512], index: 1, kind: input, shape index: {}]   ;;  %s9718_s2 = inlined_call_operand.hbm [shape: f32[1,512], index: 2, kind: input, shape index: {}]   ;;  %s9719_s3 = inlined_call_operand.hbm [shape: f32[256,512], index: 3, kind: input, shape index: {}]   ;;  %s9720_s4 = inlined_call_operand.hbm [shape: f32[1,512], index: 4, kind: input, shape index: {}]   ;;  %s9721_s5 = inlined_call_operand.hbm [shape: f32[8,2,128], index: 5, kind: output, shape index: {}]  }
   0x1   :  { %11 = vsyncpa [#allocation10], 0 }
   0x2   :  { %12 = vsyncpa [#allocation13], 0  ;;  %s31_s20 = sshll.u32 %s9717_s1, 4  ;;  %s32_s20 = int_to_ptr.hbm [resolvable:$true] %s31_s20 }
   0x3   :  { %13 = vsyncpa [#allocation8], 0  ;;  %s5304_s21 = smov [#allocation9]   ;;  %s55_s25 = sshll.u32 %s9719_s3, 4  ;;  %s56_s25 = int_to_ptr.hbm [resolvable:$true] %s55_s25 }
   0x4   :  { %s33_s22 = sshll.u32 %s5304_s21, 4  ;;  %s5305_s26 = smov 512   ;;  %s34_s22 = int_to_ptr.vmem [resolvable:$true] %s33_s22 }
   0x5   :  { %s5306_s27 = smov 32   ;;  %s5307_s28 = smov [#allocation12]  }
   0x6   :  { %39 = dma.hbm_to_vmem [thread:$0]  %s32_s20, 16384, %s34_s22, [#allocation10], %s5305_s26, %s5305_s26, %s5306_s27  }
   0x7   :  { %s57_s29 = sshll.u32 %s5307_s28, 4  ;;  %s18_s1 = sshll.u32 %s9716_s0, 4  ;;  %s58_s29 = int_to_ptr.vmem [resolvable:$true] %s57_s29  ;;  %s19_s1 = int_to_ptr.hbm [resolvable:$true] %s18_s1 }
   0x8   :  { %63 = dma.hbm_to_vmem [thread:$0]  %s56_s25, 16384, %s58_s29, [#allocation13], %s5305_s26, %s5305_s26, %s5306_s27  }
   0x9   :  { %s5308_s7 = smov [#allocation6]   ;;  %s45_s3 = sshll.u32 %s9718_s2, 4  ;;  %s46_s3 = int_to_ptr.hbm [resolvable:$true] %s45_s3 }
   0xa   :  { %s20_s8 = sshll.u32 %s5308_s7, 4  ;;  %s5309_s11 = smov 2   ;;  %s21_s8 = int_to_ptr.vmem [resolvable:$true] %s20_s8 }
   0xb   :  { %26 = dma.hbm_to_vmem [thread:$0]  %s19_s1, 256, %s21_s8, [#allocation7], %s5306_s27, %s5306_s27, %s5309_s11  }
   0xc   :  { %s69_s0 = sshll.u32 %s9720_s4, 4  ;;  %s5310_s14 = smov [#allocation11]   ;;  %s70_s0 = int_to_ptr.hbm [resolvable:$true] %s69_s0 }
   0xd   :  { %s47_s15 = sshll.u32 %s5310_s14, 4  ;;  %s5311_s16 = smov [#allocation14]   ;;  %s48_s15 = int_to_ptr.vmem [resolvable:$true] %s47_s15 }
   0xe   :  { %50 = dma.hbm_to_vmem [thread:$0]  %s46_s3, 64, %s48_s15, [#allocation10]  }
   0xf   :  { %s71_s17 = sshll.u32 %s5311_s16, 4  ;;  %s72_s17 = int_to_ptr.vmem [resolvable:$true] %s71_s17 }
  0x10   :  { %74 = dma.hbm_to_vmem [thread:$0]  %s70_s0, 64, %s72_s17, [#allocation13]  }
  0x11   :  { %5296 = dma.done.wait [#allocation7], 256  }
  0x12   :  { %5297 = vsyncadd [#allocation7], 4294967040 }
  0x13   :  { %5298 = dma.done.wait [#allocation10], 16448  }
  0x14   :  { %5299 = vsyncadd [#allocation10], 4294950848 }
  0x15   :  { %5300 = dma.done.wait [#allocation13], 16448  }
  0x16   :  { %5301 = vsyncadd [#allocation13], 4294950848  ;;  %v164_v0 = vld [vmem:[#allocation9 + $0x1e8] sm:$0xff]  ;;  %v163_v3 = vld [vmem:[#allocation9 + $0x1e0] sm:$0xff]  ;;  %v5312_v5 = vmov 0.0   ;;  %s5313_s2 = smov [#allocation15]  }
  0x17   :  { %v160_v1 = vld [vmem:[#allocation9 + $0x1c8] sm:$0xff]  ;;  %415 = vmatpush.msra.mxu2 %v164_v0  ;;  %99 = vst [vmem:[#allocation2] sm:$0x3] %v5312_v5  ;;  %375 = vmatpush.msra.mxu0 %v163_v3  ;;  %v159_v7 = vld [vmem:[#allocation9 + $0x1c0] sm:$0xff]  ;;  %v166_v62 = vld [vmem:[#allocation9 + $0x1f8] sm:$0xff]  ;;  %s3989_s4 = sshll.u32 %s5313_s2, 4  ;;  %s3990_s4 = int_to_ptr.vmem [resolvable:$true] %s3989_s4 }
  0x18   :  { %v5364_v2 = vld [vmem:[#allocation9 + $0x3e8] sm:$0xff]  ;;  %v5369_v8 = vld [vmem:[#allocation9 + $0x3e0] sm:$0xff]  ;;  %100 = vst [vmem:[#allocation3] sm:$0x3] %v5312_v5  ;;  %v162_v3 = vld [vmem:[#allocation9 + $0x1d8] sm:$0xff]  ;;  %s3991_s20 = sshll.u32 %s9721_s5, 4  ;;  %s3992_s20 = int_to_ptr.hbm [resolvable:$true] %s3991_s20 }
  0x19   :  { %435 = vmatpush.msra.mxu3 %v5364_v2  ;;  %v5367_v4 = vld [vmem:[#allocation9 + $0x3c8] sm:$0xff]  ;;  %416 = vmatpush.msra.mxu2 %v160_v1  ;;  %v155_v10 = vld [vmem:[#allocation9 + $0x1a0] sm:$0xff]  ;;  %102 = vst [vmem:[#allocation5] sm:$0x3] %v5312_v5  ;;  %v5455_v1 = vld [vmem:[#allocation9 + $0x3f8] sm:$0xff] }
  0x1a   :  { %v156_v6 = vld [vmem:[#allocation9 + $0x1a8] sm:$0xff]  ;;  %v5374_v11 = vld [vmem:[#allocation9 + $0x3c0] sm:$0xff]  ;;  %376 = vmatpush.msra.mxu0 %v159_v7  ;;  %395 = vmatpush.msra.mxu1 %v5369_v8  ;;  %101 = vst [vmem:[#allocation4] sm:$0x3] %v5312_v5  ;;  %v165_v5 = vld [vmem:[#allocation9 + $0x1f0] sm:$0xff] }
  0x1b   :  { %436 = vmatpush.msra.mxu3 %v5367_v4  ;;  %v5372_v9 = vld [vmem:[#allocation9 + $0x3a8] sm:$0xff]  ;;  %417 = vmatpush.msra.mxu2 %v156_v6  ;;  %v151_v14 = vld [vmem:[#allocation9 + $0x180] sm:$0xff]  ;;  %v5460_v7 = vld [vmem:[#allocation9 + $0x3d8] sm:$0xff] }
  0x1c   :  { %v152_v12 = vld [vmem:[#allocation9 + $0x188] sm:$0xff]  ;;  %v5380_v15 = vld [vmem:[#allocation9 + $0x3a0] sm:$0xff]  ;;  %377 = vmatpush.msra.mxu0 %v155_v10  ;;  %396 = vmatpush.msra.mxu1 %v5374_v11  ;;  %v158_v10 = vld [vmem:[#allocation9 + $0x1b8] sm:$0xff] }
  0x1d   :  { %v5377_v13 = vld [vmem:[#allocation9 + $0x388] sm:$0xff]  ;;  %437 = vmatpush.msra.mxu3 %v5372_v9  ;;  %418 = vmatpush.msra.mxu2 %v152_v12  ;;  %v147_v18 = vld [vmem:[#allocation9 + $0x160] sm:$0xff]  ;;  %v161_v12 = vld [vmem:[#allocation9 + $0x1d0] sm:$0xff] }
  0x1e   :  { %v148_v16 = vld [vmem:[#allocation9 + $0x168] sm:$0xff]  ;;  %v5386_v19 = vld [vmem:[#allocation9 + $0x380] sm:$0xff]  ;;  %378 = vmatpush.msra.mxu0 %v151_v14  ;;  %397 = vmatpush.msra.mxu1 %v5380_v15  ;;  %v5464_v14 = vld [vmem:[#allocation9 + $0x3f0] sm:$0xff] }
  0x1f   :  { %v5383_v17 = vld [vmem:[#allocation9 + $0x368] sm:$0xff]  ;;  %438 = vmatpush.msra.mxu3 %v5377_v13  ;;  %419 = vmatpush.msra.mxu2 %v148_v16  ;;  %v143_v22 = vld [vmem:[#allocation9 + $0x140] sm:$0xff]  ;;  %v5466_v16 = vld [vmem:[#allocation9 + $0x3b8] sm:$0xff] }
  0x20   :  { %v144_v20 = vld [vmem:[#allocation9 + $0x148] sm:$0xff]  ;;  %v5392_v23 = vld [vmem:[#allocation9 + $0x360] sm:$0xff]  ;;  %379 = vmatpush.msra.mxu0 %v147_v18  ;;  %398 = vmatpush.msra.mxu1 %v5386_v19  ;;  %v154_v18 = vld [vmem:[#allocation9 + $0x198] sm:$0xff] }
  0x21   :  { %v5389_v21 = vld [vmem:[#allocation9 + $0x348] sm:$0xff]  ;;  %439 = vmatpush.msra.mxu3 %v5383_v17  ;;  %420 = vmatpush.msra.mxu2 %v144_v20  ;;  %v139_v26 = vld [vmem:[#allocation9 + $0x120] sm:$0xff]  ;;  %v157_v20 = vld [vmem:[#allocation9 + $0x1b0] sm:$0xff] }
  0x22   :  { %v140_v24 = vld [vmem:[#allocation9 + $0x128] sm:$0xff]  ;;  %v5398_v27 = vld [vmem:[#allocation9 + $0x340] sm:$0xff]  ;;  %380 = vmatpush.msra.mxu0 %v143_v22  ;;  %399 = vmatpush.msra.mxu1 %v5392_v23  ;;  %v5470_v22 = vld [vmem:[#allocation6] sm:$0x3] }
  0x23   :  { %v5395_v25 = vld [vmem:[#allocation9 + $0x328] sm:$0xff]  ;;  %440 = vmatpush.msra.mxu3 %v5389_v21  ;;  %421 = vmatpush.msra.mxu2 %v140_v24  ;;  %v135_v30 = vld [vmem:[#allocation9 + $0x100] sm:$0xff]  ;;  %v5472_v24 = vld [vmem:[#allocation9 + $0x3d0] sm:$0xff] }
  0x24   :  { %v136_v28 = vld [vmem:[#allocation9 + $0x108] sm:$0xff]  ;;  %v5404_v31 = vld [vmem:[#allocation9 + $0x320] sm:$0xff]  ;;  %381 = vmatpush.msra.mxu0 %v139_v26  ;;  %400 = vmatpush.msra.mxu1 %v5398_v27  ;;  %v150_v26 = vld [vmem:[#allocation9 + $0x178] sm:$0xff] }
  0x25   :  { %v5401_v29 = vld [vmem:[#allocation9 + $0x308] sm:$0xff]  ;;  %441 = vmatpush.msra.mxu3 %v5395_v25  ;;  %422 = vmatpush.msra.mxu2 %v136_v28  ;;  %v131_v34 = vld [vmem:[#allocation9 + $0xe0] sm:$0xff]  ;;  %v5476_v28 = vld [vmem:[#allocation9 + $0x398] sm:$0xff] }
  0x26   :  { %v132_v32 = vld [vmem:[#allocation9 + $0xe8] sm:$0xff]  ;;  %v5410_v35 = vld [vmem:[#allocation9 + $0x300] sm:$0xff]  ;;  %382 = vmatpush.msra.mxu0 %v135_v30  ;;  %401 = vmatpush.msra.mxu1 %v5404_v31 }
  0x27   :  { %v5407_v33 = vld [vmem:[#allocation9 + $0x2e8] sm:$0xff]  ;;  %442 = vmatpush.msra.mxu3 %v5401_v29  ;;  %423 = vmatpush.msra.mxu2 %v132_v32  ;;  %v127_v38 = vld [vmem:[#allocation9 + $0xc0] sm:$0xff]  ;;  %v153_v32 = vld [vmem:[#allocation9 + $0x190] sm:$0xff] }
  0x28   :  { %v128_v36 = vld [vmem:[#allocation9 + $0xc8] sm:$0xff]  ;;  %v5416_v39 = vld [vmem:[#allocation9 + $0x2e0] sm:$0xff]  ;;  %383 = vmatpush.msra.mxu0 %v131_v34  ;;  %402 = vmatpush.msra.mxu1 %v5410_v35  ;;  %v5482_v34 = vld [vmem:[#allocation9 + $0x3b0] sm:$0xff] }
  0x29   :  { %v5413_v37 = vld [vmem:[#allocation9 + $0x2c8] sm:$0xff]  ;;  %443 = vmatpush.msra.mxu3 %v5407_v33  ;;  %424 = vmatpush.msra.mxu2 %v128_v36  ;;  %v123_v42 = vld [vmem:[#allocation9 + $0xa0] sm:$0xff]  ;;  %v146_v36 = vld [vmem:[#allocation9 + $0x158] sm:$0xff] }
  0x2a   :  { %v124_v40 = vld [vmem:[#allocation9 + $0xa8] sm:$0xff]  ;;  %v5422_v43 = vld [vmem:[#allocation9 + $0x2c0] sm:$0xff]  ;;  %384 = vmatpush.msra.mxu0 %v127_v38  ;;  %403 = vmatpush.msra.mxu1 %v5416_v39  ;;  %v5485_v38 = vld [vmem:[#allocation9 + $0x378] sm:$0xff] }
  0x2b   :  { %v5419_v41 = vld [vmem:[#allocation9 + $0x2a8] sm:$0xff]  ;;  %444 = vmatpush.msra.mxu3 %v5413_v37  ;;  %425 = vmatpush.msra.mxu2 %v124_v40  ;;  %v119_v46 = vld [vmem:[#allocation9 + $0x80] sm:$0xff]  ;;  %v149_v40 = vld [vmem:[#allocation9 + $0x170] sm:$0xff] }
  0x2c   :  { %v120_v44 = vld [vmem:[#allocation9 + $0x88] sm:$0xff]  ;;  %v5428_v47 = vld [vmem:[#allocation9 + $0x2a0] sm:$0xff]  ;;  %385 = vmatpush.msra.mxu0 %v123_v42  ;;  %404 = vmatpush.msra.mxu1 %v5422_v43  ;;  %v5488_v42 = vld [vmem:[#allocation9 + $0x390] sm:$0xff] }
  0x2d   :  { %v5425_v45 = vld [vmem:[#allocation9 + $0x288] sm:$0xff]  ;;  %445 = vmatpush.msra.mxu3 %v5419_v41  ;;  %426 = vmatpush.msra.mxu2 %v120_v44  ;;  %v115_v50 = vld [vmem:[#allocation9 + $0x60] sm:$0xff]  ;;  %v142_v44 = vld [vmem:[#allocation9 + $0x138] sm:$0xff] }
  0x2e   :  { %v116_v48 = vld [vmem:[#allocation9 + $0x68] sm:$0xff]  ;;  %v5434_v51 = vld [vmem:[#allocation9 + $0x280] sm:$0xff]  ;;  %386 = vmatpush.msra.mxu0 %v119_v46  ;;  %405 = vmatpush.msra.mxu1 %v5428_v47  ;;  %v5491_v46 = vld [vmem:[#allocation9 + $0x358] sm:$0xff] }
  0x2f   :  { %v5431_v49 = vld [vmem:[#allocation9 + $0x268] sm:$0xff]  ;;  %446 = vmatpush.msra.mxu3 %v5425_v45  ;;  %427 = vmatpush.msra.mxu2 %v116_v48  ;;  %v111_v54 = vld [vmem:[#allocation9 + $0x40] sm:$0xff]  ;;  %v145_v48 = vld [vmem:[#allocation9 + $0x150] sm:$0xff] }
  0x30   :  { %v112_v52 = vld [vmem:[#allocation9 + $0x48] sm:$0xff]  ;;  %v5440_v55 = vld [vmem:[#allocation9 + $0x260] sm:$0xff]  ;;  %387 = vmatpush.msra.mxu0 %v115_v50  ;;  %406 = vmatpush.msra.mxu1 %v5434_v51  ;;  %v5494_v50 = vld [vmem:[#allocation9 + $0x370] sm:$0xff] }
  0x31   :  { %v5437_v53 = vld [vmem:[#allocation9 + $0x248] sm:$0xff]  ;;  %447 = vmatpush.msra.mxu3 %v5431_v49  ;;  %428 = vmatpush.msra.mxu2 %v112_v52  ;;  %v107_v58 = vld [vmem:[#allocation9 + $0x20] sm:$0xff]  ;;  %v138_v52 = vld [vmem:[#allocation9 + $0x118] sm:$0xff] }
  0x32   :  { %v108_v56 = vld [vmem:[#allocation9 + $0x28] sm:$0xff]  ;;  %v5446_v59 = vld [vmem:[#allocation9 + $0x240] sm:$0xff]  ;;  %388 = vmatpush.msra.mxu0 %v111_v54  ;;  %407 = vmatpush.msra.mxu1 %v5440_v55  ;;  %v5497_v54 = vld [vmem:[#allocation9 + $0x338] sm:$0xff] }
  0x33   :  { %v5443_v57 = vld [vmem:[#allocation9 + $0x228] sm:$0xff]  ;;  %448 = vmatpush.msra.mxu3 %v5437_v53  ;;  %429 = vmatpush.msra.mxu2 %v108_v56  ;;  %v103_v63 = vld [vmem:[#allocation9] sm:$0xff]  ;;  %v141_v56 = vld [vmem:[#allocation9 + $0x130] sm:$0xff] }
  0x34   :  { %v104_v60 = vld [vmem:[#allocation9 + $0x8] sm:$0xff]  ;;  %389 = vmatpush.msra.mxu0 %v107_v58  ;;  %408 = vmatpush.msra.mxu1 %v5446_v59  ;;  %v5453_v0 = vld [vmem:[#allocation9 + $0x220] sm:$0xff]  ;;  %v5502_v58 = vld [vmem:[#allocation9 + $0x350] sm:$0xff] }
  0x35   :  { %v5449_v61 = vld [vmem:[#allocation9 + $0x208] sm:$0xff]  ;;  %449 = vmatpush.msra.mxu3 %v5443_v57  ;;  %430 = vmatpush.msra.mxu2 %v104_v60  ;;  %v5458_v6 = vld [vmem:[#allocation9 + $0x200] sm:$0xff]  ;;  %v134_v60 = vld [vmem:[#allocation9 + $0xf8] sm:$0xff] }
  0x36   :  { %390 = vmatpush.msra.mxu0 %v103_v63  ;;  %409 = vmatpush.msra.mxu1 %v5453_v0  ;;  %v5478_v30 = vld [vmem:[#allocation2] sm:$0x3]  ;;  %v137_v63 = vld [vmem:[#allocation9 + $0x110] sm:$0xff] }
  0x37   :  { %450 = vmatpush.msra.mxu3 %v5449_v61  ;;  %495 = vmatpush.msrb.mxu2 %v166_v62  ;;  %v5505_v62 = vld [vmem:[#allocation9 + $0x318] sm:$0xff] }
  0x38   :  { %455 = vmatpush.msrb.mxu0 %v165_v5  ;;  %410 = vmatpush.msra.mxu1 %v5458_v6  ;;  %v130_v5 = vld [vmem:[#allocation9 + $0xd8] sm:$0xff] }
  0x39   :  { %515 = vmatpush.msrb.mxu3 %v5455_v1  ;;  %496 = vmatpush.msrb.mxu2 %v162_v3  ;;  %v5508_v3 = vld [vmem:[#allocation9 + $0x330] sm:$0xff] }
  0x3a   :  { %456 = vmatpush.msrb.mxu0 %v161_v12  ;;  %475 = vmatpush.msrb.mxu1 %v5464_v14  ;;  %v133_v12 = vld [vmem:[#allocation9 + $0xf0] sm:$0xff] }
  0x3b   :  { %516 = vmatpush.msrb.mxu3 %v5460_v7  ;;  %497 = vmatpush.msrb.mxu2 %v158_v10  ;;  %v5511_v10 = vld [vmem:[#allocation9 + $0x2f8] sm:$0xff] }
  0x3c   :  { %457 = vmatpush.msrb.mxu0 %v157_v20  ;;  %431 = vmatmul.f32.vlgmr.msra.gmra.mxu2 %v5470_v22  ;;  %v126_v20 = vld [vmem:[#allocation9 + $0xb8] sm:$0xff] }
  0x3d   :  { %517 = vmatpush.msrb.mxu3 %v5466_v16  ;;  %498 = vmatpush.msrb.mxu2 %v154_v18  ;;  %v5514_v18 = vld [vmem:[#allocation9 + $0x310] sm:$0xff] }
  0x3e   :  { %476 = vmatpush.msrb.mxu1 %v5472_v24  ;;  %451 = vmatmul.f32.vlgmr.msra.gmra.mxu3 %v5478_v30 }
  0x3f   :  { %499 = vmatpush.msrb.mxu2 %v150_v26  ;;  %518 = vmatpush.msrb.mxu3 %v5476_v28  ;;  %v5517_v26 = vld [vmem:[#allocation9 + $0x2d8] sm:$0xff] }
  0x40   :  { %458 = vmatpush.msrb.mxu0 %v153_v32  ;;  %477 = vmatpush.msrb.mxu1 %v5482_v34  ;;  %10419 = vst [vmem:[#allocation20_spill] sm:$0xff] %v5517_v26  ;;  %v129_v32 = vld [vmem:[#allocation9 + $0xd0] sm:$0xff] }
  0x41   :  { %500 = vmatpush.msrb.mxu2 %v146_v36  ;;  %519 = vmatpush.msrb.mxu3 %v5485_v38  ;;  %v5520_v36 = vld [vmem:[#allocation9 + $0x2f0] sm:$0xff] }
  0x42   :  { %459 = vmatpush.msrb.mxu0 %v149_v40  ;;  %478 = vmatpush.msrb.mxu1 %v5488_v42  ;;  %v122_v40 = vld [vmem:[#allocation9 + $0x98] sm:$0xff] }
  0x43   :  { %501 = vmatpush.msrb.mxu2 %v142_v44  ;;  %520 = vmatpush.msrb.mxu3 %v5491_v46  ;;  %v5523_v44 = vld [vmem:[#allocation9 + $0x2b8] sm:$0xff] }
  0x44   :  { %391 = vmatmul.f32.vlgmr.msra.gmra.mxu0 %v5470_v22  ;;  %479 = vmatpush.msrb.mxu1 %v5494_v50  ;;  %10420 = vst [vmem:[#allocation21_spill] sm:$0xff] %v5523_v44 }
  0x45   :  { %460 = vmatpush.msrb.mxu0 %v145_v48  ;;  %502 = vmatpush.msrb.mxu2 %v138_v52  ;;  %v125_v48 = vld [vmem:[#allocation9 + $0xb0] sm:$0xff] }
  0x46   :  { %521 = vmatpush.msrb.mxu3 %v5497_v54  ;;  %411 = vmatmul.f32.vlgmr.msra.gmra.mxu1 %v5478_v30  ;;  %v5526_v52 = vld [vmem:[#allocation9 + $0x2d0] sm:$0xff] }
  0x47   :  { %461 = vmatpush.msrb.mxu0 %v141_v56  ;;  %480 = vmatpush.msrb.mxu1 %v5502_v58  ;;  %10421 = vst [vmem:[#allocation22_spill] sm:$0xff] %v5526_v52  ;;  %v118_v56 = vld [vmem:[#allocation9 + $0x78] sm:$0xff] }
  0x48   :  { %503 = vmatpush.msrb.mxu2 %v134_v60  ;;  %522 = vmatpush.msrb.mxu3 %v5505_v62  ;;  %v5529_v60 = vld [vmem:[#allocation9 + $0x298] sm:$0xff] }
  0x49   :  { %462 = vmatpush.msrb.mxu0 %v137_v63  ;;  %481 = vmatpush.msrb.mxu1 %v5508_v3  ;;  %10422 = vst [vmem:[#allocation23_spill] sm:$0xff] %v5529_v60  ;;  %v121_v63 = vld [vmem:[#allocation9 + $0x90] sm:$0xff] }
  0x4a   :  { %504 = vmatpush.msrb.mxu2 %v130_v5  ;;  %523 = vmatpush.msrb.mxu3 %v5511_v10  ;;  %v5532_v5 = vld [vmem:[#allocation9 + $0x2b0] sm:$0xff] }
  0x4b   :  { %463 = vmatpush.msrb.mxu0 %v133_v12  ;;  %482 = vmatpush.msrb.mxu1 %v5514_v18  ;;  %10423 = vst [vmem:[#allocation24_spill] sm:$0xff] %v5532_v5  ;;  %v114_v12 = vld [vmem:[#allocation9 + $0x58] sm:$0xff] }
  0x4c   :  { %505 = vmatpush.msrb.mxu2 %v126_v20  ;;  %524 = vmatpush.msrb.mxu3 %v5517_v26  ;;  %v5535_v20 = vld [vmem:[#allocation9 + $0x278] sm:$0xff]  ;;  %v5538_v26 = vld [vmem:[#allocation9 + $0x290] sm:$0xff] }
  0x4d   :  { %464 = vmatpush.msrb.mxu0 %v129_v32  ;;  %483 = vmatpush.msrb.mxu1 %v5520_v36  ;;  %10424 = vst [vmem:[#allocation25_spill] sm:$0xff] %v5535_v20  ;;  %v117_v32 = vld [vmem:[#allocation9 + $0x70] sm:$0xff] }
  0x4e   :  { %506 = vmatpush.msrb.mxu2 %v122_v40  ;;  %525 = vmatpush.msrb.mxu3 %v5523_v44  ;;  %v110_v40 = vld [vmem:[#allocation9 + $0x38] sm:$0xff] }
  0x4f   :  { %465 = vmatpush.msrb.mxu0 %v125_v48  ;;  %484 = vmatpush.msrb.mxu1 %v5526_v52  ;;  %v5541_v44 = vld [vmem:[#allocation9 + $0x258] sm:$0xff]  ;;  %v113_v48 = vld [vmem:[#allocation9 + $0x50] sm:$0xff] }
  0x50   :  { %507 = vmatpush.msrb.mxu2 %v118_v56  ;;  %526 = vmatpush.msrb.mxu3 %v5529_v60  ;;  %v5544_v52 = vld [vmem:[#allocation9 + $0x270] sm:$0xff]  ;;  %v106_v56 = vld [vmem:[#allocation9 + $0x18] sm:$0xff] }
  0x51   :  { %466 = vmatpush.msrb.mxu0 %v121_v63  ;;  %485 = vmatpush.msrb.mxu1 %v5532_v5  ;;  %v5547_v60 = vld [vmem:[#allocation9 + $0x238] sm:$0xff]  ;;  %v109_v63 = vld [vmem:[#allocation9 + $0x30] sm:$0xff] }
  0x52   :  { %508 = vmatpush.msrb.mxu2 %v114_v12  ;;  %527 = vmatpush.msrb.mxu3 %v5535_v20  ;;  %10425 = vst [vmem:[#allocation26_spill] sm:$0xff] %v5547_v60  ;;  %v5550_v5 = vld [vmem:[#allocation9 + $0x250] sm:$0xff]  ;;  %v5553_v12 = vld [vmem:[#allocation9 + $0x218] sm:$0xff] }
  0x53   :  { %467 = vmatpush.msrb.mxu0 %v117_v32  ;;  %486 = vmatpush.msrb.mxu1 %v5538_v26  ;;  %10426 = vst [vmem:[#allocation27_spill] sm:$0xff] %v5553_v12  ;;  %v105_v32 = vld [vmem:[#allocation9 + $0x10] sm:$0xff] }
  0x54   :  { %509 = vmatpush.msrb.mxu2 %v110_v40  ;;  %528 = vmatpush.msrb.mxu3 %v5541_v44  ;;  %v5556_v20 = vld [vmem:[#allocation9 + $0x230] sm:$0xff] }
  0x55   :  { %468 = vmatpush.msrb.mxu0 %v113_v48  ;;  %487 = vmatpush.msrb.mxu1 %v5544_v52  ;;  %10427 = vst [vmem:[#allocation28_spill] sm:$0xff] %v5556_v20  ;;  %v5560_v40 = vld [vmem:[#allocation12 + $0x3e8] sm:$0xff] }
  0x56   :  { %510 = vmatpush.msrb.mxu2 %v106_v56  ;;  %529 = vmatpush.msrb.mxu3 %v5547_v60  ;;  %10428 = vst [vmem:[#allocation29_spill] sm:$0xff] %v5560_v40  ;;  %v5563_v48 = vld [vmem:[#allocation9 + $0x210] sm:$0xff] }
  0x57   :  { %469 = vmatpush.msrb.mxu0 %v109_v63  ;;  %488 = vmatpush.msrb.mxu1 %v5550_v5  ;;  %10429 = vst [vmem:[#allocation30_spill] sm:$0xff] %v5563_v48  ;;  %v5567_v56 = vld [vmem:[#allocation12 + $0x3c8] sm:$0xff]  ;;  %v5570_v63 = vld [vmem:[#allocation12 + $0x3e0] sm:$0xff] }
  0x58   :  { %511 = vmatmul.f32.vlgmr.msrb.gmra.mxu2 %v5470_v22  ;;  %530 = vmatpush.msrb.mxu3 %v5553_v12  ;;  %10430 = vst [vmem:[#allocation31_spill] sm:$0xff] %v5567_v56  ;;  %v5574_v60 = vld [vmem:[#allocation12 + $0x3a8] sm:$0xff] }
  0x59   :  { %470 = vmatpush.msrb.mxu0 %v105_v32  ;;  %489 = vmatpush.msrb.mxu1 %v5556_v20  ;;  %10431 = vst [vmem:[#allocation32_spill] sm:$0xff] %v5570_v63  ;;  %v5577_v32 = vld [vmem:[#allocation12 + $0x3c0] sm:$0xff]  ;;  %v5581_v12 = vld [vmem:[#allocation12 + $0x388] sm:$0xff] }
  0x5a   :  { %531 = vmatmul.f32.vlgmr.msrb.gmra.mxu3 %v5478_v30  ;;  %471 = vmatmul.f32.vlgmr.msrb.gmra.mxu0 %v5470_v22  ;;  %10432 = vst [vmem:[#allocation33_spill] sm:$0xff] %v5574_v60  ;;  %v5583_v20 = vld [vmem:[#allocation12 + $0x3a0] sm:$0xff]  ;;  %v5587_v22 = vld [vmem:[#allocation12 + $0x368] sm:$0xff] }
  0x5b   :  { %667 = vmatpush.msra.mxu3 %v5560_v40  ;;  %490 = vmatpush.msrb.mxu1 %v5563_v48  ;;  %10433 = vst [vmem:[#allocation34_spill] sm:$0xff] %v5577_v32  ;;  %v5589_v40 = vld [vmem:[#allocation12 + $0x380] sm:$0xff]  ;;  %v5648_v48 = vld [vmem:[#allocation12 + $0x1e8] sm:$0xff] }
  0x5c   :  { %491 = vmatmul.f32.vlgmr.msrb.gmra.mxu1 %v5478_v30  ;;  %10434 = vst [vmem:[#allocation35_spill] sm:$0xff] %v5581_v12  ;;  %v5593_v30 = vld [vmem:[#allocation12 + $0x348] sm:$0xff]  ;;  %647 = vmatpush.msra.mxu2 %v5648_v48 }
  0x5d   :  { %668 = vmatpush.msra.mxu3 %v5567_v56  ;;  %627 = vmatpush.msra.mxu1 %v5570_v63  ;;  %10435 = vst [vmem:[#allocation36_spill] sm:$0xff] %v5583_v20  ;;  %v5595_v56 = vld [vmem:[#allocation12 + $0x360] sm:$0xff]  ;;  %v5599_v63 = vld [vmem:[#allocation12 + $0x328] sm:$0xff] }
  0x5e   :  { %10436 = vst [vmem:[#allocation37_spill] sm:$0xff] %v5587_v22 }
  0x5f   :  { %669 = vmatpush.msra.mxu3 %v5574_v60  ;;  %628 = vmatpush.msra.mxu1 %v5577_v32  ;;  %10437 = vst [vmem:[#allocation38_spill] sm:$0xff] %v5589_v40  ;;  %v5601_v60 = vld [vmem:[#allocation12 + $0x340] sm:$0xff]  ;;  %v5605_v32 = vld [vmem:[#allocation12 + $0x308] sm:$0xff] }
  0x60   :  { %10438 = vst [vmem:[#allocation39_spill] sm:$0xff] %v5593_v30 }
  0x61   :  { %670 = vmatpush.msra.mxu3 %v5581_v12  ;;  %629 = vmatpush.msra.mxu1 %v5583_v20  ;;  %10439 = vst [vmem:[#allocation40_spill] sm:$0xff] %v5595_v56  ;;  %v5607_v12 = vld [vmem:[#allocation12 + $0x320] sm:$0xff]  ;;  %v5611_v20 = vld [vmem:[#allocation12 + $0x2e8] sm:$0xff] }
  0x62   :  { %10440 = vst [vmem:[#allocation41_spill] sm:$0xff] %v5599_v63 }
  0x63   :  { %671 = vmatpush.msra.mxu3 %v5587_v22  ;;  %630 = vmatpush.msra.mxu1 %v5589_v40  ;;  %10441 = vst [vmem:[#allocation42_spill] sm:$0xff] %v5601_v60  ;;  %v5613_v22 = vld [vmem:[#allocation12 + $0x300] sm:$0xff]  ;;  %v5617_v40 = vld [vmem:[#allocation12 + $0x2c8] sm:$0xff] }
  0x64   :  { %10442 = vst [vmem:[#allocation43_spill] sm:$0xff] %v5605_v32 }
  0x65   :  { %672 = vmatpush.msra.mxu3 %v5593_v30  ;;  %631 = vmatpush.msra.mxu1 %v5595_v56  ;;  %10443 = vst [vmem:[#allocation44_spill] sm:$0xff] %v5607_v12  ;;  %v5619_v30 = vld [vmem:[#allocation12 + $0x2e0] sm:$0xff]  ;;  %v5623_v56 = vld [vmem:[#allocation12 + $0x2a8] sm:$0xff] }
  0x66   :  { %10444 = vst [vmem:[#allocation45_spill] sm:$0xff] %v5611_v20 }
  0x67   :  { %673 = vmatpush.msra.mxu3 %v5599_v63  ;;  %632 = vmatpush.msra.mxu1 %v5601_v60  ;;  %10445 = vst [vmem:[#allocation46_spill] sm:$0xff] %v5613_v22  ;;  %v5625_v63 = vld [vmem:[#allocation12 + $0x2c0] sm:$0xff]  ;;  %v5629_v60 = vld [vmem:[#allocation12 + $0x288] sm:$0xff] }
  0x68   :  { %10446 = vst [vmem:[#allocation47_spill] sm:$0xff] %v5617_v40 }
  0x69   :  { %674 = vmatpush.msra.mxu3 %v5605_v32  ;;  %633 = vmatpush.msra.mxu1 %v5607_v12  ;;  %10447 = vst [vmem:[#allocation48_spill] sm:$0xff] %v5619_v30  ;;  %v5631_v32 = vld [vmem:[#allocation12 + $0x2a0] sm:$0xff]  ;;  %v5635_v12 = vld [vmem:[#allocation12 + $0x268] sm:$0xff] }
  0x6a   :  { %10448 = vst [vmem:[#allocation49_spill] sm:$0xff] %v5623_v56 }
  0x6b   :  { %675 = vmatpush.msra.mxu3 %v5611_v20  ;;  %634 = vmatpush.msra.mxu1 %v5613_v22  ;;  %10449 = vst [vmem:[#allocation50_spill] sm:$0xff] %v5625_v63  ;;  %v5637_v20 = vld [vmem:[#allocation12 + $0x280] sm:$0xff]  ;;  %v5641_v22 = vld [vmem:[#allocation12 + $0x248] sm:$0xff] }
  0x6c   :  { %10450 = vst [vmem:[#allocation51_spill] sm:$0xff] %v5629_v60 }
  0x6d   :  { %676 = vmatpush.msra.mxu3 %v5617_v40  ;;  %635 = vmatpush.msra.mxu1 %v5619_v30  ;;  %10451 = vst [vmem:[#allocation52_spill] sm:$0xff] %v5631_v32  ;;  %v5643_v40 = vld [vmem:[#allocation12 + $0x260] sm:$0xff] }
  0x6e   :  { %10452 = vst [vmem:[#allocation53_spill] sm:$0xff] %v5635_v12  ;;  %v5646_v30 = vld [vmem:[#allocation12 + $0x1e0] sm:$0xff] }
  0x6f   :  { %677 = vmatpush.msra.mxu3 %v5623_v56  ;;  %636 = vmatpush.msra.mxu1 %v5625_v63  ;;  %10453 = vst [vmem:[#allocation54_spill] sm:$0xff] %v5637_v20  ;;  %v5651_v56 = vld [vmem:[#allocation12 + $0x228] sm:$0xff]  ;;  %v5654_v63 = vld [vmem:[#allocation12 + $0x240] sm:$0xff] }
  0x70   :  { %10454 = vst [vmem:[#allocation55_spill] sm:$0xff] %v5641_v22  ;;  %607 = vmatpush.msra.mxu0 %v5646_v30 }
  0x71   :  { %678 = vmatpush.msra.mxu3 %v5629_v60  ;;  %637 = vmatpush.msra.mxu1 %v5631_v32  ;;  %10455 = vst [vmem:[#allocation56_spill] sm:$0xff] %v5643_v40  ;;  %v5658_v60 = vld [vmem:[#allocation12 + $0x1c0] sm:$0xff]  ;;  %v5660_v32 = vld [vmem:[#allocation12 + $0x1c8] sm:$0xff] }
  0x72   :  { %10456 = vst [vmem:[#allocation57_spill] sm:$0xff] %v5646_v30  ;;  %608 = vmatpush.msra.mxu0 %v5658_v60  ;;  %v5669_v30 = vld [vmem:[#allocation12 + $0x3f8] sm:$0xff]  ;;  %648 = vmatpush.msra.mxu2 %v5660_v32 }
  0x73   :  { %679 = vmatpush.msra.mxu3 %v5635_v12  ;;  %10457 = vst [vmem:[#allocation58_spill] sm:$0xff] %v5648_v48  ;;  %638 = vmatpush.msra.mxu1 %v5637_v20  ;;  %v5663_v12 = vld [vmem:[#allocation12 + $0x208] sm:$0xff]  ;;  %v5666_v20 = vld [vmem:[#allocation12 + $0x220] sm:$0xff] }
  0x74   :  { %10458 = vst [vmem:[#allocation59_spill] sm:$0xff] %v5651_v56  ;;  %v5673_v48 = vld [vmem:[#allocation12 + $0x200] sm:$0xff] }
  0x75   :  { %680 = vmatpush.msra.mxu3 %v5641_v22  ;;  %10459 = vst [vmem:[#allocation60_spill] sm:$0xff] %v5658_v60  ;;  %639 = vmatpush.msra.mxu1 %v5643_v40  ;;  %v5676_v22 = vld [vmem:[#allocation12 + $0x3d8] sm:$0xff]  ;;  %v5679_v40 = vld [vmem:[#allocation12 + $0x3f0] sm:$0xff] }
  0x76   :  { %10460 = vst [vmem:[#allocation61_spill] sm:$0xff] %v5660_v32  ;;  %v5682_v60 = vld [vmem:[#allocation12 + $0x3b8] sm:$0xff] }
  0x77   :  { %10461 = vst [vmem:[#allocation62_spill] sm:$0xff] %v5663_v12  ;;  %681 = vmatpush.msra.mxu3 %v5651_v56  ;;  %640 = vmatpush.msra.mxu1 %v5654_v63  ;;  %v5685_v56 = vld [vmem:[#allocation12 + $0x3d0] sm:$0xff]  ;;  %v5689_v32 = vld [vmem:[#allocation12 + $0x398] sm:$0xff] }
  0x78   :  { %10462 = vst [vmem:[#allocation63_spill] sm:$0xff] %v5666_v20 }
  0x79   :  { %10463 = vst [vmem:[#allocation64_spill] sm:$0xff] %v5669_v30  ;;  %682 = vmatpush.msra.mxu3 %v5663_v12  ;;  %641 = vmatpush.msra.mxu1 %v5666_v20  ;;  %v5691_v12 = vld [vmem:[#allocation12 + $0x3b0] sm:$0xff]  ;;  %v5695_v20 = vld [vmem:[#allocation12 + $0x378] sm:$0xff] }
  0x7a   :  { %10464 = vst [vmem:[#allocation65_spill] sm:$0xff] %v5673_v48 }
  0x7b   :  { %10465 = vst [vmem:[#allocation66_spill] sm:$0xff] %v5676_v22  ;;  %747 = vmatpush.msrb.mxu3 %v5669_v30  ;;  %642 = vmatpush.msra.mxu1 %v5673_v48  ;;  %v5697_v30 = vld [vmem:[#allocation12 + $0x390] sm:$0xff]  ;;  %v5701_v48 = vld [vmem:[#allocation12 + $0x358] sm:$0xff] }
  0x7c   :  { %10466 = vst [vmem:[#allocation67_spill] sm:$0xff] %v5679_v40 }
  0x7d   :  { %10467 = vst [vmem:[#allocation68_spill] sm:$0xff] %v5682_v60  ;;  %748 = vmatpush.msrb.mxu3 %v5676_v22  ;;  %707 = vmatpush.msrb.mxu1 %v5679_v40  ;;  %v5703_v22 = vld [vmem:[#allocation12 + $0x370] sm:$0xff]  ;;  %v5707_v40 = vld [vmem:[#allocation12 + $0x338] sm:$0xff] }
  0x7e   :  { %10468 = vst [vmem:[#allocation69_spill] sm:$0xff] %v5685_v56 }
  0x7f   :  { %10469 = vst [vmem:[#allocation70_spill] sm:$0xff] %v5689_v32  ;;  %749 = vmatpush.msrb.mxu3 %v5682_v60  ;;  %708 = vmatpush.msrb.mxu1 %v5685_v56  ;;  %v5709_v60 = vld [vmem:[#allocation12 + $0x350] sm:$0xff]  ;;  %v5713_v56 = vld [vmem:[#allocation12 + $0x318] sm:$0xff] }
  0x80   :  { %10470 = vst [vmem:[#allocation71_spill] sm:$0xff] %v5691_v12 }
  0x81   :  { %10471 = vst [vmem:[#allocation72_spill] sm:$0xff] %v5695_v20  ;;  %750 = vmatpush.msrb.mxu3 %v5689_v32  ;;  %709 = vmatpush.msrb.mxu1 %v5691_v12  ;;  %v5715_v32 = vld [vmem:[#allocation12 + $0x330] sm:$0xff]  ;;  %v5719_v12 = vld [vmem:[#allocation12 + $0x2f8] sm:$0xff] }
  0x82   :  { %10472 = vst [vmem:[#allocation73_spill] sm:$0xff] %v5697_v30 }
  0x83   :  { %10473 = vst [vmem:[#allocation74_spill] sm:$0xff] %v5701_v48  ;;  %751 = vmatpush.msrb.mxu3 %v5695_v20  ;;  %710 = vmatpush.msrb.mxu1 %v5697_v30  ;;  %v5721_v20 = vld [vmem:[#allocation12 + $0x310] sm:$0xff]  ;;  %v5725_v30 = vld [vmem:[#allocation12 + $0x2d8] sm:$0xff] }
  0x84   :  { %10474 = vst [vmem:[#allocation75_spill] sm:$0xff] %v5703_v22 }
  0x85   :  { %10475 = vst [vmem:[#allocation76_spill] sm:$0xff] %v5707_v40  ;;  %752 = vmatpush.msrb.mxu3 %v5701_v48  ;;  %711 = vmatpush.msrb.mxu1 %v5703_v22  ;;  %v5727_v48 = vld [vmem:[#allocation12 + $0x2f0] sm:$0xff]  ;;  %v5731_v22 = vld [vmem:[#allocation12 + $0x2b8] sm:$0xff] }
  0x86   :  { %10476 = vst [vmem:[#allocation77_spill] sm:$0xff] %v5709_v60 }
  0x87   :  { %10477 = vst [vmem:[#allocation78_spill] sm:$0xff] %v5713_v56  ;;  %753 = vmatpush.msrb.mxu3 %v5707_v40  ;;  %712 = vmatpush.msrb.mxu1 %v5709_v60  ;;  %v5733_v40 = vld [vmem:[#allocation12 + $0x2d0] sm:$0xff]  ;;  %v5737_v60 = vld [vmem:[#allocation12 + $0x298] sm:$0xff] }
  0x88   :  { %10478 = vst [vmem:[#allocation79_spill] sm:$0xff] %v5715_v32 }
  0x89   :  { %10479 = vst [vmem:[#allocation80_spill] sm:$0xff] %v5719_v12  ;;  %754 = vmatpush.msrb.mxu3 %v5713_v56  ;;  %713 = vmatpush.msrb.mxu1 %v5715_v32  ;;  %v5739_v56 = vld [vmem:[#allocation12 + $0x2b0] sm:$0xff]  ;;  %v5743_v32 = vld [vmem:[#allocation12 + $0x278] sm:$0xff] }
  0x8a   :  { %10480 = vst [vmem:[#allocation81_spill] sm:$0xff] %v5721_v20 }
  0x8b   :  { %10481 = vst [vmem:[#allocation82_spill] sm:$0xff] %v5725_v30  ;;  %755 = vmatpush.msrb.mxu3 %v5719_v12  ;;  %714 = vmatpush.msrb.mxu1 %v5721_v20  ;;  %v5745_v12 = vld [vmem:[#allocation12 + $0x290] sm:$0xff] }
  0x8c   :  { %10482 = vst [vmem:[#allocation83_spill] sm:$0xff] %v5731_v22  ;;  %v5749_v20 = vld [vmem:[#allocation12 + $0x270] sm:$0xff] }
  0x8d   :  { %10483 = vst [vmem:[#allocation84_spill] sm:$0xff] %v5733_v40  ;;  %756 = vmatpush.msrb.mxu3 %v5725_v30  ;;  %715 = vmatpush.msrb.mxu1 %v5727_v48  ;;  %v5754_v30 = vld [vmem:[#allocation12 + $0x250] sm:$0xff] }
  0x8e   :  { %10484 = vst [vmem:[#allocation85_spill] sm:$0xff] %v5737_v60 }
  0x8f   :  { %10485 = vst [vmem:[#allocation86_spill] sm:$0xff] %v5739_v56  ;;  %757 = vmatpush.msrb.mxu3 %v5731_v22  ;;  %716 = vmatpush.msrb.mxu1 %v5733_v40  ;;  %v5756_v22 = vld [vmem:[#allocation12 + $0x258] sm:$0xff]  ;;  %v5758_v40 = vld [vmem:[#allocation12 + $0x1a0] sm:$0xff] }
  0x90   :  { %10486 = vst [vmem:[#allocation87_spill] sm:$0xff] %v5743_v32  ;;  %609 = vmatpush.msra.mxu0 %v5758_v40 }
  0x91   :  { %10487 = vst [vmem:[#allocation88_spill] sm:$0xff] %v5745_v12  ;;  %758 = vmatpush.msrb.mxu3 %v5737_v60  ;;  %717 = vmatpush.msrb.mxu1 %v5739_v56  ;;  %v5762_v60 = vld [vmem:[#allocation12 + $0x1a8] sm:$0xff] }
  0x92   :  { %10488 = vst [vmem:[#allocation89_spill] sm:$0xff] %v5749_v20  ;;  %649 = vmatpush.msra.mxu2 %v5762_v60  ;;  %v5774_v56 = vld [vmem:[#allocation12 + $0x188] sm:$0xff] }
  0x93   :  { %759 = vmatpush.msrb.mxu3 %v5743_v32  ;;  %718 = vmatpush.msrb.mxu1 %v5745_v12  ;;  %10489 = vst [vmem:[#allocation90_spill] sm:$0xff] %v5754_v30  ;;  %v5766_v32 = vld [vmem:[#allocation12 + $0x230] sm:$0xff]  ;;  %v5768_v12 = vld [vmem:[#allocation12 + $0x238] sm:$0xff] }
  0x94   :  { %10490 = vst [vmem:[#allocation91_spill] sm:$0xff] %v5756_v22  ;;  %650 = vmatpush.msra.mxu2 %v5774_v56 }
  0x95   :  { %719 = vmatpush.msrb.mxu1 %v5749_v20  ;;  %760 = vmatpush.msrb.mxu3 %v5756_v22  ;;  %10491 = vst [vmem:[#allocation92_spill] sm:$0xff] %v5762_v60  ;;  %v5772_v20 = vld [vmem:[#allocation12 + $0x180] sm:$0xff]  ;;  %v5778_v22 = vld [vmem:[#allocation12 + $0x210] sm:$0xff] }
  0x96   :  { %10492 = vst [vmem:[#allocation93_spill] sm:$0xff] %v5766_v32  ;;  %610 = vmatpush.msra.mxu0 %v5772_v20  ;;  %v5784_v60 = vld [vmem:[#allocation12 + $0x160] sm:$0xff] }
  0x97   :  { %720 = vmatpush.msrb.mxu1 %v5754_v30  ;;  %10493 = vst [vmem:[#allocation94_spill] sm:$0xff] %v5768_v12  ;;  %761 = vmatpush.msrb.mxu3 %v5768_v12  ;;  %v5780_v30 = vld [vmem:[#allocation12 + $0x218] sm:$0xff]  ;;  %v5788_v12 = vld [vmem:[#allocation12 + $0x168] sm:$0xff] }
  0x98   :  { %10494 = vst [vmem:[#allocation95_spill] sm:$0xff] %v5772_v20  ;;  %611 = vmatpush.msra.mxu0 %v5784_v60  ;;  %651 = vmatpush.msra.mxu2 %v5788_v12  ;;  %v5796_v20 = vld [vmem:[#allocation12 + $0x148] sm:$0xff] }
  0x99   :  { %721 = vmatpush.msrb.mxu1 %v5766_v32  ;;  %10495 = vst [vmem:[#allocation96_spill] sm:$0xff] %v5774_v56  ;;  %762 = vmatpush.msrb.mxu3 %v5780_v30  ;;  %v5786_v32 = vld [vmem:[#allocation4] sm:$0x3]  ;;  %v5794_v56 = vld [vmem:[#allocation12 + $0x140] sm:$0xff] }
  0x9a   :  { %10496 = vst [vmem:[#allocation97_spill] sm:$0xff] %v5778_v22  ;;  %643 = vmatmul.f32.vlgmr.msra.gmra.mxu1 %v5786_v32  ;;  %683 = vmatmul.f32.vlgmr.msra.gmra.mxu3 %v5786_v32 }
  0x9b   :  { %10497 = vst [vmem:[#allocation98_spill] sm:$0xff] %v5780_v30  ;;  %722 = vmatpush.msrb.mxu1 %v5778_v22  ;;  %893 = vmatpush.msra.mxu3 %v5364_v2  ;;  %v5802_v30 = vld [vmem:[#allocation12 + $0x120] sm:$0xff]  ;;  %v5804_v22 = vld [vmem:[#allocation12 + $0x128] sm:$0xff] }
  0x9c   :  { %10498 = vst [vmem:[#allocation99_spill] sm:$0xff] %v5788_v12  ;;  %612 = vmatpush.msra.mxu0 %v5794_v56  ;;  %652 = vmatpush.msra.mxu2 %v5796_v20  ;;  %v5810_v12 = vld [vmem:[#allocation12 + $0x100] sm:$0xff] }
  0x9d   :  { %853 = vmatpush.msra.mxu1 %v5369_v8  ;;  %894 = vmatpush.msra.mxu3 %v5367_v4  ;;  %v5812_v8 = vld [vmem:[#allocation12 + $0x108] sm:$0xff]  ;;  %v5818_v2 = vld [vmem:[#allocation12 + $0xe0] sm:$0xff] }
  0x9e   :  { %613 = vmatpush.msra.mxu0 %v5802_v30  ;;  %653 = vmatpush.msra.mxu2 %v5804_v22  ;;  %v5826_v4 = vld [vmem:[#allocation12 + $0xc0] sm:$0xff] }
  0x9f   :  { %854 = vmatpush.msra.mxu1 %v5374_v11  ;;  %895 = vmatpush.msra.mxu3 %v5372_v9  ;;  %v5820_v11 = vld [vmem:[#allocation12 + $0xe8] sm:$0xff]  ;;  %v5834_v9 = vld [vmem:[#allocation12 + $0xa0] sm:$0xff] }
  0xa0   :  { %614 = vmatpush.msra.mxu0 %v5810_v12  ;;  %654 = vmatpush.msra.mxu2 %v5812_v8 }
  0xa1   :  { %855 = vmatpush.msra.mxu1 %v5380_v15  ;;  %896 = vmatpush.msra.mxu3 %v5377_v13  ;;  %v5828_v15 = vld [vmem:[#allocation12 + $0xc8] sm:$0xff]  ;;  %v5842_v13 = vld [vmem:[#allocation12 + $0x80] sm:$0xff] }
  0xa2   :  { %615 = vmatpush.msra.mxu0 %v5818_v2  ;;  %655 = vmatpush.msra.mxu2 %v5820_v11 }
  0xa3   :  { %856 = vmatpush.msra.mxu1 %v5386_v19  ;;  %897 = vmatpush.msra.mxu3 %v5383_v17  ;;  %v5836_v19 = vld [vmem:[#allocation12 + $0xa8] sm:$0xff]  ;;  %v5850_v17 = vld [vmem:[#allocation12 + $0x60] sm:$0xff] }
  0xa4   :  { %616 = vmatpush.msra.mxu0 %v5826_v4  ;;  %656 = vmatpush.msra.mxu2 %v5828_v15  ;;  %10499 = vst [vmem:[#allocation100_spill] sm:$0xff] %v5850_v17 }
  0xa5   :  { %857 = vmatpush.msra.mxu1 %v5392_v23  ;;  %898 = vmatpush.msra.mxu3 %v5389_v21  ;;  %v5844_v23 = vld [vmem:[#allocation12 + $0x88] sm:$0xff]  ;;  %v5858_v21 = vld [vmem:[#allocation12 + $0x40] sm:$0xff] }
  0xa6   :  { %617 = vmatpush.msra.mxu0 %v5834_v9  ;;  %657 = vmatpush.msra.mxu2 %v5836_v19  ;;  %10501 = vst [vmem:[#allocation102_spill] sm:$0xff] %v5858_v21 }
  0xa7   :  { %858 = vmatpush.msra.mxu1 %v5398_v27  ;;  %899 = vmatpush.msra.mxu3 %v5395_v25  ;;  %v5852_v27 = vld [vmem:[#allocation12 + $0x68] sm:$0xff]  ;;  %v5864_v25 = vld [vmem:[#allocation11] sm:$0xf] }
  0xa8   :  { %618 = vmatpush.msra.mxu0 %v5842_v13  ;;  %658 = vmatpush.msra.mxu2 %v5844_v23  ;;  %10500 = vst [vmem:[#allocation101_spill] sm:$0xff] %v5852_v27 }
  0xa9   :  { %859 = vmatpush.msra.mxu1 %v5404_v31  ;;  %900 = vmatpush.msra.mxu3 %v5401_v29  ;;  %v5860_v31 = vld [vmem:[#allocation12 + $0x48] sm:$0xff] }
  0xaa   :  { %619 = vmatpush.msra.mxu0 %v5850_v17  ;;  %659 = vmatpush.msra.mxu2 %v5852_v27  ;;  %10502 = vst [vmem:[#allocation103_spill] sm:$0xff] %v5860_v31  ;;  %v5870_v29 = vld [vmem:[#allocation12 + $0x28] sm:$0xff] }
  0xab   :  { %860 = vmatpush.msra.mxu1 %v5410_v35  ;;  %901 = vmatpush.msra.mxu3 %v5407_v33  ;;  %v5868_v35 = vld [vmem:[#allocation12 + $0x20] sm:$0xff]  ;;  %10504 = vst [vmem:[#allocation105_spill] sm:$0xff] %v5870_v29  ;;  %v5878_v33 = vld [vmem:[#allocation12 + $0x8] sm:$0xff] }
  0xac   :  { %620 = vmatpush.msra.mxu0 %v5858_v21  ;;  %660 = vmatpush.msra.mxu2 %v5860_v31  ;;  %10503 = vst [vmem:[#allocation104_spill] sm:$0xff] %v5868_v35  ;;  %v5881_v21 = vperm.slane %v5864_v25, 0  ;;  %v5884_v31 = vperm.slane %v5864_v25, 1 }
  0xad   :  { %861 = vmatpush.msra.mxu1 %v5416_v39  ;;  %902 = vmatpush.msra.mxu3 %v5413_v37  ;;  %v5876_v39 = vld [vmem:[#allocation12] sm:$0xff]  ;;  %10506 = vst [vmem:[#allocation107_spill] sm:$0xff] %v5878_v33  ;;  %v5890_v37 = vld [vmem:[#allocation12 + $0x1f8] sm:$0xff] }
  0xae   :  { %621 = vmatpush.msra.mxu0 %v5868_v35  ;;  %661 = vmatpush.msra.mxu2 %v5870_v29  ;;  %10505 = vst [vmem:[#allocation106_spill] sm:$0xff] %v5876_v39  ;;  %v5896_v29 = vld [vmem:[#allocation12 + $0x1d0] sm:$0xff]  ;;  %v5898_v35 = vld [vmem:[#allocation12 + $0x1d8] sm:$0xff] }
  0xaf   :  { %862 = vmatpush.msra.mxu1 %v5422_v43  ;;  %10507 = vst [vmem:[#allocation108_spill] sm:$0xff] %v5881_v21  ;;  %903 = vmatpush.msra.mxu3 %v5419_v41  ;;  %v5888_v43 = vld [vmem:[#allocation12 + $0x1f0] sm:$0xff] }
  0xb0   :  { %10508 = vst [vmem:[#allocation109_spill] sm:$0xff] %v5884_v31  ;;  %622 = vmatpush.msra.mxu0 %v5876_v39  ;;  %662 = vmatpush.msra.mxu2 %v5878_v33 }
  0xb1   :  { %863 = vmatpush.msra.mxu1 %v5428_v47  ;;  %10509 = vst [vmem:[#allocation110_spill] sm:$0xff] %v5888_v43  ;;  %904 = vmatpush.msra.mxu3 %v5425_v45  ;;  %v5908_v45 = vld [vmem:[#allocation12 + $0x1b8] sm:$0xff] }
  0xb2   :  { %687 = vmatpush.msrb.mxu0 %v5888_v43  ;;  %727 = vmatpush.msrb.mxu2 %v5890_v37 }
  0xb3   :  { %864 = vmatpush.msra.mxu1 %v5434_v51  ;;  %905 = vmatpush.msra.mxu3 %v5431_v49  ;;  %v5906_v51 = vld [vmem:[#allocation12 + $0x1b0] sm:$0xff] }
  0xb4   :  { %688 = vmatpush.msrb.mxu0 %v5896_v29  ;;  %728 = vmatpush.msrb.mxu2 %v5898_v35 }
  0xb5   :  { %865 = vmatpush.msra.mxu1 %v5440_v55  ;;  %906 = vmatpush.msra.mxu3 %v5437_v53  ;;  %v5916_v55 = vld [vmem:[#allocation12 + $0x198] sm:$0xff] }
  0xb6   :  { %689 = vmatpush.msrb.mxu0 %v5906_v51  ;;  %729 = vmatpush.msrb.mxu2 %v5908_v45  ;;  %v5926_v53 = vld [vmem:[#allocation12 + $0x178] sm:$0xff] }
  0xb7   :  { %866 = vmatpush.msra.mxu1 %v5446_v59  ;;  %907 = vmatpush.msra.mxu3 %v5443_v57  ;;  %v5932_v57 = vld [vmem:[#allocation12 + $0x150] sm:$0xff]  ;;  %v5934_v59 = vld [vmem:[#allocation12 + $0x158] sm:$0xff] }
  0xb8   :  { %730 = vmatpush.msrb.mxu2 %v5916_v55  ;;  %723 = vmatmul.f32.vlgmr.msrb.gmra.mxu1 %v5786_v32 }
  0xb9   :  { %867 = vmatpush.msra.mxu1 %v5453_v0  ;;  %908 = vmatpush.msra.mxu3 %v5449_v61  ;;  %v5940_v0 = vld [vmem:[#allocation12 + $0x130] sm:$0xff]  ;;  %v5942_v61 = vld [vmem:[#allocation12 + $0x138] sm:$0xff] }
  0xba   :  { %731 = vmatpush.msrb.mxu2 %v5926_v53  ;;  %763 = vmatmul.f32.vlgmr.msrb.gmra.mxu3 %v5786_v32 }
  0xbb   :  { %868 = vmatpush.msra.mxu1 %v5458_v6  ;;  %973 = vmatpush.msrb.mxu3 %v5455_v1  ;;  %v5948_v6 = vld [vmem:[#allocation12 + $0x110] sm:$0xff] }
  0xbc   :  { %732 = vmatpush.msrb.mxu2 %v5934_v59 }
  0xbd   :  { %933 = vmatpush.msrb.mxu1 %v5464_v14  ;;  %974 = vmatpush.msrb.mxu3 %v5460_v7 }
  0xbe   :  { %733 = vmatpush.msrb.mxu2 %v5942_v61 }
  0xbf   :  { %v432_v47 = vpop.f32.mrf.mxu2  ;;  %934 = vmatpush.msrb.mxu1 %v5472_v24  ;;  %975 = vmatpush.msrb.mxu3 %v5466_v16  ;;  %v5960_v24 = vld [vmem:[#allocation12 + $0xf8] sm:$0xff]  ;;  %v5978_v16 = vld [vmem:[#allocation12 + $0xb0] sm:$0xff] }
  0xc0   :  { %v433_v39 = vadd.f32 %v432_v47, %v5884_v31  ;;  %v5922_v31 = vld [vmem:[#allocation12 + $0x170] sm:$0xff]  ;;  %10510 = vst [vmem:[#allocation111_spill] sm:$0xff] %v5978_v16 }
  0xc1   :  { %v392_v27 = vpop.f32.mrf.mxu0  ;;  %v452_v33 = vpop.f32.mrf.mxu3  ;;  %935 = vmatpush.msrb.mxu1 %v5482_v34  ;;  %976 = vmatpush.msrb.mxu3 %v5476_v28  ;;  %v5971_v34 = vld [vmem:[#allocation12 + $0xd8] sm:$0xff]  ;;  %v5986_v28 = vld [vmem:[#allocation12 + $0x90] sm:$0xff] }
  0xc2   :  { %v393_v41 = vadd.f32 %v392_v27, %v5881_v21  ;;  %v453_v17 = vadd.f32 %v452_v33, %v433_v39  ;;  %v5914_v27 = vld [vmem:[#allocation12 + $0x190] sm:$0xff]  ;;  %10512 = vst [vmem:[#allocation113_spill] sm:$0xff] %v5986_v28 }
  0xc3   :  { %v412_v43 = vpop.f32.mrf.mxu1  ;;  %690 = vmatpush.msrb.mxu0 %v5914_v27  ;;  %v5958_v33 = vld [vmem:[#allocation12 + $0xf0] sm:$0xff]  ;;  %936 = vmatpush.msrb.mxu1 %v5488_v42  ;;  %v5988_v42 = vld [vmem:[#allocation12 + $0x98] sm:$0xff] }
  0xc4   :  { %v413_v49 = vadd.f32 %v412_v43, %v393_v41  ;;  %v4007_v47 = vmul.f32 -1.442695, %v453_v17  ;;  %v5950_v17 = vld [vmem:[#allocation12 + $0x118] sm:$0xff]  ;;  %v5969_v43 = vld [vmem:[#allocation12 + $0xd0] sm:$0xff]  ;;  %977 = vmatpush.msrb.mxu3 %v5485_v38  ;;  %10513 = vst [vmem:[#allocation114_spill] sm:$0xff] %v5988_v42 }
  0xc5   :  { %691 = vmatpush.msrb.mxu0 %v5922_v31  ;;  %734 = vmatpush.msrb.mxu2 %v5950_v17  ;;  %v5980_v41 = vld [vmem:[#allocation12 + $0xb8] sm:$0xff] }
  0xc6   :  { %v4006_v39 = vmul.f32 -1.442695, %v413_v49  ;;  %4064 = vpow2.f32 %v4007_v47  ;;  %937 = vmatpush.msrb.mxu1 %v5494_v50  ;;  %10511 = vst [vmem:[#allocation112_spill] sm:$0xff] %v5980_v41  ;;  %978 = vmatpush.msrb.mxu3 %v5491_v46  ;;  %v5996_v50 = vld [vmem:[#allocation12 + $0x70] sm:$0xff]  ;;  %v5998_v49 = vld [vmem:[#allocation12 + $0x78] sm:$0xff]  ;;  %v6005_v47 = vperm.slane %v5864_v25, 2 }
  0xc7   :  { %692 = vmatpush.msrb.mxu0 %v5932_v57  ;;  %735 = vmatpush.msrb.mxu2 %v5960_v24  ;;  %10514 = vst [vmem:[#allocation115_spill] sm:$0xff] %v5996_v50 }
  0xc8   :  { %4066 = vpow2.f32 %v4006_v39  ;;  %938 = vmatpush.msrb.mxu1 %v5502_v58  ;;  %979 = vmatpush.msrb.mxu3 %v5497_v54  ;;  %10515 = vst [vmem:[#allocation116_spill] sm:$0xff] %v5998_v49  ;;  %v6008_v39 = vperm.slane %v5864_v25, 3 }
  0xc9   :  { %693 = vmatpush.msrb.mxu0 %v5940_v0  ;;  %736 = vmatpush.msrb.mxu2 %v5971_v34  ;;  %10516 = vst [vmem:[#allocation117_spill] sm:$0xff] %v6005_v47 }
  0xca   :  { %939 = vmatpush.msrb.mxu1 %v5508_v3  ;;  %10517 = vst [vmem:[#allocation118_spill] sm:$0xff] %v6008_v39  ;;  %980 = vmatpush.msrb.mxu3 %v5505_v62 }
  0xcb   :  { %694 = vmatpush.msrb.mxu0 %v5948_v6  ;;  %737 = vmatpush.msrb.mxu2 %v5980_v41 }
  0xcc   :  { %v4065_v32 = vpop.eup %4064  ;;  %940 = vmatpush.msrb.mxu1 %v5514_v18  ;;  %981 = vmatpush.msrb.mxu3 %v5511_v10  ;;  %v6026_v18 = vld [vmem:[#allocation12 + $0x38] sm:$0xff] }
  0xcd   :  { %v5954_v14 = vadd.f32 1.0, %v4065_v32  ;;  %695 = vmatpush.msrb.mxu0 %v5958_v33  ;;  %738 = vmatpush.msrb.mxu2 %v5988_v42  ;;  %v6016_v32 = vld [vmem:[#allocation12 + $0x50] sm:$0xff]  ;;  %v6036_v10 = vld [vmem:[#allocation12 + $0x18] sm:$0xff] }
  0xce   :  { %v4067_v1 = vpop.eup %4066  ;;  %941 = vmatpush.msrb.mxu1 %v5520_v36  ;;  %v6024_v42 = vld [vmem:[#allocation12 + $0x30] sm:$0xff] }
  0xcf   :  { %v5962_v7 = vadd.f32 1.0, %v4067_v1  ;;  %4068 = vrcp.f32 %v5954_v14  ;;  %696 = vmatpush.msrb.mxu0 %v5969_v43  ;;  %v6018_v1 = vld [vmem:[#allocation12 + $0x58] sm:$0xff]  ;;  %739 = vmatpush.msrb.mxu2 %v5998_v49  ;;  %v6034_v36 = vld [vmem:[#allocation12 + $0x10] sm:$0xff]  ;;  %vm563_vm0 = vweird.f32 %v5954_v14 }
  0xd1   :  { %4070 = vrcp.f32 %v5962_v7  ;;  %697 = vmatpush.msrb.mxu0 %v5978_v16  ;;  %740 = vmatpush.msrb.mxu2 %v6018_v1  ;;  %vm544_vm2 = vweird.f32 %v5962_v7 }
  0xd3   :  { %698 = vmatpush.msrb.mxu0 %v5986_v28  ;;  %741 = vmatpush.msrb.mxu2 %v6026_v18 }
  0xd5   :  { %v5992_v38 = vpop.eup %4068  ;;  %699 = vmatpush.msrb.mxu0 %v5996_v50  ;;  %v10519_v50 = vld [vmem:[#allocation20_spill] sm:$0xff]  ;;  %742 = vmatpush.msrb.mxu2 %v6036_v10 }
  0xd6   :  { %v559_v46 = vmul.f32 %v5992_v38, %v5954_v14  ;;  %982 = vmatpush.msrb.mxu3 %v10519_v50  ;;  %vm564_vm1 = vweird.f32 %v5992_v38 }
  0xd7   :  { %v6000_v58 = vpop.eup %4070  ;;  %v472_v3 = vpop.f32.mrf.mxu0  ;;  %700 = vmatpush.msrb.mxu0 %v6016_v32  ;;  %vm6054_vm4 = vmor %vm563_vm0, %vm564_vm1 }
  0xd8   :  { %v540_v54 = vmul.f32 %v6000_v58, %v5962_v7  ;;  %v560_v21 = vsub.f32 1.0, %v559_v46  ;;  %v473_v62 = vadd.f32 %v472_v3, %v6005_v47  ;;  %v10518_v46 = vld [vmem:[#allocation22_spill] sm:$0xff]  ;;  %v10521_v47 = vld [vmem:[#allocation21_spill] sm:$0xff]  ;;  %vm545_vm3 = vweird.f32 %v6000_v58 }
  0xd9   :  { %v492_v49 = vpop.f32.mrf.mxu1  ;;  %942 = vmatpush.msrb.mxu1 %v10518_v46  ;;  %701 = vmatpush.msrb.mxu0 %v6024_v42  ;;  %vm6064_vm5 = vmor %vm544_vm2, %vm545_vm3 }
  0xda   :  { %v541_v25 = vsub.f32 1.0, %v540_v54  ;;  %983 = vmatpush.msrb.mxu3 %v10521_v47  ;;  %v493_v50 = vadd.f32 %v492_v49, %v473_v62  ;;  %v550_v47 = vand.u32 2147483648, %v5962_v7  ;;  %v567_v62 = vand.u32 2147483647, %v5954_v14 }
  0xdb   :  { %v512_v28 = vpop.f32.mrf.mxu2  ;;  %702 = vmatpush.msrb.mxu0 %v6034_v36 }
  0xdc   :  { %v513_v41 = vadd.f32 %v512_v28, %v6008_v39  ;;  %v561_v28 = vmul.f32 %v5992_v38, %v560_v21  ;;  %v542_v3 = vmul.f32 %v6000_v58, %v541_v25  ;;  %v10520_v39 = vld [vmem:[#allocation24_spill] sm:$0xff]  ;;  %v10522_v21 = vld [vmem:[#allocation23_spill] sm:$0xff]  ;;  %vm568_vm7 = vcmp.eq.f32.partialorder %v567_v62, 8.507059e+37 }
  0xdd   :  { %v532_v54 = vpop.f32.mrf.mxu3  ;;  %943 = vmatpush.msrb.mxu1 %v10520_v39  ;;  %984 = vmatpush.msrb.mxu3 %v10522_v21  ;;  %v548_v39 = vand.u32 2147483647, %v5962_v7  ;;  %v10530_v21 = vld [vmem:[#allocation30_spill] sm:$0xff] }
  0xde   :  { %v533_v16 = vadd.f32 %v532_v54, %v513_v41  ;;  %v569_v41 = vand.u32 2147483648, %v5954_v14  ;;  %v562_v25 = vadd.f32 %v5992_v38, %v561_v28  ;;  %v10528_v14 = vld [vmem:[#allocation28_spill] sm:$0xff]  ;;  %v10529_v28 = vld [vmem:[#allocation26_spill] sm:$0xff] }
  0xdf   :  { %944 = vmatpush.msrb.mxu1 %v5538_v26  ;;  %v10525_v26 = vld [vmem:[#allocation25_spill] sm:$0xff]  ;;  %vm549_vm6 = vcmp.eq.f32.partialorder %v548_v39, 8.507059e+37 }
  0xe0   :  { %v4008_v46 = vmul.f32 -1.442695, %v533_v16  ;;  %v543_v16 = vadd.f32 %v6000_v58, %v542_v3  ;;  %985 = vmatpush.msrb.mxu3 %v10525_v26  ;;  %v570_v3 = vor.u32 1.1754944e-38, %v569_v41 }
  0xe1   :  { %945 = vmatpush.msrb.mxu1 %v5544_v52  ;;  %v566_v52 = vsel %vm6054_vm4, %v5992_v38, %v562_v25 }
  0xe2   :  { %4072 = vpow2.f32 %v4008_v46  ;;  %986 = vmatpush.msrb.mxu3 %v5541_v44  ;;  %v551_v46 = vor.u32 1.1754944e-38, %v550_v47  ;;  %v547_v7 = vsel %vm6064_vm5, %v6000_v58, %v543_v16  ;;  %v10531_v44 = vld [vmem:[#allocation27_spill] sm:$0xff]  ;;  %v362_v47 = vld [vmem:[#allocation3] sm:$0x3]  ;;  %v571_v58 = vsel %vm568_vm7, %v570_v3, %v566_v52 }
  0xe3   :  { %4074 = vtanh.f32 %v493_v50  ;;  %946 = vmatpush.msrb.mxu1 %v5550_v5  ;;  %v593_v16 = vmul.f32 %v571_v58, %v362_v47  ;;  %v10532_v47 = vld [vmem:[#allocation32_spill] sm:$0xff]  ;;  %v10533_v58 = vld [vmem:[#allocation29_spill] sm:$0xff] }
  0xe4   :  { %987 = vmatpush.msrb.mxu3 %v10529_v28  ;;  %v552_v26 = vsel %vm549_vm6, %v551_v46, %v547_v7 }
  0xe5   :  { %947 = vmatpush.msrb.mxu1 %v10528_v14 }
  0xe6   :  { %988 = vmatpush.msrb.mxu3 %v10531_v44  ;;  %v6083_v44 = vld [vmem:[#allocation9 + $0x1e0] sm:$0xff] }
  0xe7   :  { %948 = vmatpush.msrb.mxu1 %v10530_v21 }
  0xe8   :  { %v4073_v50 = vpop.eup %4072 }
  0xe9   :  { %v577_v5 = vadd.f32 1.0, %v4073_v50  ;;  %v4075_v41 = vpop.eup %4074 }
  0xea   :  { %v594_v39 = vmul.f32 %v4075_v41, %v552_v26  ;;  %v6086_v41 = vld [vmem:[#allocation9 + $0x1e8] sm:$0xff] }
  0xeb   :  { %4076 = vrcp.f32 %v577_v5  ;;  %v589_v54 = vand.u32 2147483648, %v577_v5  ;;  %v587_v28 = vand.u32 2147483647, %v577_v5  ;;  %vm583_vm9 = vweird.f32 %v577_v5  ;;  %v6093_v26 = vld [vmem:[#allocation9 + $0x1c8] sm:$0xff] }
  0xec   :  { %v6080_v38 = vadd.f32 %v594_v39, %v593_v16  ;;  %v6097_v16 = vld [vmem:[#allocation9 + $0x1a0] sm:$0xff]  ;;  %v10534_v39 = vld [vmem:[#allocation34_spill] sm:$0xff] }
  0xed   :  { %v590_v21 = vor.u32 1.1754944e-38, %v589_v54  ;;  %vm588_vm11 = vcmp.eq.f32.partialorder %v587_v28, 8.507059e+37  ;;  %v10536_v54 = vld [vmem:[#allocation36_spill] sm:$0xff]  ;;  %v6112_v28 = vld [vmem:[#allocation9 + $0x160] sm:$0xff] }
  0xee   :  { %4078 = vtanh.f32 %v6080_v38 }
  0xf1   :  { %v4077_v49 = vpop.eup %4076 }
  0xf2   :  { %v579_v25 = vmul.f32 %v4077_v49, %v577_v5  ;;  %vm584_vm8 = vweird.f32 %v4077_v49  ;;  %v6089_v5 = vld [vmem:[#allocation9 + $0x1c0] sm:$0xff] }
  0xf3   :  { %vm585_vm10 = vmor %vm583_vm9, %vm584_vm8 }
  0xf4   :  { %v580_v62 = vsub.f32 1.0, %v579_v25  ;;  %v4079_v3 = vpop.eup %4078  ;;  %v10535_v25 = vld [vmem:[#allocation31_spill] sm:$0xff] }
  0xf6   :  { %v581_v14 = vmul.f32 %v4077_v49, %v580_v62  ;;  %v6105_v62 = vld [vmem:[#allocation9 + $0x180] sm:$0xff] }
  0xf8   :  { %v582_v50 = vadd.f32 %v4077_v49, %v581_v14  ;;  %v6109_v14 = vld [vmem:[#allocation9 + $0x188] sm:$0xff] }
  0xfa   :  { %v586_v46 = vsel %vm585_vm10, %v4077_v49, %v582_v50  ;;  %v6101_v49 = vld [vmem:[#allocation9 + $0x1a8] sm:$0xff] }
  0xfb   :  { %v591_v7 = vsel %vm588_vm11, %v590_v21, %v586_v46  ;;  %v6115_v50 = vld [vmem:[#allocation9 + $0x168] sm:$0xff]  ;;  %v6118_v21 = vld [vmem:[#allocation9 + $0x140] sm:$0xff] }
  0xfc   :  { %v597_v52 = vmul.f32 %v4079_v3, %v591_v7  ;;  %v6121_v46 = vld [vmem:[#allocation9 + $0x148] sm:$0xff]  ;;  %v10537_v3 = vld [vmem:[#allocation33_spill] sm:$0xff] }
  0xfd   :  { %v6125_v7 = vld [vmem:[#allocation9 + $0x120] sm:$0xff] }
  0xfe   :  { %623 = vmatmul.f32.vlgmr.msra.gmra.mxu0 %v597_v52  ;;  %663 = vmatmul.f32.vlgmr.msra.gmra.mxu2 %v597_v52  ;;  %10538 = vst [vmem:[#allocation22_spill] sm:$0xff] %v6125_v7 }
  0xff   :  { %833 = vmatpush.msra.mxu0 %v6083_v44  ;;  %869 = vmatmul.f32.vlgmr.msra.gmra.mxu1 %v597_v52 }
 0x100   :  { %873 = vmatpush.msra.mxu2 %v6086_v41  ;;  %909 = vmatmul.f32.vlgmr.msra.gmra.mxu3 %v597_v52 }
 0x101   :  { %834 = vmatpush.msra.mxu0 %v6089_v5  ;;  %1076 = vmatpush.msra.mxu1 %v10532_v47  ;;  %v10539_v47 = vld [vmem:[#allocation38_spill] sm:$0xff] }
 0x102   :  { %874 = vmatpush.msra.mxu2 %v6093_v26  ;;  %1116 = vmatpush.msra.mxu3 %v10533_v58  ;;  %v6129_v58 = vld [vmem:[#allocation9 + $0x128] sm:$0xff] }
 0x103   :  { %835 = vmatpush.msra.mxu0 %v6097_v16  ;;  %1077 = vmatpush.msra.mxu1 %v10534_v39  ;;  %10540 = vst [vmem:[#allocation20_spill] sm:$0xff] %v6129_v58  ;;  %v6133_v39 = vld [vmem:[#allocation9 + $0x100] sm:$0xff] }
 0x104   :  { %875 = vmatpush.msra.mxu2 %v6101_v49  ;;  %1117 = vmatpush.msra.mxu3 %v10535_v25  ;;  %10542 = vst [vmem:[#allocation24_spill] sm:$0xff] %v6133_v39  ;;  %v10543_v25 = vld [vmem:[#allocation40_spill] sm:$0xff] }
 0x105   :  { %836 = vmatpush.msra.mxu0 %v6105_v62  ;;  %1078 = vmatpush.msra.mxu1 %v10536_v54  ;;  %v6137_v54 = vld [vmem:[#allocation9 + $0x108] sm:$0xff] }
 0x106   :  { %876 = vmatpush.msra.mxu2 %v6109_v14  ;;  %703 = vmatmul.f32.vlgmr.msrb.gmra.mxu0 %v597_v52  ;;  %10544 = vst [vmem:[#allocation21_spill] sm:$0xff] %v6137_v54 }
 0x107   :  { %743 = vmatmul.f32.vlgmr.msrb.gmra.mxu2 %v597_v52  ;;  %837 = vmatpush.msra.mxu0 %v6112_v28 }
 0x108   :  { %877 = vmatpush.msra.mxu2 %v6115_v50  ;;  %949 = vmatmul.f32.vlgmr.msrb.gmra.mxu1 %v597_v52 }
 0x109   :  { %989 = vmatmul.f32.vlgmr.msrb.gmra.mxu3 %v597_v52  ;;  %838 = vmatpush.msra.mxu0 %v6118_v21  ;;  %v10541_v52 = vld [vmem:[#allocation35_spill] sm:$0xff] }
 0x10a   :  { %878 = vmatpush.msra.mxu2 %v6121_v46  ;;  %1118 = vmatpush.msra.mxu3 %v10537_v3  ;;  %v10545_v3 = vld [vmem:[#allocation37_spill] sm:$0xff] }
 0x10b   :  { %839 = vmatpush.msra.mxu0 %v6125_v7  ;;  %1079 = vmatpush.msra.mxu1 %v10539_v47  ;;  %v6141_v7 = vld [vmem:[#allocation9 + $0xe0] sm:$0xff]  ;;  %v10547_v47 = vld [vmem:[#allocation42_spill] sm:$0xff] }
 0x10c   :  { %879 = vmatpush.msra.mxu2 %v6129_v58  ;;  %1119 = vmatpush.msra.mxu3 %v10541_v52  ;;  %10546 = vst [vmem:[#allocation23_spill] sm:$0xff] %v6141_v7  ;;  %v6145_v58 = vld [vmem:[#allocation9 + $0xe8] sm:$0xff]  ;;  %v10549_v52 = vld [vmem:[#allocation39_spill] sm:$0xff] }
 0x10d   :  { %840 = vmatpush.msra.mxu0 %v6133_v39  ;;  %1080 = vmatpush.msra.mxu1 %v10543_v25  ;;  %10548 = vst [vmem:[#allocation25_spill] sm:$0xff] %v6145_v58  ;;  %v6149_v39 = vld [vmem:[#allocation9 + $0xc0] sm:$0xff]  ;;  %v10551_v25 = vld [vmem:[#allocation44_spill] sm:$0xff] }
 0x10e   :  { %880 = vmatpush.msra.mxu2 %v6137_v54  ;;  %1120 = vmatpush.msra.mxu3 %v10545_v3  ;;  %10550 = vst [vmem:[#allocation28_spill] sm:$0xff] %v6149_v39  ;;  %v6153_v54 = vld [vmem:[#allocation9 + $0xc8] sm:$0xff]  ;;  %v10553_v3 = vld [vmem:[#allocation41_spill] sm:$0xff] }
 0x10f   :  { %841 = vmatpush.msra.mxu0 %v6141_v7  ;;  %1081 = vmatpush.msra.mxu1 %v10547_v47  ;;  %10552 = vst [vmem:[#allocation26_spill] sm:$0xff] %v6153_v54  ;;  %v6157_v7 = vld [vmem:[#allocation9 + $0xa0] sm:$0xff]  ;;  %v10555_v47 = vld [vmem:[#allocation46_spill] sm:$0xff] }
 0x110   :  { %881 = vmatpush.msra.mxu2 %v6145_v58  ;;  %1121 = vmatpush.msra.mxu3 %v10549_v52  ;;  %10554 = vst [vmem:[#allocation30_spill] sm:$0xff] %v6157_v7  ;;  %v6161_v58 = vld [vmem:[#allocation9 + $0xa8] sm:$0xff]  ;;  %v10557_v52 = vld [vmem:[#allocation43_spill] sm:$0xff] }
 0x111   :  { %842 = vmatpush.msra.mxu0 %v6149_v39  ;;  %1082 = vmatpush.msra.mxu1 %v10551_v25  ;;  %10556 = vst [vmem:[#allocation27_spill] sm:$0xff] %v6161_v58  ;;  %v6165_v39 = vld [vmem:[#allocation9 + $0x80] sm:$0xff]  ;;  %v10559_v25 = vld [vmem:[#allocation48_spill] sm:$0xff] }
 0x112   :  { %882 = vmatpush.msra.mxu2 %v6153_v54  ;;  %1122 = vmatpush.msra.mxu3 %v10553_v3  ;;  %10558 = vst [vmem:[#allocation32_spill] sm:$0xff] %v6165_v39  ;;  %v6169_v54 = vld [vmem:[#allocation9 + $0x88] sm:$0xff]  ;;  %v10561_v3 = vld [vmem:[#allocation45_spill] sm:$0xff] }
 0x113   :  { %843 = vmatpush.msra.mxu0 %v6157_v7  ;;  %1083 = vmatpush.msra.mxu1 %v10555_v47  ;;  %10560 = vst [vmem:[#allocation29_spill] sm:$0xff] %v6169_v54  ;;  %v6173_v7 = vld [vmem:[#allocation9 + $0x60] sm:$0xff]  ;;  %v10563_v47 = vld [vmem:[#allocation50_spill] sm:$0xff] }
 0x114   :  { %883 = vmatpush.msra.mxu2 %v6161_v58  ;;  %1123 = vmatpush.msra.mxu3 %v10557_v52  ;;  %10562 = vst [vmem:[#allocation34_spill] sm:$0xff] %v6173_v7  ;;  %v6177_v58 = vld [vmem:[#allocation9 + $0x68] sm:$0xff]  ;;  %v10565_v52 = vld [vmem:[#allocation47_spill] sm:$0xff] }
 0x115   :  { %844 = vmatpush.msra.mxu0 %v6165_v39  ;;  %1084 = vmatpush.msra.mxu1 %v10559_v25  ;;  %10564 = vst [vmem:[#allocation31_spill] sm:$0xff] %v6177_v58  ;;  %v6181_v39 = vld [vmem:[#allocation9 + $0x40] sm:$0xff]  ;;  %v10567_v25 = vld [vmem:[#allocation52_spill] sm:$0xff] }
 0x116   :  { %884 = vmatpush.msra.mxu2 %v6169_v54  ;;  %1124 = vmatpush.msra.mxu3 %v10561_v3  ;;  %10566 = vst [vmem:[#allocation36_spill] sm:$0xff] %v6181_v39  ;;  %v6185_v54 = vld [vmem:[#allocation9 + $0x48] sm:$0xff]  ;;  %v10569_v3 = vld [vmem:[#allocation49_spill] sm:$0xff] }
 0x117   :  { %845 = vmatpush.msra.mxu0 %v6173_v7  ;;  %1085 = vmatpush.msra.mxu1 %v10563_v47  ;;  %10568 = vst [vmem:[#allocation33_spill] sm:$0xff] %v6185_v54  ;;  %v6189_v7 = vld [vmem:[#allocation9 + $0x20] sm:$0xff]  ;;  %v6192_v47 = vld [vmem:[#allocation6 + $0x2] sm:$0x3] }
 0x118   :  { %885 = vmatpush.msra.mxu2 %v6177_v58  ;;  %1125 = vmatpush.msra.mxu3 %v10565_v52  ;;  %10570 = vst [vmem:[#allocation38_spill] sm:$0xff] %v6189_v7  ;;  %v10571_v58 = vld [vmem:[#allocation54_spill] sm:$0xff] }
 0x119   :  { %846 = vmatpush.msra.mxu0 %v6181_v39  ;;  %1086 = vmatpush.msra.mxu1 %v10567_v25  ;;  %v6195_v52 = vld [vmem:[#allocation9 + $0x28] sm:$0xff]  ;;  %v10573_v39 = vld [vmem:[#allocation51_spill] sm:$0xff]  ;;  %v6199_v25 = vld [vmem:[#allocation9] sm:$0xff] }
 0x11a   :  { %886 = vmatpush.msra.mxu2 %v6185_v54  ;;  %1126 = vmatpush.msra.mxu3 %v10569_v3  ;;  %10572 = vst [vmem:[#allocation35_spill] sm:$0xff] %v6195_v52  ;;  %v10575_v54 = vld [vmem:[#allocation56_spill] sm:$0xff]  ;;  %v6203_v3 = vld [vmem:[#allocation9 + $0x8] sm:$0xff] }
 0x11b   :  { %847 = vmatpush.msra.mxu0 %v6189_v7  ;;  %1087 = vmatpush.msra.mxu1 %v10571_v58  ;;  %10574 = vst [vmem:[#allocation40_spill] sm:$0xff] %v6199_v25  ;;  %v6208_v58 = vld [vmem:[#allocation9 + $0x1f0] sm:$0xff] }
 0x11c   :  { %887 = vmatpush.msra.mxu2 %v6195_v52  ;;  %1127 = vmatpush.msra.mxu3 %v10573_v39  ;;  %10576 = vst [vmem:[#allocation37_spill] sm:$0xff] %v6203_v3  ;;  %v6211_v52 = vld [vmem:[#allocation9 + $0x1f8] sm:$0xff]  ;;  %v10579_v39 = vld [vmem:[#allocation53_spill] sm:$0xff]  ;;  %v6223_v7 = vld [vmem:[#allocation9 + $0x1b0] sm:$0xff] }
 0x11d   :  { %848 = vmatpush.msra.mxu0 %v6199_v25  ;;  %1088 = vmatpush.msra.mxu1 %v10575_v54  ;;  %10577 = vst [vmem:[#allocation42_spill] sm:$0xff] %v6208_v58  ;;  %v6215_v25 = vld [vmem:[#allocation9 + $0x1d0] sm:$0xff]  ;;  %v6219_v54 = vld [vmem:[#allocation9 + $0x1d8] sm:$0xff] }
 0x11e   :  { %888 = vmatpush.msra.mxu2 %v6203_v3  ;;  %849 = vmatmul.f32.vlgmr.msra.gmra.mxu0 %v6192_v47  ;;  %10578 = vst [vmem:[#allocation39_spill] sm:$0xff] %v6211_v52  ;;  %v10582_v3 = vld [vmem:[#allocation55_spill] sm:$0xff] }
 0x11f   :  { %889 = vmatmul.f32.vlgmr.msra.gmra.mxu2 %v6192_v47  ;;  %913 = vmatpush.msrb.mxu0 %v6208_v58  ;;  %10580 = vst [vmem:[#allocation44_spill] sm:$0xff] %v6215_v25  ;;  %v10584_v58 = vld [vmem:[#allocation63_spill] sm:$0xff] }
 0x120   :  { %953 = vmatpush.msrb.mxu2 %v6211_v52  ;;  %1128 = vmatpush.msra.mxu3 %v10579_v39  ;;  %10581 = vst [vmem:[#allocation41_spill] sm:$0xff] %v6219_v54  ;;  %v6227_v52 = vld [vmem:[#allocation9 + $0x1b8] sm:$0xff]  ;;  %v10586_v39 = vld [vmem:[#allocation59_spill] sm:$0xff] }
 0x121   :  { %914 = vmatpush.msrb.mxu0 %v6215_v25  ;;  %1089 = vmatpush.msra.mxu1 %v5654_v63  ;;  %10583 = vst [vmem:[#allocation46_spill] sm:$0xff] %v6223_v7  ;;  %v6231_v25 = vld [vmem:[#allocation9 + $0x190] sm:$0xff]  ;;  %v10588_v63 = vld [vmem:[#allocation65_spill] sm:$0xff] }
 0x122   :  { %954 = vmatpush.msrb.mxu2 %v6219_v54  ;;  %1129 = vmatpush.msra.mxu3 %v10582_v3  ;;  %10585 = vst [vmem:[#allocation43_spill] sm:$0xff] %v6227_v52  ;;  %v6235_v54 = vld [vmem:[#allocation9 + $0x198] sm:$0xff]  ;;  %v10590_v3 = vld [vmem:[#allocation62_spill] sm:$0xff] }
 0x123   :  { %915 = vmatpush.msrb.mxu0 %v6223_v7  ;;  %1090 = vmatpush.msra.mxu1 %v10584_v58  ;;  %10587 = vst [vmem:[#allocation48_spill] sm:$0xff] %v6231_v25  ;;  %v6239_v7 = vld [vmem:[#allocation9 + $0x170] sm:$0xff] }
 0x124   :  { %955 = vmatpush.msrb.mxu2 %v6227_v52  ;;  %1130 = vmatpush.msra.mxu3 %v10586_v39  ;;  %10589 = vst [vmem:[#allocation45_spill] sm:$0xff] %v6235_v54  ;;  %v10592_v58 = vld [vmem:[#allocation67_spill] sm:$0xff]  ;;  %v6243_v52 = vld [vmem:[#allocation9 + $0x178] sm:$0xff] }
 0x125   :  { %916 = vmatpush.msrb.mxu0 %v6231_v25  ;;  %1091 = vmatpush.msra.mxu1 %v10588_v63  ;;  %10591 = vst [vmem:[#allocation50_spill] sm:$0xff] %v6239_v7  ;;  %v10594_v39 = vld [vmem:[#allocation64_spill] sm:$0xff]  ;;  %v6247_v25 = vld [vmem:[#allocation9 + $0x150] sm:$0xff]  ;;  %v10596_v63 = vld [vmem:[#allocation69_spill] sm:$0xff] }
 0x126   :  { %956 = vmatpush.msrb.mxu2 %v6235_v54  ;;  %1131 = vmatpush.msra.mxu3 %v10590_v3  ;;  %10593 = vst [vmem:[#allocation47_spill] sm:$0xff] %v6243_v52  ;;  %v6251_v54 = vld [vmem:[#allocation9 + $0x158] sm:$0xff]  ;;  %v10598_v3 = vld [vmem:[#allocation66_spill] sm:$0xff] }
 0x127   :  { %917 = vmatpush.msrb.mxu0 %v6239_v7  ;;  %1156 = vmatpush.msrb.mxu1 %v10592_v58  ;;  %10595 = vst [vmem:[#allocation52_spill] sm:$0xff] %v6247_v25  ;;  %v6255_v7 = vld [vmem:[#allocation9 + $0x130] sm:$0xff] }
 0x128   :  { %957 = vmatpush.msrb.mxu2 %v6243_v52  ;;  %1196 = vmatpush.msrb.mxu3 %v10594_v39  ;;  %10597 = vst [vmem:[#allocation49_spill] sm:$0xff] %v6251_v54  ;;  %v10600_v58 = vld [vmem:[#allocation71_spill] sm:$0xff]  ;;  %v6259_v52 = vld [vmem:[#allocation9 + $0x138] sm:$0xff] }
 0x129   :  { %918 = vmatpush.msrb.mxu0 %v6247_v25  ;;  %1157 = vmatpush.msrb.mxu1 %v10596_v63  ;;  %10599 = vst [vmem:[#allocation54_spill] sm:$0xff] %v6255_v7  ;;  %v10602_v39 = vld [vmem:[#allocation68_spill] sm:$0xff]  ;;  %v6263_v25 = vld [vmem:[#allocation9 + $0x110] sm:$0xff]  ;;  %v10604_v63 = vld [vmem:[#allocation73_spill] sm:$0xff] }
 0x12a   :  { %958 = vmatpush.msrb.mxu2 %v6251_v54  ;;  %1197 = vmatpush.msrb.mxu3 %v10598_v3  ;;  %10601 = vst [vmem:[#allocation51_spill] sm:$0xff] %v6259_v52  ;;  %v6267_v54 = vld [vmem:[#allocation9 + $0x118] sm:$0xff]  ;;  %v10606_v3 = vld [vmem:[#allocation70_spill] sm:$0xff] }
 0x12b   :  { %919 = vmatpush.msrb.mxu0 %v6255_v7  ;;  %1158 = vmatpush.msrb.mxu1 %v10600_v58  ;;  %10603 = vst [vmem:[#allocation56_spill] sm:$0xff] %v6263_v25  ;;  %v6271_v7 = vld [vmem:[#allocation9 + $0xf0] sm:$0xff] }
 0x12c   :  { %959 = vmatpush.msrb.mxu2 %v6259_v52  ;;  %1198 = vmatpush.msrb.mxu3 %v10602_v39  ;;  %10605 = vst [vmem:[#allocation53_spill] sm:$0xff] %v6267_v54  ;;  %v10608_v58 = vld [vmem:[#allocation75_spill] sm:$0xff]  ;;  %v6275_v52 = vld [vmem:[#allocation9 + $0xf8] sm:$0xff] }
 0x12d   :  { %920 = vmatpush.msrb.mxu0 %v6263_v25  ;;  %1159 = vmatpush.msrb.mxu1 %v10604_v63  ;;  %10607 = vst [vmem:[#allocation55_spill] sm:$0xff] %v6271_v7  ;;  %v10610_v39 = vld [vmem:[#allocation72_spill] sm:$0xff]  ;;  %v6279_v25 = vld [vmem:[#allocation9 + $0xd0] sm:$0xff]  ;;  %v10612_v63 = vld [vmem:[#allocation77_spill] sm:$0xff] }
 0x12e   :  { %960 = vmatpush.msrb.mxu2 %v6267_v54  ;;  %1199 = vmatpush.msrb.mxu3 %v10606_v3  ;;  %10609 = vst [vmem:[#allocation63_spill] sm:$0xff] %v6275_v52  ;;  %v6283_v54 = vld [vmem:[#allocation9 + $0xd8] sm:$0xff]  ;;  %v10614_v3 = vld [vmem:[#allocation74_spill] sm:$0xff] }
 0x12f   :  { %921 = vmatpush.msrb.mxu0 %v6271_v7  ;;  %1160 = vmatpush.msrb.mxu1 %v10608_v58  ;;  %10611 = vst [vmem:[#allocation59_spill] sm:$0xff] %v6279_v25  ;;  %v6287_v7 = vld [vmem:[#allocation9 + $0xb0] sm:$0xff] }
 0x130   :  { %961 = vmatpush.msrb.mxu2 %v6275_v52  ;;  %1200 = vmatpush.msrb.mxu3 %v10610_v39  ;;  %10613 = vst [vmem:[#allocation65_spill] sm:$0xff] %v6283_v54  ;;  %v10616_v58 = vld [vmem:[#allocation79_spill] sm:$0xff]  ;;  %v6291_v52 = vld [vmem:[#allocation9 + $0xb8] sm:$0xff] }
 0x131   :  { %922 = vmatpush.msrb.mxu0 %v6279_v25  ;;  %1161 = vmatpush.msrb.mxu1 %v10612_v63  ;;  %10615 = vst [vmem:[#allocation62_spill] sm:$0xff] %v6287_v7  ;;  %v10618_v39 = vld [vmem:[#allocation76_spill] sm:$0xff]  ;;  %v6295_v25 = vld [vmem:[#allocation9 + $0x90] sm:$0xff]  ;;  %v10620_v63 = vld [vmem:[#allocation81_spill] sm:$0xff] }
 0x132   :  { %962 = vmatpush.msrb.mxu2 %v6283_v54  ;;  %1201 = vmatpush.msrb.mxu3 %v10614_v3  ;;  %10617 = vst [vmem:[#allocation67_spill] sm:$0xff] %v6291_v52  ;;  %v6299_v54 = vld [vmem:[#allocation9 + $0x98] sm:$0xff]  ;;  %v10622_v3 = vld [vmem:[#allocation78_spill] sm:$0xff] }
 0x133   :  { %923 = vmatpush.msrb.mxu0 %v6287_v7  ;;  %1162 = vmatpush.msrb.mxu1 %v10616_v58  ;;  %10619 = vst [vmem:[#allocation64_spill] sm:$0xff] %v6295_v25  ;;  %v6303_v7 = vld [vmem:[#allocation9 + $0x70] sm:$0xff]  ;;  %v6307_v58 = vld [vmem:[#allocation9 + $0x78] sm:$0xff] }
 0x134   :  { %963 = vmatpush.msrb.mxu2 %v6291_v52  ;;  %1202 = vmatpush.msrb.mxu3 %v10618_v39  ;;  %10621 = vst [vmem:[#allocation69_spill] sm:$0xff] %v6299_v54  ;;  %v10625_v39 = vld [vmem:[#allocation80_spill] sm:$0xff] }
 0x135   :  { %924 = vmatpush.msrb.mxu0 %v6295_v25  ;;  %1163 = vmatpush.msrb.mxu1 %v10620_v63  ;;  %10623 = vst [vmem:[#allocation66_spill] sm:$0xff] %v6303_v7  ;;  %v6311_v25 = vld [vmem:[#allocation9 + $0x50] sm:$0xff]  ;;  %v10627_v63 = vld [vmem:[#allocation84_spill] sm:$0xff] }
 0x136   :  { %964 = vmatpush.msrb.mxu2 %v6299_v54  ;;  %1203 = vmatpush.msrb.mxu3 %v10622_v3  ;;  %10624 = vst [vmem:[#allocation71_spill] sm:$0xff] %v6307_v58  ;;  %v6315_v54 = vld [vmem:[#allocation9 + $0x58] sm:$0xff]  ;;  %v10629_v3 = vld [vmem:[#allocation82_spill] sm:$0xff] }
 0x137   :  { %925 = vmatpush.msrb.mxu0 %v6303_v7  ;;  %1164 = vmatpush.msrb.mxu1 %v5727_v48  ;;  %10626 = vst [vmem:[#allocation68_spill] sm:$0xff] %v6311_v25  ;;  %v6319_v7 = vld [vmem:[#allocation9 + $0x30] sm:$0xff]  ;;  %v10631_v48 = vld [vmem:[#allocation86_spill] sm:$0xff]  ;;  %v10645_v52 = vld [vmem:[#allocation92_spill] sm:$0xff] }
 0x138   :  { %965 = vmatpush.msrb.mxu2 %v6307_v58  ;;  %1204 = vmatpush.msrb.mxu3 %v10625_v39  ;;  %10628 = vst [vmem:[#allocation73_spill] sm:$0xff] %v6315_v54  ;;  %v6323_v58 = vld [vmem:[#allocation9 + $0x38] sm:$0xff]  ;;  %v10633_v39 = vld [vmem:[#allocation83_spill] sm:$0xff] }
 0x139   :  { %926 = vmatpush.msrb.mxu0 %v6311_v25  ;;  %1165 = vmatpush.msrb.mxu1 %v10627_v63  ;;  %10630 = vst [vmem:[#allocation70_spill] sm:$0xff] %v6319_v7  ;;  %v6327_v25 = vld [vmem:[#allocation9 + $0x10] sm:$0xff]  ;;  %v10635_v63 = vld [vmem:[#allocation88_spill] sm:$0xff] }
 0x13a   :  { %966 = vmatpush.msrb.mxu2 %v6315_v54  ;;  %1205 = vmatpush.msrb.mxu3 %v10629_v3  ;;  %10632 = vst [vmem:[#allocation75_spill] sm:$0xff] %v6323_v58  ;;  %v6331_v54 = vld [vmem:[#allocation9 + $0x18] sm:$0xff]  ;;  %v10637_v3 = vld [vmem:[#allocation57_spill] sm:$0xff] }
 0x13b   :  { %927 = vmatpush.msrb.mxu0 %v6319_v7  ;;  %1166 = vmatpush.msrb.mxu1 %v10631_v48  ;;  %10634 = vst [vmem:[#allocation72_spill] sm:$0xff] %v6327_v25  ;;  %v10638_v48 = vld [vmem:[#allocation58_spill] sm:$0xff]  ;;  %v10641_v7 = vld [vmem:[#allocation89_spill] sm:$0xff] }
 0x13c   :  { %967 = vmatpush.msrb.mxu2 %v6323_v58  ;;  %1206 = vmatpush.msrb.mxu3 %v10633_v39  ;;  %10636 = vst [vmem:[#allocation77_spill] sm:$0xff] %v6331_v54  ;;  %v10639_v58 = vld [vmem:[#allocation85_spill] sm:$0xff]  ;;  %v10640_v39 = vld [vmem:[#allocation60_spill] sm:$0xff] }
 0x13d   :  { %928 = vmatpush.msrb.mxu0 %v6327_v25  ;;  %1167 = vmatpush.msrb.mxu1 %v10635_v63  ;;  %v10642_v25 = vld [vmem:[#allocation61_spill] sm:$0xff]  ;;  %v10643_v63 = vld [vmem:[#allocation87_spill] sm:$0xff] }
 0x13e   :  { %968 = vmatpush.msrb.mxu2 %v6331_v54  ;;  %929 = vmatmul.f32.vlgmr.msrb.gmra.mxu0 %v6192_v47  ;;  %v10644_v54 = vld [vmem:[#allocation90_spill] sm:$0xff] }
 0x13f   :  { %969 = vmatmul.f32.vlgmr.msrb.gmra.mxu2 %v6192_v47  ;;  %1056 = vmatpush.msra.mxu0 %v10637_v3  ;;  %v10646_v47 = vld [vmem:[#allocation91_spill] sm:$0xff] }
 0x140   :  { %1096 = vmatpush.msra.mxu2 %v10638_v48  ;;  %1207 = vmatpush.msrb.mxu3 %v10639_v58  ;;  %v10647_v3 = vld [vmem:[#allocation95_spill] sm:$0xff]  ;;  %v10648_v48 = vld [vmem:[#allocation93_spill] sm:$0xff]  ;;  %v10649_v58 = vld [vmem:[#allocation96_spill] sm:$0xff] }
 0x141   :  { %1057 = vmatpush.msra.mxu0 %v10640_v39  ;;  %1168 = vmatpush.msrb.mxu1 %v10641_v7  ;;  %v10650_v39 = vld [vmem:[#allocation94_spill] sm:$0xff]  ;;  %v10651_v7 = vld [vmem:[#allocation97_spill] sm:$0xff] }
 0x142   :  { %1097 = vmatpush.msra.mxu2 %v10642_v25  ;;  %1208 = vmatpush.msrb.mxu3 %v10643_v63  ;;  %v10652_v25 = vld [vmem:[#allocation99_spill] sm:$0xff] }
 0x143   :  { %1058 = vmatpush.msra.mxu0 %v5758_v40  ;;  %1169 = vmatpush.msrb.mxu1 %v10644_v54  ;;  %v10653_v40 = vld [vmem:[#allocation98_spill] sm:$0xff] }
 0x144   :  { %1098 = vmatpush.msra.mxu2 %v10645_v52  ;;  %1209 = vmatpush.msrb.mxu3 %v10646_v47 }
 0x145   :  { %1059 = vmatpush.msra.mxu0 %v10647_v3  ;;  %1170 = vmatpush.msrb.mxu1 %v10648_v48 }
 0x146   :  { %1099 = vmatpush.msra.mxu2 %v10649_v58  ;;  %1210 = vmatpush.msrb.mxu3 %v10650_v39 }
 0x147   :  { %1060 = vmatpush.msra.mxu0 %v5784_v60  ;;  %1171 = vmatpush.msrb.mxu1 %v10651_v7  ;;  %v10654_v60 = vld [vmem:[#allocation100_spill] sm:$0xff] }
 0x148   :  { %1100 = vmatpush.msra.mxu2 %v10652_v25  ;;  %1211 = vmatpush.msrb.mxu3 %v10653_v40 }
 0x149   :  { %1061 = vmatpush.msra.mxu0 %v5794_v56  ;;  %v10657_v56 = vld [vmem:[#allocation103_spill] sm:$0xff] }
 0x14a   :  { %1101 = vmatpush.msra.mxu2 %v5796_v20  ;;  %v10655_v20 = vld [vmem:[#allocation101_spill] sm:$0xff] }
 0x14b   :  { %1062 = vmatpush.msra.mxu0 %v5802_v30  ;;  %v10659_v30 = vld [vmem:[#allocation105_spill] sm:$0xff] }
 0x14c   :  { %1102 = vmatpush.msra.mxu2 %v5804_v22  ;;  %v10658_v22 = vld [vmem:[#allocation104_spill] sm:$0xff] }
 0x14d   :  { %1063 = vmatpush.msra.mxu0 %v5810_v12  ;;  %v10656_v12 = vld [vmem:[#allocation102_spill] sm:$0xff] }
 0x14e   :  { %1103 = vmatpush.msra.mxu2 %v5812_v8  ;;  %v10660_v8 = vld [vmem:[#allocation106_spill] sm:$0xff] }
 0x14f   :  { %1064 = vmatpush.msra.mxu0 %v5818_v2  ;;  %v10661_v2 = vld [vmem:[#allocation107_spill] sm:$0xff] }
 0x150   :  { %1104 = vmatpush.msra.mxu2 %v5820_v11  ;;  %v10662_v11 = vld [vmem:[#allocation110_spill] sm:$0xff] }
 0x151   :  { %1065 = vmatpush.msra.mxu0 %v5826_v4  ;;  %v10663_v4 = vld [vmem:[#allocation111_spill] sm:$0xff] }
 0x152   :  { %1105 = vmatpush.msra.mxu2 %v5828_v15  ;;  %v10664_v15 = vld [vmem:[#allocation112_spill] sm:$0xff] }
 0x153   :  { %1066 = vmatpush.msra.mxu0 %v5834_v9  ;;  %v10665_v9 = vld [vmem:[#allocation113_spill] sm:$0xff] }
 0x154   :  { %1106 = vmatpush.msra.mxu2 %v5836_v19  ;;  %v360_v19 = vld [vmem:[#allocation14] sm:$0xf] }
 0x155   :  { %1067 = vmatpush.msra.mxu0 %v5842_v13  ;;  %v10666_v13 = vld [vmem:[#allocation114_spill] sm:$0xff] }
 0x156   :  { %1107 = vmatpush.msra.mxu2 %v5844_v23  ;;  %v10667_v23 = vld [vmem:[#allocation115_spill] sm:$0xff] }
 0x157   :  { %1068 = vmatpush.msra.mxu0 %v10654_v60 }
 0x158   :  { %1108 = vmatpush.msra.mxu2 %v10655_v20 }
 0x159   :  { %1069 = vmatpush.msra.mxu0 %v10656_v12 }
 0x15a   :  { %1109 = vmatpush.msra.mxu2 %v10657_v56 }
 0x15b   :  { %1070 = vmatpush.msra.mxu0 %v10658_v22 }
 0x15c   :  { %1110 = vmatpush.msra.mxu2 %v10659_v30  ;;  %v6448_v30 = vld [vmem:[#allocation9 + $0x3a0] sm:$0xff] }
 0x15d   :  { %1071 = vmatpush.msra.mxu0 %v10660_v8 }
 0x15e   :  { %1111 = vmatpush.msra.mxu2 %v10661_v2 }
 0x15f   :  { %1136 = vmatpush.msrb.mxu0 %v10662_v11 }
 0x160   :  { %1176 = vmatpush.msrb.mxu2 %v5890_v37 }
 0x161   :  { %1137 = vmatpush.msrb.mxu0 %v5896_v29 }
 0x162   :  { %1177 = vmatpush.msrb.mxu2 %v5898_v35  ;;  %v6403_v35 = vperm.slane %v360_v19, 0 }
 0x163   :  { %1138 = vmatpush.msrb.mxu0 %v5906_v51  ;;  %v644_v51 = vpop.f32.mrf.mxu1 }
 0x164   :  { %1178 = vmatpush.msrb.mxu2 %v5908_v45  ;;  %10669 = vst [vmem:[#allocation74_spill] sm:$0xff] %v6403_v35 }
 0x165   :  { %1139 = vmatpush.msrb.mxu0 %v5914_v27  ;;  %v6412_v27 = vperm.slane %v360_v19, 1 }
 0x166   :  { %1179 = vmatpush.msrb.mxu2 %v5916_v55 }
 0x167   :  { %1140 = vmatpush.msrb.mxu0 %v5922_v31  ;;  %v10668_v31 = vld [vmem:[#allocation116_spill] sm:$0xff]  ;;  %10670 = vst [vmem:[#allocation79_spill] sm:$0xff] %v6412_v27 }
 0x168   :  { %1180 = vmatpush.msrb.mxu2 %v5926_v53 }
 0x169   :  { %1141 = vmatpush.msrb.mxu0 %v5932_v57 }
 0x16a   :  { %1181 = vmatpush.msrb.mxu2 %v5934_v59  ;;  %v684_v59 = vpop.f32.mrf.mxu3 }
 0x16b   :  { %1142 = vmatpush.msrb.mxu0 %v5940_v0  ;;  %v724_v3 = vpop.f32.mrf.mxu1 }
 0x16c   :  { %1182 = vmatpush.msrb.mxu2 %v5942_v61 }
 0x16d   :  { %1143 = vmatpush.msrb.mxu0 %v5948_v6 }
 0x16e   :  { %1183 = vmatpush.msrb.mxu2 %v5950_v17  ;;  %v6415_v17 = vperm.slane %v360_v19, 3 }
 0x16f   :  { %1144 = vmatpush.msrb.mxu0 %v5958_v33 }
 0x170   :  { %1184 = vmatpush.msrb.mxu2 %v5960_v24  ;;  %10671 = vst [vmem:[#allocation76_spill] sm:$0xff] %v6415_v17 }
 0x171   :  { %1145 = vmatpush.msrb.mxu0 %v5969_v43 }
 0x172   :  { %1185 = vmatpush.msrb.mxu2 %v5971_v34  ;;  %v764_v34 = vpop.f32.mrf.mxu3 }
 0x173   :  { %1146 = vmatpush.msrb.mxu0 %v10663_v4 }
 0x174   :  { %1186 = vmatpush.msrb.mxu2 %v10664_v15 }
 0x175   :  { %1147 = vmatpush.msrb.mxu0 %v10665_v9  ;;  %v10675_v9 = vld [vmem:[#allocation108_spill] sm:$0xff] }
 0x176   :  { %1187 = vmatpush.msrb.mxu2 %v10666_v13 }
 0x177   :  { %1148 = vmatpush.msrb.mxu0 %v10667_v23 }
 0x178   :  { %1188 = vmatpush.msrb.mxu2 %v10668_v31  ;;  %v364_v31 = vld [vmem:[#allocation5] sm:$0x3] }
 0x179   :  { %1149 = vmatpush.msrb.mxu0 %v6016_v32  ;;  %v6418_v32 = vperm.slane %v360_v19, 2 }
 0x17a   :  { %1189 = vmatpush.msrb.mxu2 %v6018_v1 }
 0x17b   :  { %1150 = vmatpush.msrb.mxu0 %v6024_v42  ;;  %v624_v29 = vpop.f32.mrf.mxu0  ;;  %10672 = vst [vmem:[#allocation81_spill] sm:$0xff] %v6418_v32 }
 0x17c   :  { %1190 = vmatpush.msrb.mxu2 %v6026_v18  ;;  %v625_v37 = vadd.f32 %v624_v29, %v6403_v35 }
 0x17d   :  { %1151 = vmatpush.msrb.mxu0 %v6034_v36 }
 0x17e   :  { %1191 = vmatpush.msrb.mxu2 %v6036_v10  ;;  %v645_v45 = vadd.f32 %v644_v51, %v625_v37  ;;  %v870_v51 = vpop.f32.mrf.mxu1 }
 0x180   :  { %v4009_v55 = vmul.f32 -1.442695, %v645_v45 }
 0x181   :  { %v664_v53 = vpop.f32.mrf.mxu2 }
 0x182   :  { %4080 = vpow2.f32 %v4009_v55  ;;  %v665_v57 = vadd.f32 %v664_v53, %v6412_v27 }
 0x183   :  { %v704_v36 = vpop.f32.mrf.mxu0 }
 0x184   :  { %v685_v0 = vadd.f32 %v684_v59, %v665_v57  ;;  %v705_v63 = vadd.f32 %v704_v36, %v6418_v32 }
 0x186   :  { %v4010_v61 = vmul.f32 -1.442695, %v685_v0  ;;  %v725_v48 = vadd.f32 %v724_v3, %v705_v63 }
 0x188   :  { %v4081_v6 = vpop.eup %4080  ;;  %4082 = vpow2.f32 %v4010_v61 }
 0x189   :  { %v770_v33 = vadd.f32 1.0, %v4081_v6 }
 0x18a   :  { %v744_v24 = vpop.f32.mrf.mxu2 }
 0x18b   :  { %4084 = vrcp.f32 %v770_v33  ;;  %v745_v43 = vadd.f32 %v744_v24, %v6415_v17  ;;  %v782_v60 = vand.u32 2147483648, %v770_v33  ;;  %vm776_vm13 = vweird.f32 %v770_v33 }
 0x18c   :  { %v780_v56 = vand.u32 2147483647, %v770_v33 }
 0x18d   :  { %v765_v1 = vadd.f32 %v764_v34, %v745_v43  ;;  %v783_v15 = vor.u32 1.1754944e-38, %v782_v60  ;;  %v910_v43 = vpop.f32.mrf.mxu3  ;;  %v6435_v60 = vld [vmem:[#allocation9 + $0x3e8] sm:$0xff] }
 0x18e   :  { %v4083_v42 = vpop.eup %4082  ;;  %vm781_vm1 = vcmp.eq.f32.partialorder %v780_v56, 8.507059e+37  ;;  %v6443_v56 = vld [vmem:[#allocation9 + $0x3c8] sm:$0xff] }
 0x18f   :  { %v789_v18 = vadd.f32 1.0, %v4083_v42  ;;  %v4011_v10 = vmul.f32 -1.442695, %v765_v1 }
 0x191   :  { %v4085_v52 = vpop.eup %4084  ;;  %4086 = vrcp.f32 %v789_v18  ;;  %v801_v22 = vand.u32 2147483648, %v789_v18  ;;  %v799_v4 = vand.u32 2147483647, %v789_v18  ;;  %vm795_vm0 = vweird.f32 %v789_v18 }
 0x192   :  { %v772_v54 = vmul.f32 %v4085_v52, %v770_v33  ;;  %4088 = vpow2.f32 %v4011_v10  ;;  %vm777_vm12 = vweird.f32 %v4085_v52  ;;  %v10676_v33 = vld [vmem:[#allocation109_spill] sm:$0xff] }
 0x193   :  { %4090 = vtanh.f32 %v725_v48  ;;  %vm6421_vm14 = vmor %vm776_vm13, %vm777_vm12  ;;  %v802_v23 = vor.u32 1.1754944e-38, %v801_v22  ;;  %vm800_vm3 = vcmp.eq.f32.partialorder %v799_v4, 8.507059e+37  ;;  %v6462_v4 = vld [vmem:[#allocation9 + $0x360] sm:$0xff] }
 0x194   :  { %v773_v47 = vsub.f32 1.0, %v772_v54 }
 0x196   :  { %v774_v58 = vmul.f32 %v4085_v52, %v773_v47 }
 0x197   :  { %v4087_v39 = vpop.eup %4086 }
 0x198   :  { %v4089_v7 = vpop.eup %4088  ;;  %v791_v25 = vmul.f32 %v4087_v39, %v789_v18  ;;  %v775_v40 = vadd.f32 %v4085_v52, %v774_v58  ;;  %vm796_vm15 = vweird.f32 %v4087_v39 }
 0x199   :  { %v809_v20 = vadd.f32 1.0, %v4089_v7  ;;  %vm797_vm2 = vmor %vm795_vm0, %vm796_vm15  ;;  %v4091_v37 = vpop.eup %4090 }
 0x19a   :  { %v792_v12 = vsub.f32 1.0, %v791_v25  ;;  %v779_v11 = vsel %vm6421_vm14, %v4085_v52, %v775_v40  ;;  %v6432_v40 = vld [vmem:[#allocation9 + $0x3e0] sm:$0xff] }
 0x19b   :  { %4092 = vrcp.f32 %v809_v20  ;;  %v850_v8 = vpop.f32.mrf.mxu0  ;;  %v784_v29 = vsel %vm781_vm1, %v783_v15, %v779_v11  ;;  %v821_v10 = vand.u32 2147483648, %v809_v20  ;;  %v819_v54 = vand.u32 2147483647, %v809_v20  ;;  %v6458_v11 = vld [vmem:[#allocation9 + $0x388] sm:$0xff] }
 0x19c   :  { %v793_v2 = vmul.f32 %v4087_v39, %v792_v12  ;;  %v851_v19 = vadd.f32 %v850_v8, %v10675_v9  ;;  %v826_v0 = vmul.f32 %v4091_v37, %v784_v29  ;;  %vm815_vm5 = vweird.f32 %v809_v20  ;;  %v6440_v12 = vld [vmem:[#allocation9 + $0x3c0] sm:$0xff]  ;;  %v6451_v8 = vld [vmem:[#allocation9 + $0x3a8] sm:$0xff] }
 0x19d   :  { %v822_v3 = vor.u32 1.1754944e-38, %v821_v10  ;;  %vm820_vm7 = vcmp.eq.f32.partialorder %v819_v54, 8.507059e+37  ;;  %v6465_v15 = vld [vmem:[#allocation9 + $0x368] sm:$0xff]  ;;  %v6508_v54 = vld [vmem:[#allocation9 + $0x2a0] sm:$0xff] }
 0x19e   :  { %v794_v13 = vadd.f32 %v4087_v39, %v793_v2  ;;  %v871_v57 = vadd.f32 %v870_v51, %v851_v19  ;;  %v6455_v2 = vld [vmem:[#allocation9 + $0x380] sm:$0xff]  ;;  %v6479_v29 = vld [vmem:[#allocation9 + $0x328] sm:$0xff] }
 0x19f   :  { %v6468_v19 = vld [vmem:[#allocation9 + $0x340] sm:$0xff] }
 0x1a0   :  { %v798_v45 = vsel %vm797_vm2, %v4087_v39, %v794_v13  ;;  %v4012_v1 = vmul.f32 -1.442695, %v871_v57  ;;  %v6471_v13 = vld [vmem:[#allocation9 + $0x348] sm:$0xff]  ;;  %v6484_v51 = vld [vmem:[#allocation9 + $0x300] sm:$0xff] }
 0x1a1   :  { %v4093_v55 = vpop.eup %4092  ;;  %v803_v53 = vsel %vm800_vm3, %v802_v23, %v798_v45  ;;  %v6487_v45 = vld [vmem:[#allocation9 + $0x308] sm:$0xff] }
 0x1a2   :  { %v825_v59 = vmul.f32 %v803_v53, %v364_v31  ;;  %v811_v61 = vmul.f32 %v4093_v55, %v809_v20  ;;  %v890_v6 = vpop.f32.mrf.mxu2  ;;  %vm816_vm4 = vweird.f32 %v4093_v55  ;;  %v6476_v31 = vld [vmem:[#allocation9 + $0x320] sm:$0xff] }
 0x1a3   :  { %v891_v24 = vadd.f32 %v890_v6, %v10676_v33  ;;  %vm817_vm6 = vmor %vm815_vm5, %vm816_vm4  ;;  %v6500_v6 = vld [vmem:[#allocation9 + $0x2c0] sm:$0xff] }
 0x1a4   :  { %v6429_v34 = vadd.f32 %v826_v0, %v825_v59  ;;  %v812_v42 = vsub.f32 1.0, %v811_v61  ;;  %v6494_v59 = vld [vmem:[#allocation9 + $0x2e0] sm:$0xff]  ;;  %v6497_v0 = vld [vmem:[#allocation9 + $0x2e8] sm:$0xff] }
 0x1a5   :  { %v911_v18 = vadd.f32 %v910_v43, %v891_v24  ;;  %v6503_v24 = vld [vmem:[#allocation9 + $0x2c8] sm:$0xff]  ;;  %v10677_v43 = vld [vmem:[#allocation117_spill] sm:$0xff] }
 0x1a6   :  { %4094 = vtanh.f32 %v6429_v34  ;;  %v813_v36 = vmul.f32 %v4093_v55, %v812_v42 }
 0x1a7   :  { %v4013_v52 = vmul.f32 -1.442695, %v911_v18  ;;  %4096 = vpow2.f32 %v4012_v1  ;;  %v10678_v1 = vld [vmem:[#allocation118_spill] sm:$0xff] }
 0x1a8   :  { %v814_v63 = vadd.f32 %v4093_v55, %v813_v36  ;;  %v990_v36 = vpop.f32.mrf.mxu3 }
 0x1a9   :  { %4098 = vpow2.f32 %v4013_v52 }
 0x1aa   :  { %v818_v47 = vsel %vm817_vm6, %v4093_v55, %v814_v63  ;;  %v6511_v63 = vld [vmem:[#allocation9 + $0x2a8] sm:$0xff] }
 0x1ab   :  { %v823_v58 = vsel %vm820_vm7, %v822_v3, %v818_v47  ;;  %v950_v3 = vpop.f32.mrf.mxu1 }
 0x1ac   :  { %v4095_v48 = vpop.eup %4094 }
 0x1ad   :  { %v829_v39 = vmul.f32 %v4095_v48, %v823_v58  ;;  %v4097_v7 = vpop.eup %4096  ;;  %v6514_v48 = vld [vmem:[#allocation9 + $0x280] sm:$0xff]  ;;  %v6517_v58 = vld [vmem:[#allocation9 + $0x288] sm:$0xff] }
 0x1ae   :  { %v6438_v20 = vadd.f32 1.0, %v4097_v7  ;;  %10679 = vst [vmem:[#allocation78_spill] sm:$0xff] %v6514_v48 }
 0x1af   :  { %830 = vst [vmem:[#allocation15] sm:$0x3] %v829_v39  ;;  %1092 = vmatmul.f32.vlgmr.msra.gmra.mxu1 %v829_v39  ;;  %1132 = vmatmul.f32.vlgmr.msra.gmra.mxu3 %v829_v39  ;;  %v4099_v25 = vpop.eup %4098 }
 0x1b0   :  { %1303 = vmatpush.msra.mxu1 %v6432_v40  ;;  %1343 = vmatpush.msra.mxu3 %v6435_v60  ;;  %v6446_v22 = vadd.f32 1.0, %v4099_v25  ;;  %4100 = vrcp.f32 %v6438_v20  ;;  %10680 = vst [vmem:[#allocation80_spill] sm:$0xff] %v6517_v58  ;;  %vm1002_vm10 = vweird.f32 %v6438_v20 }
 0x1b2   :  { %1304 = vmatpush.msra.mxu1 %v6440_v12  ;;  %1344 = vmatpush.msra.mxu3 %v6443_v56  ;;  %4102 = vrcp.f32 %v6446_v22  ;;  %vm1021_vm11 = vweird.f32 %v6446_v22 }
 0x1b4   :  { %1305 = vmatpush.msra.mxu1 %v6448_v30  ;;  %1345 = vmatpush.msra.mxu3 %v6451_v8 }
 0x1b6   :  { %1306 = vmatpush.msra.mxu1 %v6455_v2  ;;  %1346 = vmatpush.msra.mxu3 %v6458_v11  ;;  %v6474_v23 = vpop.eup %4100 }
 0x1b7   :  { %1172 = vmatmul.f32.vlgmr.msrb.gmra.mxu1 %v829_v39  ;;  %1212 = vmatmul.f32.vlgmr.msrb.gmra.mxu3 %v829_v39  ;;  %v998_v55 = vmul.f32 %v6474_v23, %v6438_v20  ;;  %vm1003_vm8 = vweird.f32 %v6474_v23 }
 0x1b8   :  { %1307 = vmatpush.msra.mxu1 %v6462_v4  ;;  %1347 = vmatpush.msra.mxu3 %v6465_v15  ;;  %v6482_v37 = vpop.eup %4102  ;;  %vm6548_vm12 = vmor %vm1002_vm10, %vm1003_vm8 }
 0x1b9   :  { %v1017_v53 = vmul.f32 %v6482_v37, %v6446_v22  ;;  %v999_v10 = vsub.f32 1.0, %v998_v55  ;;  %vm1022_vm9 = vweird.f32 %v6482_v37 }
 0x1ba   :  { %1308 = vmatpush.msra.mxu1 %v6468_v19  ;;  %1348 = vmatpush.msra.mxu3 %v6471_v13  ;;  %vm6562_vm13 = vmor %vm1021_vm11, %vm1022_vm9 }
 0x1bb   :  { %v930_v57 = vpop.f32.mrf.mxu0  ;;  %v1018_v52 = vsub.f32 1.0, %v1017_v53  ;;  %v1000_v55 = vmul.f32 %v6474_v23, %v999_v10  ;;  %v6522_v53 = vld [vmem:[#allocation9 + $0x260] sm:$0xff] }
 0x1bc   :  { %1309 = vmatpush.msra.mxu1 %v6476_v31  ;;  %1349 = vmatpush.msra.mxu3 %v6479_v29  ;;  %v931_v42 = vadd.f32 %v930_v57, %v10677_v43  ;;  %10681 = vst [vmem:[#allocation84_spill] sm:$0xff] %v6522_v53  ;;  %v6525_v57 = vld [vmem:[#allocation9 + $0x268] sm:$0xff]  ;;  %v6538_v10 = vld [vmem:[#allocation9 + $0x220] sm:$0xff] }
 0x1bd   :  { %v1019_v25 = vmul.f32 %v6482_v37, %v1018_v52  ;;  %10682 = vst [vmem:[#allocation82_spill] sm:$0xff] %v6525_v57  ;;  %v6541_v52 = vld [vmem:[#allocation9 + $0x228] sm:$0xff] }
 0x1be   :  { %1310 = vmatpush.msra.mxu1 %v6484_v51  ;;  %1350 = vmatpush.msra.mxu3 %v6487_v45  ;;  %v951_v39 = vadd.f32 %v950_v3, %v931_v42  ;;  %v1001_v42 = vadd.f32 %v6474_v23, %v1000_v55  ;;  %10685 = vst [vmem:[#allocation88_spill] sm:$0xff] %v6538_v10  ;;  %v1008_v3 = vand.u32 2147483648, %v6438_v20  ;;  %v6554_v55 = vld [vmem:[#allocation9 + $0x200] sm:$0xff] }
 0x1bf   :  { %10686 = vst [vmem:[#allocation57_spill] sm:$0xff] %v6541_v52 }
 0x1c0   :  { %1311 = vmatpush.msra.mxu1 %v6494_v59  ;;  %1351 = vmatpush.msra.mxu3 %v6497_v0  ;;  %10689 = vst [vmem:[#allocation58_spill] sm:$0xff] %v6554_v55 }
 0x1c2   :  { %v970_v61 = vpop.f32.mrf.mxu2  ;;  %1312 = vmatpush.msra.mxu1 %v6500_v6  ;;  %1352 = vmatpush.msra.mxu3 %v6503_v24 }
 0x1c3   :  { %v971_v18 = vadd.f32 %v970_v61, %v10678_v1  ;;  %v6528_v61 = vld [vmem:[#allocation9 + $0x240] sm:$0xff] }
 0x1c4   :  { %1313 = vmatpush.msra.mxu1 %v6508_v54  ;;  %1353 = vmatpush.msra.mxu3 %v6511_v63  ;;  %10683 = vst [vmem:[#allocation86_spill] sm:$0xff] %v6528_v61 }
 0x1c5   :  { %v991_v47 = vadd.f32 %v990_v36, %v971_v18  ;;  %v6531_v18 = vld [vmem:[#allocation9 + $0x248] sm:$0xff]  ;;  %v1020_v36 = vadd.f32 %v6482_v37, %v1019_v25  ;;  %v1025_v25 = vand.u32 2147483647, %v6446_v22 }
 0x1c6   :  { %1314 = vmatpush.msra.mxu1 %v6514_v48  ;;  %1354 = vmatpush.msra.mxu3 %v6517_v58  ;;  %10684 = vst [vmem:[#allocation83_spill] sm:$0xff] %v6531_v18  ;;  %v1009_v58 = vor.u32 1.1754944e-38, %v1008_v3  ;;  %v6578_v48 = vld [vmem:[#allocation9 + $0x3d0] sm:$0xff] }
 0x1c7   :  { %v4014_v7 = vmul.f32 -1.442695, %v991_v47  ;;  %v1027_v47 = vand.u32 2147483648, %v6446_v22  ;;  %v1005_v22 = vsel %vm6548_vm12, %v6474_v23, %v1001_v42  ;;  %vm1026_vm15 = vcmp.eq.f32.partialorder %v1025_v25, 8.507059e+37  ;;  %v6608_v25 = vld [vmem:[#allocation9 + $0x358] sm:$0xff] }
 0x1c8   :  { %1315 = vmatpush.msra.mxu1 %v6522_v53  ;;  %1355 = vmatpush.msra.mxu3 %v6525_v57  ;;  %10697 = vst [vmem:[#allocation90_spill] sm:$0xff] %v6608_v25 }
 0x1c9   :  { %4104 = vpow2.f32 %v4014_v7  ;;  %v1006_v7 = vand.u32 2147483647, %v6438_v20  ;;  %v6569_v20 = vld [vmem:[#allocation9 + $0x3f8] sm:$0xff]  ;;  %v1028_v53 = vor.u32 1.1754944e-38, %v1027_v47 }
 0x1ca   :  { %1316 = vmatpush.msra.mxu1 %v6528_v61  ;;  %1356 = vmatpush.msra.mxu3 %v6531_v18  ;;  %4106 = vtanh.f32 %v951_v39  ;;  %v6566_v61 = vld [vmem:[#allocation9 + $0x3f0] sm:$0xff] }
 0x1cb   :  { %10693 = vst [vmem:[#allocation60_spill] sm:$0xff] %v6566_v61  ;;  %vm1007_vm14 = vcmp.eq.f32.partialorder %v1006_v7, 8.507059e+37  ;;  %v6584_v39 = vld [vmem:[#allocation9 + $0x3b0] sm:$0xff] }
 0x1cc   :  { %1317 = vmatpush.msra.mxu1 %v6538_v10  ;;  %1357 = vmatpush.msra.mxu3 %v6541_v52  ;;  %v6557_v52 = vld [vmem:[#allocation9 + $0x208] sm:$0xff]  ;;  %v1010_v23 = vsel %vm1007_vm14, %v1009_v58, %v1005_v22  ;;  %v6605_v7 = vld [vmem:[#allocation9 + $0x350] sm:$0xff] }
 0x1cd   :  { %10690 = vst [vmem:[#allocation85_spill] sm:$0xff] %v6557_v52  ;;  %v6611_v22 = vld [vmem:[#allocation9 + $0x330] sm:$0xff] }
 0x1ce   :  { %1318 = vmatpush.msra.mxu1 %v6554_v55  ;;  %1358 = vmatpush.msra.mxu3 %v6557_v52  ;;  %v1024_v52 = vsel %vm6562_vm13, %v6482_v37, %v1020_v36  ;;  %v6587_v37 = vld [vmem:[#allocation9 + $0x3b8] sm:$0xff]  ;;  %v6590_v36 = vld [vmem:[#allocation9 + $0x390] sm:$0xff]  ;;  %10696 = vst [vmem:[#allocation87_spill] sm:$0xff] %v6605_v7 }
 0x1cf   :  { %v4105_v10 = vpop.eup %4104  ;;  %v1029_v42 = vsel %vm1026_vm15, %v1028_v53, %v1024_v52  ;;  %v6597_v53 = vld [vmem:[#allocation9 + $0x370] sm:$0xff]  ;;  %v6600_v52 = vld [vmem:[#allocation9 + $0x378] sm:$0xff]  ;;  %10698 = vst [vmem:[#allocation92_spill] sm:$0xff] %v6611_v22 }
 0x1d0   :  { %1383 = vmatpush.msrb.mxu1 %v6566_v61  ;;  %1423 = vmatpush.msrb.mxu3 %v6569_v20  ;;  %v1035_v55 = vadd.f32 1.0, %v4105_v10  ;;  %v4107_v57 = vpop.eup %4106  ;;  %v6581_v61 = vld [vmem:[#allocation9 + $0x3d8] sm:$0xff]  ;;  %v1051_v58 = vmul.f32 %v1029_v42, %v6080_v38  ;;  %10694 = vst [vmem:[#allocation89_spill] sm:$0xff] %v6597_v53 }
 0x1d1   :  { %v1052_v18 = vmul.f32 %v4107_v57, %v1010_v23  ;;  %v6593_v10 = vld [vmem:[#allocation9 + $0x398] sm:$0xff]  ;;  %10695 = vst [vmem:[#allocation61_spill] sm:$0xff] %v6600_v52 }
 0x1d2   :  { %1384 = vmatpush.msrb.mxu1 %v6578_v48  ;;  %1424 = vmatpush.msrb.mxu3 %v6581_v61  ;;  %4108 = vrcp.f32 %v1035_v55  ;;  %v6614_v23 = vld [vmem:[#allocation9 + $0x338] sm:$0xff]  ;;  %v1047_v42 = vand.u32 2147483648, %v1035_v55  ;;  %vm1041_vm1 = vweird.f32 %v1035_v55 }
 0x1d3   :  { %v6603_v57 = vadd.f32 %v1052_v18, %v1051_v58  ;;  %10699 = vst [vmem:[#allocation91_spill] sm:$0xff] %v6614_v23  ;;  %v1045_v58 = vand.u32 2147483647, %v1035_v55 }
 0x1d4   :  { %1385 = vmatpush.msrb.mxu1 %v6584_v39  ;;  %1425 = vmatpush.msrb.mxu3 %v6587_v37 }
 0x1d5   :  { %4110 = vtanh.f32 %v6603_v57  ;;  %vm1046_vm3 = vcmp.eq.f32.partialorder %v1045_v58, 8.507059e+37  ;;  %v10718_v58 = vld [vmem:[#allocation21_spill] sm:$0xff] }
 0x1d6   :  { %1386 = vmatpush.msrb.mxu1 %v6590_v36  ;;  %1426 = vmatpush.msrb.mxu3 %v6593_v10 }
 0x1d8   :  { %1387 = vmatpush.msrb.mxu1 %v6597_v53  ;;  %1427 = vmatpush.msrb.mxu3 %v6600_v52  ;;  %v4109_v47 = vpop.eup %4108  ;;  %v6630_v53 = vld [vmem:[#allocation9 + $0x2d0] sm:$0xff] }
 0x1d9   :  { %v1037_v3 = vmul.f32 %v4109_v47, %v1035_v55  ;;  %vm1042_vm0 = vweird.f32 %v4109_v47 }
 0x1da   :  { %1388 = vmatpush.msrb.mxu1 %v6605_v7  ;;  %1428 = vmatpush.msrb.mxu3 %v6608_v25  ;;  %v6618_v7 = vld [vmem:[#allocation9 + $0x310] sm:$0xff]  ;;  %v6621_v25 = vld [vmem:[#allocation9 + $0x318] sm:$0xff]  ;;  %vm1043_vm2 = vmor %vm1041_vm1, %vm1042_vm0 }
 0x1db   :  { %v1038_v38 = vsub.f32 1.0, %v1037_v3  ;;  %10700 = vst [vmem:[#allocation95_spill] sm:$0xff] %v6618_v7  ;;  %v4111_v55 = vpop.eup %4110 }
 0x1dc   :  { %1389 = vmatpush.msrb.mxu1 %v6611_v22  ;;  %1429 = vmatpush.msrb.mxu3 %v6614_v23  ;;  %10701 = vst [vmem:[#allocation93_spill] sm:$0xff] %v6621_v25  ;;  %v6624_v22 = vld [vmem:[#allocation9 + $0x2f0] sm:$0xff]  ;;  %v6627_v23 = vld [vmem:[#allocation9 + $0x2f8] sm:$0xff] }
 0x1dd   :  { %v1039_v18 = vmul.f32 %v4109_v47, %v1038_v38  ;;  %10702 = vst [vmem:[#allocation96_spill] sm:$0xff] %v6624_v22  ;;  %v1048_v38 = vor.u32 1.1754944e-38, %v1047_v42  ;;  %v6653_v42 = vld [vmem:[#allocation9 + $0x270] sm:$0xff] }
 0x1de   :  { %1390 = vmatpush.msrb.mxu1 %v6618_v7  ;;  %1430 = vmatpush.msrb.mxu3 %v6621_v25  ;;  %10703 = vst [vmem:[#allocation94_spill] sm:$0xff] %v6627_v23  ;;  %v6633_v7 = vld [vmem:[#allocation9 + $0x2d8] sm:$0xff] }
 0x1df   :  { %v1040_v3 = vadd.f32 %v4109_v47, %v1039_v18  ;;  %10705 = vst [vmem:[#allocation99_spill] sm:$0xff] %v6653_v42 }
 0x1e0   :  { %1391 = vmatpush.msrb.mxu1 %v6624_v22  ;;  %1431 = vmatpush.msrb.mxu3 %v6627_v23  ;;  %v6636_v22 = vld [vmem:[#allocation9 + $0x2b0] sm:$0xff]  ;;  %v6639_v23 = vld [vmem:[#allocation9 + $0x2b8] sm:$0xff] }
 0x1e1   :  { %v1044_v52 = vsel %vm1043_vm2, %v4109_v47, %v1040_v3  ;;  %v6649_v47 = vld [vmem:[#allocation9 + $0x298] sm:$0xff]  ;;  %v6694_v3 = vld [vmem:[#allocation12 + $0x3c0] sm:$0xff] }
 0x1e2   :  { %1392 = vmatpush.msrb.mxu1 %v6630_v53  ;;  %1432 = vmatpush.msrb.mxu3 %v6633_v7  ;;  %v1049_v18 = vsel %vm1046_vm3, %v1048_v38, %v1044_v52  ;;  %v6645_v52 = vld [vmem:[#allocation9 + $0x290] sm:$0xff]  ;;  %10704 = vst [vmem:[#allocation97_spill] sm:$0xff] %v6649_v47 }
 0x1e3   :  { %v1055_v25 = vmul.f32 %v4111_v55, %v1049_v18  ;;  %10719 = vst [vmem:[#allocation110_spill] sm:$0xff] %v6694_v3  ;;  %v10721_v38 = vld [vmem:[#allocation23_spill] sm:$0xff]  ;;  %v10722_v55 = vld [vmem:[#allocation25_spill] sm:$0xff] }
 0x1e4   :  { %1393 = vmatpush.msrb.mxu1 %v6636_v22  ;;  %1433 = vmatpush.msrb.mxu3 %v6639_v23  ;;  %v6702_v18 = vld [vmem:[#allocation12 + $0x3a0] sm:$0xff] }
 0x1e5   :  { %1072 = vmatmul.f32.vlgmr.msra.gmra.mxu0 %v1055_v25  ;;  %1112 = vmatmul.f32.vlgmr.msra.gmra.mxu2 %v1055_v25  ;;  %10723 = vst [vmem:[#allocation112_spill] sm:$0xff] %v6702_v18 }
 0x1e6   :  { %1283 = vmatpush.msra.mxu0 %v6083_v44  ;;  %1319 = vmatmul.f32.vlgmr.msra.gmra.mxu1 %v1055_v25  ;;  %v6657_v44 = vld [vmem:[#allocation9 + $0x278] sm:$0xff] }
 0x1e7   :  { %1323 = vmatpush.msra.mxu2 %v6086_v41  ;;  %1359 = vmatmul.f32.vlgmr.msra.gmra.mxu3 %v1055_v25  ;;  %10706 = vst [vmem:[#allocation98_spill] sm:$0xff] %v6657_v44  ;;  %v6661_v41 = vld [vmem:[#allocation9 + $0x250] sm:$0xff] }
 0x1e8   :  { %1284 = vmatpush.msra.mxu0 %v6089_v5  ;;  %1394 = vmatpush.msrb.mxu1 %v6645_v52  ;;  %10707 = vst [vmem:[#allocation100_spill] sm:$0xff] %v6661_v41  ;;  %v6665_v5 = vld [vmem:[#allocation9 + $0x258] sm:$0xff] }
 0x1e9   :  { %1324 = vmatpush.msra.mxu2 %v6093_v26  ;;  %1434 = vmatpush.msrb.mxu3 %v6649_v47  ;;  %10708 = vst [vmem:[#allocation101_spill] sm:$0xff] %v6665_v5  ;;  %v6670_v26 = vld [vmem:[#allocation9 + $0x230] sm:$0xff] }
 0x1ea   :  { %1285 = vmatpush.msra.mxu0 %v6097_v16  ;;  %1395 = vmatpush.msrb.mxu1 %v6653_v42  ;;  %10709 = vst [vmem:[#allocation102_spill] sm:$0xff] %v6670_v26  ;;  %v6673_v16 = vld [vmem:[#allocation9 + $0x238] sm:$0xff] }
 0x1eb   :  { %1325 = vmatpush.msra.mxu2 %v6101_v49  ;;  %1435 = vmatpush.msrb.mxu3 %v6657_v44  ;;  %10710 = vst [vmem:[#allocation103_spill] sm:$0xff] %v6673_v16  ;;  %v6678_v49 = vld [vmem:[#allocation9 + $0x210] sm:$0xff] }
 0x1ec   :  { %1286 = vmatpush.msra.mxu0 %v6105_v62  ;;  %1396 = vmatpush.msrb.mxu1 %v6661_v41  ;;  %10711 = vst [vmem:[#allocation104_spill] sm:$0xff] %v6678_v49  ;;  %v6681_v62 = vld [vmem:[#allocation9 + $0x218] sm:$0xff] }
 0x1ed   :  { %1326 = vmatpush.msra.mxu2 %v6109_v14  ;;  %1436 = vmatpush.msrb.mxu3 %v6665_v5  ;;  %10712 = vst [vmem:[#allocation105_spill] sm:$0xff] %v6681_v62  ;;  %v10713_v14 = vld [vmem:[#allocation22_spill] sm:$0xff] }
 0x1ee   :  { %1152 = vmatmul.f32.vlgmr.msrb.gmra.mxu0 %v1055_v25  ;;  %1192 = vmatmul.f32.vlgmr.msrb.gmra.mxu2 %v1055_v25 }
 0x1ef   :  { %1287 = vmatpush.msra.mxu0 %v6112_v28  ;;  %1327 = vmatpush.msra.mxu2 %v6115_v50  ;;  %v10714_v28 = vld [vmem:[#allocation20_spill] sm:$0xff]  ;;  %v6686_v50 = vld [vmem:[#allocation12 + $0x3e0] sm:$0xff] }
 0x1f0   :  { %1397 = vmatpush.msrb.mxu1 %v6670_v26  ;;  %1437 = vmatpush.msrb.mxu3 %v6673_v16  ;;  %10715 = vst [vmem:[#allocation106_spill] sm:$0xff] %v6686_v50 }
 0x1f1   :  { %1288 = vmatpush.msra.mxu0 %v6118_v21  ;;  %1328 = vmatpush.msra.mxu2 %v6121_v46  ;;  %v6689_v21 = vld [vmem:[#allocation12 + $0x3e8] sm:$0xff]  ;;  %v10717_v46 = vld [vmem:[#allocation24_spill] sm:$0xff] }
 0x1f2   :  { %1398 = vmatpush.msrb.mxu1 %v6678_v49  ;;  %1438 = vmatpush.msrb.mxu3 %v6681_v62  ;;  %10716 = vst [vmem:[#allocation107_spill] sm:$0xff] %v6689_v21 }
 0x1f3   :  { %1399 = vmatmul.f32.vlgmr.msrb.gmra.mxu1 %v1055_v25  ;;  %1439 = vmatmul.f32.vlgmr.msrb.gmra.mxu3 %v1055_v25  ;;  %v6697_v25 = vld [vmem:[#allocation12 + $0x3c8] sm:$0xff] }
 0x1f4   :  { %1289 = vmatpush.msra.mxu0 %v10713_v14  ;;  %1329 = vmatpush.msra.mxu2 %v10714_v28  ;;  %10720 = vst [vmem:[#allocation111_spill] sm:$0xff] %v6697_v25  ;;  %v6705_v14 = vld [vmem:[#allocation12 + $0x3a8] sm:$0xff]  ;;  %v10725_v28 = vld [vmem:[#allocation28_spill] sm:$0xff] }
 0x1f5   :  { %1526 = vmatpush.msra.mxu1 %v6686_v50  ;;  %1566 = vmatpush.msra.mxu3 %v6689_v21  ;;  %10724 = vst [vmem:[#allocation113_spill] sm:$0xff] %v6705_v14 }
 0x1f6   :  { %1290 = vmatpush.msra.mxu0 %v10717_v46  ;;  %1330 = vmatpush.msra.mxu2 %v10718_v58  ;;  %v10726_v46 = vld [vmem:[#allocation26_spill] sm:$0xff] }
 0x1f7   :  { %1527 = vmatpush.msra.mxu1 %v6694_v3  ;;  %1567 = vmatpush.msra.mxu3 %v6697_v25  ;;  %v6710_v58 = vld [vmem:[#allocation12 + $0x380] sm:$0xff]  ;;  %v6713_v25 = vld [vmem:[#allocation12 + $0x388] sm:$0xff] }
 0x1f8   :  { %1291 = vmatpush.msra.mxu0 %v10721_v38  ;;  %1331 = vmatpush.msra.mxu2 %v10722_v55  ;;  %10727 = vst [vmem:[#allocation114_spill] sm:$0xff] %v6710_v58  ;;  %v10729_v38 = vld [vmem:[#allocation30_spill] sm:$0xff]  ;;  %v10730_v55 = vld [vmem:[#allocation27_spill] sm:$0xff] }
 0x1f9   :  { %1528 = vmatpush.msra.mxu1 %v6702_v18  ;;  %1568 = vmatpush.msra.mxu3 %v6705_v14  ;;  %10728 = vst [vmem:[#allocation115_spill] sm:$0xff] %v6713_v25  ;;  %v6718_v18 = vld [vmem:[#allocation12 + $0x360] sm:$0xff]  ;;  %v6721_v14 = vld [vmem:[#allocation12 + $0x368] sm:$0xff] }
 0x1fa   :  { %1292 = vmatpush.msra.mxu0 %v10725_v28  ;;  %1332 = vmatpush.msra.mxu2 %v10726_v46  ;;  %10731 = vst [vmem:[#allocation116_spill] sm:$0xff] %v6718_v18  ;;  %v10733_v28 = vld [vmem:[#allocation32_spill] sm:$0xff]  ;;  %v10734_v46 = vld [vmem:[#allocation29_spill] sm:$0xff] }
 0x1fb   :  { %1529 = vmatpush.msra.mxu1 %v6710_v58  ;;  %1569 = vmatpush.msra.mxu3 %v6713_v25  ;;  %10732 = vst [vmem:[#allocation108_spill] sm:$0xff] %v6721_v14  ;;  %v6726_v58 = vld [vmem:[#allocation12 + $0x340] sm:$0xff]  ;;  %v6729_v25 = vld [vmem:[#allocation12 + $0x348] sm:$0xff] }
 0x1fc   :  { %1293 = vmatpush.msra.mxu0 %v10729_v38  ;;  %1333 = vmatpush.msra.mxu2 %v10730_v55  ;;  %10735 = vst [vmem:[#allocation109_spill] sm:$0xff] %v6726_v58  ;;  %v10737_v38 = vld [vmem:[#allocation34_spill] sm:$0xff]  ;;  %v10738_v55 = vld [vmem:[#allocation31_spill] sm:$0xff] }
 0x1fd   :  { %1530 = vmatpush.msra.mxu1 %v6718_v18  ;;  %1570 = vmatpush.msra.mxu3 %v6721_v14  ;;  %10736 = vst [vmem:[#allocation22_spill] sm:$0xff] %v6729_v25  ;;  %v6734_v18 = vld [vmem:[#allocation12 + $0x320] sm:$0xff]  ;;  %v6737_v14 = vld [vmem:[#allocation12 + $0x328] sm:$0xff] }
 0x1fe   :  { %1294 = vmatpush.msra.mxu0 %v10733_v28  ;;  %1334 = vmatpush.msra.mxu2 %v10734_v46  ;;  %10739 = vst [vmem:[#allocation20_spill] sm:$0xff] %v6734_v18  ;;  %v10741_v28 = vld [vmem:[#allocation36_spill] sm:$0xff]  ;;  %v10742_v46 = vld [vmem:[#allocation33_spill] sm:$0xff] }
 0x1ff   :  { %1531 = vmatpush.msra.mxu1 %v6726_v58  ;;  %1571 = vmatpush.msra.mxu3 %v6729_v25  ;;  %10740 = vst [vmem:[#allocation24_spill] sm:$0xff] %v6737_v14  ;;  %v6742_v58 = vld [vmem:[#allocation12 + $0x300] sm:$0xff]  ;;  %v6745_v25 = vld [vmem:[#allocation12 + $0x308] sm:$0xff] }
 0x200   :  { %1295 = vmatpush.msra.mxu0 %v10737_v38  ;;  %1335 = vmatpush.msra.mxu2 %v10738_v55  ;;  %10743 = vst [vmem:[#allocation21_spill] sm:$0xff] %v6742_v58  ;;  %v10745_v38 = vld [vmem:[#allocation38_spill] sm:$0xff]  ;;  %v10746_v55 = vld [vmem:[#allocation35_spill] sm:$0xff] }
 0x201   :  { %1532 = vmatpush.msra.mxu1 %v6734_v18  ;;  %1572 = vmatpush.msra.mxu3 %v6737_v14  ;;  %10744 = vst [vmem:[#allocation23_spill] sm:$0xff] %v6745_v25  ;;  %v6750_v18 = vld [vmem:[#allocation6 + $0x4] sm:$0x3]  ;;  %v6752_v3 = vld [vmem:[#allocation12 + $0x2e0] sm:$0xff]  ;;  %v6775_v14 = vld [vmem:[#allocation12 + $0x2a8] sm:$0xff] }
 0x202   :  { %1296 = vmatpush.msra.mxu0 %v10741_v28  ;;  %1336 = vmatpush.msra.mxu2 %v10742_v46  ;;  %10747 = vst [vmem:[#allocation25_spill] sm:$0xff] %v6752_v3  ;;  %v6755_v28 = vld [vmem:[#allocation12 + $0x2e8] sm:$0xff]  ;;  %v10749_v46 = vld [vmem:[#allocation40_spill] sm:$0xff] }
 0x203   :  { %1533 = vmatpush.msra.mxu1 %v6742_v58  ;;  %1573 = vmatpush.msra.mxu3 %v6745_v25  ;;  %10748 = vst [vmem:[#allocation28_spill] sm:$0xff] %v6755_v28  ;;  %v10750_v58 = vld [vmem:[#allocation37_spill] sm:$0xff] }
 0x204   :  { %1297 = vmatpush.msra.mxu0 %v10745_v38  ;;  %1337 = vmatpush.msra.mxu2 %v10746_v55  ;;  %v10751_v38 = vld [vmem:[#allocation42_spill] sm:$0xff]  ;;  %v10752_v55 = vld [vmem:[#allocation39_spill] sm:$0xff]  ;;  %10758 = vst [vmem:[#allocation32_spill] sm:$0xff] %v6775_v14 }
 0x205   :  { %1534 = vmatpush.msra.mxu1 %v6752_v3  ;;  %1574 = vmatpush.msra.mxu3 %v6755_v28  ;;  %v6764_v25 = vld [vmem:[#allocation12 + $0x2c0] sm:$0xff]  ;;  %v6767_v3 = vld [vmem:[#allocation12 + $0x2c8] sm:$0xff]  ;;  %v10755_v28 = vld [vmem:[#allocation44_spill] sm:$0xff] }
 0x206   :  { %1298 = vmatpush.msra.mxu0 %v10749_v46  ;;  %1338 = vmatpush.msra.mxu2 %v10750_v58  ;;  %10753 = vst [vmem:[#allocation26_spill] sm:$0xff] %v6764_v25  ;;  %v10756_v46 = vld [vmem:[#allocation41_spill] sm:$0xff] }
 0x207   :  { %1299 = vmatmul.f32.vlgmr.msra.gmra.mxu0 %v6750_v18  ;;  %1339 = vmatmul.f32.vlgmr.msra.gmra.mxu2 %v6750_v18  ;;  %10754 = vst [vmem:[#allocation30_spill] sm:$0xff] %v6767_v3  ;;  %v6772_v58 = vld [vmem:[#allocation12 + $0x2a0] sm:$0xff] }
 0x208   :  { %1363 = vmatpush.msrb.mxu0 %v10751_v38  ;;  %1403 = vmatpush.msrb.mxu2 %v10752_v55  ;;  %10757 = vst [vmem:[#allocation27_spill] sm:$0xff] %v6772_v58  ;;  %v10759_v38 = vld [vmem:[#allocation46_spill] sm:$0xff]  ;;  %v10760_v55 = vld [vmem:[#allocation43_spill] sm:$0xff] }
 0x209   :  { %1535 = vmatpush.msra.mxu1 %v6764_v25  ;;  %1575 = vmatpush.msra.mxu3 %v6767_v3  ;;  %v6780_v25 = vld [vmem:[#allocation12 + $0x280] sm:$0xff]  ;;  %v6783_v3 = vld [vmem:[#allocation12 + $0x288] sm:$0xff] }
 0x20a   :  { %1364 = vmatpush.msrb.mxu0 %v10755_v28  ;;  %1404 = vmatpush.msrb.mxu2 %v10756_v46  ;;  %10761 = vst [vmem:[#allocation29_spill] sm:$0xff] %v6780_v25  ;;  %v10763_v28 = vld [vmem:[#allocation48_spill] sm:$0xff]  ;;  %v10764_v46 = vld [vmem:[#allocation45_spill] sm:$0xff] }
 0x20b   :  { %1536 = vmatpush.msra.mxu1 %v6772_v58  ;;  %1576 = vmatpush.msra.mxu3 %v6775_v14  ;;  %10762 = vst [vmem:[#allocation34_spill] sm:$0xff] %v6783_v3  ;;  %v6788_v58 = vld [vmem:[#allocation12 + $0x260] sm:$0xff]  ;;  %v6791_v14 = vld [vmem:[#allocation12 + $0x268] sm:$0xff] }
 0x20c   :  { %1365 = vmatpush.msrb.mxu0 %v10759_v38  ;;  %1405 = vmatpush.msrb.mxu2 %v10760_v55  ;;  %10765 = vst [vmem:[#allocation31_spill] sm:$0xff] %v6788_v58  ;;  %v10767_v38 = vld [vmem:[#allocation50_spill] sm:$0xff]  ;;  %v10768_v55 = vld [vmem:[#allocation47_spill] sm:$0xff] }
 0x20d   :  { %1537 = vmatpush.msra.mxu1 %v6780_v25  ;;  %1577 = vmatpush.msra.mxu3 %v6783_v3  ;;  %10766 = vst [vmem:[#allocation36_spill] sm:$0xff] %v6791_v14  ;;  %v6796_v25 = vld [vmem:[#allocation12 + $0x240] sm:$0xff]  ;;  %v6799_v3 = vld [vmem:[#allocation12 + $0x248] sm:$0xff] }
 0x20e   :  { %1366 = vmatpush.msrb.mxu0 %v10763_v28  ;;  %1406 = vmatpush.msrb.mxu2 %v10764_v46  ;;  %10769 = vst [vmem:[#allocation33_spill] sm:$0xff] %v6796_v25  ;;  %v10771_v28 = vld [vmem:[#allocation52_spill] sm:$0xff]  ;;  %v10772_v46 = vld [vmem:[#allocation49_spill] sm:$0xff] }
 0x20f   :  { %1538 = vmatpush.msra.mxu1 %v6788_v58  ;;  %1578 = vmatpush.msra.mxu3 %v6791_v14  ;;  %10770 = vst [vmem:[#allocation38_spill] sm:$0xff] %v6799_v3  ;;  %v6804_v58 = vld [vmem:[#allocation12 + $0x220] sm:$0xff]  ;;  %v6807_v14 = vld [vmem:[#allocation12 + $0x228] sm:$0xff] }
 0x210   :  { %1367 = vmatpush.msrb.mxu0 %v10767_v38  ;;  %1407 = vmatpush.msrb.mxu2 %v10768_v55  ;;  %10773 = vst [vmem:[#allocation35_spill] sm:$0xff] %v6804_v58  ;;  %v10775_v38 = vld [vmem:[#allocation54_spill] sm:$0xff]  ;;  %v10776_v55 = vld [vmem:[#allocation51_spill] sm:$0xff] }
 0x211   :  { %1539 = vmatpush.msra.mxu1 %v6796_v25  ;;  %1579 = vmatpush.msra.mxu3 %v6799_v3  ;;  %10774 = vst [vmem:[#allocation40_spill] sm:$0xff] %v6807_v14  ;;  %v6812_v25 = vld [vmem:[#allocation12 + $0x200] sm:$0xff]  ;;  %v6815_v3 = vld [vmem:[#allocation12 + $0x208] sm:$0xff] }
 0x212   :  { %1368 = vmatpush.msrb.mxu0 %v10771_v28  ;;  %1408 = vmatpush.msrb.mxu2 %v10772_v46  ;;  %10777 = vst [vmem:[#allocation37_spill] sm:$0xff] %v6812_v25  ;;  %v10779_v28 = vld [vmem:[#allocation56_spill] sm:$0xff]  ;;  %v10780_v46 = vld [vmem:[#allocation53_spill] sm:$0xff] }
 0x213   :  { %1540 = vmatpush.msra.mxu1 %v6804_v58  ;;  %1580 = vmatpush.msra.mxu3 %v6807_v14  ;;  %10778 = vst [vmem:[#allocation42_spill] sm:$0xff] %v6815_v3  ;;  %v6820_v58 = vld [vmem:[#allocation12 + $0x3f0] sm:$0xff]  ;;  %v6823_v14 = vld [vmem:[#allocation12 + $0x3f8] sm:$0xff] }
 0x214   :  { %1369 = vmatpush.msrb.mxu0 %v10775_v38  ;;  %1409 = vmatpush.msrb.mxu2 %v10776_v55  ;;  %10781 = vst [vmem:[#allocation39_spill] sm:$0xff] %v6820_v58  ;;  %v10783_v38 = vld [vmem:[#allocation55_spill] sm:$0xff] }
 0x215   :  { %1541 = vmatpush.msra.mxu1 %v6812_v25  ;;  %1581 = vmatpush.msra.mxu3 %v6815_v3  ;;  %10782 = vst [vmem:[#allocation44_spill] sm:$0xff] %v6823_v14  ;;  %v10784_v55 = vld [vmem:[#allocation63_spill] sm:$0xff]  ;;  %v6831_v3 = vld [vmem:[#allocation12 + $0x3d8] sm:$0xff] }
 0x216   :  { %1370 = vmatpush.msrb.mxu0 %v10779_v28  ;;  %1410 = vmatpush.msrb.mxu2 %v10780_v46  ;;  %v6828_v25 = vld [vmem:[#allocation12 + $0x3d0] sm:$0xff]  ;;  %10786 = vst [vmem:[#allocation46_spill] sm:$0xff] %v6831_v3  ;;  %v10788_v46 = vld [vmem:[#allocation65_spill] sm:$0xff] }
 0x217   :  { %1606 = vmatpush.msrb.mxu1 %v6820_v58  ;;  %1646 = vmatpush.msrb.mxu3 %v6823_v14  ;;  %10785 = vst [vmem:[#allocation41_spill] sm:$0xff] %v6828_v25  ;;  %v10787_v28 = vld [vmem:[#allocation59_spill] sm:$0xff]  ;;  %v6839_v14 = vld [vmem:[#allocation12 + $0x3b8] sm:$0xff] }
 0x218   :  { %1371 = vmatpush.msrb.mxu0 %v10783_v38  ;;  %1411 = vmatpush.msrb.mxu2 %v10784_v55  ;;  %v6836_v58 = vld [vmem:[#allocation12 + $0x3b0] sm:$0xff]  ;;  %10790 = vst [vmem:[#allocation48_spill] sm:$0xff] %v6839_v14  ;;  %v10791_v38 = vld [vmem:[#allocation62_spill] sm:$0xff] }
 0x219   :  { %1607 = vmatpush.msrb.mxu1 %v6828_v25  ;;  %1647 = vmatpush.msrb.mxu3 %v6831_v3  ;;  %10789 = vst [vmem:[#allocation43_spill] sm:$0xff] %v6836_v58  ;;  %v10792_v55 = vld [vmem:[#allocation67_spill] sm:$0xff]  ;;  %v6847_v3 = vld [vmem:[#allocation12 + $0x398] sm:$0xff] }
 0x21a   :  { %1372 = vmatpush.msrb.mxu0 %v10787_v28  ;;  %1412 = vmatpush.msrb.mxu2 %v10788_v46  ;;  %v6844_v25 = vld [vmem:[#allocation12 + $0x390] sm:$0xff]  ;;  %10794 = vst [vmem:[#allocation50_spill] sm:$0xff] %v6847_v3  ;;  %v10796_v46 = vld [vmem:[#allocation69_spill] sm:$0xff] }
 0x21b   :  { %1608 = vmatpush.msrb.mxu1 %v6836_v58  ;;  %1648 = vmatpush.msrb.mxu3 %v6839_v14  ;;  %10793 = vst [vmem:[#allocation45_spill] sm:$0xff] %v6844_v25  ;;  %v10795_v28 = vld [vmem:[#allocation64_spill] sm:$0xff] }
 0x21c   :  { %1373 = vmatpush.msrb.mxu0 %v10791_v38  ;;  %1413 = vmatpush.msrb.mxu2 %v10792_v55  ;;  %v6852_v58 = vld [vmem:[#allocation12 + $0x370] sm:$0xff]  ;;  %v6855_v14 = vld [vmem:[#allocation12 + $0x378] sm:$0xff]  ;;  %v10799_v38 = vld [vmem:[#allocation66_spill] sm:$0xff] }
 0x21d   :  { %1609 = vmatpush.msrb.mxu1 %v6844_v25  ;;  %1649 = vmatpush.msrb.mxu3 %v6847_v3  ;;  %10797 = vst [vmem:[#allocation47_spill] sm:$0xff] %v6852_v58  ;;  %v10800_v55 = vld [vmem:[#allocation71_spill] sm:$0xff]  ;;  %v6863_v3 = vld [vmem:[#allocation12 + $0x358] sm:$0xff] }
 0x21e   :  { %1374 = vmatpush.msrb.mxu0 %v10795_v28  ;;  %1414 = vmatpush.msrb.mxu2 %v10796_v46  ;;  %10798 = vst [vmem:[#allocation52_spill] sm:$0xff] %v6855_v14  ;;  %v6860_v25 = vld [vmem:[#allocation12 + $0x350] sm:$0xff]  ;;  %v10804_v46 = vld [vmem:[#allocation73_spill] sm:$0xff] }
 0x21f   :  { %1610 = vmatpush.msrb.mxu1 %v6852_v58  ;;  %1650 = vmatpush.msrb.mxu3 %v6855_v14  ;;  %10801 = vst [vmem:[#allocation49_spill] sm:$0xff] %v6860_v25  ;;  %v10803_v28 = vld [vmem:[#allocation68_spill] sm:$0xff] }
 0x220   :  { %1375 = vmatpush.msrb.mxu0 %v10799_v38  ;;  %1415 = vmatpush.msrb.mxu2 %v10800_v55  ;;  %10802 = vst [vmem:[#allocation54_spill] sm:$0xff] %v6863_v3  ;;  %v6868_v58 = vld [vmem:[#allocation12 + $0x330] sm:$0xff]  ;;  %v6871_v14 = vld [vmem:[#allocation12 + $0x338] sm:$0xff]  ;;  %v10807_v38 = vld [vmem:[#allocation70_spill] sm:$0xff] }
 0x221   :  { %1611 = vmatpush.msrb.mxu1 %v6860_v25  ;;  %1651 = vmatpush.msrb.mxu3 %v6863_v3  ;;  %10805 = vst [vmem:[#allocation51_spill] sm:$0xff] %v6868_v58  ;;  %v10808_v55 = vld [vmem:[#allocation75_spill] sm:$0xff]  ;;  %v6879_v3 = vld [vmem:[#allocation12 + $0x318] sm:$0xff] }
 0x222   :  { %1376 = vmatpush.msrb.mxu0 %v10803_v28  ;;  %1416 = vmatpush.msrb.mxu2 %v10804_v46  ;;  %10806 = vst [vmem:[#allocation56_spill] sm:$0xff] %v6871_v14  ;;  %v6876_v25 = vld [vmem:[#allocation12 + $0x310] sm:$0xff]  ;;  %v10812_v46 = vld [vmem:[#allocation77_spill] sm:$0xff] }
 0x223   :  { %1612 = vmatpush.msrb.mxu1 %v6868_v58  ;;  %1652 = vmatpush.msrb.mxu3 %v6871_v14  ;;  %10809 = vst [vmem:[#allocation53_spill] sm:$0xff] %v6876_v25  ;;  %v10811_v28 = vld [vmem:[#allocation72_spill] sm:$0xff] }
 0x224   :  { %1377 = vmatpush.msrb.mxu0 %v10807_v38  ;;  %1417 = vmatpush.msrb.mxu2 %v10808_v55  ;;  %10810 = vst [vmem:[#allocation55_spill] sm:$0xff] %v6879_v3  ;;  %v6886_v14 = vld [vmem:[#allocation12 + $0x2f0] sm:$0xff]  ;;  %v6889_v38 = vld [vmem:[#allocation12 + $0x2f8] sm:$0xff]  ;;  %v6892_v55 = vld [vmem:[#allocation12 + $0x1e0] sm:$0xff] }
 0x225   :  { %1613 = vmatpush.msrb.mxu1 %v6876_v25  ;;  %1653 = vmatpush.msrb.mxu3 %v6879_v3  ;;  %10813 = vst [vmem:[#allocation63_spill] sm:$0xff] %v6886_v14  ;;  %v6895_v3 = vld [vmem:[#allocation12 + $0x1e8] sm:$0xff]  ;;  %v7115_v25 = vld [vmem:[#allocation12 + $0x30] sm:$0xff] }
 0x226   :  { %1378 = vmatpush.msrb.mxu0 %v10811_v28  ;;  %1418 = vmatpush.msrb.mxu2 %v10812_v46  ;;  %10814 = vst [vmem:[#allocation59_spill] sm:$0xff] %v6889_v38  ;;  %v6898_v28 = vld [vmem:[#allocation12 + $0x2d0] sm:$0xff]  ;;  %v6904_v46 = vld [vmem:[#allocation12 + $0x1c0] sm:$0xff] }
 0x227   :  { %1379 = vmatmul.f32.vlgmr.msrb.gmra.mxu0 %v6750_v18  ;;  %1419 = vmatmul.f32.vlgmr.msrb.gmra.mxu2 %v6750_v18  ;;  %10815 = vst [vmem:[#allocation65_spill] sm:$0xff] %v6892_v55  ;;  %v6901_v18 = vld [vmem:[#allocation12 + $0x2d8] sm:$0xff]  ;;  %v7121_v58 = vld [vmem:[#allocation12 + $0x10] sm:$0xff] }
 0x228   :  { %1614 = vmatpush.msrb.mxu1 %v6886_v14  ;;  %1654 = vmatpush.msrb.mxu3 %v6889_v38  ;;  %10816 = vst [vmem:[#allocation62_spill] sm:$0xff] %v6895_v3  ;;  %v6907_v38 = vld [vmem:[#allocation12 + $0x1c8] sm:$0xff]  ;;  %v7108_v14 = vld [vmem:[#allocation12 + $0x50] sm:$0xff] }
 0x229   :  { %1506 = vmatpush.msra.mxu0 %v6892_v55  ;;  %1546 = vmatpush.msra.mxu2 %v6895_v3  ;;  %10817 = vst [vmem:[#allocation67_spill] sm:$0xff] %v6898_v28  ;;  %v6910_v55 = vld [vmem:[#allocation12 + $0x2b0] sm:$0xff]  ;;  %v6913_v3 = vld [vmem:[#allocation12 + $0x2b8] sm:$0xff] }
 0x22a   :  { %1615 = vmatpush.msrb.mxu1 %v6898_v28  ;;  %10818 = vst [vmem:[#allocation64_spill] sm:$0xff] %v6901_v18  ;;  %1655 = vmatpush.msrb.mxu3 %v6901_v18  ;;  %v6916_v28 = vld [vmem:[#allocation12 + $0x1a0] sm:$0xff]  ;;  %v6919_v18 = vld [vmem:[#allocation12 + $0x1a8] sm:$0xff] }
 0x22b   :  { %10819 = vst [vmem:[#allocation69_spill] sm:$0xff] %v6904_v46  ;;  %1507 = vmatpush.msra.mxu0 %v6904_v46  ;;  %1547 = vmatpush.msra.mxu2 %v6907_v38  ;;  %v6922_v46 = vld [vmem:[#allocation12 + $0x290] sm:$0xff] }
 0x22c   :  { %10820 = vst [vmem:[#allocation66_spill] sm:$0xff] %v6907_v38  ;;  %1616 = vmatpush.msrb.mxu1 %v6910_v55  ;;  %1656 = vmatpush.msrb.mxu3 %v6913_v3  ;;  %v6925_v38 = vld [vmem:[#allocation12 + $0x298] sm:$0xff] }
 0x22d   :  { %10821 = vst [vmem:[#allocation71_spill] sm:$0xff] %v6910_v55  ;;  %1508 = vmatpush.msra.mxu0 %v6916_v28  ;;  %1548 = vmatpush.msra.mxu2 %v6919_v18  ;;  %v6928_v55 = vld [vmem:[#allocation12 + $0x180] sm:$0xff] }
 0x22e   :  { %10822 = vst [vmem:[#allocation68_spill] sm:$0xff] %v6913_v3  ;;  %1617 = vmatpush.msrb.mxu1 %v6922_v46  ;;  %1657 = vmatpush.msrb.mxu3 %v6925_v38  ;;  %v6931_v3 = vld [vmem:[#allocation12 + $0x188] sm:$0xff] }
 0x22f   :  { %10823 = vst [vmem:[#allocation73_spill] sm:$0xff] %v6916_v28  ;;  %1509 = vmatpush.msra.mxu0 %v6928_v55  ;;  %1549 = vmatpush.msra.mxu2 %v6931_v3  ;;  %v6934_v28 = vld [vmem:[#allocation12 + $0x270] sm:$0xff] }
 0x230   :  { %10824 = vst [vmem:[#allocation70_spill] sm:$0xff] %v6919_v18  ;;  %1618 = vmatpush.msrb.mxu1 %v6934_v28  ;;  %v6937_v18 = vld [vmem:[#allocation12 + $0x278] sm:$0xff] }
 0x231   :  { %10825 = vst [vmem:[#allocation75_spill] sm:$0xff] %v6922_v46  ;;  %1658 = vmatpush.msrb.mxu3 %v6937_v18  ;;  %v6940_v46 = vld [vmem:[#allocation12 + $0x160] sm:$0xff] }
 0x232   :  { %10826 = vst [vmem:[#allocation72_spill] sm:$0xff] %v6925_v38  ;;  %1510 = vmatpush.msra.mxu0 %v6940_v46  ;;  %v6943_v38 = vld [vmem:[#allocation12 + $0x168] sm:$0xff]  ;;  %v1133_v21 = vpop.f32.mrf.mxu3 }
 0x233   :  { %10827 = vst [vmem:[#allocation77_spill] sm:$0xff] %v6928_v55  ;;  %1550 = vmatpush.msra.mxu2 %v6943_v38  ;;  %v6946_v55 = vld [vmem:[#allocation12 + $0x250] sm:$0xff] }
 0x234   :  { %10828 = vst [vmem:[#allocation119_spill] sm:$0xff] %v6931_v3  ;;  %1619 = vmatpush.msrb.mxu1 %v6946_v55  ;;  %v6949_v3 = vld [vmem:[#allocation12 + $0x258] sm:$0xff] }
 0x235   :  { %10829 = vst [vmem:[#allocation120_spill] sm:$0xff] %v6934_v28  ;;  %1659 = vmatpush.msrb.mxu3 %v6949_v3  ;;  %v6952_v28 = vld [vmem:[#allocation12 + $0x140] sm:$0xff] }
 0x236   :  { %10830 = vst [vmem:[#allocation121_spill] sm:$0xff] %v6937_v18  ;;  %1511 = vmatpush.msra.mxu0 %v6952_v28  ;;  %v6955_v18 = vld [vmem:[#allocation12 + $0x148] sm:$0xff] }
 0x237   :  { %10831 = vst [vmem:[#allocation122_spill] sm:$0xff] %v6940_v46  ;;  %1551 = vmatpush.msra.mxu2 %v6955_v18  ;;  %v6958_v46 = vld [vmem:[#allocation12 + $0x230] sm:$0xff] }
 0x238   :  { %10832 = vst [vmem:[#allocation123_spill] sm:$0xff] %v6943_v38  ;;  %1620 = vmatpush.msrb.mxu1 %v6958_v46  ;;  %v6961_v38 = vld [vmem:[#allocation12 + $0x238] sm:$0xff] }
 0x239   :  { %10833 = vst [vmem:[#allocation124_spill] sm:$0xff] %v6946_v55  ;;  %1660 = vmatpush.msrb.mxu3 %v6961_v38  ;;  %v6964_v55 = vld [vmem:[#allocation12 + $0x120] sm:$0xff] }
 0x23a   :  { %10834 = vst [vmem:[#allocation125_spill] sm:$0xff] %v6949_v3  ;;  %1512 = vmatpush.msra.mxu0 %v6964_v55  ;;  %v6967_v3 = vld [vmem:[#allocation12 + $0x128] sm:$0xff] }
 0x23b   :  { %10835 = vst [vmem:[#allocation126_spill] sm:$0xff] %v6952_v28  ;;  %1552 = vmatpush.msra.mxu2 %v6967_v3  ;;  %v6970_v28 = vld [vmem:[#allocation12 + $0x210] sm:$0xff] }
 0x23c   :  { %10836 = vst [vmem:[#allocation127_spill] sm:$0xff] %v6955_v18  ;;  %1621 = vmatpush.msrb.mxu1 %v6970_v28  ;;  %v6973_v18 = vld [vmem:[#allocation12 + $0x218] sm:$0xff] }
 0x23d   :  { %10837 = vst [vmem:[#allocation128_spill] sm:$0xff] %v6958_v46  ;;  %1661 = vmatpush.msrb.mxu3 %v6973_v18  ;;  %v6976_v46 = vld [vmem:[#allocation12 + $0x100] sm:$0xff] }
 0x23e   :  { %10838 = vst [vmem:[#allocation129_spill] sm:$0xff] %v6961_v38  ;;  %1513 = vmatpush.msra.mxu0 %v6976_v46  ;;  %v6979_v38 = vld [vmem:[#allocation12 + $0x108] sm:$0xff] }
 0x23f   :  { %10839 = vst [vmem:[#allocation130_spill] sm:$0xff] %v6964_v55  ;;  %1553 = vmatpush.msra.mxu2 %v6979_v38  ;;  %v6982_v55 = vld [vmem:[#allocation12 + $0xe0] sm:$0xff] }
 0x240   :  { %10840 = vst [vmem:[#allocation131_spill] sm:$0xff] %v6967_v3  ;;  %1514 = vmatpush.msra.mxu0 %v6982_v55  ;;  %v6985_v3 = vld [vmem:[#allocation12 + $0xe8] sm:$0xff] }
 0x241   :  { %10841 = vst [vmem:[#allocation132_spill] sm:$0xff] %v6970_v28  ;;  %1554 = vmatpush.msra.mxu2 %v6985_v3  ;;  %v6988_v28 = vld [vmem:[#allocation12 + $0xc0] sm:$0xff] }
 0x242   :  { %10842 = vst [vmem:[#allocation133_spill] sm:$0xff] %v6973_v18  ;;  %1515 = vmatpush.msra.mxu0 %v6988_v28  ;;  %v6991_v18 = vld [vmem:[#allocation12 + $0xc8] sm:$0xff] }
 0x243   :  { %10843 = vst [vmem:[#allocation134_spill] sm:$0xff] %v6976_v46  ;;  %1555 = vmatpush.msra.mxu2 %v6991_v18  ;;  %v6994_v46 = vld [vmem:[#allocation12 + $0xa0] sm:$0xff] }
 0x244   :  { %10844 = vst [vmem:[#allocation135_spill] sm:$0xff] %v6979_v38  ;;  %1516 = vmatpush.msra.mxu0 %v6994_v46  ;;  %v6997_v38 = vld [vmem:[#allocation12 + $0xa8] sm:$0xff] }
 0x245   :  { %10845 = vst [vmem:[#allocation136_spill] sm:$0xff] %v6982_v55  ;;  %1556 = vmatpush.msra.mxu2 %v6997_v38  ;;  %v7000_v55 = vld [vmem:[#allocation12 + $0x80] sm:$0xff] }
 0x246   :  { %10846 = vst [vmem:[#allocation137_spill] sm:$0xff] %v6985_v3  ;;  %1517 = vmatpush.msra.mxu0 %v7000_v55  ;;  %v7003_v3 = vld [vmem:[#allocation12 + $0x88] sm:$0xff] }
 0x247   :  { %10847 = vst [vmem:[#allocation138_spill] sm:$0xff] %v6988_v28  ;;  %1557 = vmatpush.msra.mxu2 %v7003_v3  ;;  %v7006_v28 = vld [vmem:[#allocation12 + $0x60] sm:$0xff] }
 0x248   :  { %10848 = vst [vmem:[#allocation139_spill] sm:$0xff] %v6991_v18  ;;  %1518 = vmatpush.msra.mxu0 %v7006_v28  ;;  %v7009_v18 = vld [vmem:[#allocation12 + $0x68] sm:$0xff] }
 0x249   :  { %10849 = vst [vmem:[#allocation140_spill] sm:$0xff] %v6994_v46  ;;  %1558 = vmatpush.msra.mxu2 %v7009_v18  ;;  %v7012_v46 = vld [vmem:[#allocation12 + $0x40] sm:$0xff] }
 0x24a   :  { %10850 = vst [vmem:[#allocation141_spill] sm:$0xff] %v6997_v38  ;;  %1519 = vmatpush.msra.mxu0 %v7012_v46  ;;  %v7015_v38 = vld [vmem:[#allocation12 + $0x48] sm:$0xff] }
 0x24b   :  { %10851 = vst [vmem:[#allocation142_spill] sm:$0xff] %v7000_v55  ;;  %1559 = vmatpush.msra.mxu2 %v7015_v38  ;;  %v7018_v55 = vld [vmem:[#allocation12 + $0x20] sm:$0xff] }
 0x24c   :  { %10852 = vst [vmem:[#allocation143_spill] sm:$0xff] %v7003_v3  ;;  %1520 = vmatpush.msra.mxu0 %v7018_v55  ;;  %v7021_v3 = vld [vmem:[#allocation12 + $0x28] sm:$0xff] }
 0x24d   :  { %10853 = vst [vmem:[#allocation144_spill] sm:$0xff] %v7006_v28  ;;  %1560 = vmatpush.msra.mxu2 %v7021_v3  ;;  %v7024_v28 = vld [vmem:[#allocation12] sm:$0xff] }
 0x24e   :  { %10854 = vst [vmem:[#allocation145_spill] sm:$0xff] %v7009_v18  ;;  %1521 = vmatpush.msra.mxu0 %v7024_v28  ;;  %v7027_v18 = vld [vmem:[#allocation12 + $0x8] sm:$0xff] }
 0x24f   :  { %10855 = vst [vmem:[#allocation146_spill] sm:$0xff] %v7012_v46  ;;  %1561 = vmatpush.msra.mxu2 %v7027_v18  ;;  %v7030_v46 = vld [vmem:[#allocation12 + $0x1f0] sm:$0xff] }
 0x250   :  { %10856 = vst [vmem:[#allocation147_spill] sm:$0xff] %v7015_v38  ;;  %1586 = vmatpush.msrb.mxu0 %v7030_v46  ;;  %v7033_v38 = vld [vmem:[#allocation12 + $0x1f8] sm:$0xff] }
 0x251   :  { %10857 = vst [vmem:[#allocation148_spill] sm:$0xff] %v7018_v55  ;;  %1626 = vmatpush.msrb.mxu2 %v7033_v38  ;;  %v7036_v55 = vld [vmem:[#allocation12 + $0x1d0] sm:$0xff] }
 0x252   :  { %10858 = vst [vmem:[#allocation149_spill] sm:$0xff] %v7021_v3  ;;  %1587 = vmatpush.msrb.mxu0 %v7036_v55  ;;  %v7039_v3 = vld [vmem:[#allocation12 + $0x1d8] sm:$0xff] }
 0x253   :  { %10859 = vst [vmem:[#allocation150_spill] sm:$0xff] %v7024_v28  ;;  %1627 = vmatpush.msrb.mxu2 %v7039_v3  ;;  %v7042_v28 = vld [vmem:[#allocation12 + $0x1b0] sm:$0xff] }
 0x254   :  { %10860 = vst [vmem:[#allocation151_spill] sm:$0xff] %v7027_v18  ;;  %1588 = vmatpush.msrb.mxu0 %v7042_v28  ;;  %v7045_v18 = vld [vmem:[#allocation12 + $0x1b8] sm:$0xff] }
 0x255   :  { %10861 = vst [vmem:[#allocation152_spill] sm:$0xff] %v7030_v46  ;;  %1628 = vmatpush.msrb.mxu2 %v7045_v18  ;;  %v7048_v46 = vld [vmem:[#allocation12 + $0x190] sm:$0xff] }
 0x256   :  { %10862 = vst [vmem:[#allocation153_spill] sm:$0xff] %v7033_v38  ;;  %1589 = vmatpush.msrb.mxu0 %v7048_v46  ;;  %v7051_v38 = vld [vmem:[#allocation12 + $0x198] sm:$0xff] }
 0x257   :  { %10863 = vst [vmem:[#allocation154_spill] sm:$0xff] %v7036_v55  ;;  %1629 = vmatpush.msrb.mxu2 %v7051_v38  ;;  %v7054_v55 = vld [vmem:[#allocation12 + $0x170] sm:$0xff] }
 0x258   :  { %10864 = vst [vmem:[#allocation155_spill] sm:$0xff] %v7039_v3  ;;  %1590 = vmatpush.msrb.mxu0 %v7054_v55  ;;  %v7057_v3 = vld [vmem:[#allocation12 + $0x178] sm:$0xff] }
 0x259   :  { %10865 = vst [vmem:[#allocation156_spill] sm:$0xff] %v7042_v28  ;;  %1630 = vmatpush.msrb.mxu2 %v7057_v3  ;;  %v7060_v28 = vld [vmem:[#allocation12 + $0x150] sm:$0xff] }
 0x25a   :  { %10866 = vst [vmem:[#allocation157_spill] sm:$0xff] %v7045_v18  ;;  %1591 = vmatpush.msrb.mxu0 %v7060_v28  ;;  %v7063_v18 = vld [vmem:[#allocation12 + $0x158] sm:$0xff] }
 0x25b   :  { %10867 = vst [vmem:[#allocation158_spill] sm:$0xff] %v7048_v46  ;;  %1631 = vmatpush.msrb.mxu2 %v7063_v18  ;;  %v7066_v46 = vld [vmem:[#allocation12 + $0x130] sm:$0xff] }
 0x25c   :  { %10868 = vst [vmem:[#allocation159_spill] sm:$0xff] %v7051_v38  ;;  %1592 = vmatpush.msrb.mxu0 %v7066_v46  ;;  %v7069_v38 = vld [vmem:[#allocation12 + $0x138] sm:$0xff] }
 0x25d   :  { %10869 = vst [vmem:[#allocation160_spill] sm:$0xff] %v7054_v55  ;;  %1632 = vmatpush.msrb.mxu2 %v7069_v38  ;;  %v7072_v55 = vld [vmem:[#allocation12 + $0x110] sm:$0xff] }
 0x25e   :  { %10870 = vst [vmem:[#allocation161_spill] sm:$0xff] %v7057_v3  ;;  %1593 = vmatpush.msrb.mxu0 %v7072_v55  ;;  %v7075_v3 = vld [vmem:[#allocation12 + $0x118] sm:$0xff] }
 0x25f   :  { %10871 = vst [vmem:[#allocation162_spill] sm:$0xff] %v7060_v28  ;;  %1633 = vmatpush.msrb.mxu2 %v7075_v3  ;;  %v7078_v28 = vld [vmem:[#allocation12 + $0xf0] sm:$0xff] }
 0x260   :  { %10872 = vst [vmem:[#allocation163_spill] sm:$0xff] %v7063_v18  ;;  %1594 = vmatpush.msrb.mxu0 %v7078_v28  ;;  %v7081_v18 = vld [vmem:[#allocation12 + $0xf8] sm:$0xff] }
 0x261   :  { %10873 = vst [vmem:[#allocation164_spill] sm:$0xff] %v7066_v46  ;;  %1634 = vmatpush.msrb.mxu2 %v7081_v18  ;;  %v7084_v46 = vld [vmem:[#allocation12 + $0xd0] sm:$0xff] }
 0x262   :  { %10874 = vst [vmem:[#allocation165_spill] sm:$0xff] %v7069_v38  ;;  %1595 = vmatpush.msrb.mxu0 %v7084_v46  ;;  %v7087_v38 = vld [vmem:[#allocation12 + $0xd8] sm:$0xff] }
 0x263   :  { %10875 = vst [vmem:[#allocation166_spill] sm:$0xff] %v7072_v55  ;;  %1635 = vmatpush.msrb.mxu2 %v7087_v38  ;;  %v7090_v55 = vld [vmem:[#allocation12 + $0xb0] sm:$0xff] }
 0x264   :  { %10876 = vst [vmem:[#allocation167_spill] sm:$0xff] %v7075_v3  ;;  %1596 = vmatpush.msrb.mxu0 %v7090_v55  ;;  %v7093_v3 = vld [vmem:[#allocation12 + $0xb8] sm:$0xff] }
 0x265   :  { %10877 = vst [vmem:[#allocation168_spill] sm:$0xff] %v7078_v28  ;;  %1636 = vmatpush.msrb.mxu2 %v7093_v3  ;;  %v7096_v28 = vld [vmem:[#allocation12 + $0x90] sm:$0xff] }
 0x266   :  { %10878 = vst [vmem:[#allocation169_spill] sm:$0xff] %v7081_v18  ;;  %1597 = vmatpush.msrb.mxu0 %v7096_v28  ;;  %v7099_v18 = vld [vmem:[#allocation12 + $0x98] sm:$0xff] }
 0x267   :  { %10879 = vst [vmem:[#allocation170_spill] sm:$0xff] %v7084_v46  ;;  %1637 = vmatpush.msrb.mxu2 %v7099_v18  ;;  %v7102_v46 = vld [vmem:[#allocation12 + $0x70] sm:$0xff] }
 0x268   :  { %10880 = vst [vmem:[#allocation171_spill] sm:$0xff] %v7087_v38  ;;  %1598 = vmatpush.msrb.mxu0 %v7102_v46  ;;  %v7105_v38 = vld [vmem:[#allocation12 + $0x78] sm:$0xff] }
 0x269   :  { %10881 = vst [vmem:[#allocation172_spill] sm:$0xff] %v7090_v55  ;;  %1638 = vmatpush.msrb.mxu2 %v7105_v38  ;;  %v1073_v55 = vpop.f32.mrf.mxu0 }
 0x26a   :  { %10882 = vst [vmem:[#allocation173_spill] sm:$0xff] %v7093_v3  ;;  %1599 = vmatpush.msrb.mxu0 %v7108_v14  ;;  %v7111_v3 = vld [vmem:[#allocation12 + $0x58] sm:$0xff] }
 0x26b   :  { %10883 = vst [vmem:[#allocation174_spill] sm:$0xff] %v7096_v28  ;;  %1639 = vmatpush.msrb.mxu2 %v7111_v3  ;;  %v1074_v28 = vadd.f32 %v1073_v55, %v6403_v35  ;;  %v1113_v55 = vpop.f32.mrf.mxu2 }
 0x26c   :  { %10884 = vst [vmem:[#allocation175_spill] sm:$0xff] %v7099_v18  ;;  %v1093_v18 = vpop.f32.mrf.mxu1  ;;  %1600 = vmatpush.msrb.mxu0 %v7115_v25  ;;  %v1114_v35 = vadd.f32 %v1113_v55, %v6412_v27 }
 0x26d   :  { %10885 = vst [vmem:[#allocation176_spill] sm:$0xff] %v7102_v46  ;;  %v7118_v46 = vld [vmem:[#allocation12 + $0x38] sm:$0xff] }
 0x26e   :  { %10886 = vst [vmem:[#allocation177_spill] sm:$0xff] %v7105_v38  ;;  %1640 = vmatpush.msrb.mxu2 %v7118_v46  ;;  %v1094_v38 = vadd.f32 %v1093_v18, %v1074_v28  ;;  %1601 = vmatpush.msrb.mxu0 %v7121_v58 }
 0x26f   :  { %10887 = vst [vmem:[#allocation178_spill] sm:$0xff] %v7108_v14  ;;  %v7124_v14 = vld [vmem:[#allocation12 + $0x18] sm:$0xff] }
 0x270   :  { %10888 = vst [vmem:[#allocation179_spill] sm:$0xff] %v7111_v3  ;;  %1641 = vmatpush.msrb.mxu2 %v7124_v14  ;;  %v4015_v3 = vmul.f32 -1.442695, %v1094_v38 }
 0x271   :  { %10889 = vst [vmem:[#allocation180_spill] sm:$0xff] %v7115_v25  ;;  %v1134_v25 = vadd.f32 %v1133_v21, %v1114_v35 }
 0x272   :  { %10890 = vst [vmem:[#allocation181_spill] sm:$0xff] %v7118_v46  ;;  %4112 = vpow2.f32 %v4015_v3 }
 0x273   :  { %10891 = vst [vmem:[#allocation182_spill] sm:$0xff] %v7121_v58  ;;  %v4016_v50 = vmul.f32 -1.442695, %v1134_v25  ;;  %v1193_v28 = vpop.f32.mrf.mxu2  ;;  %v1213_v58 = vpop.f32.mrf.mxu3 }
 0x274   :  { %10892 = vst [vmem:[#allocation183_spill] sm:$0xff] %v7124_v14  ;;  %v1194_v18 = vadd.f32 %v1193_v28, %v6415_v17  ;;  %v1153_v14 = vpop.f32.mrf.mxu0  ;;  %v1173_v21 = vpop.f32.mrf.mxu1 }
 0x275   :  { %4114 = vpow2.f32 %v4016_v50  ;;  %v1154_v55 = vadd.f32 %v1153_v14, %v6418_v32 }
 0x276   :  { %v1214_v16 = vadd.f32 %v1213_v58, %v1194_v18 }
 0x277   :  { %v1174_v50 = vadd.f32 %v1173_v21, %v1154_v55 }
 0x278   :  { %v4113_v62 = vpop.eup %4112  ;;  %v4017_v38 = vmul.f32 -1.442695, %v1214_v16 }
 0x279   :  { %v1219_v46 = vadd.f32 1.0, %v4113_v62 }
 0x27b   :  { %4116 = vrcp.f32 %v1219_v46  ;;  %v4115_v49 = vpop.eup %4114  ;;  %v1231_v17 = vand.u32 2147483648, %v1219_v46  ;;  %vm1225_vm5 = vweird.f32 %v1219_v46  ;;  %v1229_v16 = vand.u32 2147483647, %v1219_v46 }
 0x27c   :  { %v1238_v26 = vadd.f32 1.0, %v4115_v49 }
 0x27d   :  { %v1232_v55 = vor.u32 1.1754944e-38, %v1231_v17  ;;  %vm1230_vm9 = vcmp.eq.f32.partialorder %v1229_v16, 8.507059e+37 }
 0x27e   :  { %4118 = vrcp.f32 %v1238_v26  ;;  %v1250_v18 = vand.u32 2147483648, %v1238_v26  ;;  %vm1244_vm8 = vweird.f32 %v1238_v26 }
 0x27f   :  { %4120 = vpow2.f32 %v4017_v38 }
 0x280   :  { %4122 = vtanh.f32 %v1174_v50 }
 0x281   :  { %v4117_v5 = vpop.eup %4116 }
 0x282   :  { %v1221_v3 = vmul.f32 %v4117_v5, %v1219_v46  ;;  %vm1226_vm4 = vweird.f32 %v4117_v5  ;;  %v1320_v46 = vpop.f32.mrf.mxu1 }
 0x283   :  { %vm1227_vm6 = vmor %vm1225_vm5, %vm1226_vm4 }
 0x284   :  { %v1222_v35 = vsub.f32 1.0, %v1221_v3  ;;  %v4119_v25 = vpop.eup %4118  ;;  %v1248_v3 = vand.u32 2147483647, %v1238_v26 }
 0x285   :  { %v4121_v27 = vpop.eup %4120  ;;  %v1240_v41 = vmul.f32 %v4119_v25, %v1238_v26  ;;  %vm1245_vm7 = vweird.f32 %v4119_v25 }
 0x286   :  { %v1223_v62 = vmul.f32 %v4117_v5, %v1222_v35  ;;  %v1258_v58 = vadd.f32 1.0, %v4121_v27  ;;  %v1300_v35 = vpop.f32.mrf.mxu0  ;;  %vm1246_vm10 = vmor %vm1244_vm8, %vm1245_vm7  ;;  %v1251_v27 = vor.u32 1.1754944e-38, %v1250_v18  ;;  %v4123_v32 = vpop.eup %4122  ;;  %vm1249_vm11 = vcmp.eq.f32.partialorder %v1248_v3, 8.507059e+37 }
 0x287   :  { %v1241_v49 = vsub.f32 1.0, %v1240_v41 }
 0x288   :  { %v1224_v28 = vadd.f32 %v4117_v5, %v1223_v62  ;;  %4124 = vrcp.f32 %v1258_v58  ;;  %v1301_v62 = vadd.f32 %v1300_v35, %v10675_v9  ;;  %v1360_v35 = vpop.f32.mrf.mxu3  ;;  %vm1264_vm13 = vweird.f32 %v1258_v58 }
 0x289   :  { %v1242_v14 = vmul.f32 %v4119_v25, %v1241_v49 }
 0x28a   :  { %v1228_v38 = vsel %vm1227_vm6, %v4117_v5, %v1224_v28  ;;  %v1321_v49 = vadd.f32 %v1320_v46, %v1301_v62  ;;  %v1340_v47 = vpop.f32.mrf.mxu2 }
 0x28b   :  { %v1243_v21 = vadd.f32 %v4119_v25, %v1242_v14  ;;  %v1233_v41 = vsel %vm1230_vm9, %v1232_v55, %v1228_v38  ;;  %v1341_v14 = vadd.f32 %v1340_v47, %v10676_v33  ;;  %v1270_v38 = vand.u32 2147483648, %v1258_v58 }
 0x28c   :  { %v1275_v28 = vmul.f32 %v4123_v32, %v1233_v41  ;;  %v4018_v18 = vmul.f32 -1.442695, %v1321_v49  ;;  %v1268_v55 = vand.u32 2147483647, %v1258_v58  ;;  %v10899_v49 = vld [vmem:[#allocation88_spill] sm:$0xff] }
 0x28d   :  { %v1247_v50 = vsel %vm1246_vm10, %v4119_v25, %v1243_v21  ;;  %v1361_v3 = vadd.f32 %v1360_v35, %v1341_v14  ;;  %v10901_v35 = vld [vmem:[#allocation58_spill] sm:$0xff] }
 0x28e   :  { %v4125_v44 = vpop.eup %4124  ;;  %v1252_v42 = vsel %vm1249_vm11, %v1251_v27, %v1247_v50  ;;  %vm1269_vm15 = vcmp.eq.f32.partialorder %v1268_v55, 8.507059e+37  ;;  %v10898_v50 = vld [vmem:[#allocation83_spill] sm:$0xff]  ;;  %v10905_v55 = vld [vmem:[#allocation60_spill] sm:$0xff] }
 0x28f   :  { %v1274_v5 = vmul.f32 %v1252_v42, %v6429_v34  ;;  %v1260_v17 = vmul.f32 %v4125_v44, %v1258_v58  ;;  %vm1265_vm12 = vweird.f32 %v4125_v44  ;;  %v4019_v21 = vmul.f32 -1.442695, %v1361_v3 }
 0x290   :  { %vm1266_vm14 = vmor %vm1264_vm13, %vm1265_vm12  ;;  %v1271_v34 = vor.u32 1.1754944e-38, %v1270_v38  ;;  %v10926_v38 = vld [vmem:[#allocation105_spill] sm:$0xff] }
 0x291   :  { %v7132_v26 = vadd.f32 %v1275_v28, %v1274_v5  ;;  %v1261_v16 = vsub.f32 1.0, %v1260_v17  ;;  %v10900_v5 = vld [vmem:[#allocation57_spill] sm:$0xff] }
 0x293   :  { %4126 = vtanh.f32 %v7132_v26  ;;  %v1262_v25 = vmul.f32 %v4125_v44, %v1261_v16 }
 0x294   :  { %4128 = vpow2.f32 %v4018_v18  ;;  %v10902_v18 = vld [vmem:[#allocation85_spill] sm:$0xff] }
 0x295   :  { %v1263_v62 = vadd.f32 %v4125_v44, %v1262_v25  ;;  %4130 = vpow2.f32 %v4019_v21 }
 0x297   :  { %v1267_v32 = vsel %vm1266_vm14, %v4125_v44, %v1263_v62  ;;  %v7292_v62 = vld [vmem:[#allocation9 + $0x100] sm:$0xff] }
 0x298   :  { %v1272_v47 = vsel %vm1269_vm15, %v1271_v34, %v1267_v32 }
 0x299   :  { %v4127_v42 = vpop.eup %4126 }
 0x29a   :  { %v1278_v27 = vmul.f32 %v4127_v42, %v1272_v47  ;;  %v4129_v41 = vpop.eup %4128 }
 0x29b   :  { %v4131_v46 = vpop.eup %4130  ;;  %v7140_v44 = vadd.f32 1.0, %v4129_v41 }
 0x29c   :  { %1280 = vst [vmem:[#allocation15 + $0x2] sm:$0x3] %v1278_v27  ;;  %1542 = vmatmul.f32.vlgmr.msra.gmra.mxu1 %v1278_v27  ;;  %1582 = vmatmul.f32.vlgmr.msra.gmra.mxu3 %v1278_v27  ;;  %v7142_v58 = vadd.f32 1.0, %v4131_v46 }
 0x29d   :  { %1753 = vmatpush.msra.mxu1 %v6432_v40  ;;  %1793 = vmatpush.msra.mxu3 %v6435_v60  ;;  %4132 = vrcp.f32 %v7140_v44  ;;  %vm1452_vm2 = vweird.f32 %v7140_v44  ;;  %v1458_v14 = vand.u32 2147483648, %v7140_v44  ;;  %v1456_v25 = vand.u32 2147483647, %v7140_v44 }
 0x29e   :  { %4134 = vrcp.f32 %v7142_v58  ;;  %v1477_v16 = vand.u32 2147483648, %v7142_v58  ;;  %vm1471_vm3 = vweird.f32 %v7142_v58  ;;  %v1475_v3 = vand.u32 2147483647, %v7142_v58 }
 0x29f   :  { %1754 = vmatpush.msra.mxu1 %v6440_v12  ;;  %1794 = vmatpush.msra.mxu3 %v6443_v56  ;;  %vm1457_vm6 = vcmp.eq.f32.partialorder %v1456_v25, 8.507059e+37  ;;  %v7284_v25 = vld [vmem:[#allocation9 + $0x120] sm:$0xff] }
 0x2a0   :  { %v1478_v47 = vor.u32 1.1754944e-38, %v1477_v16  ;;  %vm1476_vm7 = vcmp.eq.f32.partialorder %v1475_v3, 8.507059e+37  ;;  %v10924_v16 = vld [vmem:[#allocation103_spill] sm:$0xff]  ;;  %v7287_v3 = vld [vmem:[#allocation9 + $0x128] sm:$0xff] }
 0x2a1   :  { %1755 = vmatpush.msra.mxu1 %v6448_v30  ;;  %1795 = vmatpush.msra.mxu3 %v6451_v8 }
 0x2a3   :  { %1756 = vmatpush.msra.mxu1 %v6455_v2  ;;  %1796 = vmatpush.msra.mxu3 %v6458_v11  ;;  %v7156_v40 = vpop.eup %4132 }
 0x2a4   :  { %1622 = vmatmul.f32.vlgmr.msrb.gmra.mxu1 %v1278_v27  ;;  %1662 = vmatmul.f32.vlgmr.msrb.gmra.mxu3 %v1278_v27  ;;  %v7158_v60 = vpop.eup %4134  ;;  %v1448_v12 = vmul.f32 %v7156_v40, %v7140_v44  ;;  %v1380_v30 = vpop.f32.mrf.mxu0  ;;  %vm1453_vm0 = vweird.f32 %v7156_v40  ;;  %v1459_v27 = vor.u32 1.1754944e-38, %v1458_v14  ;;  %v7276_v14 = vld [vmem:[#allocation9 + $0x140] sm:$0xff] }
 0x2a5   :  { %1757 = vmatpush.msra.mxu1 %v6462_v4  ;;  %1797 = vmatpush.msra.mxu3 %v6465_v15  ;;  %v1467_v56 = vmul.f32 %v7158_v60, %v7142_v58  ;;  %v1381_v2 = vadd.f32 %v1380_v30, %v10677_v43  ;;  %v1440_v4 = vpop.f32.mrf.mxu3  ;;  %vm1472_vm1 = vweird.f32 %v7158_v60  ;;  %vm7194_vm4 = vmor %vm1452_vm2, %vm1453_vm0  ;;  %v10909_v58 = vld [vmem:[#allocation61_spill] sm:$0xff]  ;;  %v10913_v30 = vld [vmem:[#allocation91_spill] sm:$0xff] }
 0x2a6   :  { %v1449_v15 = vsub.f32 1.0, %v1448_v12  ;;  %vm7204_vm5 = vmor %vm1471_vm3, %vm1472_vm1  ;;  %v10910_v12 = vld [vmem:[#allocation87_spill] sm:$0xff] }
 0x2a7   :  { %1758 = vmatpush.msra.mxu1 %v6468_v19  ;;  %1798 = vmatpush.msra.mxu3 %v6471_v13  ;;  %v1468_v19 = vsub.f32 1.0, %v1467_v56  ;;  %v10912_v56 = vld [vmem:[#allocation92_spill] sm:$0xff] }
 0x2a9   :  { %1759 = vmatpush.msra.mxu1 %v6476_v31  ;;  %1799 = vmatpush.msra.mxu3 %v6479_v29  ;;  %v10893_v31 = vld [vmem:[#allocation78_spill] sm:$0xff]  ;;  %v10894_v29 = vld [vmem:[#allocation80_spill] sm:$0xff] }
 0x2aa   :  { %v1420_v8 = vpop.f32.mrf.mxu2 }
 0x2ab   :  { %1760 = vmatpush.msra.mxu1 %v6484_v51  ;;  %1800 = vmatpush.msra.mxu3 %v6487_v45  ;;  %v1421_v11 = vadd.f32 %v1420_v8, %v10678_v1  ;;  %v1400_v51 = vpop.f32.mrf.mxu1  ;;  %v10915_v8 = vld [vmem:[#allocation93_spill] sm:$0xff] }
 0x2ac   :  { %v1401_v45 = vadd.f32 %v1400_v51, %v1381_v2 }
 0x2ad   :  { %1761 = vmatpush.msra.mxu1 %v6494_v59  ;;  %1801 = vmatpush.msra.mxu3 %v6497_v0  ;;  %v1441_v13 = vadd.f32 %v1440_v4, %v1421_v11  ;;  %v10895_v0 = vld [vmem:[#allocation84_spill] sm:$0xff] }
 0x2ae   :  { %v10916_v4 = vld [vmem:[#allocation96_spill] sm:$0xff] }
 0x2af   :  { %1762 = vmatpush.msra.mxu1 %v6500_v6  ;;  %1802 = vmatpush.msra.mxu3 %v6503_v24  ;;  %v4020_v59 = vmul.f32 -1.442695, %v1441_v13  ;;  %v10896_v6 = vld [vmem:[#allocation82_spill] sm:$0xff]  ;;  %v1469_v24 = vmul.f32 %v7158_v60, %v1468_v19 }
 0x2b1   :  { %1763 = vmatpush.msra.mxu1 %v6508_v54  ;;  %1803 = vmatpush.msra.mxu3 %v6511_v63  ;;  %v1450_v54 = vmul.f32 %v7156_v40, %v1449_v15  ;;  %4136 = vpow2.f32 %v4020_v59  ;;  %v10897_v63 = vld [vmem:[#allocation86_spill] sm:$0xff]  ;;  %v1470_v17 = vadd.f32 %v7158_v60, %v1469_v24  ;;  %v10918_v59 = vld [vmem:[#allocation97_spill] sm:$0xff]  ;;  %v10921_v24 = vld [vmem:[#allocation100_spill] sm:$0xff] }
 0x2b2   :  { %4138 = vtanh.f32 %v1401_v45  ;;  %v10917_v15 = vld [vmem:[#allocation94_spill] sm:$0xff] }
 0x2b3   :  { %1764 = vmatpush.msra.mxu1 %v10893_v31  ;;  %1804 = vmatpush.msra.mxu3 %v10894_v29  ;;  %v1451_v28 = vadd.f32 %v7156_v40, %v1450_v54  ;;  %v1474_v34 = vsel %vm7204_vm5, %v7158_v60, %v1470_v17  ;;  %v7258_v54 = vld [vmem:[#allocation9 + $0x1a8] sm:$0xff] }
 0x2b4   :  { %v1479_v46 = vsel %vm1476_vm7, %v1478_v47, %v1474_v34  ;;  %v7272_v17 = vld [vmem:[#allocation9 + $0x168] sm:$0xff] }
 0x2b5   :  { %1765 = vmatpush.msra.mxu1 %v10895_v0  ;;  %1805 = vmatpush.msra.mxu3 %v10896_v6  ;;  %v1455_v32 = vsel %vm7194_vm4, %v7156_v40, %v1451_v28  ;;  %v7240_v0 = vld [vmem:[#allocation9 + $0x1e0] sm:$0xff]  ;;  %v10929_v34 = vld [vmem:[#allocation110_spill] sm:$0xff] }
 0x2b6   :  { %v1460_v41 = vsel %vm1457_vm6, %v1459_v27, %v1455_v32  ;;  %v7254_v6 = vld [vmem:[#allocation9 + $0x1a0] sm:$0xff]  ;;  %v7295_v32 = vld [vmem:[#allocation9 + $0x108] sm:$0xff]  ;;  %v10931_v27 = vld [vmem:[#allocation112_spill] sm:$0xff] }
 0x2b7   :  { %1766 = vmatpush.msra.mxu1 %v10897_v63  ;;  %1806 = vmatpush.msra.mxu3 %v10898_v50  ;;  %v4137_v21 = vpop.eup %4136  ;;  %v10922_v63 = vld [vmem:[#allocation101_spill] sm:$0xff]  ;;  %v7303_v47 = vld [vmem:[#allocation9 + $0xe8] sm:$0xff] }
 0x2b8   :  { %v1485_v42 = vadd.f32 1.0, %v4137_v21  ;;  %v7262_v50 = vld [vmem:[#allocation9 + $0x180] sm:$0xff]  ;;  %v10928_v21 = vld [vmem:[#allocation107_spill] sm:$0xff] }
 0x2b9   :  { %1767 = vmatpush.msra.mxu1 %v10899_v49  ;;  %1807 = vmatpush.msra.mxu3 %v10900_v5  ;;  %v10923_v49 = vld [vmem:[#allocation102_spill] sm:$0xff]  ;;  %v7269_v28 = vld [vmem:[#allocation9 + $0x160] sm:$0xff] }
 0x2ba   :  { %4140 = vrcp.f32 %v1485_v42  ;;  %v1495_v11 = vand.u32 2147483647, %v1485_v42  ;;  %vm1491_vm9 = vweird.f32 %v1485_v42  ;;  %v7266_v5 = vld [vmem:[#allocation9 + $0x188] sm:$0xff] }
 0x2bb   :  { %1768 = vmatpush.msra.mxu1 %v10901_v35  ;;  %1808 = vmatpush.msra.mxu3 %v10902_v18  ;;  %v10925_v35 = vld [vmem:[#allocation104_spill] sm:$0xff]  ;;  %v7280_v18 = vld [vmem:[#allocation9 + $0x148] sm:$0xff] }
 0x2bc   :  { %vm1496_vm11 = vcmp.eq.f32.partialorder %v1495_v11, 8.507059e+37  ;;  %v7340_v11 = vld [vmem:[#allocation9 + $0x40] sm:$0xff] }
 0x2bd   :  { %1833 = vmatpush.msrb.mxu1 %v10905_v55  ;;  %1873 = vmatpush.msrb.mxu3 %v6569_v20  ;;  %v4139_v20 = vpop.eup %4138  ;;  %v10927_v55 = vld [vmem:[#allocation106_spill] sm:$0xff] }
 0x2be   :  { %v1502_v44 = vmul.f32 %v4139_v20, %v1460_v41  ;;  %v7300_v20 = vld [vmem:[#allocation9 + $0xe0] sm:$0xff] }
 0x2bf   :  { %1834 = vmatpush.msrb.mxu1 %v6578_v48  ;;  %1874 = vmatpush.msrb.mxu3 %v6581_v61  ;;  %v1501_v48 = vmul.f32 %v1479_v46, %v6603_v57  ;;  %v10908_v61 = vld [vmem:[#allocation89_spill] sm:$0xff]  ;;  %v10914_v57 = vld [vmem:[#allocation95_spill] sm:$0xff] }
 0x2c0   :  { %v4141_v40 = vpop.eup %4140  ;;  %v10932_v41 = vld [vmem:[#allocation113_spill] sm:$0xff] }
 0x2c1   :  { %1835 = vmatpush.msrb.mxu1 %v6584_v39  ;;  %1875 = vmatpush.msrb.mxu3 %v6587_v37  ;;  %v7223_v60 = vadd.f32 %v1502_v44, %v1501_v48  ;;  %v10911_v39 = vld [vmem:[#allocation90_spill] sm:$0xff]  ;;  %v1487_v37 = vmul.f32 %v4141_v40, %v1485_v42  ;;  %vm1492_vm8 = vweird.f32 %v4141_v40  ;;  %v7308_v46 = vld [vmem:[#allocation9 + $0xc0] sm:$0xff] }
 0x2c2   :  { %vm1493_vm10 = vmor %vm1491_vm9, %vm1492_vm8  ;;  %v7311_v44 = vld [vmem:[#allocation9 + $0xc8] sm:$0xff] }
 0x2c3   :  { %1836 = vmatpush.msrb.mxu1 %v6590_v36  ;;  %1876 = vmatpush.msrb.mxu3 %v6593_v10  ;;  %v1488_v36 = vsub.f32 1.0, %v1487_v37  ;;  %4142 = vtanh.f32 %v7223_v60  ;;  %v1497_v10 = vand.u32 2147483648, %v1485_v42  ;;  %v10930_v42 = vld [vmem:[#allocation111_spill] sm:$0xff]  ;;  %v10933_v48 = vld [vmem:[#allocation114_spill] sm:$0xff]  ;;  %v7324_v37 = vld [vmem:[#allocation9 + $0x80] sm:$0xff] }
 0x2c5   :  { %1837 = vmatpush.msrb.mxu1 %v10908_v61  ;;  %1877 = vmatpush.msrb.mxu3 %v10909_v58  ;;  %v1489_v2 = vmul.f32 %v4141_v40, %v1488_v36  ;;  %v1498_v13 = vor.u32 1.1754944e-38, %v1497_v10  ;;  %v10934_v61 = vld [vmem:[#allocation115_spill] sm:$0xff]  ;;  %v7316_v58 = vld [vmem:[#allocation9 + $0xa0] sm:$0xff]  ;;  %v10938_v36 = vld [vmem:[#allocation22_spill] sm:$0xff] }
 0x2c6   :  { %v7332_v10 = vld [vmem:[#allocation9 + $0x60] sm:$0xff] }
 0x2c7   :  { %1838 = vmatpush.msrb.mxu1 %v10910_v12  ;;  %1878 = vmatpush.msrb.mxu3 %v10911_v39  ;;  %v1490_v19 = vadd.f32 %v4141_v40, %v1489_v2  ;;  %v10935_v12 = vld [vmem:[#allocation116_spill] sm:$0xff] }
 0x2c8   :  { %v10936_v39 = vld [vmem:[#allocation108_spill] sm:$0xff] }
 0x2c9   :  { %1839 = vmatpush.msrb.mxu1 %v10912_v56  ;;  %1879 = vmatpush.msrb.mxu3 %v10913_v30  ;;  %v1494_v31 = vsel %vm1493_vm10, %v4141_v40, %v1490_v19  ;;  %v4143_v29 = vpop.eup %4142  ;;  %v7319_v40 = vld [vmem:[#allocation9 + $0xa8] sm:$0xff]  ;;  %v10937_v30 = vld [vmem:[#allocation109_spill] sm:$0xff]  ;;  %v10940_v2 = vld [vmem:[#allocation24_spill] sm:$0xff] }
 0x2ca   :  { %v1499_v51 = vsel %vm1496_vm11, %v1498_v13, %v1494_v31  ;;  %v7327_v56 = vld [vmem:[#allocation9 + $0x88] sm:$0xff]  ;;  %v10942_v19 = vld [vmem:[#allocation23_spill] sm:$0xff]  ;;  %v7348_v13 = vld [vmem:[#allocation9 + $0x20] sm:$0xff] }
 0x2cb   :  { %1840 = vmatpush.msrb.mxu1 %v10914_v57  ;;  %1880 = vmatpush.msrb.mxu3 %v10915_v8  ;;  %v1505_v45 = vmul.f32 %v4143_v29, %v1499_v51  ;;  %v7335_v57 = vld [vmem:[#allocation9 + $0x68] sm:$0xff]  ;;  %v10939_v8 = vld [vmem:[#allocation20_spill] sm:$0xff]  ;;  %v7354_v29 = vld [vmem:[#allocation6 + $0x6] sm:$0x3] }
 0x2cc   :  { %v7351_v31 = vld [vmem:[#allocation9 + $0x28] sm:$0xff]  ;;  %v10943_v51 = vld [vmem:[#allocation25_spill] sm:$0xff] }
 0x2cd   :  { %1841 = vmatpush.msrb.mxu1 %v10916_v4  ;;  %1881 = vmatpush.msrb.mxu3 %v10917_v15  ;;  %v7343_v4 = vld [vmem:[#allocation9 + $0x48] sm:$0xff]  ;;  %v10941_v15 = vld [vmem:[#allocation21_spill] sm:$0xff] }
 0x2ce   :  { %1522 = vmatmul.f32.vlgmr.msra.gmra.mxu0 %v1505_v45  ;;  %1562 = vmatmul.f32.vlgmr.msra.gmra.mxu2 %v1505_v45 }
 0x2cf   :  { %1842 = vmatpush.msrb.mxu1 %v6630_v53  ;;  %1882 = vmatpush.msrb.mxu3 %v6633_v7  ;;  %v7243_v53 = vld [vmem:[#allocation9 + $0x1e8] sm:$0xff]  ;;  %v7246_v7 = vld [vmem:[#allocation9 + $0x1c0] sm:$0xff] }
 0x2d0   :  { %1733 = vmatpush.msra.mxu0 %v7240_v0  ;;  %1769 = vmatmul.f32.vlgmr.msra.gmra.mxu1 %v1505_v45 }
 0x2d1   :  { %1843 = vmatpush.msrb.mxu1 %v6636_v22  ;;  %1883 = vmatpush.msrb.mxu3 %v6639_v23  ;;  %v10919_v22 = vld [vmem:[#allocation99_spill] sm:$0xff]  ;;  %v7250_v23 = vld [vmem:[#allocation9 + $0x1c8] sm:$0xff] }
 0x2d2   :  { %1773 = vmatpush.msra.mxu2 %v7243_v53  ;;  %1809 = vmatmul.f32.vlgmr.msra.gmra.mxu3 %v1505_v45 }
 0x2d3   :  { %1844 = vmatpush.msrb.mxu1 %v6645_v52  ;;  %1884 = vmatpush.msrb.mxu3 %v10918_v59  ;;  %v10920_v52 = vld [vmem:[#allocation98_spill] sm:$0xff]  ;;  %v7358_v59 = vld [vmem:[#allocation9] sm:$0xff] }
 0x2d4   :  { %1734 = vmatpush.msra.mxu0 %v7246_v7  ;;  %1774 = vmatpush.msra.mxu2 %v7250_v23 }
 0x2d5   :  { %1845 = vmatpush.msrb.mxu1 %v10919_v22  ;;  %1885 = vmatpush.msrb.mxu3 %v10920_v52  ;;  %v7361_v22 = vld [vmem:[#allocation9 + $0x8] sm:$0xff]  ;;  %v7366_v52 = vld [vmem:[#allocation9 + $0x1f0] sm:$0xff] }
 0x2d6   :  { %1735 = vmatpush.msra.mxu0 %v7254_v6  ;;  %1775 = vmatpush.msra.mxu2 %v7258_v54 }
 0x2d7   :  { %1846 = vmatpush.msrb.mxu1 %v10921_v24  ;;  %1886 = vmatpush.msrb.mxu3 %v10922_v63  ;;  %v7369_v24 = vld [vmem:[#allocation9 + $0x1f8] sm:$0xff]  ;;  %v10945_v63 = vld [vmem:[#allocation26_spill] sm:$0xff] }
 0x2d8   :  { %1736 = vmatpush.msra.mxu0 %v7262_v50  ;;  %1776 = vmatpush.msra.mxu2 %v7266_v5 }
 0x2d9   :  { %1847 = vmatpush.msrb.mxu1 %v10923_v49  ;;  %1602 = vmatmul.f32.vlgmr.msrb.gmra.mxu0 %v1505_v45  ;;  %v10946_v49 = vld [vmem:[#allocation30_spill] sm:$0xff] }
 0x2da   :  { %1642 = vmatmul.f32.vlgmr.msrb.gmra.mxu2 %v1505_v45  ;;  %1737 = vmatpush.msra.mxu0 %v7269_v28 }
 0x2db   :  { %1777 = vmatpush.msra.mxu2 %v7272_v17  ;;  %1887 = vmatpush.msrb.mxu3 %v10924_v16  ;;  %v7374_v16 = vld [vmem:[#allocation9 + $0x1d0] sm:$0xff] }
 0x2dc   :  { %1738 = vmatpush.msra.mxu0 %v7276_v14  ;;  %1848 = vmatpush.msrb.mxu1 %v10925_v35  ;;  %10947 = vst [vmem:[#allocation78_spill] sm:$0xff] %v7374_v16  ;;  %v7377_v35 = vld [vmem:[#allocation9 + $0x1d8] sm:$0xff] }
 0x2dd   :  { %1778 = vmatpush.msra.mxu2 %v7280_v18  ;;  %1888 = vmatpush.msrb.mxu3 %v10926_v38  ;;  %10948 = vst [vmem:[#allocation80_spill] sm:$0xff] %v7377_v35  ;;  %v10949_v38 = vld [vmem:[#allocation27_spill] sm:$0xff] }
 0x2de   :  { %1849 = vmatmul.f32.vlgmr.msrb.gmra.mxu1 %v1505_v45  ;;  %1889 = vmatmul.f32.vlgmr.msrb.gmra.mxu3 %v1505_v45  ;;  %v10944_v45 = vld [vmem:[#allocation28_spill] sm:$0xff] }
 0x2df   :  { %1739 = vmatpush.msra.mxu0 %v7284_v25  ;;  %1779 = vmatpush.msra.mxu2 %v7287_v3 }
 0x2e0   :  { %1976 = vmatpush.msra.mxu1 %v10927_v55  ;;  %2016 = vmatpush.msra.mxu3 %v10928_v21  ;;  %v10950_v55 = vld [vmem:[#allocation32_spill] sm:$0xff]  ;;  %v7382_v21 = vld [vmem:[#allocation9 + $0x1b0] sm:$0xff] }
 0x2e1   :  { %1740 = vmatpush.msra.mxu0 %v7292_v62  ;;  %1780 = vmatpush.msra.mxu2 %v7295_v32  ;;  %10951 = vst [vmem:[#allocation84_spill] sm:$0xff] %v7382_v21 }
 0x2e2   :  { %1977 = vmatpush.msra.mxu1 %v10929_v34  ;;  %2017 = vmatpush.msra.mxu3 %v10930_v42  ;;  %v7385_v34 = vld [vmem:[#allocation9 + $0x1b8] sm:$0xff]  ;;  %v10953_v42 = vld [vmem:[#allocation29_spill] sm:$0xff] }
 0x2e3   :  { %1741 = vmatpush.msra.mxu0 %v7300_v20  ;;  %1781 = vmatpush.msra.mxu2 %v7303_v47  ;;  %10952 = vst [vmem:[#allocation82_spill] sm:$0xff] %v7385_v34 }
 0x2e4   :  { %1978 = vmatpush.msra.mxu1 %v10931_v27  ;;  %2018 = vmatpush.msra.mxu3 %v10932_v41  ;;  %v10954_v27 = vld [vmem:[#allocation34_spill] sm:$0xff]  ;;  %v7390_v41 = vld [vmem:[#allocation9 + $0x190] sm:$0xff] }
 0x2e5   :  { %1742 = vmatpush.msra.mxu0 %v7308_v46  ;;  %1782 = vmatpush.msra.mxu2 %v7311_v44  ;;  %10955 = vst [vmem:[#allocation86_spill] sm:$0xff] %v7390_v41 }
 0x2e6   :  { %1979 = vmatpush.msra.mxu1 %v10933_v48  ;;  %2019 = vmatpush.msra.mxu3 %v10934_v61  ;;  %v7393_v48 = vld [vmem:[#allocation9 + $0x198] sm:$0xff]  ;;  %v10957_v61 = vld [vmem:[#allocation31_spill] sm:$0xff] }
 0x2e7   :  { %1743 = vmatpush.msra.mxu0 %v7316_v58  ;;  %1783 = vmatpush.msra.mxu2 %v7319_v40  ;;  %10956 = vst [vmem:[#allocation83_spill] sm:$0xff] %v7393_v48 }
 0x2e8   :  { %1980 = vmatpush.msra.mxu1 %v10935_v12  ;;  %2020 = vmatpush.msra.mxu3 %v10936_v39  ;;  %v10958_v12 = vld [vmem:[#allocation36_spill] sm:$0xff]  ;;  %v7398_v39 = vld [vmem:[#allocation9 + $0x170] sm:$0xff] }
 0x2e9   :  { %1744 = vmatpush.msra.mxu0 %v7324_v37  ;;  %1784 = vmatpush.msra.mxu2 %v7327_v56  ;;  %10959 = vst [vmem:[#allocation88_spill] sm:$0xff] %v7398_v39 }
 0x2ea   :  { %1981 = vmatpush.msra.mxu1 %v10937_v30  ;;  %2021 = vmatpush.msra.mxu3 %v10938_v36  ;;  %v7401_v30 = vld [vmem:[#allocation9 + $0x178] sm:$0xff]  ;;  %v10961_v36 = vld [vmem:[#allocation33_spill] sm:$0xff] }
 0x2eb   :  { %1745 = vmatpush.msra.mxu0 %v7332_v10  ;;  %1785 = vmatpush.msra.mxu2 %v7335_v57  ;;  %10960 = vst [vmem:[#allocation57_spill] sm:$0xff] %v7401_v30 }
 0x2ec   :  { %1982 = vmatpush.msra.mxu1 %v10939_v8  ;;  %2022 = vmatpush.msra.mxu3 %v10940_v2  ;;  %v10962_v8 = vld [vmem:[#allocation38_spill] sm:$0xff]  ;;  %v7406_v2 = vld [vmem:[#allocation9 + $0x150] sm:$0xff] }
 0x2ed   :  { %1746 = vmatpush.msra.mxu0 %v7340_v11  ;;  %1786 = vmatpush.msra.mxu2 %v7343_v4  ;;  %10963 = vst [vmem:[#allocation58_spill] sm:$0xff] %v7406_v2 }
 0x2ee   :  { %1983 = vmatpush.msra.mxu1 %v10941_v15  ;;  %2023 = vmatpush.msra.mxu3 %v10942_v19  ;;  %v7409_v15 = vld [vmem:[#allocation9 + $0x158] sm:$0xff]  ;;  %v10965_v19 = vld [vmem:[#allocation35_spill] sm:$0xff] }
 0x2ef   :  { %1747 = vmatpush.msra.mxu0 %v7348_v13  ;;  %1787 = vmatpush.msra.mxu2 %v7351_v31  ;;  %10964 = vst [vmem:[#allocation85_spill] sm:$0xff] %v7409_v15 }
 0x2f0   :  { %1984 = vmatpush.msra.mxu1 %v10943_v51  ;;  %2024 = vmatpush.msra.mxu3 %v10944_v45  ;;  %v10966_v51 = vld [vmem:[#allocation40_spill] sm:$0xff]  ;;  %v7414_v45 = vld [vmem:[#allocation9 + $0x130] sm:$0xff] }
 0x2f1   :  { %1748 = vmatpush.msra.mxu0 %v7358_v59  ;;  %1788 = vmatpush.msra.mxu2 %v7361_v22  ;;  %10967 = vst [vmem:[#allocation60_spill] sm:$0xff] %v7414_v45 }
 0x2f2   :  { %1749 = vmatmul.f32.vlgmr.msra.gmra.mxu0 %v7354_v29  ;;  %1789 = vmatmul.f32.vlgmr.msra.gmra.mxu2 %v7354_v29 }
 0x2f3   :  { %1813 = vmatpush.msrb.mxu0 %v7366_v52  ;;  %1853 = vmatpush.msrb.mxu2 %v7369_v24 }
 0x2f4   :  { %1985 = vmatpush.msra.mxu1 %v10945_v63  ;;  %2025 = vmatpush.msra.mxu3 %v10946_v49  ;;  %v7417_v63 = vld [vmem:[#allocation9 + $0x138] sm:$0xff]  ;;  %v10969_v49 = vld [vmem:[#allocation37_spill] sm:$0xff] }
 0x2f5   :  { %1814 = vmatpush.msrb.mxu0 %v7374_v16  ;;  %1854 = vmatpush.msrb.mxu2 %v7377_v35  ;;  %10968 = vst [vmem:[#allocation89_spill] sm:$0xff] %v7417_v63 }
 0x2f6   :  { %1986 = vmatpush.msra.mxu1 %v10949_v38  ;;  %2026 = vmatpush.msra.mxu3 %v10950_v55  ;;  %v10970_v38 = vld [vmem:[#allocation42_spill] sm:$0xff]  ;;  %v7422_v55 = vld [vmem:[#allocation9 + $0x110] sm:$0xff] }
 0x2f7   :  { %1815 = vmatpush.msrb.mxu0 %v7382_v21  ;;  %1855 = vmatpush.msrb.mxu2 %v7385_v34  ;;  %10971 = vst [vmem:[#allocation61_spill] sm:$0xff] %v7422_v55 }
 0x2f8   :  { %1987 = vmatpush.msra.mxu1 %v10953_v42  ;;  %2027 = vmatpush.msra.mxu3 %v10954_v27  ;;  %v7425_v42 = vld [vmem:[#allocation9 + $0x118] sm:$0xff]  ;;  %v10973_v27 = vld [vmem:[#allocation39_spill] sm:$0xff] }
 0x2f9   :  { %1816 = vmatpush.msrb.mxu0 %v7390_v41  ;;  %1856 = vmatpush.msrb.mxu2 %v7393_v48  ;;  %10972 = vst [vmem:[#allocation87_spill] sm:$0xff] %v7425_v42 }
 0x2fa   :  { %1988 = vmatpush.msra.mxu1 %v10957_v61  ;;  %2028 = vmatpush.msra.mxu3 %v10958_v12  ;;  %v10974_v61 = vld [vmem:[#allocation44_spill] sm:$0xff]  ;;  %v7430_v12 = vld [vmem:[#allocation9 + $0xf0] sm:$0xff] }
 0x2fb   :  { %1817 = vmatpush.msrb.mxu0 %v7398_v39  ;;  %1857 = vmatpush.msrb.mxu2 %v7401_v30  ;;  %10975 = vst [vmem:[#allocation90_spill] sm:$0xff] %v7430_v12 }
 0x2fc   :  { %1989 = vmatpush.msra.mxu1 %v10961_v36  ;;  %2029 = vmatpush.msra.mxu3 %v10962_v8  ;;  %v7433_v36 = vld [vmem:[#allocation9 + $0xf8] sm:$0xff]  ;;  %v10977_v8 = vld [vmem:[#allocation41_spill] sm:$0xff] }
 0x2fd   :  { %1818 = vmatpush.msrb.mxu0 %v7406_v2  ;;  %1858 = vmatpush.msrb.mxu2 %v7409_v15  ;;  %10976 = vst [vmem:[#allocation92_spill] sm:$0xff] %v7433_v36 }
 0x2fe   :  { %1990 = vmatpush.msra.mxu1 %v10965_v19  ;;  %2030 = vmatpush.msra.mxu3 %v10966_v51  ;;  %v10978_v19 = vld [vmem:[#allocation46_spill] sm:$0xff]  ;;  %v7438_v51 = vld [vmem:[#allocation9 + $0xd0] sm:$0xff] }
 0x2ff   :  { %1819 = vmatpush.msrb.mxu0 %v7414_v45  ;;  %1859 = vmatpush.msrb.mxu2 %v7417_v63  ;;  %10979 = vst [vmem:[#allocation91_spill] sm:$0xff] %v7438_v51 }
 0x300   :  { %1991 = vmatpush.msra.mxu1 %v10969_v49  ;;  %2031 = vmatpush.msra.mxu3 %v10970_v38  ;;  %v7441_v49 = vld [vmem:[#allocation9 + $0xd8] sm:$0xff]  ;;  %v10981_v38 = vld [vmem:[#allocation43_spill] sm:$0xff] }
 0x301   :  { %1820 = vmatpush.msrb.mxu0 %v7422_v55  ;;  %1860 = vmatpush.msrb.mxu2 %v7425_v42  ;;  %10980 = vst [vmem:[#allocation95_spill] sm:$0xff] %v7441_v49  ;;  %v11014_v42 = vld [vmem:[#allocation68_spill] sm:$0xff] }
 0x302   :  { %2056 = vmatpush.msrb.mxu1 %v10973_v27  ;;  %2096 = vmatpush.msrb.mxu3 %v10974_v61  ;;  %v10982_v27 = vld [vmem:[#allocation48_spill] sm:$0xff]  ;;  %v7446_v61 = vld [vmem:[#allocation9 + $0xb0] sm:$0xff] }
 0x303   :  { %1821 = vmatpush.msrb.mxu0 %v7430_v12  ;;  %1861 = vmatpush.msrb.mxu2 %v7433_v36  ;;  %10983 = vst [vmem:[#allocation93_spill] sm:$0xff] %v7446_v61  ;;  %v7449_v36 = vld [vmem:[#allocation9 + $0xb8] sm:$0xff]  ;;  %v11012_v12 = vld [vmem:[#allocation66_spill] sm:$0xff] }
 0x304   :  { %2057 = vmatpush.msrb.mxu1 %v10977_v8  ;;  %2097 = vmatpush.msrb.mxu3 %v10978_v19  ;;  %10984 = vst [vmem:[#allocation96_spill] sm:$0xff] %v7449_v36  ;;  %v10985_v8 = vld [vmem:[#allocation45_spill] sm:$0xff]  ;;  %v10986_v19 = vld [vmem:[#allocation50_spill] sm:$0xff] }
 0x305   :  { %1822 = vmatpush.msrb.mxu0 %v7438_v51  ;;  %1862 = vmatpush.msrb.mxu2 %v7441_v49  ;;  %v7454_v51 = vld [vmem:[#allocation9 + $0x90] sm:$0xff]  ;;  %v7457_v49 = vld [vmem:[#allocation9 + $0x98] sm:$0xff] }
 0x306   :  { %2058 = vmatpush.msrb.mxu1 %v10981_v38  ;;  %2098 = vmatpush.msrb.mxu3 %v10982_v27  ;;  %10987 = vst [vmem:[#allocation94_spill] sm:$0xff] %v7454_v51  ;;  %v10989_v38 = vld [vmem:[#allocation47_spill] sm:$0xff]  ;;  %v10990_v27 = vld [vmem:[#allocation52_spill] sm:$0xff] }
 0x307   :  { %1823 = vmatpush.msrb.mxu0 %v7446_v61  ;;  %1863 = vmatpush.msrb.mxu2 %v7449_v36  ;;  %10988 = vst [vmem:[#allocation97_spill] sm:$0xff] %v7457_v49  ;;  %v7462_v61 = vld [vmem:[#allocation9 + $0x70] sm:$0xff]  ;;  %v7465_v36 = vld [vmem:[#allocation9 + $0x78] sm:$0xff] }
 0x308   :  { %2059 = vmatpush.msrb.mxu1 %v10985_v8  ;;  %2099 = vmatpush.msrb.mxu3 %v10986_v19  ;;  %10991 = vst [vmem:[#allocation99_spill] sm:$0xff] %v7462_v61  ;;  %v10993_v8 = vld [vmem:[#allocation49_spill] sm:$0xff]  ;;  %v10994_v19 = vld [vmem:[#allocation54_spill] sm:$0xff] }
 0x309   :  { %1824 = vmatpush.msrb.mxu0 %v7454_v51  ;;  %1864 = vmatpush.msrb.mxu2 %v7457_v49  ;;  %10992 = vst [vmem:[#allocation98_spill] sm:$0xff] %v7465_v36  ;;  %v7470_v51 = vld [vmem:[#allocation9 + $0x50] sm:$0xff]  ;;  %v7473_v49 = vld [vmem:[#allocation9 + $0x58] sm:$0xff] }
 0x30a   :  { %2060 = vmatpush.msrb.mxu1 %v10989_v38  ;;  %2100 = vmatpush.msrb.mxu3 %v10990_v27  ;;  %10995 = vst [vmem:[#allocation100_spill] sm:$0xff] %v7470_v51  ;;  %v10997_v38 = vld [vmem:[#allocation51_spill] sm:$0xff]  ;;  %v10998_v27 = vld [vmem:[#allocation56_spill] sm:$0xff] }
 0x30b   :  { %1825 = vmatpush.msrb.mxu0 %v7462_v61  ;;  %1865 = vmatpush.msrb.mxu2 %v7465_v36  ;;  %10996 = vst [vmem:[#allocation101_spill] sm:$0xff] %v7473_v49  ;;  %v7478_v61 = vld [vmem:[#allocation9 + $0x30] sm:$0xff]  ;;  %v7481_v36 = vld [vmem:[#allocation9 + $0x38] sm:$0xff] }
 0x30c   :  { %2061 = vmatpush.msrb.mxu1 %v10993_v8  ;;  %2101 = vmatpush.msrb.mxu3 %v10994_v19  ;;  %10999 = vst [vmem:[#allocation102_spill] sm:$0xff] %v7478_v61  ;;  %v11001_v8 = vld [vmem:[#allocation53_spill] sm:$0xff]  ;;  %v11002_v19 = vld [vmem:[#allocation55_spill] sm:$0xff] }
 0x30d   :  { %1826 = vmatpush.msrb.mxu0 %v7470_v51  ;;  %1866 = vmatpush.msrb.mxu2 %v7473_v49  ;;  %11000 = vst [vmem:[#allocation103_spill] sm:$0xff] %v7481_v36  ;;  %v7486_v51 = vld [vmem:[#allocation9 + $0x10] sm:$0xff]  ;;  %v7489_v49 = vld [vmem:[#allocation9 + $0x18] sm:$0xff] }
 0x30e   :  { %2062 = vmatpush.msrb.mxu1 %v10997_v38  ;;  %2102 = vmatpush.msrb.mxu3 %v10998_v27  ;;  %11003 = vst [vmem:[#allocation104_spill] sm:$0xff] %v7486_v51  ;;  %v11005_v38 = vld [vmem:[#allocation63_spill] sm:$0xff] }
 0x30f   :  { %1827 = vmatpush.msrb.mxu0 %v7478_v61  ;;  %1867 = vmatpush.msrb.mxu2 %v7481_v36  ;;  %11004 = vst [vmem:[#allocation105_spill] sm:$0xff] %v7489_v49  ;;  %v11006_v27 = vld [vmem:[#allocation59_spill] sm:$0xff]  ;;  %v11007_v36 = vld [vmem:[#allocation65_spill] sm:$0xff]  ;;  %v11010_v61 = vld [vmem:[#allocation64_spill] sm:$0xff] }
 0x310   :  { %2063 = vmatpush.msrb.mxu1 %v11001_v8  ;;  %2103 = vmatpush.msrb.mxu3 %v11002_v19  ;;  %v11008_v8 = vld [vmem:[#allocation62_spill] sm:$0xff]  ;;  %v11009_v19 = vld [vmem:[#allocation67_spill] sm:$0xff] }
 0x311   :  { %1828 = vmatpush.msrb.mxu0 %v7486_v51  ;;  %1868 = vmatpush.msrb.mxu2 %v7489_v49  ;;  %v11011_v51 = vld [vmem:[#allocation69_spill] sm:$0xff]  ;;  %v11013_v49 = vld [vmem:[#allocation71_spill] sm:$0xff] }
 0x312   :  { %1829 = vmatmul.f32.vlgmr.msrb.gmra.mxu0 %v7354_v29  ;;  %1869 = vmatmul.f32.vlgmr.msrb.gmra.mxu2 %v7354_v29  ;;  %v11015_v29 = vld [vmem:[#allocation73_spill] sm:$0xff] }
 0x313   :  { %2064 = vmatpush.msrb.mxu1 %v11005_v38  ;;  %2104 = vmatpush.msrb.mxu3 %v11006_v27  ;;  %v11016_v38 = vld [vmem:[#allocation70_spill] sm:$0xff]  ;;  %v11017_v27 = vld [vmem:[#allocation75_spill] sm:$0xff] }
 0x314   :  { %1956 = vmatpush.msra.mxu0 %v11007_v36  ;;  %1996 = vmatpush.msra.mxu2 %v11008_v8  ;;  %v11018_v36 = vld [vmem:[#allocation72_spill] sm:$0xff]  ;;  %v11019_v8 = vld [vmem:[#allocation77_spill] sm:$0xff] }
 0x315   :  { %2065 = vmatpush.msrb.mxu1 %v11009_v19  ;;  %2105 = vmatpush.msrb.mxu3 %v11010_v61  ;;  %v11020_v19 = vld [vmem:[#allocation119_spill] sm:$0xff]  ;;  %v11021_v61 = vld [vmem:[#allocation120_spill] sm:$0xff] }
 0x316   :  { %1957 = vmatpush.msra.mxu0 %v11011_v51  ;;  %1997 = vmatpush.msra.mxu2 %v11012_v12  ;;  %v11022_v51 = vld [vmem:[#allocation121_spill] sm:$0xff]  ;;  %v11023_v12 = vld [vmem:[#allocation122_spill] sm:$0xff] }
 0x317   :  { %2066 = vmatpush.msrb.mxu1 %v11013_v49  ;;  %2106 = vmatpush.msrb.mxu3 %v11014_v42  ;;  %v11024_v49 = vld [vmem:[#allocation123_spill] sm:$0xff]  ;;  %v11025_v42 = vld [vmem:[#allocation124_spill] sm:$0xff] }
 0x318   :  { %1958 = vmatpush.msra.mxu0 %v11015_v29  ;;  %1998 = vmatpush.msra.mxu2 %v11016_v38  ;;  %v11026_v29 = vld [vmem:[#allocation125_spill] sm:$0xff]  ;;  %v11027_v38 = vld [vmem:[#allocation126_spill] sm:$0xff] }
 0x319   :  { %2067 = vmatpush.msrb.mxu1 %v11017_v27  ;;  %2107 = vmatpush.msrb.mxu3 %v11018_v36  ;;  %v11028_v27 = vld [vmem:[#allocation127_spill] sm:$0xff]  ;;  %v11029_v36 = vld [vmem:[#allocation128_spill] sm:$0xff] }
 0x31a   :  { %1959 = vmatpush.msra.mxu0 %v11019_v8  ;;  %1999 = vmatpush.msra.mxu2 %v11020_v19  ;;  %v11030_v8 = vld [vmem:[#allocation129_spill] sm:$0xff]  ;;  %v11031_v19 = vld [vmem:[#allocation130_spill] sm:$0xff] }
 0x31b   :  { %2068 = vmatpush.msrb.mxu1 %v11021_v61  ;;  %2108 = vmatpush.msrb.mxu3 %v11022_v51  ;;  %v11032_v61 = vld [vmem:[#allocation131_spill] sm:$0xff]  ;;  %v11033_v51 = vld [vmem:[#allocation132_spill] sm:$0xff] }
 0x31c   :  { %1960 = vmatpush.msra.mxu0 %v11023_v12  ;;  %2000 = vmatpush.msra.mxu2 %v11024_v49  ;;  %v11034_v12 = vld [vmem:[#allocation133_spill] sm:$0xff]  ;;  %v11035_v49 = vld [vmem:[#allocation134_spill] sm:$0xff] }
 0x31d   :  { %2069 = vmatpush.msrb.mxu1 %v11025_v42  ;;  %2109 = vmatpush.msrb.mxu3 %v11026_v29  ;;  %v11036_v42 = vld [vmem:[#allocation135_spill] sm:$0xff]  ;;  %v11037_v29 = vld [vmem:[#allocation136_spill] sm:$0xff] }
 0x31e   :  { %1961 = vmatpush.msra.mxu0 %v11027_v38  ;;  %2001 = vmatpush.msra.mxu2 %v11028_v27  ;;  %v11038_v38 = vld [vmem:[#allocation137_spill] sm:$0xff]  ;;  %v11039_v27 = vld [vmem:[#allocation138_spill] sm:$0xff] }
 0x31f   :  { %2070 = vmatpush.msrb.mxu1 %v11029_v36  ;;  %2110 = vmatpush.msrb.mxu3 %v11030_v8  ;;  %v11040_v36 = vld [vmem:[#allocation139_spill] sm:$0xff]  ;;  %v11041_v8 = vld [vmem:[#allocation140_spill] sm:$0xff]  ;;  %v1583_v15 = vpop.f32.mrf.mxu3 }
 0x320   :  { %1962 = vmatpush.msra.mxu0 %v11031_v19  ;;  %2002 = vmatpush.msra.mxu2 %v11032_v61  ;;  %v11042_v19 = vld [vmem:[#allocation141_spill] sm:$0xff]  ;;  %v11043_v61 = vld [vmem:[#allocation142_spill] sm:$0xff] }
 0x321   :  { %2071 = vmatpush.msrb.mxu1 %v11033_v51  ;;  %2111 = vmatpush.msrb.mxu3 %v11034_v12  ;;  %v11044_v51 = vld [vmem:[#allocation143_spill] sm:$0xff]  ;;  %v11045_v12 = vld [vmem:[#allocation144_spill] sm:$0xff] }
 0x322   :  { %1963 = vmatpush.msra.mxu0 %v11035_v49  ;;  %2003 = vmatpush.msra.mxu2 %v11036_v42  ;;  %v11046_v49 = vld [vmem:[#allocation145_spill] sm:$0xff]  ;;  %v11047_v42 = vld [vmem:[#allocation146_spill] sm:$0xff] }
 0x324   :  { %1964 = vmatpush.msra.mxu0 %v11037_v29  ;;  %2004 = vmatpush.msra.mxu2 %v11038_v38  ;;  %v11048_v29 = vld [vmem:[#allocation147_spill] sm:$0xff]  ;;  %v11049_v38 = vld [vmem:[#allocation148_spill] sm:$0xff] }
 0x326   :  { %1965 = vmatpush.msra.mxu0 %v11039_v27  ;;  %2005 = vmatpush.msra.mxu2 %v11040_v36  ;;  %v11050_v27 = vld [vmem:[#allocation149_spill] sm:$0xff]  ;;  %v11051_v36 = vld [vmem:[#allocation150_spill] sm:$0xff] }
 0x328   :  { %1966 = vmatpush.msra.mxu0 %v11041_v8  ;;  %2006 = vmatpush.msra.mxu2 %v11042_v19  ;;  %v11052_v8 = vld [vmem:[#allocation151_spill] sm:$0xff]  ;;  %v11053_v19 = vld [vmem:[#allocation152_spill] sm:$0xff] }
 0x32a   :  { %1967 = vmatpush.msra.mxu0 %v11043_v61  ;;  %2007 = vmatpush.msra.mxu2 %v11044_v51  ;;  %v11054_v61 = vld [vmem:[#allocation153_spill] sm:$0xff]  ;;  %v11055_v51 = vld [vmem:[#allocation154_spill] sm:$0xff] }
 0x32c   :  { %1968 = vmatpush.msra.mxu0 %v11045_v12  ;;  %2008 = vmatpush.msra.mxu2 %v11046_v49  ;;  %v11056_v12 = vld [vmem:[#allocation155_spill] sm:$0xff]  ;;  %v11057_v49 = vld [vmem:[#allocation156_spill] sm:$0xff] }
 0x32e   :  { %1969 = vmatpush.msra.mxu0 %v11047_v42  ;;  %2009 = vmatpush.msra.mxu2 %v11048_v29  ;;  %v11058_v42 = vld [vmem:[#allocation157_spill] sm:$0xff]  ;;  %v11059_v29 = vld [vmem:[#allocation158_spill] sm:$0xff] }
 0x330   :  { %1970 = vmatpush.msra.mxu0 %v11049_v38  ;;  %2010 = vmatpush.msra.mxu2 %v11050_v27  ;;  %v11060_v38 = vld [vmem:[#allocation159_spill] sm:$0xff]  ;;  %v11061_v27 = vld [vmem:[#allocation160_spill] sm:$0xff] }
 0x332   :  { %1971 = vmatpush.msra.mxu0 %v11051_v36  ;;  %2011 = vmatpush.msra.mxu2 %v11052_v8  ;;  %v11062_v36 = vld [vmem:[#allocation161_spill] sm:$0xff]  ;;  %v11063_v8 = vld [vmem:[#allocation162_spill] sm:$0xff] }
 0x334   :  { %2036 = vmatpush.msrb.mxu0 %v11053_v19  ;;  %2076 = vmatpush.msrb.mxu2 %v11054_v61  ;;  %v11064_v19 = vld [vmem:[#allocation163_spill] sm:$0xff]  ;;  %v11065_v61 = vld [vmem:[#allocation164_spill] sm:$0xff] }
 0x336   :  { %2037 = vmatpush.msrb.mxu0 %v11055_v51  ;;  %2077 = vmatpush.msrb.mxu2 %v11056_v12  ;;  %v11066_v51 = vld [vmem:[#allocation165_spill] sm:$0xff]  ;;  %v11067_v12 = vld [vmem:[#allocation166_spill] sm:$0xff] }
 0x338   :  { %2038 = vmatpush.msrb.mxu0 %v11057_v49  ;;  %2078 = vmatpush.msrb.mxu2 %v11058_v42  ;;  %v11068_v49 = vld [vmem:[#allocation167_spill] sm:$0xff]  ;;  %v11069_v42 = vld [vmem:[#allocation168_spill] sm:$0xff] }
 0x33a   :  { %2039 = vmatpush.msrb.mxu0 %v11059_v29  ;;  %2079 = vmatpush.msrb.mxu2 %v11060_v38  ;;  %v11070_v29 = vld [vmem:[#allocation169_spill] sm:$0xff]  ;;  %v11071_v38 = vld [vmem:[#allocation170_spill] sm:$0xff] }
 0x33c   :  { %2040 = vmatpush.msrb.mxu0 %v11061_v27  ;;  %2080 = vmatpush.msrb.mxu2 %v11062_v36  ;;  %v11072_v27 = vld [vmem:[#allocation171_spill] sm:$0xff]  ;;  %v11073_v36 = vld [vmem:[#allocation172_spill] sm:$0xff] }
 0x33e   :  { %2041 = vmatpush.msrb.mxu0 %v11063_v8  ;;  %2081 = vmatpush.msrb.mxu2 %v11064_v19  ;;  %v11074_v8 = vld [vmem:[#allocation173_spill] sm:$0xff]  ;;  %v11075_v19 = vld [vmem:[#allocation174_spill] sm:$0xff] }
 0x340   :  { %2042 = vmatpush.msrb.mxu0 %v11065_v61  ;;  %2082 = vmatpush.msrb.mxu2 %v11066_v51  ;;  %v11076_v61 = vld [vmem:[#allocation175_spill] sm:$0xff]  ;;  %v11077_v51 = vld [vmem:[#allocation176_spill] sm:$0xff] }
 0x342   :  { %2043 = vmatpush.msrb.mxu0 %v11067_v12  ;;  %2083 = vmatpush.msrb.mxu2 %v11068_v49  ;;  %v11078_v12 = vld [vmem:[#allocation177_spill] sm:$0xff]  ;;  %v11079_v49 = vld [vmem:[#allocation178_spill] sm:$0xff] }
 0x344   :  { %2044 = vmatpush.msrb.mxu0 %v11069_v42  ;;  %2084 = vmatpush.msrb.mxu2 %v11070_v29  ;;  %v11080_v42 = vld [vmem:[#allocation179_spill] sm:$0xff] }
 0x346   :  { %2045 = vmatpush.msrb.mxu0 %v11071_v38  ;;  %2085 = vmatpush.msrb.mxu2 %v11072_v27  ;;  %v11081_v38 = vld [vmem:[#allocation74_spill] sm:$0xff]  ;;  %v11082_v27 = vld [vmem:[#allocation180_spill] sm:$0xff] }
 0x348   :  { %2046 = vmatpush.msrb.mxu0 %v11073_v36  ;;  %2086 = vmatpush.msrb.mxu2 %v11074_v8  ;;  %v11083_v36 = vld [vmem:[#allocation181_spill] sm:$0xff]  ;;  %v1543_v8 = vpop.f32.mrf.mxu1 }
 0x34a   :  { %2047 = vmatpush.msrb.mxu0 %v11075_v19  ;;  %2087 = vmatpush.msrb.mxu2 %v11076_v61  ;;  %v11084_v19 = vld [vmem:[#allocation182_spill] sm:$0xff]  ;;  %v11085_v61 = vld [vmem:[#allocation183_spill] sm:$0xff] }
 0x34b   :  { %v1523_v29 = vpop.f32.mrf.mxu0 }
 0x34c   :  { %2048 = vmatpush.msrb.mxu0 %v11077_v51  ;;  %2088 = vmatpush.msrb.mxu2 %v11078_v12  ;;  %v1524_v55 = vadd.f32 %v1523_v29, %v11081_v38  ;;  %v11086_v12 = vld [vmem:[#allocation79_spill] sm:$0xff] }
 0x34e   :  { %2049 = vmatpush.msrb.mxu0 %v11079_v49  ;;  %2089 = vmatpush.msrb.mxu2 %v11080_v42  ;;  %v1544_v63 = vadd.f32 %v1543_v8, %v1524_v55  ;;  %v1663_v55 = vpop.f32.mrf.mxu3 }
 0x350   :  { %2050 = vmatpush.msrb.mxu0 %v11082_v27  ;;  %2090 = vmatpush.msrb.mxu2 %v11083_v36  ;;  %v4021_v51 = vmul.f32 -1.442695, %v1544_v63  ;;  %v11087_v36 = vld [vmem:[#allocation76_spill] sm:$0xff] }
 0x351   :  { %v1563_v45 = vpop.f32.mrf.mxu2 }
 0x352   :  { %2051 = vmatpush.msrb.mxu0 %v11084_v19  ;;  %2091 = vmatpush.msrb.mxu2 %v11085_v61  ;;  %4144 = vpow2.f32 %v4021_v51  ;;  %v1564_v49 = vadd.f32 %v1563_v45, %v11086_v12  ;;  %v11088_v45 = vld [vmem:[#allocation81_spill] sm:$0xff] }
 0x354   :  { %v1584_v42 = vadd.f32 %v1583_v15, %v1564_v49  ;;  %v1623_v49 = vpop.f32.mrf.mxu1 }
 0x356   :  { %v4022_v2 = vmul.f32 -1.442695, %v1584_v42  ;;  %v1603_v61 = vpop.f32.mrf.mxu0 }
 0x357   :  { %v1604_v12 = vadd.f32 %v1603_v61, %v11088_v45 }
 0x358   :  { %v4145_v30 = vpop.eup %4144  ;;  %4146 = vpow2.f32 %v4022_v2 }
 0x359   :  { %v1669_v29 = vadd.f32 1.0, %v4145_v30  ;;  %v1624_v2 = vadd.f32 %v1623_v49, %v1604_v12 }
 0x35b   :  { %4148 = vrcp.f32 %v1669_v29  ;;  %vm1675_vm13 = vweird.f32 %v1669_v29 }
 0x35d   :  { %v1643_v27 = vpop.f32.mrf.mxu2 }
 0x35e   :  { %v1644_v38 = vadd.f32 %v1643_v27, %v11087_v36  ;;  %v4147_v8 = vpop.eup %4146  ;;  %v1681_v36 = vand.u32 2147483648, %v1669_v29 }
 0x35f   :  { %v1688_v39 = vadd.f32 1.0, %v4147_v8  ;;  %v1679_v8 = vand.u32 2147483647, %v1669_v29 }
 0x360   :  { %v1664_v19 = vadd.f32 %v1663_v55, %v1644_v38 }
 0x361   :  { %v4149_v48 = vpop.eup %4148  ;;  %4150 = vrcp.f32 %v1688_v39  ;;  %vm1694_vm0 = vweird.f32 %v1688_v39  ;;  %vm1680_vm1 = vcmp.eq.f32.partialorder %v1679_v8, 8.507059e+37 }
 0x362   :  { %v4023_v63 = vmul.f32 -1.442695, %v1664_v19  ;;  %v1671_v51 = vmul.f32 %v4149_v48, %v1669_v29  ;;  %vm1676_vm12 = vweird.f32 %v4149_v48  ;;  %v1700_v19 = vand.u32 2147483648, %v1688_v39  ;;  %v1770_v29 = vpop.f32.mrf.mxu1 }
 0x363   :  { %vm1677_vm14 = vmor %vm1675_vm13, %vm1676_vm12 }
 0x364   :  { %4152 = vpow2.f32 %v4023_v63  ;;  %v1672_v15 = vsub.f32 1.0, %v1671_v51  ;;  %v1698_v51 = vand.u32 2147483647, %v1688_v39 }
 0x365   :  { %4154 = vtanh.f32 %v1624_v2 }
 0x366   :  { %v1673_v30 = vmul.f32 %v4149_v48, %v1672_v15  ;;  %v1682_v15 = vor.u32 1.1754944e-38, %v1681_v36  ;;  %vm1699_vm3 = vcmp.eq.f32.partialorder %v1698_v51, 8.507059e+37 }
 0x367   :  { %v4151_v42 = vpop.eup %4150 }
 0x368   :  { %v1690_v34 = vmul.f32 %v4151_v42, %v1688_v39  ;;  %v1674_v27 = vadd.f32 %v4149_v48, %v1673_v30  ;;  %vm1695_vm15 = vweird.f32 %v4151_v42  ;;  %v1810_v39 = vpop.f32.mrf.mxu3 }
 0x369   :  { %vm1696_vm2 = vmor %vm1694_vm0, %vm1695_vm15 }
 0x36a   :  { %v4153_v41 = vpop.eup %4152  ;;  %v1691_v55 = vsub.f32 1.0, %v1690_v34  ;;  %v1678_v63 = vsel %vm1677_vm14, %v4149_v48, %v1674_v27 }
 0x36b   :  { %v1708_v38 = vadd.f32 1.0, %v4153_v41  ;;  %v1701_v41 = vor.u32 1.1754944e-38, %v1700_v19  ;;  %v1683_v34 = vsel %vm1680_vm1, %v1682_v15, %v1678_v63  ;;  %v4155_v45 = vpop.eup %4154 }
 0x36c   :  { %v1692_v61 = vmul.f32 %v4151_v42, %v1691_v55  ;;  %v1725_v27 = vmul.f32 %v4155_v45, %v1683_v34 }
 0x36d   :  { %4156 = vrcp.f32 %v1708_v38  ;;  %v1720_v51 = vand.u32 2147483648, %v1708_v38  ;;  %vm1714_vm5 = vweird.f32 %v1708_v38 }
 0x36e   :  { %v1693_v30 = vadd.f32 %v4151_v42, %v1692_v61 }
 0x36f   :  { %v1750_v12 = vpop.f32.mrf.mxu0  ;;  %v1721_v45 = vor.u32 1.1754944e-38, %v1720_v51  ;;  %v7623_v51 = vld [vmem:[#allocation9 + $0x348] sm:$0xff] }
 0x370   :  { %v1751_v49 = vadd.f32 %v1750_v12, %v10675_v9  ;;  %v1697_v2 = vsel %vm1696_vm2, %v4151_v42, %v1693_v30  ;;  %11095 = vst [vmem:[#allocation114_spill] sm:$0xff] %v7623_v51 }
 0x371   :  { %v1702_v35 = vsel %vm1699_vm3, %v1701_v41, %v1697_v2  ;;  %v7584_v2 = vld [vmem:[#allocation9 + $0x3e0] sm:$0xff] }
 0x372   :  { %v1771_v55 = vadd.f32 %v1770_v29, %v1751_v49  ;;  %v1724_v48 = vmul.f32 %v1702_v35, %v7132_v26  ;;  %v1718_v49 = vand.u32 2147483647, %v1708_v38 }
 0x373   :  { %v4157_v21 = vpop.eup %4156 }
 0x374   :  { %v1710_v16 = vmul.f32 %v4157_v21, %v1708_v38  ;;  %v7581_v8 = vadd.f32 %v1725_v27, %v1724_v48  ;;  %v4024_v19 = vmul.f32 -1.442695, %v1771_v55  ;;  %vm1715_vm4 = vweird.f32 %v4157_v21  ;;  %v7587_v38 = vld [vmem:[#allocation9 + $0x3e8] sm:$0xff] }
 0x375   :  { %v1790_v36 = vpop.f32.mrf.mxu2  ;;  %vm1716_vm6 = vmor %vm1714_vm5, %vm1715_vm4  ;;  %vm1719_vm7 = vcmp.eq.f32.partialorder %v1718_v49, 8.507059e+37  ;;  %v7595_v48 = vld [vmem:[#allocation9 + $0x3c8] sm:$0xff]  ;;  %v7628_v49 = vld [vmem:[#allocation9 + $0x320] sm:$0xff] }
 0x376   :  { %v1791_v12 = vadd.f32 %v1790_v36, %v10676_v33  ;;  %v1711_v61 = vsub.f32 1.0, %v1710_v16  ;;  %4158 = vtanh.f32 %v7581_v8  ;;  %v7600_v36 = vld [vmem:[#allocation9 + $0x3a0] sm:$0xff]  ;;  %11096 = vst [vmem:[#allocation115_spill] sm:$0xff] %v7628_v49 }
 0x377   :  { %4160 = vpow2.f32 %v4024_v19  ;;  %v7614_v19 = vld [vmem:[#allocation9 + $0x360] sm:$0xff] }
 0x378   :  { %v1811_v63 = vadd.f32 %v1810_v39, %v1791_v12  ;;  %v1712_v42 = vmul.f32 %v4157_v21, %v1711_v61  ;;  %v7603_v12 = vld [vmem:[#allocation9 + $0x3a8] sm:$0xff]  ;;  %v7607_v39 = vld [vmem:[#allocation9 + $0x380] sm:$0xff]  ;;  %11092 = vst [vmem:[#allocation111_spill] sm:$0xff] %v7614_v19 }
 0x379   :  { %11089 = vst [vmem:[#allocation106_spill] sm:$0xff] %v7603_v12  ;;  %v7610_v61 = vld [vmem:[#allocation9 + $0x388] sm:$0xff] }
 0x37a   :  { %v4025_v15 = vmul.f32 -1.442695, %v1811_v63  ;;  %v1713_v26 = vadd.f32 %v4157_v21, %v1712_v42  ;;  %11090 = vst [vmem:[#allocation107_spill] sm:$0xff] %v7607_v39  ;;  %v7617_v63 = vld [vmem:[#allocation9 + $0x368] sm:$0xff]  ;;  %v7620_v42 = vld [vmem:[#allocation9 + $0x340] sm:$0xff] }
 0x37b   :  { %11091 = vst [vmem:[#allocation110_spill] sm:$0xff] %v7610_v61 }
 0x37c   :  { %4162 = vpow2.f32 %v4025_v15  ;;  %v1717_v35 = vsel %vm1716_vm6, %v4157_v21, %v1713_v26  ;;  %v4159_v30 = vpop.eup %4158  ;;  %v7592_v21 = vld [vmem:[#allocation9 + $0x3c0] sm:$0xff]  ;;  %11093 = vst [vmem:[#allocation112_spill] sm:$0xff] %v7617_v63  ;;  %v7631_v26 = vld [vmem:[#allocation9 + $0x328] sm:$0xff] }
 0x37d   :  { %v1722_v41 = vsel %vm1719_vm7, %v1721_v45, %v1717_v35  ;;  %v4161_v34 = vpop.eup %4160  ;;  %11094 = vst [vmem:[#allocation113_spill] sm:$0xff] %v7620_v42  ;;  %v7636_v45 = vld [vmem:[#allocation9 + $0x300] sm:$0xff] }
 0x37e   :  { %v1728_v16 = vmul.f32 %v4159_v30, %v1722_v41  ;;  %v7590_v55 = vadd.f32 1.0, %v4161_v34  ;;  %11097 = vst [vmem:[#allocation116_spill] sm:$0xff] %v7631_v26  ;;  %v7639_v30 = vld [vmem:[#allocation9 + $0x308] sm:$0xff] }
 0x37f   :  { %11098 = vst [vmem:[#allocation108_spill] sm:$0xff] %v7636_v45 }
 0x380   :  { %1730 = vst [vmem:[#allocation15 + $0x4] sm:$0x3] %v1728_v16  ;;  %1992 = vmatmul.f32.vlgmr.msra.gmra.mxu1 %v1728_v16  ;;  %2032 = vmatmul.f32.vlgmr.msra.gmra.mxu3 %v1728_v16  ;;  %4164 = vrcp.f32 %v7590_v55  ;;  %vm1902_vm10 = vweird.f32 %v7590_v55 }
 0x381   :  { %2203 = vmatpush.msra.mxu1 %v7584_v2  ;;  %2243 = vmatpush.msra.mxu3 %v7587_v38  ;;  %11099 = vst [vmem:[#allocation109_spill] sm:$0xff] %v7639_v30 }
 0x382   :  { %v4163_v29 = vpop.eup %4162 }
 0x383   :  { %2204 = vmatpush.msra.mxu1 %v7592_v21  ;;  %2244 = vmatpush.msra.mxu3 %v7595_v48  ;;  %v7598_v27 = vadd.f32 1.0, %v4163_v29  ;;  %v7646_v29 = vld [vmem:[#allocation9 + $0x2e0] sm:$0xff] }
 0x384   :  { %11100 = vst [vmem:[#allocation22_spill] sm:$0xff] %v7646_v29 }
 0x385   :  { %2205 = vmatpush.msra.mxu1 %v7600_v36  ;;  %2245 = vmatpush.msra.mxu3 %v7603_v12  ;;  %4166 = vrcp.f32 %v7598_v27  ;;  %v7666_v12 = vld [vmem:[#allocation9 + $0x280] sm:$0xff]  ;;  %vm1921_vm11 = vweird.f32 %v7598_v27 }
 0x386   :  { %v7626_v15 = vpop.eup %4164  ;;  %11105 = vst [vmem:[#allocation25_spill] sm:$0xff] %v7666_v12 }
 0x387   :  { %2206 = vmatpush.msra.mxu1 %v7607_v39  ;;  %2246 = vmatpush.msra.mxu3 %v7610_v61  ;;  %v1898_v41 = vmul.f32 %v7626_v15, %v7590_v55  ;;  %v7660_v61 = vld [vmem:[#allocation9 + $0x2a0] sm:$0xff]  ;;  %v1850_v39 = vpop.f32.mrf.mxu1  ;;  %vm1903_vm8 = vweird.f32 %v7626_v15 }
 0x388   :  { %2072 = vmatmul.f32.vlgmr.msrb.gmra.mxu1 %v1728_v16  ;;  %2112 = vmatmul.f32.vlgmr.msrb.gmra.mxu3 %v1728_v16  ;;  %11103 = vst [vmem:[#allocation21_spill] sm:$0xff] %v7660_v61  ;;  %vm7700_vm12 = vmor %vm1902_vm10, %vm1903_vm8 }
 0x389   :  { %2207 = vmatpush.msra.mxu1 %v7614_v19  ;;  %2247 = vmatpush.msra.mxu3 %v7617_v63  ;;  %v1890_v63 = vpop.f32.mrf.mxu3  ;;  %v1899_v19 = vsub.f32 1.0, %v1898_v41 }
 0x38b   :  { %2208 = vmatpush.msra.mxu1 %v7620_v42  ;;  %2248 = vmatpush.msra.mxu3 %v7623_v51  ;;  %v7634_v35 = vpop.eup %4166 }
 0x38c   :  { %v1917_v16 = vmul.f32 %v7634_v35, %v7598_v27  ;;  %vm1922_vm9 = vweird.f32 %v7634_v35 }
 0x38d   :  { %2209 = vmatpush.msra.mxu1 %v7628_v49  ;;  %2249 = vmatpush.msra.mxu3 %v7631_v26  ;;  %v7649_v26 = vld [vmem:[#allocation9 + $0x2e8] sm:$0xff]  ;;  %v7652_v49 = vld [vmem:[#allocation9 + $0x2c0] sm:$0xff]  ;;  %vm7714_vm13 = vmor %vm1921_vm11, %vm1922_vm9 }
 0x38e   :  { %11101 = vst [vmem:[#allocation20_spill] sm:$0xff] %v7649_v26 }
 0x38f   :  { %2210 = vmatpush.msra.mxu1 %v7636_v45  ;;  %2250 = vmatpush.msra.mxu3 %v7639_v30  ;;  %v1830_v34 = vpop.f32.mrf.mxu0  ;;  %11102 = vst [vmem:[#allocation24_spill] sm:$0xff] %v7652_v49  ;;  %v7655_v30 = vld [vmem:[#allocation9 + $0x2c8] sm:$0xff] }
 0x390   :  { %v1831_v51 = vadd.f32 %v1830_v34, %v10677_v43  ;;  %v7669_v34 = vld [vmem:[#allocation9 + $0x288] sm:$0xff]  ;;  %v7730_v43 = vld [vmem:[#allocation9 + $0x3d0] sm:$0xff] }
 0x391   :  { %2211 = vmatpush.msra.mxu1 %v7646_v29  ;;  %2251 = vmatpush.msra.mxu3 %v7649_v26  ;;  %v1918_v29 = vsub.f32 1.0, %v1917_v16  ;;  %v7663_v26 = vld [vmem:[#allocation9 + $0x2a8] sm:$0xff]  ;;  %11106 = vst [vmem:[#allocation28_spill] sm:$0xff] %v7669_v34 }
 0x392   :  { %11104 = vst [vmem:[#allocation23_spill] sm:$0xff] %v7663_v26 }
 0x393   :  { %2212 = vmatpush.msra.mxu1 %v7652_v49  ;;  %2252 = vmatpush.msra.mxu3 %v7655_v30  ;;  %v1919_v16 = vmul.f32 %v7634_v35, %v1918_v29  ;;  %v1927_v29 = vand.u32 2147483648, %v7598_v27 }
 0x395   :  { %v1870_v45 = vpop.f32.mrf.mxu2  ;;  %2213 = vmatpush.msra.mxu1 %v7660_v61  ;;  %2253 = vmatpush.msra.mxu3 %v7663_v26  ;;  %v1900_v61 = vmul.f32 %v7626_v15, %v1899_v19  ;;  %v1920_v19 = vadd.f32 %v7634_v35, %v1919_v16  ;;  %v1925_v16 = vand.u32 2147483647, %v7598_v27 }
 0x396   :  { %v1871_v42 = vadd.f32 %v1870_v45, %v10678_v1  ;;  %v1851_v45 = vadd.f32 %v1850_v39, %v1831_v51  ;;  %v7674_v1 = vld [vmem:[#allocation9 + $0x260] sm:$0xff] }
 0x397   :  { %2214 = vmatpush.msra.mxu1 %v7666_v12  ;;  %2254 = vmatpush.msra.mxu3 %v7669_v34  ;;  %11107 = vst [vmem:[#allocation26_spill] sm:$0xff] %v7674_v1  ;;  %v7683_v34 = vld [vmem:[#allocation9 + $0x248] sm:$0xff]  ;;  %v1901_v39 = vadd.f32 %v7626_v15, %v1900_v61  ;;  %v7690_v51 = vld [vmem:[#allocation9 + $0x220] sm:$0xff]  ;;  %v1928_v12 = vor.u32 1.1754944e-38, %v1927_v29  ;;  %vm1926_vm15 = vcmp.eq.f32.partialorder %v1925_v16, 8.507059e+37  ;;  %v7736_v61 = vld [vmem:[#allocation9 + $0x3b0] sm:$0xff] }
 0x398   :  { %v1891_v49 = vadd.f32 %v1890_v63, %v1871_v42  ;;  %v7677_v63 = vld [vmem:[#allocation9 + $0x268] sm:$0xff]  ;;  %v7680_v42 = vld [vmem:[#allocation9 + $0x240] sm:$0xff]  ;;  %11110 = vst [vmem:[#allocation32_spill] sm:$0xff] %v7683_v34  ;;  %v7760_v16 = vld [vmem:[#allocation9 + $0x358] sm:$0xff] }
 0x399   :  { %2215 = vmatpush.msra.mxu1 %v7674_v1  ;;  %11108 = vst [vmem:[#allocation30_spill] sm:$0xff] %v7677_v63  ;;  %2255 = vmatpush.msra.mxu3 %v7677_v63  ;;  %v7718_v63 = vld [vmem:[#allocation9 + $0x3f0] sm:$0xff]  ;;  %v1905_v27 = vsel %vm7700_vm12, %v7626_v15, %v1901_v39 }
 0x39a   :  { %v4026_v41 = vmul.f32 -1.442695, %v1891_v49  ;;  %11109 = vst [vmem:[#allocation27_spill] sm:$0xff] %v7680_v42  ;;  %v7693_v49 = vld [vmem:[#allocation9 + $0x228] sm:$0xff] }
 0x39b   :  { %2216 = vmatpush.msra.mxu1 %v7680_v42  ;;  %2256 = vmatpush.msra.mxu3 %v7683_v34  ;;  %11111 = vst [vmem:[#allocation29_spill] sm:$0xff] %v7690_v51  ;;  %v7742_v42 = vld [vmem:[#allocation9 + $0x390] sm:$0xff] }
 0x39c   :  { %4168 = vpow2.f32 %v4026_v41  ;;  %11112 = vst [vmem:[#allocation34_spill] sm:$0xff] %v7693_v49  ;;  %v1906_v41 = vand.u32 2147483647, %v7590_v55 }
 0x39d   :  { %4170 = vtanh.f32 %v1851_v45  ;;  %2217 = vmatpush.msra.mxu1 %v7690_v51  ;;  %2257 = vmatpush.msra.mxu3 %v7693_v49  ;;  %v1908_v45 = vand.u32 2147483648, %v7590_v55  ;;  %v7706_v51 = vld [vmem:[#allocation9 + $0x200] sm:$0xff]  ;;  %v7709_v49 = vld [vmem:[#allocation9 + $0x208] sm:$0xff]  ;;  %11119 = vst [vmem:[#allocation33_spill] sm:$0xff] %v7718_v63  ;;  %v7721_v55 = vld [vmem:[#allocation9 + $0x3f8] sm:$0xff] }
 0x39e   :  { %11115 = vst [vmem:[#allocation31_spill] sm:$0xff] %v7706_v51  ;;  %vm1907_vm14 = vcmp.eq.f32.partialorder %v1906_v41, 8.507059e+37  ;;  %v7757_v41 = vld [vmem:[#allocation9 + $0x350] sm:$0xff] }
 0x39f   :  { %2218 = vmatpush.msra.mxu1 %v7706_v51  ;;  %11116 = vst [vmem:[#allocation36_spill] sm:$0xff] %v7709_v49  ;;  %2258 = vmatpush.msra.mxu3 %v7709_v49  ;;  %v1924_v49 = vsel %vm7714_vm13, %v7634_v35, %v1920_v19  ;;  %v1909_v26 = vor.u32 1.1754944e-38, %v1908_v45  ;;  %v7739_v35 = vld [vmem:[#allocation9 + $0x3b8] sm:$0xff] }
 0x3a0   :  { %v1929_v39 = vsel %vm1926_vm15, %v1928_v12, %v1924_v49  ;;  %v7745_v19 = vld [vmem:[#allocation9 + $0x398] sm:$0xff]  ;;  %v7749_v12 = vld [vmem:[#allocation9 + $0x370] sm:$0xff]  ;;  %11122 = vst [vmem:[#allocation40_spill] sm:$0xff] %v7757_v41 }
 0x3a1   :  { %2283 = vmatpush.msrb.mxu1 %v7718_v63  ;;  %2323 = vmatpush.msrb.mxu3 %v7721_v55  ;;  %v7733_v63 = vld [vmem:[#allocation9 + $0x3d8] sm:$0xff]  ;;  %v1910_v15 = vsel %vm1907_vm14, %v1909_v26, %v1905_v27  ;;  %v1951_v26 = vmul.f32 %v1929_v39, %v7223_v60  ;;  %11120 = vst [vmem:[#allocation38_spill] sm:$0xff] %v7749_v12  ;;  %v7763_v27 = vld [vmem:[#allocation9 + $0x330] sm:$0xff] }
 0x3a2   :  { %v4169_v34 = vpop.eup %4168  ;;  %v7752_v49 = vld [vmem:[#allocation9 + $0x378] sm:$0xff]  ;;  %11123 = vst [vmem:[#allocation37_spill] sm:$0xff] %v7760_v16 }
 0x3a3   :  { %v1935_v51 = vadd.f32 1.0, %v4169_v34  ;;  %v4171_v1 = vpop.eup %4170  ;;  %2284 = vmatpush.msrb.mxu1 %v7730_v43  ;;  %2324 = vmatpush.msrb.mxu3 %v7733_v63  ;;  %11121 = vst [vmem:[#allocation35_spill] sm:$0xff] %v7752_v49 }
 0x3a4   :  { %v1952_v34 = vmul.f32 %v4171_v1, %v1910_v15  ;;  %11124 = vst [vmem:[#allocation42_spill] sm:$0xff] %v7763_v27  ;;  %v7766_v15 = vld [vmem:[#allocation9 + $0x338] sm:$0xff] }
 0x3a5   :  { %4172 = vrcp.f32 %v1935_v51  ;;  %2285 = vmatpush.msrb.mxu1 %v7736_v61  ;;  %2325 = vmatpush.msrb.mxu3 %v7739_v35  ;;  %11125 = vst [vmem:[#allocation39_spill] sm:$0xff] %v7766_v15  ;;  %v1947_v39 = vand.u32 2147483648, %v1935_v51  ;;  %vm1941_vm1 = vweird.f32 %v1935_v51 }
 0x3a6   :  { %v7755_v1 = vadd.f32 %v1952_v34, %v1951_v26  ;;  %v1945_v26 = vand.u32 2147483647, %v1935_v51 }
 0x3a7   :  { %2286 = vmatpush.msrb.mxu1 %v7742_v42  ;;  %2326 = vmatpush.msrb.mxu3 %v7745_v19 }
 0x3a8   :  { %4174 = vtanh.f32 %v7755_v1  ;;  %vm1946_vm3 = vcmp.eq.f32.partialorder %v1945_v26, 8.507059e+37  ;;  %v7935_v26 = vld [vmem:[#allocation12 + $0x288] sm:$0xff] }
 0x3a9   :  { %2287 = vmatpush.msrb.mxu1 %v7749_v12  ;;  %2327 = vmatpush.msrb.mxu3 %v7752_v49  ;;  %v7782_v12 = vld [vmem:[#allocation9 + $0x2d0] sm:$0xff]  ;;  %11148 = vst [vmem:[#allocation62_spill] sm:$0xff] %v7935_v26 }
 0x3ab   :  { %v4173_v29 = vpop.eup %4172  ;;  %2288 = vmatpush.msrb.mxu1 %v7757_v41  ;;  %2328 = vmatpush.msrb.mxu3 %v7760_v16  ;;  %v7770_v41 = vld [vmem:[#allocation9 + $0x310] sm:$0xff]  ;;  %v7773_v16 = vld [vmem:[#allocation9 + $0x318] sm:$0xff] }
 0x3ac   :  { %v1937_v45 = vmul.f32 %v4173_v29, %v1935_v51  ;;  %vm1942_vm0 = vweird.f32 %v4173_v29  ;;  %11126 = vst [vmem:[#allocation44_spill] sm:$0xff] %v7770_v41 }
 0x3ad   :  { %2289 = vmatpush.msrb.mxu1 %v7763_v27  ;;  %2329 = vmatpush.msrb.mxu3 %v7766_v15  ;;  %11127 = vst [vmem:[#allocation41_spill] sm:$0xff] %v7773_v16  ;;  %v7776_v27 = vld [vmem:[#allocation9 + $0x2f0] sm:$0xff]  ;;  %v7779_v15 = vld [vmem:[#allocation9 + $0x2f8] sm:$0xff]  ;;  %vm1943_vm2 = vmor %vm1941_vm1, %vm1942_vm0 }
 0x3ae   :  { %v1938_v60 = vsub.f32 1.0, %v1937_v45  ;;  %11128 = vst [vmem:[#allocation46_spill] sm:$0xff] %v7776_v27  ;;  %v4175_v51 = vpop.eup %4174 }
 0x3af   :  { %2290 = vmatpush.msrb.mxu1 %v7770_v41  ;;  %2330 = vmatpush.msrb.mxu3 %v7773_v16  ;;  %11129 = vst [vmem:[#allocation43_spill] sm:$0xff] %v7779_v15  ;;  %v7785_v41 = vld [vmem:[#allocation9 + $0x2d8] sm:$0xff] }
 0x3b0   :  { %v1939_v34 = vmul.f32 %v4173_v29, %v1938_v60  ;;  %v1948_v60 = vor.u32 1.1754944e-38, %v1947_v39  ;;  %v7805_v39 = vld [vmem:[#allocation9 + $0x270] sm:$0xff] }
 0x3b1   :  { %2291 = vmatpush.msrb.mxu1 %v7776_v27  ;;  %2331 = vmatpush.msrb.mxu3 %v7779_v15  ;;  %v7788_v27 = vld [vmem:[#allocation9 + $0x2b0] sm:$0xff]  ;;  %v7791_v15 = vld [vmem:[#allocation9 + $0x2b8] sm:$0xff] }
 0x3b2   :  { %v1940_v45 = vadd.f32 %v4173_v29, %v1939_v34 }
 0x3b3   :  { %2292 = vmatpush.msrb.mxu1 %v7782_v12  ;;  %2332 = vmatpush.msrb.mxu3 %v7785_v41 }
 0x3b4   :  { %v1944_v49 = vsel %vm1943_vm2, %v4173_v29, %v1940_v45  ;;  %v7801_v29 = vld [vmem:[#allocation9 + $0x298] sm:$0xff]  ;;  %v11149_v45 = vld [vmem:[#allocation86_spill] sm:$0xff] }
 0x3b5   :  { %v1949_v34 = vsel %vm1946_vm3, %v1948_v60, %v1944_v49  ;;  %2293 = vmatpush.msrb.mxu1 %v7788_v27  ;;  %2333 = vmatpush.msrb.mxu3 %v7791_v15  ;;  %v7797_v49 = vld [vmem:[#allocation9 + $0x290] sm:$0xff] }
 0x3b6   :  { %v1955_v16 = vmul.f32 %v4175_v51, %v1949_v34  ;;  %v11150_v60 = vld [vmem:[#allocation83_spill] sm:$0xff]  ;;  %v7940_v51 = vld [vmem:[#allocation12 + $0x260] sm:$0xff] }
 0x3b7   :  { %2294 = vmatpush.msrb.mxu1 %v7797_v49  ;;  %2334 = vmatpush.msrb.mxu3 %v7801_v29  ;;  %11151 = vst [vmem:[#allocation67_spill] sm:$0xff] %v7940_v51  ;;  %v7943_v34 = vld [vmem:[#allocation12 + $0x268] sm:$0xff] }
 0x3b8   :  { %1972 = vmatmul.f32.vlgmr.msra.gmra.mxu0 %v1955_v16  ;;  %2012 = vmatmul.f32.vlgmr.msra.gmra.mxu2 %v1955_v16  ;;  %11152 = vst [vmem:[#allocation64_spill] sm:$0xff] %v7943_v34 }
 0x3b9   :  { %2183 = vmatpush.msra.mxu0 %v7240_v0  ;;  %2219 = vmatmul.f32.vlgmr.msra.gmra.mxu1 %v1955_v16  ;;  %v7809_v0 = vld [vmem:[#allocation9 + $0x278] sm:$0xff] }
 0x3ba   :  { %2223 = vmatpush.msra.mxu2 %v7243_v53  ;;  %2259 = vmatmul.f32.vlgmr.msra.gmra.mxu3 %v1955_v16  ;;  %v7813_v53 = vld [vmem:[#allocation9 + $0x250] sm:$0xff] }
 0x3bb   :  { %2184 = vmatpush.msra.mxu0 %v7246_v7  ;;  %2295 = vmatpush.msrb.mxu1 %v7805_v39  ;;  %v7817_v7 = vld [vmem:[#allocation9 + $0x258] sm:$0xff] }
 0x3bc   :  { %2224 = vmatpush.msra.mxu2 %v7250_v23  ;;  %2335 = vmatpush.msrb.mxu3 %v7809_v0  ;;  %v7822_v23 = vld [vmem:[#allocation9 + $0x230] sm:$0xff] }
 0x3bd   :  { %2185 = vmatpush.msra.mxu0 %v7254_v6  ;;  %2296 = vmatpush.msrb.mxu1 %v7813_v53  ;;  %v7825_v6 = vld [vmem:[#allocation9 + $0x238] sm:$0xff] }
 0x3be   :  { %2225 = vmatpush.msra.mxu2 %v7258_v54  ;;  %2336 = vmatpush.msrb.mxu3 %v7817_v7  ;;  %v7830_v54 = vld [vmem:[#allocation9 + $0x210] sm:$0xff] }
 0x3bf   :  { %2186 = vmatpush.msra.mxu0 %v7262_v50  ;;  %2297 = vmatpush.msrb.mxu1 %v7822_v23  ;;  %v7833_v50 = vld [vmem:[#allocation9 + $0x218] sm:$0xff] }
 0x3c0   :  { %2226 = vmatpush.msra.mxu2 %v7266_v5  ;;  %2052 = vmatmul.f32.vlgmr.msrb.gmra.mxu0 %v1955_v16  ;;  %v7838_v5 = vld [vmem:[#allocation12 + $0x3e0] sm:$0xff] }
 0x3c1   :  { %2092 = vmatmul.f32.vlgmr.msrb.gmra.mxu2 %v1955_v16  ;;  %2187 = vmatpush.msra.mxu0 %v7269_v28  ;;  %v7841_v28 = vld [vmem:[#allocation12 + $0x3e8] sm:$0xff] }
 0x3c2   :  { %2227 = vmatpush.msra.mxu2 %v7272_v17  ;;  %2337 = vmatpush.msrb.mxu3 %v7825_v6  ;;  %v7846_v17 = vld [vmem:[#allocation12 + $0x3c0] sm:$0xff] }
 0x3c3   :  { %2188 = vmatpush.msra.mxu0 %v7276_v14  ;;  %2298 = vmatpush.msrb.mxu1 %v7830_v54  ;;  %v7849_v14 = vld [vmem:[#allocation12 + $0x3c8] sm:$0xff] }
 0x3c4   :  { %2228 = vmatpush.msra.mxu2 %v7280_v18  ;;  %2338 = vmatpush.msrb.mxu3 %v7833_v50  ;;  %v7854_v18 = vld [vmem:[#allocation12 + $0x3a0] sm:$0xff] }
 0x3c5   :  { %2299 = vmatmul.f32.vlgmr.msrb.gmra.mxu1 %v1955_v16  ;;  %2339 = vmatmul.f32.vlgmr.msrb.gmra.mxu3 %v1955_v16  ;;  %v7932_v16 = vld [vmem:[#allocation12 + $0x280] sm:$0xff] }
 0x3c6   :  { %2189 = vmatpush.msra.mxu0 %v7284_v25  ;;  %2229 = vmatpush.msra.mxu2 %v7287_v3  ;;  %v7857_v25 = vld [vmem:[#allocation12 + $0x3a8] sm:$0xff]  ;;  %v7862_v3 = vld [vmem:[#allocation12 + $0x380] sm:$0xff]  ;;  %11147 = vst [vmem:[#allocation65_spill] sm:$0xff] %v7932_v16 }
 0x3c7   :  { %2426 = vmatpush.msra.mxu1 %v7838_v5  ;;  %2466 = vmatpush.msra.mxu3 %v7841_v28 }
 0x3c8   :  { %2190 = vmatpush.msra.mxu0 %v7292_v62  ;;  %2230 = vmatpush.msra.mxu2 %v7295_v32  ;;  %v7865_v62 = vld [vmem:[#allocation12 + $0x388] sm:$0xff]  ;;  %v7870_v32 = vld [vmem:[#allocation12 + $0x360] sm:$0xff] }
 0x3c9   :  { %2427 = vmatpush.msra.mxu1 %v7846_v17  ;;  %2467 = vmatpush.msra.mxu3 %v7849_v14 }
 0x3ca   :  { %2191 = vmatpush.msra.mxu0 %v7300_v20  ;;  %2231 = vmatpush.msra.mxu2 %v7303_v47  ;;  %v7873_v20 = vld [vmem:[#allocation12 + $0x368] sm:$0xff]  ;;  %v7878_v47 = vld [vmem:[#allocation12 + $0x340] sm:$0xff] }
 0x3cb   :  { %2428 = vmatpush.msra.mxu1 %v7854_v18  ;;  %2468 = vmatpush.msra.mxu3 %v7857_v25  ;;  %11130 = vst [vmem:[#allocation48_spill] sm:$0xff] %v7873_v20 }
 0x3cc   :  { %2192 = vmatpush.msra.mxu0 %v7308_v46  ;;  %2232 = vmatpush.msra.mxu2 %v7311_v44  ;;  %11131 = vst [vmem:[#allocation45_spill] sm:$0xff] %v7878_v47  ;;  %v7881_v46 = vld [vmem:[#allocation12 + $0x348] sm:$0xff]  ;;  %v7886_v44 = vld [vmem:[#allocation12 + $0x320] sm:$0xff] }
 0x3cd   :  { %2429 = vmatpush.msra.mxu1 %v7862_v3  ;;  %2469 = vmatpush.msra.mxu3 %v7865_v62  ;;  %11132 = vst [vmem:[#allocation50_spill] sm:$0xff] %v7881_v46 }
 0x3ce   :  { %2193 = vmatpush.msra.mxu0 %v7316_v58  ;;  %2233 = vmatpush.msra.mxu2 %v7319_v40  ;;  %11133 = vst [vmem:[#allocation47_spill] sm:$0xff] %v7886_v44  ;;  %v7889_v58 = vld [vmem:[#allocation12 + $0x328] sm:$0xff]  ;;  %v7894_v40 = vld [vmem:[#allocation12 + $0x300] sm:$0xff] }
 0x3cf   :  { %2430 = vmatpush.msra.mxu1 %v7870_v32  ;;  %2470 = vmatpush.msra.mxu3 %v7873_v20  ;;  %11134 = vst [vmem:[#allocation52_spill] sm:$0xff] %v7889_v58 }
 0x3d0   :  { %2194 = vmatpush.msra.mxu0 %v7324_v37  ;;  %2234 = vmatpush.msra.mxu2 %v7327_v56  ;;  %11135 = vst [vmem:[#allocation49_spill] sm:$0xff] %v7894_v40  ;;  %v7897_v37 = vld [vmem:[#allocation12 + $0x308] sm:$0xff]  ;;  %v7902_v56 = vld [vmem:[#allocation6 + $0x8] sm:$0x3] }
 0x3d1   :  { %2431 = vmatpush.msra.mxu1 %v7878_v47  ;;  %2471 = vmatpush.msra.mxu3 %v7881_v46  ;;  %11136 = vst [vmem:[#allocation54_spill] sm:$0xff] %v7897_v37 }
 0x3d2   :  { %2195 = vmatpush.msra.mxu0 %v7332_v10  ;;  %2235 = vmatpush.msra.mxu2 %v7335_v57  ;;  %v7904_v10 = vld [vmem:[#allocation12 + $0x2e0] sm:$0xff]  ;;  %v7907_v57 = vld [vmem:[#allocation12 + $0x2e8] sm:$0xff] }
 0x3d3   :  { %2432 = vmatpush.msra.mxu1 %v7886_v44  ;;  %2472 = vmatpush.msra.mxu3 %v7889_v58  ;;  %11137 = vst [vmem:[#allocation51_spill] sm:$0xff] %v7904_v10 }
 0x3d4   :  { %2196 = vmatpush.msra.mxu0 %v7340_v11  ;;  %2236 = vmatpush.msra.mxu2 %v7343_v4  ;;  %11138 = vst [vmem:[#allocation56_spill] sm:$0xff] %v7907_v57  ;;  %v7916_v11 = vld [vmem:[#allocation12 + $0x2c0] sm:$0xff]  ;;  %v7919_v4 = vld [vmem:[#allocation12 + $0x2c8] sm:$0xff] }
 0x3d5   :  { %2433 = vmatpush.msra.mxu1 %v7894_v40  ;;  %2473 = vmatpush.msra.mxu3 %v7897_v37  ;;  %11139 = vst [vmem:[#allocation53_spill] sm:$0xff] %v7916_v11 }
 0x3d6   :  { %2197 = vmatpush.msra.mxu0 %v7348_v13  ;;  %2237 = vmatpush.msra.mxu2 %v7351_v31  ;;  %11140 = vst [vmem:[#allocation55_spill] sm:$0xff] %v7919_v4  ;;  %v11141_v13 = vld [vmem:[#allocation78_spill] sm:$0xff]  ;;  %v11142_v31 = vld [vmem:[#allocation80_spill] sm:$0xff] }
 0x3d7   :  { %2434 = vmatpush.msra.mxu1 %v7904_v10  ;;  %2474 = vmatpush.msra.mxu3 %v7907_v57 }
 0x3d8   :  { %2198 = vmatpush.msra.mxu0 %v7358_v59  ;;  %2238 = vmatpush.msra.mxu2 %v7361_v22  ;;  %v7924_v59 = vld [vmem:[#allocation12 + $0x2a0] sm:$0xff]  ;;  %v7927_v22 = vld [vmem:[#allocation12 + $0x2a8] sm:$0xff] }
 0x3d9   :  { %2199 = vmatmul.f32.vlgmr.msra.gmra.mxu0 %v7902_v56  ;;  %2239 = vmatmul.f32.vlgmr.msra.gmra.mxu2 %v7902_v56  ;;  %11143 = vst [vmem:[#allocation63_spill] sm:$0xff] %v7924_v59 }
 0x3da   :  { %2263 = vmatpush.msrb.mxu0 %v7366_v52  ;;  %2303 = vmatpush.msrb.mxu2 %v7369_v24  ;;  %11144 = vst [vmem:[#allocation59_spill] sm:$0xff] %v7927_v22  ;;  %v11145_v52 = vld [vmem:[#allocation84_spill] sm:$0xff]  ;;  %v11146_v24 = vld [vmem:[#allocation82_spill] sm:$0xff] }
 0x3db   :  { %2435 = vmatpush.msra.mxu1 %v7916_v11  ;;  %2475 = vmatpush.msra.mxu3 %v7919_v4 }
 0x3dc   :  { %2264 = vmatpush.msrb.mxu0 %v11141_v13  ;;  %2304 = vmatpush.msrb.mxu2 %v11142_v31  ;;  %v11153_v13 = vld [vmem:[#allocation88_spill] sm:$0xff]  ;;  %v11154_v31 = vld [vmem:[#allocation57_spill] sm:$0xff] }
 0x3dd   :  { %2436 = vmatpush.msra.mxu1 %v7924_v59  ;;  %2476 = vmatpush.msra.mxu3 %v7927_v22 }
 0x3de   :  { %2265 = vmatpush.msrb.mxu0 %v11145_v52  ;;  %2305 = vmatpush.msrb.mxu2 %v11146_v24  ;;  %v7948_v52 = vld [vmem:[#allocation12 + $0x240] sm:$0xff]  ;;  %v7951_v24 = vld [vmem:[#allocation12 + $0x248] sm:$0xff] }
 0x3df   :  { %2437 = vmatpush.msra.mxu1 %v7932_v16  ;;  %2477 = vmatpush.msra.mxu3 %v7935_v26  ;;  %11155 = vst [vmem:[#allocation69_spill] sm:$0xff] %v7948_v52  ;;  %v8273_v26 = vld [vmem:[#allocation12 + $0x10] sm:$0xff] }
 0x3e0   :  { %2266 = vmatpush.msrb.mxu0 %v11149_v45  ;;  %2306 = vmatpush.msrb.mxu2 %v11150_v60  ;;  %11156 = vst [vmem:[#allocation66_spill] sm:$0xff] %v7951_v24  ;;  %v11157_v45 = vld [vmem:[#allocation58_spill] sm:$0xff]  ;;  %v11158_v60 = vld [vmem:[#allocation85_spill] sm:$0xff] }
 0x3e1   :  { %2438 = vmatpush.msra.mxu1 %v7940_v51  ;;  %2478 = vmatpush.msra.mxu3 %v7943_v34  ;;  %v7956_v51 = vld [vmem:[#allocation12 + $0x220] sm:$0xff]  ;;  %v7959_v34 = vld [vmem:[#allocation12 + $0x228] sm:$0xff] }
 0x3e2   :  { %2267 = vmatpush.msrb.mxu0 %v11153_v13  ;;  %2307 = vmatpush.msrb.mxu2 %v11154_v31  ;;  %11159 = vst [vmem:[#allocation71_spill] sm:$0xff] %v7956_v51  ;;  %v11161_v13 = vld [vmem:[#allocation60_spill] sm:$0xff]  ;;  %v11162_v31 = vld [vmem:[#allocation89_spill] sm:$0xff] }
 0x3e3   :  { %2439 = vmatpush.msra.mxu1 %v7948_v52  ;;  %2479 = vmatpush.msra.mxu3 %v7951_v24  ;;  %11160 = vst [vmem:[#allocation68_spill] sm:$0xff] %v7959_v34  ;;  %v7964_v52 = vld [vmem:[#allocation12 + $0x200] sm:$0xff]  ;;  %v7967_v24 = vld [vmem:[#allocation12 + $0x208] sm:$0xff] }
 0x3e4   :  { %2268 = vmatpush.msrb.mxu0 %v11157_v45  ;;  %2308 = vmatpush.msrb.mxu2 %v11158_v60  ;;  %11163 = vst [vmem:[#allocation73_spill] sm:$0xff] %v7964_v52  ;;  %v11165_v45 = vld [vmem:[#allocation61_spill] sm:$0xff]  ;;  %v11166_v60 = vld [vmem:[#allocation87_spill] sm:$0xff] }
 0x3e5   :  { %2440 = vmatpush.msra.mxu1 %v7956_v51  ;;  %2480 = vmatpush.msra.mxu3 %v7959_v34  ;;  %11164 = vst [vmem:[#allocation70_spill] sm:$0xff] %v7967_v24  ;;  %v7972_v51 = vld [vmem:[#allocation12 + $0x3f0] sm:$0xff]  ;;  %v7975_v34 = vld [vmem:[#allocation12 + $0x3f8] sm:$0xff] }
 0x3e6   :  { %2269 = vmatpush.msrb.mxu0 %v11161_v13  ;;  %2309 = vmatpush.msrb.mxu2 %v11162_v31  ;;  %11167 = vst [vmem:[#allocation75_spill] sm:$0xff] %v7972_v51  ;;  %v11169_v13 = vld [vmem:[#allocation90_spill] sm:$0xff]  ;;  %v11170_v31 = vld [vmem:[#allocation92_spill] sm:$0xff] }
 0x3e7   :  { %2441 = vmatpush.msra.mxu1 %v7964_v52  ;;  %2481 = vmatpush.msra.mxu3 %v7967_v24  ;;  %11168 = vst [vmem:[#allocation72_spill] sm:$0xff] %v7975_v34  ;;  %v7980_v52 = vld [vmem:[#allocation12 + $0x3d0] sm:$0xff]  ;;  %v7983_v24 = vld [vmem:[#allocation12 + $0x3d8] sm:$0xff] }
 0x3e8   :  { %2270 = vmatpush.msrb.mxu0 %v11165_v45  ;;  %2310 = vmatpush.msrb.mxu2 %v11166_v60  ;;  %11171 = vst [vmem:[#allocation77_spill] sm:$0xff] %v7980_v52  ;;  %v11173_v45 = vld [vmem:[#allocation91_spill] sm:$0xff] }
 0x3e9   :  { %2506 = vmatpush.msrb.mxu1 %v7972_v51  ;;  %2546 = vmatpush.msrb.mxu3 %v7975_v34  ;;  %11172 = vst [vmem:[#allocation119_spill] sm:$0xff] %v7983_v24  ;;  %v11174_v60 = vld [vmem:[#allocation95_spill] sm:$0xff]  ;;  %v7991_v34 = vld [vmem:[#allocation12 + $0x3b8] sm:$0xff] }
 0x3ea   :  { %2271 = vmatpush.msrb.mxu0 %v11169_v13  ;;  %2311 = vmatpush.msrb.mxu2 %v11170_v31  ;;  %v7988_v51 = vld [vmem:[#allocation12 + $0x3b0] sm:$0xff]  ;;  %11176 = vst [vmem:[#allocation121_spill] sm:$0xff] %v7991_v34  ;;  %v11177_v13 = vld [vmem:[#allocation93_spill] sm:$0xff] }
 0x3eb   :  { %2507 = vmatpush.msrb.mxu1 %v7980_v52  ;;  %2547 = vmatpush.msrb.mxu3 %v7983_v24  ;;  %11175 = vst [vmem:[#allocation120_spill] sm:$0xff] %v7988_v51  ;;  %v11178_v31 = vld [vmem:[#allocation96_spill] sm:$0xff] }
 0x3ec   :  { %2272 = vmatpush.msrb.mxu0 %v11173_v45  ;;  %2312 = vmatpush.msrb.mxu2 %v11174_v60  ;;  %v7996_v52 = vld [vmem:[#allocation12 + $0x390] sm:$0xff]  ;;  %v7999_v24 = vld [vmem:[#allocation12 + $0x398] sm:$0xff]  ;;  %v11181_v45 = vld [vmem:[#allocation94_spill] sm:$0xff] }
 0x3ed   :  { %2508 = vmatpush.msrb.mxu1 %v7988_v51  ;;  %2548 = vmatpush.msrb.mxu3 %v7991_v34  ;;  %11179 = vst [vmem:[#allocation122_spill] sm:$0xff] %v7996_v52  ;;  %v11182_v60 = vld [vmem:[#allocation97_spill] sm:$0xff]  ;;  %v8004_v51 = vld [vmem:[#allocation12 + $0x370] sm:$0xff] }
 0x3ee   :  { %2273 = vmatpush.msrb.mxu0 %v11177_v13  ;;  %2313 = vmatpush.msrb.mxu2 %v11178_v31  ;;  %11180 = vst [vmem:[#allocation123_spill] sm:$0xff] %v7999_v24  ;;  %v8007_v34 = vld [vmem:[#allocation12 + $0x378] sm:$0xff]  ;;  %v11185_v13 = vld [vmem:[#allocation99_spill] sm:$0xff]  ;;  %v11186_v31 = vld [vmem:[#allocation98_spill] sm:$0xff] }
 0x3ef   :  { %2509 = vmatpush.msrb.mxu1 %v7996_v52  ;;  %2549 = vmatpush.msrb.mxu3 %v7999_v24  ;;  %11183 = vst [vmem:[#allocation124_spill] sm:$0xff] %v8004_v51  ;;  %v8012_v52 = vld [vmem:[#allocation12 + $0x350] sm:$0xff]  ;;  %v8015_v24 = vld [vmem:[#allocation12 + $0x358] sm:$0xff] }
 0x3f0   :  { %2274 = vmatpush.msrb.mxu0 %v11181_v45  ;;  %2314 = vmatpush.msrb.mxu2 %v11182_v60  ;;  %11184 = vst [vmem:[#allocation125_spill] sm:$0xff] %v8007_v34  ;;  %v11189_v45 = vld [vmem:[#allocation100_spill] sm:$0xff]  ;;  %v11190_v60 = vld [vmem:[#allocation101_spill] sm:$0xff] }
 0x3f1   :  { %2510 = vmatpush.msrb.mxu1 %v8004_v51  ;;  %2550 = vmatpush.msrb.mxu3 %v8007_v34  ;;  %11187 = vst [vmem:[#allocation126_spill] sm:$0xff] %v8012_v52  ;;  %v8020_v51 = vld [vmem:[#allocation12 + $0x330] sm:$0xff]  ;;  %v8023_v34 = vld [vmem:[#allocation12 + $0x338] sm:$0xff] }
 0x3f2   :  { %2275 = vmatpush.msrb.mxu0 %v11185_v13  ;;  %2315 = vmatpush.msrb.mxu2 %v11186_v31  ;;  %11188 = vst [vmem:[#allocation127_spill] sm:$0xff] %v8015_v24  ;;  %v11193_v13 = vld [vmem:[#allocation102_spill] sm:$0xff]  ;;  %v11194_v31 = vld [vmem:[#allocation103_spill] sm:$0xff] }
 0x3f3   :  { %2511 = vmatpush.msrb.mxu1 %v8012_v52  ;;  %2551 = vmatpush.msrb.mxu3 %v8015_v24  ;;  %11191 = vst [vmem:[#allocation128_spill] sm:$0xff] %v8020_v51  ;;  %v8028_v52 = vld [vmem:[#allocation12 + $0x310] sm:$0xff]  ;;  %v8031_v24 = vld [vmem:[#allocation12 + $0x318] sm:$0xff] }
 0x3f4   :  { %2276 = vmatpush.msrb.mxu0 %v11189_v45  ;;  %2316 = vmatpush.msrb.mxu2 %v11190_v60  ;;  %11192 = vst [vmem:[#allocation129_spill] sm:$0xff] %v8023_v34  ;;  %v11197_v45 = vld [vmem:[#allocation104_spill] sm:$0xff]  ;;  %v11198_v60 = vld [vmem:[#allocation105_spill] sm:$0xff] }
 0x3f5   :  { %2512 = vmatpush.msrb.mxu1 %v8020_v51  ;;  %2552 = vmatpush.msrb.mxu3 %v8023_v34  ;;  %11195 = vst [vmem:[#allocation130_spill] sm:$0xff] %v8028_v52  ;;  %v8038_v34 = vld [vmem:[#allocation12 + $0x2f0] sm:$0xff] }
 0x3f6   :  { %2277 = vmatpush.msrb.mxu0 %v11193_v13  ;;  %2317 = vmatpush.msrb.mxu2 %v11194_v31  ;;  %11196 = vst [vmem:[#allocation131_spill] sm:$0xff] %v8031_v24  ;;  %v8041_v13 = vld [vmem:[#allocation12 + $0x2f8] sm:$0xff]  ;;  %v8044_v31 = vld [vmem:[#allocation12 + $0x1e0] sm:$0xff]  ;;  %v8267_v51 = vld [vmem:[#allocation12 + $0x30] sm:$0xff] }
 0x3f7   :  { %2513 = vmatpush.msrb.mxu1 %v8028_v52  ;;  %2553 = vmatpush.msrb.mxu3 %v8031_v24  ;;  %11199 = vst [vmem:[#allocation132_spill] sm:$0xff] %v8038_v34  ;;  %v8047_v24 = vld [vmem:[#allocation12 + $0x1e8] sm:$0xff] }
 0x3f8   :  { %2278 = vmatpush.msrb.mxu0 %v11197_v45  ;;  %2318 = vmatpush.msrb.mxu2 %v11198_v60  ;;  %11200 = vst [vmem:[#allocation133_spill] sm:$0xff] %v8041_v13  ;;  %v8050_v45 = vld [vmem:[#allocation12 + $0x2d0] sm:$0xff]  ;;  %v8056_v60 = vld [vmem:[#allocation12 + $0x1c0] sm:$0xff] }
 0x3f9   :  { %2279 = vmatmul.f32.vlgmr.msrb.gmra.mxu0 %v7902_v56  ;;  %2319 = vmatmul.f32.vlgmr.msrb.gmra.mxu2 %v7902_v56  ;;  %11201 = vst [vmem:[#allocation134_spill] sm:$0xff] %v8044_v31  ;;  %v8053_v56 = vld [vmem:[#allocation12 + $0x2d8] sm:$0xff] }
 0x3fa   :  { %2514 = vmatpush.msrb.mxu1 %v8038_v34  ;;  %2554 = vmatpush.msrb.mxu3 %v8041_v13  ;;  %11202 = vst [vmem:[#allocation135_spill] sm:$0xff] %v8047_v24  ;;  %v8059_v13 = vld [vmem:[#allocation12 + $0x1c8] sm:$0xff]  ;;  %v8260_v34 = vld [vmem:[#allocation12 + $0x50] sm:$0xff] }
 0x3fb   :  { %2406 = vmatpush.msra.mxu0 %v8044_v31  ;;  %2446 = vmatpush.msra.mxu2 %v8047_v24  ;;  %11203 = vst [vmem:[#allocation136_spill] sm:$0xff] %v8050_v45  ;;  %v8062_v31 = vld [vmem:[#allocation12 + $0x2b0] sm:$0xff]  ;;  %v8065_v24 = vld [vmem:[#allocation12 + $0x2b8] sm:$0xff] }
 0x3fc   :  { %2515 = vmatpush.msrb.mxu1 %v8050_v45  ;;  %11204 = vst [vmem:[#allocation137_spill] sm:$0xff] %v8053_v56  ;;  %2555 = vmatpush.msrb.mxu3 %v8053_v56  ;;  %v8068_v45 = vld [vmem:[#allocation12 + $0x1a0] sm:$0xff]  ;;  %v8071_v56 = vld [vmem:[#allocation12 + $0x1a8] sm:$0xff] }
 0x3fd   :  { %11205 = vst [vmem:[#allocation138_spill] sm:$0xff] %v8056_v60  ;;  %2407 = vmatpush.msra.mxu0 %v8056_v60  ;;  %2447 = vmatpush.msra.mxu2 %v8059_v13  ;;  %v8074_v60 = vld [vmem:[#allocation12 + $0x290] sm:$0xff] }
 0x3fe   :  { %11206 = vst [vmem:[#allocation139_spill] sm:$0xff] %v8059_v13  ;;  %2516 = vmatpush.msrb.mxu1 %v8062_v31  ;;  %2556 = vmatpush.msrb.mxu3 %v8065_v24  ;;  %v8077_v13 = vld [vmem:[#allocation12 + $0x298] sm:$0xff] }
 0x3ff   :  { %11207 = vst [vmem:[#allocation140_spill] sm:$0xff] %v8062_v31  ;;  %2408 = vmatpush.msra.mxu0 %v8068_v45  ;;  %2448 = vmatpush.msra.mxu2 %v8071_v56  ;;  %v8080_v31 = vld [vmem:[#allocation12 + $0x180] sm:$0xff] }
 0x400   :  { %11208 = vst [vmem:[#allocation141_spill] sm:$0xff] %v8065_v24  ;;  %2517 = vmatpush.msrb.mxu1 %v8074_v60  ;;  %2557 = vmatpush.msrb.mxu3 %v8077_v13  ;;  %v8083_v24 = vld [vmem:[#allocation12 + $0x188] sm:$0xff] }
 0x401   :  { %11209 = vst [vmem:[#allocation142_spill] sm:$0xff] %v8068_v45  ;;  %2409 = vmatpush.msra.mxu0 %v8080_v31  ;;  %2449 = vmatpush.msra.mxu2 %v8083_v24  ;;  %v8086_v45 = vld [vmem:[#allocation12 + $0x270] sm:$0xff] }
 0x402   :  { %11210 = vst [vmem:[#allocation143_spill] sm:$0xff] %v8071_v56  ;;  %2518 = vmatpush.msrb.mxu1 %v8086_v45  ;;  %v8089_v56 = vld [vmem:[#allocation12 + $0x278] sm:$0xff] }
 0x403   :  { %11211 = vst [vmem:[#allocation144_spill] sm:$0xff] %v8074_v60  ;;  %2558 = vmatpush.msrb.mxu3 %v8089_v56  ;;  %v8092_v60 = vld [vmem:[#allocation12 + $0x160] sm:$0xff]  ;;  %v2033_v22 = vpop.f32.mrf.mxu3 }
 0x404   :  { %11212 = vst [vmem:[#allocation145_spill] sm:$0xff] %v8077_v13  ;;  %2410 = vmatpush.msra.mxu0 %v8092_v60  ;;  %v8095_v13 = vld [vmem:[#allocation12 + $0x168] sm:$0xff] }
 0x405   :  { %11213 = vst [vmem:[#allocation146_spill] sm:$0xff] %v8080_v31  ;;  %2450 = vmatpush.msra.mxu2 %v8095_v13  ;;  %v8098_v31 = vld [vmem:[#allocation12 + $0x250] sm:$0xff] }
 0x406   :  { %11214 = vst [vmem:[#allocation147_spill] sm:$0xff] %v8083_v24  ;;  %2519 = vmatpush.msrb.mxu1 %v8098_v31  ;;  %v8101_v24 = vld [vmem:[#allocation12 + $0x258] sm:$0xff] }
 0x407   :  { %11215 = vst [vmem:[#allocation148_spill] sm:$0xff] %v8086_v45  ;;  %2559 = vmatpush.msrb.mxu3 %v8101_v24  ;;  %v8104_v45 = vld [vmem:[#allocation12 + $0x140] sm:$0xff] }
 0x408   :  { %11216 = vst [vmem:[#allocation149_spill] sm:$0xff] %v8089_v56  ;;  %2411 = vmatpush.msra.mxu0 %v8104_v45  ;;  %v8107_v56 = vld [vmem:[#allocation12 + $0x148] sm:$0xff] }
 0x409   :  { %11217 = vst [vmem:[#allocation150_spill] sm:$0xff] %v8092_v60  ;;  %2451 = vmatpush.msra.mxu2 %v8107_v56  ;;  %v8110_v60 = vld [vmem:[#allocation12 + $0x230] sm:$0xff] }
 0x40a   :  { %11218 = vst [vmem:[#allocation151_spill] sm:$0xff] %v8095_v13  ;;  %2520 = vmatpush.msrb.mxu1 %v8110_v60  ;;  %v8113_v13 = vld [vmem:[#allocation12 + $0x238] sm:$0xff] }
 0x40b   :  { %11219 = vst [vmem:[#allocation152_spill] sm:$0xff] %v8098_v31  ;;  %2560 = vmatpush.msrb.mxu3 %v8113_v13  ;;  %v8116_v31 = vld [vmem:[#allocation12 + $0x120] sm:$0xff] }
 0x40c   :  { %11220 = vst [vmem:[#allocation153_spill] sm:$0xff] %v8101_v24  ;;  %2412 = vmatpush.msra.mxu0 %v8116_v31  ;;  %v8119_v24 = vld [vmem:[#allocation12 + $0x128] sm:$0xff] }
 0x40d   :  { %11221 = vst [vmem:[#allocation154_spill] sm:$0xff] %v8104_v45  ;;  %2452 = vmatpush.msra.mxu2 %v8119_v24  ;;  %v8122_v45 = vld [vmem:[#allocation12 + $0x210] sm:$0xff] }
 0x40e   :  { %11222 = vst [vmem:[#allocation155_spill] sm:$0xff] %v8107_v56  ;;  %2521 = vmatpush.msrb.mxu1 %v8122_v45  ;;  %v8125_v56 = vld [vmem:[#allocation12 + $0x218] sm:$0xff] }
 0x40f   :  { %11223 = vst [vmem:[#allocation156_spill] sm:$0xff] %v8110_v60  ;;  %2561 = vmatpush.msrb.mxu3 %v8125_v56  ;;  %v8128_v60 = vld [vmem:[#allocation12 + $0x100] sm:$0xff] }
 0x410   :  { %11224 = vst [vmem:[#allocation157_spill] sm:$0xff] %v8113_v13  ;;  %2413 = vmatpush.msra.mxu0 %v8128_v60  ;;  %v8131_v13 = vld [vmem:[#allocation12 + $0x108] sm:$0xff] }
 0x411   :  { %11225 = vst [vmem:[#allocation158_spill] sm:$0xff] %v8116_v31  ;;  %2453 = vmatpush.msra.mxu2 %v8131_v13  ;;  %v8134_v31 = vld [vmem:[#allocation12 + $0xe0] sm:$0xff] }
 0x412   :  { %11226 = vst [vmem:[#allocation159_spill] sm:$0xff] %v8119_v24  ;;  %2414 = vmatpush.msra.mxu0 %v8134_v31  ;;  %v8137_v24 = vld [vmem:[#allocation12 + $0xe8] sm:$0xff] }
 0x413   :  { %11227 = vst [vmem:[#allocation160_spill] sm:$0xff] %v8122_v45  ;;  %2454 = vmatpush.msra.mxu2 %v8137_v24  ;;  %v8140_v45 = vld [vmem:[#allocation12 + $0xc0] sm:$0xff] }
 0x414   :  { %11228 = vst [vmem:[#allocation161_spill] sm:$0xff] %v8125_v56  ;;  %2415 = vmatpush.msra.mxu0 %v8140_v45  ;;  %v8143_v56 = vld [vmem:[#allocation12 + $0xc8] sm:$0xff] }
 0x415   :  { %11229 = vst [vmem:[#allocation162_spill] sm:$0xff] %v8128_v60  ;;  %2455 = vmatpush.msra.mxu2 %v8143_v56  ;;  %v8146_v60 = vld [vmem:[#allocation12 + $0xa0] sm:$0xff] }
 0x416   :  { %11230 = vst [vmem:[#allocation163_spill] sm:$0xff] %v8131_v13  ;;  %2416 = vmatpush.msra.mxu0 %v8146_v60  ;;  %v8149_v13 = vld [vmem:[#allocation12 + $0xa8] sm:$0xff] }
 0x417   :  { %11231 = vst [vmem:[#allocation164_spill] sm:$0xff] %v8134_v31  ;;  %2456 = vmatpush.msra.mxu2 %v8149_v13  ;;  %v8152_v31 = vld [vmem:[#allocation12 + $0x80] sm:$0xff] }
 0x418   :  { %11232 = vst [vmem:[#allocation165_spill] sm:$0xff] %v8137_v24  ;;  %2417 = vmatpush.msra.mxu0 %v8152_v31  ;;  %v8155_v24 = vld [vmem:[#allocation12 + $0x88] sm:$0xff] }
 0x419   :  { %11233 = vst [vmem:[#allocation166_spill] sm:$0xff] %v8140_v45  ;;  %2457 = vmatpush.msra.mxu2 %v8155_v24  ;;  %v8158_v45 = vld [vmem:[#allocation12 + $0x60] sm:$0xff] }
 0x41a   :  { %11234 = vst [vmem:[#allocation167_spill] sm:$0xff] %v8143_v56  ;;  %2418 = vmatpush.msra.mxu0 %v8158_v45  ;;  %v8161_v56 = vld [vmem:[#allocation12 + $0x68] sm:$0xff] }
 0x41b   :  { %11235 = vst [vmem:[#allocation168_spill] sm:$0xff] %v8146_v60  ;;  %2458 = vmatpush.msra.mxu2 %v8161_v56  ;;  %v8164_v60 = vld [vmem:[#allocation12 + $0x40] sm:$0xff] }
 0x41c   :  { %11236 = vst [vmem:[#allocation169_spill] sm:$0xff] %v8149_v13  ;;  %2419 = vmatpush.msra.mxu0 %v8164_v60  ;;  %v8167_v13 = vld [vmem:[#allocation12 + $0x48] sm:$0xff] }
 0x41d   :  { %11237 = vst [vmem:[#allocation170_spill] sm:$0xff] %v8152_v31  ;;  %2459 = vmatpush.msra.mxu2 %v8167_v13  ;;  %v8170_v31 = vld [vmem:[#allocation12 + $0x20] sm:$0xff] }
 0x41e   :  { %11238 = vst [vmem:[#allocation171_spill] sm:$0xff] %v8155_v24  ;;  %2420 = vmatpush.msra.mxu0 %v8170_v31  ;;  %v8173_v24 = vld [vmem:[#allocation12 + $0x28] sm:$0xff] }
 0x41f   :  { %11239 = vst [vmem:[#allocation172_spill] sm:$0xff] %v8158_v45  ;;  %2460 = vmatpush.msra.mxu2 %v8173_v24  ;;  %v8176_v45 = vld [vmem:[#allocation12] sm:$0xff] }
 0x420   :  { %11240 = vst [vmem:[#allocation173_spill] sm:$0xff] %v8161_v56  ;;  %2421 = vmatpush.msra.mxu0 %v8176_v45  ;;  %v8179_v56 = vld [vmem:[#allocation12 + $0x8] sm:$0xff] }
 0x421   :  { %11241 = vst [vmem:[#allocation174_spill] sm:$0xff] %v8164_v60  ;;  %2461 = vmatpush.msra.mxu2 %v8179_v56  ;;  %v8182_v60 = vld [vmem:[#allocation12 + $0x1f0] sm:$0xff] }
 0x422   :  { %11242 = vst [vmem:[#allocation175_spill] sm:$0xff] %v8167_v13  ;;  %2486 = vmatpush.msrb.mxu0 %v8182_v60  ;;  %v8185_v13 = vld [vmem:[#allocation12 + $0x1f8] sm:$0xff] }
 0x423   :  { %11243 = vst [vmem:[#allocation176_spill] sm:$0xff] %v8170_v31  ;;  %2526 = vmatpush.msrb.mxu2 %v8185_v13  ;;  %v8188_v31 = vld [vmem:[#allocation12 + $0x1d0] sm:$0xff] }
 0x424   :  { %11244 = vst [vmem:[#allocation177_spill] sm:$0xff] %v8173_v24  ;;  %2487 = vmatpush.msrb.mxu0 %v8188_v31  ;;  %v8191_v24 = vld [vmem:[#allocation12 + $0x1d8] sm:$0xff] }
 0x425   :  { %11245 = vst [vmem:[#allocation178_spill] sm:$0xff] %v8176_v45  ;;  %2527 = vmatpush.msrb.mxu2 %v8191_v24  ;;  %v8194_v45 = vld [vmem:[#allocation12 + $0x1b0] sm:$0xff] }
 0x426   :  { %11246 = vst [vmem:[#allocation179_spill] sm:$0xff] %v8179_v56  ;;  %2488 = vmatpush.msrb.mxu0 %v8194_v45  ;;  %v8197_v56 = vld [vmem:[#allocation12 + $0x1b8] sm:$0xff] }
 0x427   :  { %11247 = vst [vmem:[#allocation180_spill] sm:$0xff] %v8182_v60  ;;  %2528 = vmatpush.msrb.mxu2 %v8197_v56  ;;  %v8200_v60 = vld [vmem:[#allocation12 + $0x190] sm:$0xff] }
 0x428   :  { %11248 = vst [vmem:[#allocation181_spill] sm:$0xff] %v8185_v13  ;;  %2489 = vmatpush.msrb.mxu0 %v8200_v60  ;;  %v8203_v13 = vld [vmem:[#allocation12 + $0x198] sm:$0xff] }
 0x429   :  { %11249 = vst [vmem:[#allocation182_spill] sm:$0xff] %v8188_v31  ;;  %2529 = vmatpush.msrb.mxu2 %v8203_v13  ;;  %v8206_v31 = vld [vmem:[#allocation12 + $0x170] sm:$0xff] }
 0x42a   :  { %11250 = vst [vmem:[#allocation183_spill] sm:$0xff] %v8191_v24  ;;  %2490 = vmatpush.msrb.mxu0 %v8206_v31  ;;  %v8209_v24 = vld [vmem:[#allocation12 + $0x178] sm:$0xff] }
 0x42b   :  { %11251 = vst [vmem:[#allocation78_spill] sm:$0xff] %v8194_v45  ;;  %2530 = vmatpush.msrb.mxu2 %v8209_v24  ;;  %v8212_v45 = vld [vmem:[#allocation12 + $0x150] sm:$0xff] }
 0x42c   :  { %11252 = vst [vmem:[#allocation80_spill] sm:$0xff] %v8197_v56  ;;  %2491 = vmatpush.msrb.mxu0 %v8212_v45  ;;  %v8215_v56 = vld [vmem:[#allocation12 + $0x158] sm:$0xff] }
 0x42d   :  { %11253 = vst [vmem:[#allocation84_spill] sm:$0xff] %v8200_v60  ;;  %2531 = vmatpush.msrb.mxu2 %v8215_v56  ;;  %v8218_v60 = vld [vmem:[#allocation12 + $0x130] sm:$0xff] }
 0x42e   :  { %11254 = vst [vmem:[#allocation82_spill] sm:$0xff] %v8203_v13  ;;  %2492 = vmatpush.msrb.mxu0 %v8218_v60  ;;  %v8221_v13 = vld [vmem:[#allocation12 + $0x138] sm:$0xff] }
 0x42f   :  { %11255 = vst [vmem:[#allocation86_spill] sm:$0xff] %v8206_v31  ;;  %2532 = vmatpush.msrb.mxu2 %v8221_v13  ;;  %v8224_v31 = vld [vmem:[#allocation12 + $0x110] sm:$0xff] }
 0x430   :  { %11256 = vst [vmem:[#allocation83_spill] sm:$0xff] %v8209_v24  ;;  %2493 = vmatpush.msrb.mxu0 %v8224_v31  ;;  %v8227_v24 = vld [vmem:[#allocation12 + $0x118] sm:$0xff] }
 0x431   :  { %11257 = vst [vmem:[#allocation88_spill] sm:$0xff] %v8212_v45  ;;  %2533 = vmatpush.msrb.mxu2 %v8227_v24  ;;  %v8230_v45 = vld [vmem:[#allocation12 + $0xf0] sm:$0xff] }
 0x432   :  { %11258 = vst [vmem:[#allocation57_spill] sm:$0xff] %v8215_v56  ;;  %2494 = vmatpush.msrb.mxu0 %v8230_v45  ;;  %v8233_v56 = vld [vmem:[#allocation12 + $0xf8] sm:$0xff] }
 0x433   :  { %11259 = vst [vmem:[#allocation58_spill] sm:$0xff] %v8218_v60  ;;  %2534 = vmatpush.msrb.mxu2 %v8233_v56  ;;  %v8236_v60 = vld [vmem:[#allocation12 + $0xd0] sm:$0xff] }
 0x434   :  { %11260 = vst [vmem:[#allocation85_spill] sm:$0xff] %v8221_v13  ;;  %2495 = vmatpush.msrb.mxu0 %v8236_v60  ;;  %v8239_v13 = vld [vmem:[#allocation12 + $0xd8] sm:$0xff] }
 0x435   :  { %11261 = vst [vmem:[#allocation60_spill] sm:$0xff] %v8224_v31  ;;  %2535 = vmatpush.msrb.mxu2 %v8239_v13  ;;  %v8242_v31 = vld [vmem:[#allocation12 + $0xb0] sm:$0xff] }
 0x436   :  { %11262 = vst [vmem:[#allocation89_spill] sm:$0xff] %v8227_v24  ;;  %2496 = vmatpush.msrb.mxu0 %v8242_v31  ;;  %v8245_v24 = vld [vmem:[#allocation12 + $0xb8] sm:$0xff] }
 0x437   :  { %11263 = vst [vmem:[#allocation61_spill] sm:$0xff] %v8230_v45  ;;  %2536 = vmatpush.msrb.mxu2 %v8245_v24  ;;  %v8248_v45 = vld [vmem:[#allocation12 + $0x90] sm:$0xff] }
 0x438   :  { %11264 = vst [vmem:[#allocation87_spill] sm:$0xff] %v8233_v56  ;;  %2497 = vmatpush.msrb.mxu0 %v8248_v45  ;;  %v8251_v56 = vld [vmem:[#allocation12 + $0x98] sm:$0xff] }
 0x439   :  { %11265 = vst [vmem:[#allocation90_spill] sm:$0xff] %v8236_v60  ;;  %2537 = vmatpush.msrb.mxu2 %v8251_v56  ;;  %v8254_v60 = vld [vmem:[#allocation12 + $0x70] sm:$0xff] }
 0x43a   :  { %11266 = vst [vmem:[#allocation92_spill] sm:$0xff] %v8239_v13  ;;  %2498 = vmatpush.msrb.mxu0 %v8254_v60  ;;  %v8257_v13 = vld [vmem:[#allocation12 + $0x78] sm:$0xff] }
 0x43b   :  { %11267 = vst [vmem:[#allocation91_spill] sm:$0xff] %v8242_v31  ;;  %2538 = vmatpush.msrb.mxu2 %v8257_v13  ;;  %v1973_v31 = vpop.f32.mrf.mxu0 }
 0x43c   :  { %11268 = vst [vmem:[#allocation95_spill] sm:$0xff] %v8245_v24  ;;  %2499 = vmatpush.msrb.mxu0 %v8260_v34  ;;  %v8263_v24 = vld [vmem:[#allocation12 + $0x58] sm:$0xff] }
 0x43d   :  { %11269 = vst [vmem:[#allocation93_spill] sm:$0xff] %v8248_v45  ;;  %2539 = vmatpush.msrb.mxu2 %v8263_v24  ;;  %v11275_v45 = vld [vmem:[#allocation74_spill] sm:$0xff] }
 0x43e   :  { %11270 = vst [vmem:[#allocation96_spill] sm:$0xff] %v8251_v56  ;;  %v1974_v52 = vadd.f32 %v1973_v31, %v11275_v45  ;;  %v1993_v56 = vpop.f32.mrf.mxu1  ;;  %2500 = vmatpush.msrb.mxu0 %v8267_v51  ;;  %v2013_v31 = vpop.f32.mrf.mxu2  ;;  %v11280_v45 = vld [vmem:[#allocation79_spill] sm:$0xff] }
 0x43f   :  { %11271 = vst [vmem:[#allocation94_spill] sm:$0xff] %v8254_v60  ;;  %v8270_v60 = vld [vmem:[#allocation12 + $0x38] sm:$0xff]  ;;  %v2014_v16 = vadd.f32 %v2013_v31, %v11280_v45 }
 0x440   :  { %11272 = vst [vmem:[#allocation97_spill] sm:$0xff] %v8257_v13  ;;  %2540 = vmatpush.msrb.mxu2 %v8270_v60  ;;  %v1994_v13 = vadd.f32 %v1993_v56, %v1974_v52  ;;  %2501 = vmatpush.msrb.mxu0 %v8273_v26  ;;  %v11281_v56 = vld [vmem:[#allocation76_spill] sm:$0xff]  ;;  %v11282_v31 = vld [vmem:[#allocation81_spill] sm:$0xff] }
 0x441   :  { %11273 = vst [vmem:[#allocation99_spill] sm:$0xff] %v8260_v34  ;;  %v8276_v34 = vld [vmem:[#allocation12 + $0x18] sm:$0xff] }
 0x442   :  { %11274 = vst [vmem:[#allocation98_spill] sm:$0xff] %v8263_v24  ;;  %2541 = vmatpush.msrb.mxu2 %v8276_v34  ;;  %v4027_v24 = vmul.f32 -1.442695, %v1994_v13 }
 0x443   :  { %11276 = vst [vmem:[#allocation100_spill] sm:$0xff] %v8267_v51  ;;  %v2034_v51 = vadd.f32 %v2033_v22, %v2014_v16 }
 0x444   :  { %11277 = vst [vmem:[#allocation101_spill] sm:$0xff] %v8270_v60  ;;  %4176 = vpow2.f32 %v4027_v24 }
 0x445   :  { %11278 = vst [vmem:[#allocation102_spill] sm:$0xff] %v8273_v26  ;;  %v4028_v59 = vmul.f32 -1.442695, %v2034_v51  ;;  %v2113_v26 = vpop.f32.mrf.mxu3 }
 0x446   :  { %11279 = vst [vmem:[#allocation103_spill] sm:$0xff] %v8276_v34  ;;  %v2093_v52 = vpop.f32.mrf.mxu2  ;;  %v2053_v34 = vpop.f32.mrf.mxu0 }
 0x447   :  { %4178 = vpow2.f32 %v4028_v59  ;;  %v2094_v11 = vadd.f32 %v2093_v52, %v11281_v56  ;;  %v2054_v45 = vadd.f32 %v2053_v34, %v11282_v31  ;;  %v2073_v16 = vpop.f32.mrf.mxu1 }
 0x449   :  { %v2114_v10 = vadd.f32 %v2113_v26, %v2094_v11  ;;  %v2074_v59 = vadd.f32 %v2073_v16, %v2054_v45 }
 0x44a   :  { %v4177_v4 = vpop.eup %4176 }
 0x44b   :  { %v2119_v60 = vadd.f32 1.0, %v4177_v4  ;;  %v4029_v13 = vmul.f32 -1.442695, %v2114_v10 }
 0x44d   :  { %4180 = vrcp.f32 %v2119_v60  ;;  %v4179_v57 = vpop.eup %4178  ;;  %v2131_v56 = vand.u32 2147483648, %v2119_v60  ;;  %vm2125_vm5 = vweird.f32 %v2119_v60  ;;  %v2129_v10 = vand.u32 2147483647, %v2119_v60 }
 0x44e   :  { %v2138_v37 = vadd.f32 1.0, %v4179_v57 }
 0x44f   :  { %v2132_v45 = vor.u32 1.1754944e-38, %v2131_v56  ;;  %vm2130_vm9 = vcmp.eq.f32.partialorder %v2129_v10, 8.507059e+37 }
 0x450   :  { %4182 = vrcp.f32 %v2138_v37  ;;  %v2150_v26 = vand.u32 2147483648, %v2138_v37  ;;  %vm2144_vm8 = vweird.f32 %v2138_v37 }
 0x451   :  { %4184 = vpow2.f32 %v4029_v13 }
 0x452   :  { %4186 = vtanh.f32 %v2074_v59 }
 0x453   :  { %v4181_v40 = vpop.eup %4180 }
 0x454   :  { %v2121_v24 = vmul.f32 %v4181_v40, %v2119_v60  ;;  %vm2126_vm4 = vweird.f32 %v4181_v40  ;;  %v2220_v60 = vpop.f32.mrf.mxu1 }
 0x455   :  { %vm2127_vm6 = vmor %vm2125_vm5, %vm2126_vm4 }
 0x456   :  { %v2122_v22 = vsub.f32 1.0, %v2121_v24  ;;  %v4183_v51 = vpop.eup %4182  ;;  %v2148_v24 = vand.u32 2147483647, %v2138_v37 }
 0x457   :  { %v4185_v58 = vpop.eup %4184  ;;  %v2140_v44 = vmul.f32 %v4183_v51, %v2138_v37  ;;  %vm2145_vm7 = vweird.f32 %v4183_v51 }
 0x458   :  { %v2123_v4 = vmul.f32 %v4181_v40, %v2122_v22  ;;  %v2158_v11 = vadd.f32 1.0, %v4185_v58  ;;  %v2200_v22 = vpop.f32.mrf.mxu0  ;;  %vm2146_vm10 = vmor %vm2144_vm8, %vm2145_vm7  ;;  %v2151_v58 = vor.u32 1.1754944e-38, %v2150_v26  ;;  %v4187_v31 = vpop.eup %4186  ;;  %vm2149_vm11 = vcmp.eq.f32.partialorder %v2148_v24, 8.507059e+37 }
 0x459   :  { %v2141_v57 = vsub.f32 1.0, %v2140_v44 }
 0x45a   :  { %v2124_v52 = vadd.f32 %v4181_v40, %v2123_v4  ;;  %4188 = vrcp.f32 %v2158_v11  ;;  %v2201_v4 = vadd.f32 %v2200_v22, %v10675_v9  ;;  %v2260_v22 = vpop.f32.mrf.mxu3  ;;  %v2170_v26 = vand.u32 2147483648, %v2158_v11 }
 0x45b   :  { %v2142_v34 = vmul.f32 %v4183_v51, %v2141_v57  ;;  %vm2164_vm13 = vweird.f32 %v2158_v11 }
 0x45c   :  { %v2128_v13 = vsel %vm2127_vm6, %v4181_v40, %v2124_v52  ;;  %v2221_v57 = vadd.f32 %v2220_v60, %v2201_v4  ;;  %v2240_v20 = vpop.f32.mrf.mxu2 }
 0x45d   :  { %v2143_v16 = vadd.f32 %v4183_v51, %v2142_v34  ;;  %v2133_v44 = vsel %vm2130_vm9, %v2132_v45, %v2128_v13  ;;  %v2241_v34 = vadd.f32 %v2240_v20, %v10676_v33  ;;  %v2168_v45 = vand.u32 2147483647, %v2158_v11 }
 0x45e   :  { %v2175_v52 = vmul.f32 %v4187_v31, %v2133_v44  ;;  %v4030_v13 = vmul.f32 -1.442695, %v2221_v57  ;;  %v2171_v31 = vor.u32 1.1754944e-38, %v2170_v26  ;;  %v11284_v57 = vld [vmem:[#allocation107_spill] sm:$0xff]  ;;  %v11294_v26 = vld [vmem:[#allocation22_spill] sm:$0xff] }
 0x45f   :  { %v2147_v59 = vsel %vm2146_vm10, %v4183_v51, %v2143_v16  ;;  %v2261_v24 = vadd.f32 %v2260_v22, %v2241_v34  ;;  %vm2169_vm15 = vcmp.eq.f32.partialorder %v2168_v45, 8.507059e+37  ;;  %v11292_v34 = vld [vmem:[#allocation108_spill] sm:$0xff]  ;;  %v11293_v22 = vld [vmem:[#allocation109_spill] sm:$0xff] }
 0x460   :  { %v4189_v46 = vpop.eup %4188  ;;  %v2152_v47 = vsel %vm2149_vm11, %v2151_v58, %v2147_v59  ;;  %v11283_v59 = vld [vmem:[#allocation106_spill] sm:$0xff] }
 0x461   :  { %v2174_v40 = vmul.f32 %v2152_v47, %v7581_v8  ;;  %v2160_v56 = vmul.f32 %v4189_v46, %v2158_v11  ;;  %vm2165_vm12 = vweird.f32 %v4189_v46  ;;  %v4031_v16 = vmul.f32 -1.442695, %v2261_v24 }
 0x462   :  { %vm2166_vm14 = vmor %vm2164_vm13, %vm2165_vm12 }
 0x463   :  { %v8284_v37 = vadd.f32 %v2175_v52, %v2174_v40  ;;  %v2161_v10 = vsub.f32 1.0, %v2160_v56  ;;  %v11285_v40 = vld [vmem:[#allocation110_spill] sm:$0xff]  ;;  %v11291_v52 = vld [vmem:[#allocation116_spill] sm:$0xff] }
 0x465   :  { %4190 = vtanh.f32 %v8284_v37  ;;  %v2162_v51 = vmul.f32 %v4189_v46, %v2161_v10 }
 0x466   :  { %4192 = vpow2.f32 %v4030_v13  ;;  %v11295_v13 = vld [vmem:[#allocation20_spill] sm:$0xff] }
 0x467   :  { %v2163_v8 = vadd.f32 %v4189_v46, %v2162_v51  ;;  %4194 = vpow2.f32 %v4031_v16  ;;  %v11296_v16 = vld [vmem:[#allocation24_spill] sm:$0xff] }
 0x469   :  { %v2167_v47 = vsel %vm2166_vm14, %v4189_v46, %v2163_v8 }
 0x46a   :  { %v2172_v20 = vsel %vm2169_vm15, %v2171_v31, %v2167_v47  ;;  %v11297_v47 = vld [vmem:[#allocation117_spill] sm:$0xff] }
 0x46b   :  { %v4191_v4 = vpop.eup %4190 }
 0x46c   :  { %v2178_v58 = vmul.f32 %v4191_v4, %v2172_v20  ;;  %v4193_v44 = vpop.eup %4192  ;;  %v11298_v4 = vld [vmem:[#allocation118_spill] sm:$0xff] }
 0x46d   :  { %v4195_v11 = vpop.eup %4194  ;;  %v8292_v46 = vadd.f32 1.0, %v4193_v44  ;;  %v11300_v44 = vld [vmem:[#allocation23_spill] sm:$0xff] }
 0x46e   :  { %2180 = vst [vmem:[#allocation15 + $0x6] sm:$0x3] %v2178_v58  ;;  %2442 = vmatmul.f32.vlgmr.msra.gmra.mxu1 %v2178_v58  ;;  %2482 = vmatmul.f32.vlgmr.msra.gmra.mxu3 %v2178_v58  ;;  %v8294_v60 = vadd.f32 1.0, %v4195_v11  ;;  %v2340_v11 = vpop.f32.mrf.mxu3 }
 0x46f   :  { %2653 = vmatpush.msra.mxu1 %v7584_v2  ;;  %2693 = vmatpush.msra.mxu3 %v7587_v38  ;;  %4196 = vrcp.f32 %v8292_v46  ;;  %v11286_v2 = vld [vmem:[#allocation111_spill] sm:$0xff]  ;;  %v11287_v38 = vld [vmem:[#allocation112_spill] sm:$0xff]  ;;  %vm2352_vm2 = vweird.f32 %v8292_v46 }
 0x470   :  { %4198 = vrcp.f32 %v8294_v60  ;;  %vm2371_vm3 = vweird.f32 %v8294_v60 }
 0x471   :  { %2654 = vmatpush.msra.mxu1 %v7592_v21  ;;  %2694 = vmatpush.msra.mxu3 %v7595_v48  ;;  %v11288_v21 = vld [vmem:[#allocation113_spill] sm:$0xff]  ;;  %v11289_v48 = vld [vmem:[#allocation114_spill] sm:$0xff] }
 0x473   :  { %2655 = vmatpush.msra.mxu1 %v7600_v36  ;;  %2695 = vmatpush.msra.mxu3 %v11283_v59  ;;  %v11290_v36 = vld [vmem:[#allocation115_spill] sm:$0xff] }
 0x475   :  { %2656 = vmatpush.msra.mxu1 %v11284_v57  ;;  %2696 = vmatpush.msra.mxu3 %v11285_v40  ;;  %v8308_v56 = vpop.eup %4196 }
 0x476   :  { %2522 = vmatmul.f32.vlgmr.msrb.gmra.mxu1 %v2178_v58  ;;  %2562 = vmatmul.f32.vlgmr.msrb.gmra.mxu3 %v2178_v58  ;;  %v8310_v10 = vpop.eup %4198  ;;  %v2348_v51 = vmul.f32 %v8308_v56, %v8292_v46  ;;  %v2280_v45 = vpop.f32.mrf.mxu0  ;;  %v11299_v58 = vld [vmem:[#allocation21_spill] sm:$0xff]  ;;  %vm2353_vm0 = vweird.f32 %v8308_v56 }
 0x477   :  { %2657 = vmatpush.msra.mxu1 %v11286_v2  ;;  %2697 = vmatpush.msra.mxu3 %v11287_v38  ;;  %v2367_v24 = vmul.f32 %v8310_v10, %v8294_v60  ;;  %v2281_v31 = vadd.f32 %v2280_v45, %v11297_v47  ;;  %v11301_v2 = vld [vmem:[#allocation25_spill] sm:$0xff]  ;;  %v11302_v38 = vld [vmem:[#allocation28_spill] sm:$0xff]  ;;  %vm2372_vm1 = vweird.f32 %v8310_v10  ;;  %vm8346_vm4 = vmor %vm2352_vm2, %vm2353_vm0 }
 0x478   :  { %v2349_v59 = vsub.f32 1.0, %v2348_v51  ;;  %v11307_v51 = vld [vmem:[#allocation29_spill] sm:$0xff]  ;;  %vm8356_vm5 = vmor %vm2371_vm3, %vm2372_vm1 }
 0x479   :  { %2658 = vmatpush.msra.mxu1 %v11288_v21  ;;  %2698 = vmatpush.msra.mxu3 %v11289_v48  ;;  %v2368_v57 = vsub.f32 1.0, %v2367_v24  ;;  %v2300_v21 = vpop.f32.mrf.mxu1  ;;  %v11308_v24 = vld [vmem:[#allocation34_spill] sm:$0xff] }
 0x47a   :  { %v2301_v48 = vadd.f32 %v2300_v21, %v2281_v31  ;;  %v2358_v31 = vand.u32 2147483648, %v8292_v46 }
 0x47b   :  { %2659 = vmatpush.msra.mxu1 %v11290_v36  ;;  %2699 = vmatpush.msra.mxu3 %v11291_v52  ;;  %v11303_v36 = vld [vmem:[#allocation26_spill] sm:$0xff] }
 0x47c   :  { %v2320_v8 = vpop.f32.mrf.mxu2  ;;  %v11304_v52 = vld [vmem:[#allocation30_spill] sm:$0xff] }
 0x47d   :  { %2660 = vmatpush.msra.mxu1 %v11292_v34  ;;  %2700 = vmatpush.msra.mxu3 %v11293_v22  ;;  %v2321_v20 = vadd.f32 %v2320_v8, %v11298_v4  ;;  %v2369_v34 = vmul.f32 %v8310_v10, %v2368_v57  ;;  %v2350_v22 = vmul.f32 %v8308_v56, %v2349_v59  ;;  %v2377_v8 = vand.u32 2147483648, %v8294_v60  ;;  %v11313_v57 = vld [vmem:[#allocation33_spill] sm:$0xff] }
 0x47e   :  { %v2375_v59 = vand.u32 2147483647, %v8294_v60 }
 0x47f   :  { %2661 = vmatpush.msra.mxu1 %v11294_v26  ;;  %2701 = vmatpush.msra.mxu3 %v11295_v13  ;;  %v2341_v40 = vadd.f32 %v2340_v11, %v2321_v20  ;;  %v11305_v26 = vld [vmem:[#allocation27_spill] sm:$0xff]  ;;  %v11306_v13 = vld [vmem:[#allocation32_spill] sm:$0xff]  ;;  %v2351_v45 = vadd.f32 %v8308_v56, %v2350_v22  ;;  %v2356_v11 = vand.u32 2147483647, %v8292_v46  ;;  %v2378_v21 = vor.u32 1.1754944e-38, %v2377_v8 }
 0x480   :  { %v11309_v20 = vld [vmem:[#allocation31_spill] sm:$0xff]  ;;  %vm2376_vm7 = vcmp.eq.f32.partialorder %v2375_v59, 8.507059e+37  ;;  %v11318_v22 = vld [vmem:[#allocation40_spill] sm:$0xff] }
 0x481   :  { %2662 = vmatpush.msra.mxu1 %v11296_v16  ;;  %2702 = vmatpush.msra.mxu3 %v7655_v30  ;;  %v4032_v30 = vmul.f32 -1.442695, %v2341_v40  ;;  %v2370_v16 = vadd.f32 %v8310_v10, %v2369_v34  ;;  %vm2357_vm6 = vcmp.eq.f32.partialorder %v2356_v11, 8.507059e+37  ;;  %v11325_v8 = vld [vmem:[#allocation43_spill] sm:$0xff] }
 0x483   :  { %2663 = vmatpush.msra.mxu1 %v11299_v58  ;;  %2703 = vmatpush.msra.mxu3 %v11300_v44  ;;  %4200 = vpow2.f32 %v4032_v30  ;;  %v11310_v58 = vld [vmem:[#allocation36_spill] sm:$0xff]  ;;  %v2374_v46 = vsel %vm8356_vm5, %v8310_v10, %v2370_v16  ;;  %v11317_v10 = vld [vmem:[#allocation35_spill] sm:$0xff]  ;;  %v11324_v16 = vld [vmem:[#allocation46_spill] sm:$0xff] }
 0x484   :  { %4202 = vtanh.f32 %v2301_v48  ;;  %v2359_v48 = vor.u32 1.1754944e-38, %v2358_v31  ;;  %v2379_v30 = vsel %vm2376_vm7, %v2378_v21, %v2374_v46  ;;  %v8479_v46 = vld [vmem:[#allocation9 + $0x88] sm:$0xff]  ;;  %v11330_v21 = vld [vmem:[#allocation52_spill] sm:$0xff] }
 0x485   :  { %2664 = vmatpush.msra.mxu1 %v11301_v2  ;;  %2704 = vmatpush.msra.mxu3 %v11302_v38  ;;  %v2355_v38 = vsel %vm8346_vm4, %v8308_v56, %v2351_v45  ;;  %v8439_v2 = vld [vmem:[#allocation9 + $0x128] sm:$0xff] }
 0x486   :  { %v2360_v56 = vsel %vm2357_vm6, %v2359_v48, %v2355_v38  ;;  %v8455_v38 = vld [vmem:[#allocation9 + $0xe8] sm:$0xff]  ;;  %v8492_v48 = vld [vmem:[#allocation9 + $0x40] sm:$0xff] }
 0x487   :  { %2665 = vmatpush.msra.mxu1 %v11303_v36  ;;  %2705 = vmatpush.msra.mxu3 %v11304_v52 }
 0x489   :  { %2666 = vmatpush.msra.mxu1 %v11305_v26  ;;  %2706 = vmatpush.msra.mxu3 %v11306_v13  ;;  %v4201_v40 = vpop.eup %4200  ;;  %v11320_v26 = vld [vmem:[#allocation42_spill] sm:$0xff]  ;;  %v11321_v13 = vld [vmem:[#allocation39_spill] sm:$0xff] }
 0x48a   :  { %v2385_v60 = vadd.f32 1.0, %v4201_v40  ;;  %v8436_v40 = vld [vmem:[#allocation9 + $0x120] sm:$0xff] }
 0x48b   :  { %2667 = vmatpush.msra.mxu1 %v11307_v51  ;;  %2707 = vmatpush.msra.mxu3 %v11308_v24  ;;  %v11323_v51 = vld [vmem:[#allocation41_spill] sm:$0xff] }
 0x48c   :  { %4204 = vrcp.f32 %v2385_v60  ;;  %v2395_v45 = vand.u32 2147483647, %v2385_v60  ;;  %vm2391_vm9 = vweird.f32 %v2385_v60 }
 0x48d   :  { %2668 = vmatpush.msra.mxu1 %v11309_v20  ;;  %2708 = vmatpush.msra.mxu3 %v11310_v58 }
 0x48e   :  { %vm2396_vm11 = vcmp.eq.f32.partialorder %v2395_v45, 8.507059e+37  ;;  %v11340_v45 = vld [vmem:[#allocation59_spill] sm:$0xff] }
 0x48f   :  { %2733 = vmatpush.msrb.mxu1 %v11313_v57  ;;  %2773 = vmatpush.msrb.mxu3 %v7721_v55  ;;  %v4203_v55 = vpop.eup %4202  ;;  %v8392_v57 = vld [vmem:[#allocation9 + $0x1e0] sm:$0xff] }
 0x490   :  { %v2402_v36 = vmul.f32 %v4203_v55, %v2360_v56  ;;  %v8487_v55 = vld [vmem:[#allocation9 + $0x68] sm:$0xff] }
 0x491   :  { %2734 = vmatpush.msrb.mxu1 %v7730_v43  ;;  %2774 = vmatpush.msrb.mxu3 %v7733_v63  ;;  %v2401_v43 = vmul.f32 %v2379_v30, %v7755_v1  ;;  %v11316_v63 = vld [vmem:[#allocation38_spill] sm:$0xff]  ;;  %v11322_v1 = vld [vmem:[#allocation44_spill] sm:$0xff]  ;;  %v11331_v30 = vld [vmem:[#allocation49_spill] sm:$0xff] }
 0x492   :  { %v4205_v52 = vpop.eup %4204  ;;  %v8495_v56 = vld [vmem:[#allocation9 + $0x48] sm:$0xff] }
 0x493   :  { %2735 = vmatpush.msrb.mxu1 %v7736_v61  ;;  %2775 = vmatpush.msrb.mxu3 %v7739_v35  ;;  %v8375_v34 = vadd.f32 %v2402_v36, %v2401_v43  ;;  %v11319_v61 = vld [vmem:[#allocation37_spill] sm:$0xff]  ;;  %v2387_v35 = vmul.f32 %v4205_v52, %v2385_v60  ;;  %vm2392_vm8 = vweird.f32 %v4205_v52  ;;  %v11332_v36 = vld [vmem:[#allocation54_spill] sm:$0xff] }
 0x494   :  { %vm2393_vm10 = vmor %vm2391_vm9, %vm2392_vm8  ;;  %v8500_v43 = vld [vmem:[#allocation9 + $0x20] sm:$0xff] }
 0x495   :  { %2736 = vmatpush.msrb.mxu1 %v7742_v42  ;;  %2776 = vmatpush.msrb.mxu3 %v7745_v19  ;;  %v2388_v42 = vsub.f32 1.0, %v2387_v35  ;;  %4206 = vtanh.f32 %v8375_v34  ;;  %v2397_v19 = vand.u32 2147483648, %v2385_v60  ;;  %v8484_v60 = vld [vmem:[#allocation9 + $0x60] sm:$0xff]  ;;  %v8513_v35 = vld [vmem:[#allocation9 + $0x8] sm:$0xff] }
 0x497   :  { %2737 = vmatpush.msrb.mxu1 %v11316_v63  ;;  %2777 = vmatpush.msrb.mxu3 %v11317_v10  ;;  %v2389_v24 = vmul.f32 %v4205_v52, %v2388_v42  ;;  %v2398_v20 = vor.u32 1.1754944e-38, %v2397_v19  ;;  %v8503_v63 = vld [vmem:[#allocation9 + $0x28] sm:$0xff]  ;;  %v8506_v10 = vld [vmem:[#allocation6 + $0xa] sm:$0x3]  ;;  %v11335_v42 = vld [vmem:[#allocation53_spill] sm:$0xff] }
 0x498   :  { %v11336_v19 = vld [vmem:[#allocation55_spill] sm:$0xff] }
 0x499   :  { %2738 = vmatpush.msrb.mxu1 %v11318_v22  ;;  %2778 = vmatpush.msrb.mxu3 %v11319_v61  ;;  %v2390_v31 = vadd.f32 %v4205_v52, %v2389_v24  ;;  %v11334_v22 = vld [vmem:[#allocation56_spill] sm:$0xff]  ;;  %v8510_v61 = vld [vmem:[#allocation9] sm:$0xff]  ;;  %v11339_v24 = vld [vmem:[#allocation63_spill] sm:$0xff] }
 0x49b   :  { %2739 = vmatpush.msrb.mxu1 %v11320_v26  ;;  %2779 = vmatpush.msrb.mxu3 %v11321_v13  ;;  %v2394_v58 = vsel %vm2393_vm10, %v4205_v52, %v2390_v31  ;;  %v4207_v44 = vpop.eup %4206  ;;  %v11333_v52 = vld [vmem:[#allocation51_spill] sm:$0xff]  ;;  %v8521_v13 = vld [vmem:[#allocation9 + $0x1f8] sm:$0xff]  ;;  %v11343_v31 = vld [vmem:[#allocation65_spill] sm:$0xff] }
 0x49c   :  { %v2399_v11 = vsel %vm2396_vm11, %v2398_v20, %v2394_v58  ;;  %v8518_v26 = vld [vmem:[#allocation9 + $0x1f0] sm:$0xff]  ;;  %v11344_v20 = vld [vmem:[#allocation62_spill] sm:$0xff] }
 0x49d   :  { %2740 = vmatpush.msrb.mxu1 %v11322_v1  ;;  %2780 = vmatpush.msrb.mxu3 %v11323_v51  ;;  %v2405_v59 = vmul.f32 %v4207_v44, %v2399_v11  ;;  %v8526_v1 = vld [vmem:[#allocation9 + $0x1d0] sm:$0xff]  ;;  %v8529_v51 = vld [vmem:[#allocation9 + $0x1d8] sm:$0xff] }
 0x49e   :  { %11337 = vst [vmem:[#allocation104_spill] sm:$0xff] %v8526_v1  ;;  %v8542_v58 = vld [vmem:[#allocation9 + $0x190] sm:$0xff]  ;;  %v8545_v44 = vld [vmem:[#allocation9 + $0x198] sm:$0xff] }
 0x49f   :  { %2741 = vmatpush.msrb.mxu1 %v11324_v16  ;;  %2781 = vmatpush.msrb.mxu3 %v11325_v8  ;;  %11338 = vst [vmem:[#allocation105_spill] sm:$0xff] %v8529_v51  ;;  %v8534_v16 = vld [vmem:[#allocation9 + $0x1b0] sm:$0xff]  ;;  %v8537_v8 = vld [vmem:[#allocation9 + $0x1b8] sm:$0xff] }
 0x4a0   :  { %2422 = vmatmul.f32.vlgmr.msra.gmra.mxu0 %v2405_v59  ;;  %2462 = vmatmul.f32.vlgmr.msra.gmra.mxu2 %v2405_v59  ;;  %11341 = vst [vmem:[#allocation106_spill] sm:$0xff] %v8534_v16  ;;  %v11347_v11 = vld [vmem:[#allocation67_spill] sm:$0xff] }
 0x4a1   :  { %2742 = vmatpush.msrb.mxu1 %v7782_v12  ;;  %2782 = vmatpush.msrb.mxu3 %v7785_v41  ;;  %v8395_v12 = vld [vmem:[#allocation9 + $0x1e8] sm:$0xff]  ;;  %v8398_v41 = vld [vmem:[#allocation9 + $0x1c0] sm:$0xff]  ;;  %11342 = vst [vmem:[#allocation107_spill] sm:$0xff] %v8537_v8 }
 0x4a2   :  { %2633 = vmatpush.msra.mxu0 %v8392_v57  ;;  %2669 = vmatmul.f32.vlgmr.msra.gmra.mxu1 %v2405_v59  ;;  %11345 = vst [vmem:[#allocation110_spill] sm:$0xff] %v8542_v58 }
 0x4a3   :  { %2743 = vmatpush.msrb.mxu1 %v7788_v27  ;;  %2783 = vmatpush.msrb.mxu3 %v7791_v15  ;;  %v8402_v27 = vld [vmem:[#allocation9 + $0x1c8] sm:$0xff]  ;;  %v8406_v15 = vld [vmem:[#allocation9 + $0x1a0] sm:$0xff]  ;;  %11346 = vst [vmem:[#allocation111_spill] sm:$0xff] %v8545_v44 }
 0x4a4   :  { %2673 = vmatpush.msra.mxu2 %v8395_v12  ;;  %2709 = vmatmul.f32.vlgmr.msra.gmra.mxu3 %v2405_v59 }
 0x4a5   :  { %2744 = vmatpush.msrb.mxu1 %v7797_v49  ;;  %2784 = vmatpush.msrb.mxu3 %v7801_v29  ;;  %v8410_v49 = vld [vmem:[#allocation9 + $0x1a8] sm:$0xff]  ;;  %v8414_v29 = vld [vmem:[#allocation9 + $0x180] sm:$0xff] }
 0x4a6   :  { %2634 = vmatpush.msra.mxu0 %v8398_v41  ;;  %2674 = vmatpush.msra.mxu2 %v8402_v27 }
 0x4a7   :  { %2745 = vmatpush.msrb.mxu1 %v7805_v39  ;;  %2785 = vmatpush.msrb.mxu3 %v7809_v0  ;;  %v8418_v39 = vld [vmem:[#allocation9 + $0x188] sm:$0xff]  ;;  %v8421_v0 = vld [vmem:[#allocation9 + $0x160] sm:$0xff] }
 0x4a8   :  { %2635 = vmatpush.msra.mxu0 %v8406_v15  ;;  %2675 = vmatpush.msra.mxu2 %v8410_v49 }
 0x4a9   :  { %2746 = vmatpush.msrb.mxu1 %v7813_v53  ;;  %2786 = vmatpush.msrb.mxu3 %v7817_v7  ;;  %v8424_v53 = vld [vmem:[#allocation9 + $0x168] sm:$0xff]  ;;  %v8428_v7 = vld [vmem:[#allocation9 + $0x140] sm:$0xff] }
 0x4aa   :  { %2636 = vmatpush.msra.mxu0 %v8414_v29  ;;  %2676 = vmatpush.msra.mxu2 %v8418_v39 }
 0x4ab   :  { %2747 = vmatpush.msrb.mxu1 %v7822_v23  ;;  %2502 = vmatmul.f32.vlgmr.msrb.gmra.mxu0 %v2405_v59  ;;  %v8432_v23 = vld [vmem:[#allocation9 + $0x148] sm:$0xff] }
 0x4ac   :  { %2542 = vmatmul.f32.vlgmr.msrb.gmra.mxu2 %v2405_v59  ;;  %2637 = vmatpush.msra.mxu0 %v8421_v0 }
 0x4ad   :  { %2677 = vmatpush.msra.mxu2 %v8424_v53  ;;  %2787 = vmatpush.msrb.mxu3 %v7825_v6  ;;  %v8444_v6 = vld [vmem:[#allocation9 + $0x100] sm:$0xff] }
 0x4ae   :  { %2638 = vmatpush.msra.mxu0 %v8428_v7  ;;  %2748 = vmatpush.msrb.mxu1 %v7830_v54  ;;  %v8447_v54 = vld [vmem:[#allocation9 + $0x108] sm:$0xff] }
 0x4af   :  { %2678 = vmatpush.msra.mxu2 %v8432_v23  ;;  %2788 = vmatpush.msrb.mxu3 %v7833_v50  ;;  %v8452_v50 = vld [vmem:[#allocation9 + $0xe0] sm:$0xff] }
 0x4b0   :  { %2749 = vmatmul.f32.vlgmr.msrb.gmra.mxu1 %v2405_v59  ;;  %2789 = vmatmul.f32.vlgmr.msrb.gmra.mxu3 %v2405_v59  ;;  %v11348_v59 = vld [vmem:[#allocation64_spill] sm:$0xff] }
 0x4b1   :  { %2639 = vmatpush.msra.mxu0 %v8436_v40  ;;  %2679 = vmatpush.msra.mxu2 %v8439_v2 }
 0x4b2   :  { %2876 = vmatpush.msra.mxu1 %v7838_v5  ;;  %2916 = vmatpush.msra.mxu3 %v7841_v28  ;;  %v8460_v5 = vld [vmem:[#allocation9 + $0xc0] sm:$0xff]  ;;  %v8463_v28 = vld [vmem:[#allocation9 + $0xc8] sm:$0xff] }
 0x4b3   :  { %2640 = vmatpush.msra.mxu0 %v8444_v6  ;;  %2680 = vmatpush.msra.mxu2 %v8447_v54 }
 0x4b4   :  { %2877 = vmatpush.msra.mxu1 %v7846_v17  ;;  %2917 = vmatpush.msra.mxu3 %v7849_v14  ;;  %v8468_v17 = vld [vmem:[#allocation9 + $0xa0] sm:$0xff]  ;;  %v8471_v14 = vld [vmem:[#allocation9 + $0xa8] sm:$0xff] }
 0x4b5   :  { %2641 = vmatpush.msra.mxu0 %v8452_v50  ;;  %2681 = vmatpush.msra.mxu2 %v8455_v38 }
 0x4b6   :  { %2878 = vmatpush.msra.mxu1 %v7854_v18  ;;  %2918 = vmatpush.msra.mxu3 %v7857_v25  ;;  %v11326_v18 = vld [vmem:[#allocation48_spill] sm:$0xff]  ;;  %v8476_v25 = vld [vmem:[#allocation9 + $0x80] sm:$0xff] }
 0x4b7   :  { %2642 = vmatpush.msra.mxu0 %v8460_v5  ;;  %2682 = vmatpush.msra.mxu2 %v8463_v28 }
 0x4b8   :  { %2879 = vmatpush.msra.mxu1 %v7862_v3  ;;  %2919 = vmatpush.msra.mxu3 %v7865_v62  ;;  %v11327_v3 = vld [vmem:[#allocation45_spill] sm:$0xff]  ;;  %v11328_v62 = vld [vmem:[#allocation50_spill] sm:$0xff] }
 0x4b9   :  { %2643 = vmatpush.msra.mxu0 %v8468_v17  ;;  %2683 = vmatpush.msra.mxu2 %v8471_v14 }
 0x4ba   :  { %2880 = vmatpush.msra.mxu1 %v7870_v32  ;;  %2920 = vmatpush.msra.mxu3 %v11326_v18  ;;  %v11329_v32 = vld [vmem:[#allocation47_spill] sm:$0xff] }
 0x4bb   :  { %2644 = vmatpush.msra.mxu0 %v8476_v25  ;;  %2684 = vmatpush.msra.mxu2 %v8479_v46  ;;  %v8550_v18 = vld [vmem:[#allocation9 + $0x170] sm:$0xff] }
 0x4bc   :  { %2881 = vmatpush.msra.mxu1 %v11327_v3  ;;  %2921 = vmatpush.msra.mxu3 %v11328_v62  ;;  %11349 = vst [vmem:[#allocation112_spill] sm:$0xff] %v8550_v18  ;;  %v8553_v3 = vld [vmem:[#allocation9 + $0x178] sm:$0xff]  ;;  %v11351_v62 = vld [vmem:[#allocation69_spill] sm:$0xff] }
 0x4bd   :  { %2645 = vmatpush.msra.mxu0 %v8484_v60  ;;  %2685 = vmatpush.msra.mxu2 %v8487_v55  ;;  %11350 = vst [vmem:[#allocation113_spill] sm:$0xff] %v8553_v3 }
 0x4be   :  { %2882 = vmatpush.msra.mxu1 %v11329_v32  ;;  %2922 = vmatpush.msra.mxu3 %v11330_v21  ;;  %v11352_v32 = vld [vmem:[#allocation66_spill] sm:$0xff]  ;;  %v8558_v21 = vld [vmem:[#allocation9 + $0x150] sm:$0xff] }
 0x4bf   :  { %2646 = vmatpush.msra.mxu0 %v8492_v48  ;;  %2686 = vmatpush.msra.mxu2 %v8495_v56  ;;  %11353 = vst [vmem:[#allocation114_spill] sm:$0xff] %v8558_v21 }
 0x4c0   :  { %2883 = vmatpush.msra.mxu1 %v11331_v30  ;;  %2923 = vmatpush.msra.mxu3 %v11332_v36  ;;  %v8561_v30 = vld [vmem:[#allocation9 + $0x158] sm:$0xff]  ;;  %v11355_v36 = vld [vmem:[#allocation71_spill] sm:$0xff] }
 0x4c1   :  { %2647 = vmatpush.msra.mxu0 %v8500_v43  ;;  %2687 = vmatpush.msra.mxu2 %v8503_v63  ;;  %11354 = vst [vmem:[#allocation115_spill] sm:$0xff] %v8561_v30 }
 0x4c2   :  { %2884 = vmatpush.msra.mxu1 %v11333_v52  ;;  %2924 = vmatpush.msra.mxu3 %v11334_v22  ;;  %v11356_v52 = vld [vmem:[#allocation68_spill] sm:$0xff]  ;;  %v8566_v22 = vld [vmem:[#allocation9 + $0x130] sm:$0xff] }
 0x4c3   :  { %2648 = vmatpush.msra.mxu0 %v8510_v61  ;;  %2688 = vmatpush.msra.mxu2 %v8513_v35  ;;  %11357 = vst [vmem:[#allocation116_spill] sm:$0xff] %v8566_v22 }
 0x4c4   :  { %2649 = vmatmul.f32.vlgmr.msra.gmra.mxu0 %v8506_v10  ;;  %2689 = vmatmul.f32.vlgmr.msra.gmra.mxu2 %v8506_v10 }
 0x4c5   :  { %2713 = vmatpush.msrb.mxu0 %v8518_v26  ;;  %2753 = vmatpush.msrb.mxu2 %v8521_v13 }
 0x4c6   :  { %2885 = vmatpush.msra.mxu1 %v11335_v42  ;;  %2925 = vmatpush.msra.mxu3 %v11336_v19  ;;  %v8569_v42 = vld [vmem:[#allocation9 + $0x138] sm:$0xff]  ;;  %v11359_v19 = vld [vmem:[#allocation73_spill] sm:$0xff] }
 0x4c7   :  { %2714 = vmatpush.msrb.mxu0 %v8526_v1  ;;  %2754 = vmatpush.msrb.mxu2 %v8529_v51  ;;  %11358 = vst [vmem:[#allocation108_spill] sm:$0xff] %v8569_v42 }
 0x4c8   :  { %2886 = vmatpush.msra.mxu1 %v11339_v24  ;;  %2926 = vmatpush.msra.mxu3 %v11340_v45  ;;  %v11360_v24 = vld [vmem:[#allocation70_spill] sm:$0xff]  ;;  %v8574_v45 = vld [vmem:[#allocation9 + $0x110] sm:$0xff] }
 0x4c9   :  { %2715 = vmatpush.msrb.mxu0 %v8534_v16  ;;  %2755 = vmatpush.msrb.mxu2 %v8537_v8  ;;  %11361 = vst [vmem:[#allocation109_spill] sm:$0xff] %v8574_v45 }
 0x4ca   :  { %2887 = vmatpush.msra.mxu1 %v11343_v31  ;;  %2927 = vmatpush.msra.mxu3 %v11344_v20  ;;  %v8577_v31 = vld [vmem:[#allocation9 + $0x118] sm:$0xff]  ;;  %v11363_v20 = vld [vmem:[#allocation75_spill] sm:$0xff] }
 0x4cb   :  { %2716 = vmatpush.msrb.mxu0 %v8542_v58  ;;  %2756 = vmatpush.msrb.mxu2 %v8545_v44  ;;  %11362 = vst [vmem:[#allocation22_spill] sm:$0xff] %v8577_v31 }
 0x4cc   :  { %2888 = vmatpush.msra.mxu1 %v11347_v11  ;;  %2928 = vmatpush.msra.mxu3 %v11348_v59  ;;  %v11364_v11 = vld [vmem:[#allocation72_spill] sm:$0xff]  ;;  %v8582_v59 = vld [vmem:[#allocation9 + $0xf0] sm:$0xff] }
 0x4cd   :  { %2717 = vmatpush.msrb.mxu0 %v8550_v18  ;;  %2757 = vmatpush.msrb.mxu2 %v8553_v3  ;;  %11365 = vst [vmem:[#allocation20_spill] sm:$0xff] %v8582_v59 }
 0x4ce   :  { %2889 = vmatpush.msra.mxu1 %v11351_v62  ;;  %2929 = vmatpush.msra.mxu3 %v11352_v32  ;;  %v8585_v62 = vld [vmem:[#allocation9 + $0xf8] sm:$0xff]  ;;  %v11367_v32 = vld [vmem:[#allocation77_spill] sm:$0xff] }
 0x4cf   :  { %2718 = vmatpush.msrb.mxu0 %v8558_v21  ;;  %2758 = vmatpush.msrb.mxu2 %v8561_v30  ;;  %11366 = vst [vmem:[#allocation24_spill] sm:$0xff] %v8585_v62 }
 0x4d0   :  { %2890 = vmatpush.msra.mxu1 %v11355_v36  ;;  %2930 = vmatpush.msra.mxu3 %v11356_v52  ;;  %v11368_v36 = vld [vmem:[#allocation119_spill] sm:$0xff] }
 0x4d1   :  { %2719 = vmatpush.msrb.mxu0 %v8566_v22  ;;  %2759 = vmatpush.msrb.mxu2 %v8569_v42  ;;  %v8590_v52 = vld [vmem:[#allocation9 + $0xd0] sm:$0xff] }
 0x4d2   :  { %2891 = vmatpush.msra.mxu1 %v11359_v19  ;;  %2931 = vmatpush.msra.mxu3 %v11360_v24  ;;  %11369 = vst [vmem:[#allocation21_spill] sm:$0xff] %v8590_v52  ;;  %v8593_v19 = vld [vmem:[#allocation9 + $0xd8] sm:$0xff] }
 0x4d3   :  { %2720 = vmatpush.msrb.mxu0 %v8574_v45  ;;  %2760 = vmatpush.msrb.mxu2 %v8577_v31  ;;  %11370 = vst [vmem:[#allocation23_spill] sm:$0xff] %v8593_v19  ;;  %v11371_v24 = vld [vmem:[#allocation120_spill] sm:$0xff]  ;;  %v11404_v31 = vld [vmem:[#allocation141_spill] sm:$0xff] }
 0x4d4   :  { %2956 = vmatpush.msrb.mxu1 %v11363_v20  ;;  %2996 = vmatpush.msrb.mxu3 %v11364_v11  ;;  %v11372_v20 = vld [vmem:[#allocation121_spill] sm:$0xff]  ;;  %v8598_v11 = vld [vmem:[#allocation9 + $0xb0] sm:$0xff] }
 0x4d5   :  { %2721 = vmatpush.msrb.mxu0 %v8582_v59  ;;  %2761 = vmatpush.msrb.mxu2 %v8585_v62  ;;  %11373 = vst [vmem:[#allocation25_spill] sm:$0xff] %v8598_v11  ;;  %v8601_v62 = vld [vmem:[#allocation9 + $0xb8] sm:$0xff]  ;;  %v11402_v59 = vld [vmem:[#allocation139_spill] sm:$0xff] }
 0x4d6   :  { %2957 = vmatpush.msrb.mxu1 %v11367_v32  ;;  %2997 = vmatpush.msrb.mxu3 %v11368_v36  ;;  %11374 = vst [vmem:[#allocation28_spill] sm:$0xff] %v8601_v62  ;;  %v11375_v32 = vld [vmem:[#allocation122_spill] sm:$0xff]  ;;  %v11376_v36 = vld [vmem:[#allocation123_spill] sm:$0xff] }
 0x4d7   :  { %2722 = vmatpush.msrb.mxu0 %v8590_v52  ;;  %2762 = vmatpush.msrb.mxu2 %v8593_v19  ;;  %v8606_v52 = vld [vmem:[#allocation9 + $0x90] sm:$0xff]  ;;  %v8609_v19 = vld [vmem:[#allocation9 + $0x98] sm:$0xff] }
 0x4d8   :  { %2958 = vmatpush.msrb.mxu1 %v11371_v24  ;;  %2998 = vmatpush.msrb.mxu3 %v11372_v20  ;;  %11377 = vst [vmem:[#allocation26_spill] sm:$0xff] %v8606_v52  ;;  %v11379_v24 = vld [vmem:[#allocation124_spill] sm:$0xff]  ;;  %v11380_v20 = vld [vmem:[#allocation125_spill] sm:$0xff] }
 0x4d9   :  { %2723 = vmatpush.msrb.mxu0 %v8598_v11  ;;  %2763 = vmatpush.msrb.mxu2 %v8601_v62  ;;  %11378 = vst [vmem:[#allocation30_spill] sm:$0xff] %v8609_v19  ;;  %v8614_v11 = vld [vmem:[#allocation9 + $0x70] sm:$0xff]  ;;  %v8617_v62 = vld [vmem:[#allocation9 + $0x78] sm:$0xff] }
 0x4da   :  { %2959 = vmatpush.msrb.mxu1 %v11375_v32  ;;  %2999 = vmatpush.msrb.mxu3 %v11376_v36  ;;  %11381 = vst [vmem:[#allocation27_spill] sm:$0xff] %v8614_v11  ;;  %v11383_v32 = vld [vmem:[#allocation126_spill] sm:$0xff]  ;;  %v11384_v36 = vld [vmem:[#allocation127_spill] sm:$0xff] }
 0x4db   :  { %2724 = vmatpush.msrb.mxu0 %v8606_v52  ;;  %2764 = vmatpush.msrb.mxu2 %v8609_v19  ;;  %11382 = vst [vmem:[#allocation32_spill] sm:$0xff] %v8617_v62  ;;  %v8622_v52 = vld [vmem:[#allocation9 + $0x50] sm:$0xff]  ;;  %v8625_v19 = vld [vmem:[#allocation9 + $0x58] sm:$0xff] }
 0x4dc   :  { %2960 = vmatpush.msrb.mxu1 %v11379_v24  ;;  %3000 = vmatpush.msrb.mxu3 %v11380_v20  ;;  %11385 = vst [vmem:[#allocation29_spill] sm:$0xff] %v8622_v52  ;;  %v11387_v24 = vld [vmem:[#allocation128_spill] sm:$0xff]  ;;  %v11388_v20 = vld [vmem:[#allocation129_spill] sm:$0xff] }
 0x4dd   :  { %2725 = vmatpush.msrb.mxu0 %v8614_v11  ;;  %2765 = vmatpush.msrb.mxu2 %v8617_v62  ;;  %11386 = vst [vmem:[#allocation34_spill] sm:$0xff] %v8625_v19  ;;  %v8630_v11 = vld [vmem:[#allocation9 + $0x30] sm:$0xff]  ;;  %v8633_v62 = vld [vmem:[#allocation9 + $0x38] sm:$0xff] }
 0x4de   :  { %2961 = vmatpush.msrb.mxu1 %v11383_v32  ;;  %3001 = vmatpush.msrb.mxu3 %v11384_v36  ;;  %11389 = vst [vmem:[#allocation31_spill] sm:$0xff] %v8630_v11  ;;  %v11391_v32 = vld [vmem:[#allocation130_spill] sm:$0xff]  ;;  %v11392_v36 = vld [vmem:[#allocation131_spill] sm:$0xff] }
 0x4df   :  { %2726 = vmatpush.msrb.mxu0 %v8622_v52  ;;  %2766 = vmatpush.msrb.mxu2 %v8625_v19  ;;  %11390 = vst [vmem:[#allocation36_spill] sm:$0xff] %v8633_v62  ;;  %v8638_v52 = vld [vmem:[#allocation9 + $0x10] sm:$0xff]  ;;  %v8641_v19 = vld [vmem:[#allocation9 + $0x18] sm:$0xff] }
 0x4e0   :  { %2962 = vmatpush.msrb.mxu1 %v11387_v24  ;;  %3002 = vmatpush.msrb.mxu3 %v11388_v20  ;;  %11393 = vst [vmem:[#allocation33_spill] sm:$0xff] %v8638_v52  ;;  %v11395_v24 = vld [vmem:[#allocation132_spill] sm:$0xff]  ;;  %v11396_v20 = vld [vmem:[#allocation133_spill] sm:$0xff] }
 0x4e1   :  { %2727 = vmatpush.msrb.mxu0 %v8630_v11  ;;  %2767 = vmatpush.msrb.mxu2 %v8633_v62  ;;  %11394 = vst [vmem:[#allocation38_spill] sm:$0xff] %v8641_v19  ;;  %v11397_v62 = vld [vmem:[#allocation134_spill] sm:$0xff]  ;;  %v11400_v11 = vld [vmem:[#allocation137_spill] sm:$0xff] }
 0x4e2   :  { %2963 = vmatpush.msrb.mxu1 %v11391_v32  ;;  %3003 = vmatpush.msrb.mxu3 %v11392_v36  ;;  %v11398_v32 = vld [vmem:[#allocation135_spill] sm:$0xff]  ;;  %v11399_v36 = vld [vmem:[#allocation136_spill] sm:$0xff] }
 0x4e3   :  { %2728 = vmatpush.msrb.mxu0 %v8638_v52  ;;  %2768 = vmatpush.msrb.mxu2 %v8641_v19  ;;  %v11401_v52 = vld [vmem:[#allocation138_spill] sm:$0xff]  ;;  %v11403_v19 = vld [vmem:[#allocation140_spill] sm:$0xff] }
 0x4e4   :  { %2729 = vmatmul.f32.vlgmr.msrb.gmra.mxu0 %v8506_v10  ;;  %2769 = vmatmul.f32.vlgmr.msrb.gmra.mxu2 %v8506_v10  ;;  %v11405_v10 = vld [vmem:[#allocation142_spill] sm:$0xff] }
 0x4e5   :  { %2964 = vmatpush.msrb.mxu1 %v11395_v24  ;;  %3004 = vmatpush.msrb.mxu3 %v11396_v20  ;;  %v11406_v24 = vld [vmem:[#allocation143_spill] sm:$0xff]  ;;  %v11407_v20 = vld [vmem:[#allocation144_spill] sm:$0xff] }
 0x4e6   :  { %2856 = vmatpush.msra.mxu0 %v11397_v62  ;;  %2896 = vmatpush.msra.mxu2 %v11398_v32  ;;  %v11408_v62 = vld [vmem:[#allocation145_spill] sm:$0xff]  ;;  %v11409_v32 = vld [vmem:[#allocation146_spill] sm:$0xff] }
 0x4e7   :  { %2965 = vmatpush.msrb.mxu1 %v11399_v36  ;;  %3005 = vmatpush.msrb.mxu3 %v11400_v11  ;;  %v11410_v36 = vld [vmem:[#allocation147_spill] sm:$0xff]  ;;  %v11411_v11 = vld [vmem:[#allocation148_spill] sm:$0xff] }
 0x4e8   :  { %2857 = vmatpush.msra.mxu0 %v11401_v52  ;;  %2897 = vmatpush.msra.mxu2 %v11402_v59  ;;  %v11412_v52 = vld [vmem:[#allocation149_spill] sm:$0xff]  ;;  %v11413_v59 = vld [vmem:[#allocation150_spill] sm:$0xff] }
 0x4e9   :  { %2966 = vmatpush.msrb.mxu1 %v11403_v19  ;;  %3006 = vmatpush.msrb.mxu3 %v11404_v31  ;;  %v11414_v19 = vld [vmem:[#allocation151_spill] sm:$0xff]  ;;  %v11415_v31 = vld [vmem:[#allocation152_spill] sm:$0xff] }
 0x4ea   :  { %2858 = vmatpush.msra.mxu0 %v11405_v10  ;;  %2898 = vmatpush.msra.mxu2 %v11406_v24  ;;  %v11416_v10 = vld [vmem:[#allocation153_spill] sm:$0xff]  ;;  %v11417_v24 = vld [vmem:[#allocation154_spill] sm:$0xff] }
 0x4eb   :  { %2967 = vmatpush.msrb.mxu1 %v11407_v20  ;;  %3007 = vmatpush.msrb.mxu3 %v11408_v62  ;;  %v11418_v20 = vld [vmem:[#allocation155_spill] sm:$0xff]  ;;  %v11419_v62 = vld [vmem:[#allocation156_spill] sm:$0xff] }
 0x4ec   :  { %2859 = vmatpush.msra.mxu0 %v11409_v32  ;;  %2899 = vmatpush.msra.mxu2 %v11410_v36  ;;  %v11420_v32 = vld [vmem:[#allocation157_spill] sm:$0xff]  ;;  %v11421_v36 = vld [vmem:[#allocation158_spill] sm:$0xff] }
 0x4ed   :  { %2968 = vmatpush.msrb.mxu1 %v11411_v11  ;;  %3008 = vmatpush.msrb.mxu3 %v11412_v52  ;;  %v11422_v11 = vld [vmem:[#allocation159_spill] sm:$0xff]  ;;  %v11423_v52 = vld [vmem:[#allocation160_spill] sm:$0xff] }
 0x4ee   :  { %2860 = vmatpush.msra.mxu0 %v11413_v59  ;;  %2900 = vmatpush.msra.mxu2 %v11414_v19  ;;  %v11424_v59 = vld [vmem:[#allocation161_spill] sm:$0xff]  ;;  %v11425_v19 = vld [vmem:[#allocation162_spill] sm:$0xff] }
 0x4ef   :  { %2969 = vmatpush.msrb.mxu1 %v11415_v31  ;;  %3009 = vmatpush.msrb.mxu3 %v11416_v10  ;;  %v11426_v31 = vld [vmem:[#allocation163_spill] sm:$0xff]  ;;  %v11427_v10 = vld [vmem:[#allocation164_spill] sm:$0xff] }
 0x4f0   :  { %2861 = vmatpush.msra.mxu0 %v11417_v24  ;;  %2901 = vmatpush.msra.mxu2 %v11418_v20  ;;  %v11428_v24 = vld [vmem:[#allocation165_spill] sm:$0xff]  ;;  %v11429_v20 = vld [vmem:[#allocation166_spill] sm:$0xff] }
 0x4f1   :  { %2970 = vmatpush.msrb.mxu1 %v11419_v62  ;;  %3010 = vmatpush.msrb.mxu3 %v11420_v32  ;;  %v11430_v62 = vld [vmem:[#allocation167_spill] sm:$0xff]  ;;  %v11431_v32 = vld [vmem:[#allocation168_spill] sm:$0xff]  ;;  %v2483_v30 = vpop.f32.mrf.mxu3 }
 0x4f2   :  { %2862 = vmatpush.msra.mxu0 %v11421_v36  ;;  %2902 = vmatpush.msra.mxu2 %v11422_v11  ;;  %v11432_v36 = vld [vmem:[#allocation169_spill] sm:$0xff]  ;;  %v11433_v11 = vld [vmem:[#allocation170_spill] sm:$0xff] }
 0x4f3   :  { %2971 = vmatpush.msrb.mxu1 %v11423_v52  ;;  %3011 = vmatpush.msrb.mxu3 %v11424_v59  ;;  %v11434_v52 = vld [vmem:[#allocation171_spill] sm:$0xff]  ;;  %v11435_v59 = vld [vmem:[#allocation172_spill] sm:$0xff] }
 0x4f4   :  { %2863 = vmatpush.msra.mxu0 %v11425_v19  ;;  %2903 = vmatpush.msra.mxu2 %v11426_v31  ;;  %v11436_v19 = vld [vmem:[#allocation173_spill] sm:$0xff]  ;;  %v11437_v31 = vld [vmem:[#allocation174_spill] sm:$0xff] }
 0x4f6   :  { %2864 = vmatpush.msra.mxu0 %v11427_v10  ;;  %2904 = vmatpush.msra.mxu2 %v11428_v24  ;;  %v11438_v10 = vld [vmem:[#allocation175_spill] sm:$0xff]  ;;  %v11439_v24 = vld [vmem:[#allocation176_spill] sm:$0xff] }
 0x4f8   :  { %2865 = vmatpush.msra.mxu0 %v11429_v20  ;;  %2905 = vmatpush.msra.mxu2 %v11430_v62  ;;  %v11440_v20 = vld [vmem:[#allocation177_spill] sm:$0xff]  ;;  %v11441_v62 = vld [vmem:[#allocation178_spill] sm:$0xff] }
 0x4fa   :  { %2866 = vmatpush.msra.mxu0 %v11431_v32  ;;  %2906 = vmatpush.msra.mxu2 %v11432_v36  ;;  %v11442_v32 = vld [vmem:[#allocation179_spill] sm:$0xff]  ;;  %v11443_v36 = vld [vmem:[#allocation180_spill] sm:$0xff] }
 0x4fc   :  { %2867 = vmatpush.msra.mxu0 %v11433_v11  ;;  %2907 = vmatpush.msra.mxu2 %v11434_v52  ;;  %v11444_v11 = vld [vmem:[#allocation181_spill] sm:$0xff]  ;;  %v11445_v52 = vld [vmem:[#allocation182_spill] sm:$0xff] }
 0x4fe   :  { %2868 = vmatpush.msra.mxu0 %v11435_v59  ;;  %2908 = vmatpush.msra.mxu2 %v11436_v19  ;;  %v11446_v59 = vld [vmem:[#allocation183_spill] sm:$0xff]  ;;  %v11447_v19 = vld [vmem:[#allocation78_spill] sm:$0xff] }
 0x500   :  { %2869 = vmatpush.msra.mxu0 %v11437_v31  ;;  %2909 = vmatpush.msra.mxu2 %v11438_v10  ;;  %v11448_v31 = vld [vmem:[#allocation80_spill] sm:$0xff] }
 0x501   :  { %v11449_v10 = vld [vmem:[#allocation84_spill] sm:$0xff] }
 0x502   :  { %2870 = vmatpush.msra.mxu0 %v11439_v24  ;;  %2910 = vmatpush.msra.mxu2 %v11440_v20  ;;  %v11450_v24 = vld [vmem:[#allocation82_spill] sm:$0xff] }
 0x503   :  { %v11451_v20 = vld [vmem:[#allocation86_spill] sm:$0xff] }
 0x504   :  { %2871 = vmatpush.msra.mxu0 %v11441_v62  ;;  %2911 = vmatpush.msra.mxu2 %v11442_v32  ;;  %v11452_v62 = vld [vmem:[#allocation83_spill] sm:$0xff]  ;;  %v11453_v32 = vld [vmem:[#allocation88_spill] sm:$0xff] }
 0x506   :  { %2936 = vmatpush.msrb.mxu0 %v11443_v36  ;;  %2976 = vmatpush.msrb.mxu2 %v11444_v11  ;;  %v11454_v36 = vld [vmem:[#allocation57_spill] sm:$0xff]  ;;  %v11455_v11 = vld [vmem:[#allocation58_spill] sm:$0xff] }
 0x508   :  { %2937 = vmatpush.msrb.mxu0 %v11445_v52  ;;  %2977 = vmatpush.msrb.mxu2 %v11446_v59  ;;  %v11456_v52 = vld [vmem:[#allocation85_spill] sm:$0xff]  ;;  %v11457_v59 = vld [vmem:[#allocation60_spill] sm:$0xff] }
 0x50a   :  { %2938 = vmatpush.msrb.mxu0 %v11447_v19  ;;  %2978 = vmatpush.msrb.mxu2 %v11448_v31  ;;  %v11458_v19 = vld [vmem:[#allocation89_spill] sm:$0xff] }
 0x50b   :  { %v11459_v31 = vld [vmem:[#allocation61_spill] sm:$0xff] }
 0x50c   :  { %2939 = vmatpush.msrb.mxu0 %v11449_v10  ;;  %2979 = vmatpush.msrb.mxu2 %v11450_v24  ;;  %v11460_v10 = vld [vmem:[#allocation87_spill] sm:$0xff]  ;;  %v11461_v24 = vld [vmem:[#allocation90_spill] sm:$0xff] }
 0x50e   :  { %2940 = vmatpush.msrb.mxu0 %v11451_v20  ;;  %2980 = vmatpush.msrb.mxu2 %v11452_v62  ;;  %v11462_v20 = vld [vmem:[#allocation92_spill] sm:$0xff]  ;;  %v11463_v62 = vld [vmem:[#allocation91_spill] sm:$0xff] }
 0x510   :  { %2941 = vmatpush.msrb.mxu0 %v11453_v32  ;;  %2981 = vmatpush.msrb.mxu2 %v11454_v36  ;;  %v11464_v32 = vld [vmem:[#allocation95_spill] sm:$0xff]  ;;  %v11465_v36 = vld [vmem:[#allocation93_spill] sm:$0xff] }
 0x512   :  { %2942 = vmatpush.msrb.mxu0 %v11455_v11  ;;  %2982 = vmatpush.msrb.mxu2 %v11456_v52  ;;  %v11466_v11 = vld [vmem:[#allocation96_spill] sm:$0xff]  ;;  %v11467_v52 = vld [vmem:[#allocation94_spill] sm:$0xff] }
 0x514   :  { %2943 = vmatpush.msrb.mxu0 %v11457_v59  ;;  %2983 = vmatpush.msrb.mxu2 %v11458_v19  ;;  %v11468_v59 = vld [vmem:[#allocation97_spill] sm:$0xff]  ;;  %v11469_v19 = vld [vmem:[#allocation99_spill] sm:$0xff] }
 0x516   :  { %2944 = vmatpush.msrb.mxu0 %v11459_v31  ;;  %2984 = vmatpush.msrb.mxu2 %v11460_v10  ;;  %v11470_v31 = vld [vmem:[#allocation98_spill] sm:$0xff] }
 0x518   :  { %2945 = vmatpush.msrb.mxu0 %v11461_v24  ;;  %2985 = vmatpush.msrb.mxu2 %v11462_v20  ;;  %v11471_v24 = vld [vmem:[#allocation74_spill] sm:$0xff]  ;;  %v11472_v20 = vld [vmem:[#allocation100_spill] sm:$0xff] }
 0x51a   :  { %2946 = vmatpush.msrb.mxu0 %v11463_v62  ;;  %2986 = vmatpush.msrb.mxu2 %v11464_v32  ;;  %v11473_v62 = vld [vmem:[#allocation101_spill] sm:$0xff]  ;;  %v2443_v32 = vpop.f32.mrf.mxu1 }
 0x51c   :  { %2947 = vmatpush.msrb.mxu0 %v11465_v36  ;;  %2987 = vmatpush.msrb.mxu2 %v11466_v11  ;;  %v11474_v36 = vld [vmem:[#allocation102_spill] sm:$0xff]  ;;  %v11475_v11 = vld [vmem:[#allocation103_spill] sm:$0xff] }
 0x51d   :  { %v2423_v10 = vpop.f32.mrf.mxu0 }
 0x51e   :  { %2948 = vmatpush.msrb.mxu0 %v11467_v52  ;;  %2988 = vmatpush.msrb.mxu2 %v11468_v59  ;;  %v2424_v45 = vadd.f32 %v2423_v10, %v11471_v24  ;;  %v11476_v59 = vld [vmem:[#allocation79_spill] sm:$0xff] }
 0x520   :  { %2949 = vmatpush.msrb.mxu0 %v11469_v19  ;;  %2989 = vmatpush.msrb.mxu2 %v11470_v31  ;;  %v2444_v42 = vadd.f32 %v2443_v32, %v2424_v45  ;;  %v2563_v45 = vpop.f32.mrf.mxu3 }
 0x522   :  { %2950 = vmatpush.msrb.mxu0 %v11472_v20  ;;  %2990 = vmatpush.msrb.mxu2 %v11473_v62  ;;  %v4033_v52 = vmul.f32 -1.442695, %v2444_v42  ;;  %v11477_v62 = vld [vmem:[#allocation76_spill] sm:$0xff] }
 0x523   :  { %v2463_v22 = vpop.f32.mrf.mxu2 }
 0x524   :  { %2951 = vmatpush.msrb.mxu0 %v11474_v36  ;;  %2991 = vmatpush.msrb.mxu2 %v11475_v11  ;;  %4208 = vpow2.f32 %v4033_v52  ;;  %v2464_v19 = vadd.f32 %v2463_v22, %v11476_v59  ;;  %v11478_v22 = vld [vmem:[#allocation81_spill] sm:$0xff] }
 0x526   :  { %v2484_v31 = vadd.f32 %v2483_v30, %v2464_v19  ;;  %v2523_v19 = vpop.f32.mrf.mxu1 }
 0x528   :  { %v4034_v21 = vmul.f32 -1.442695, %v2484_v31  ;;  %v2503_v11 = vpop.f32.mrf.mxu0 }
 0x529   :  { %v2504_v59 = vadd.f32 %v2503_v11, %v11478_v22 }
 0x52a   :  { %v4209_v3 = vpop.eup %4208  ;;  %4210 = vpow2.f32 %v4034_v21 }
 0x52b   :  { %v2569_v10 = vadd.f32 1.0, %v4209_v3  ;;  %v2524_v21 = vadd.f32 %v2523_v19, %v2504_v59 }
 0x52d   :  { %4212 = vrcp.f32 %v2569_v10  ;;  %vm2575_vm13 = vweird.f32 %v2569_v10 }
 0x52f   :  { %v2543_v20 = vpop.f32.mrf.mxu2 }
 0x530   :  { %v2544_v24 = vadd.f32 %v2543_v20, %v11477_v62  ;;  %v4211_v32 = vpop.eup %4210  ;;  %v2581_v62 = vand.u32 2147483648, %v2569_v10 }
 0x531   :  { %v2588_v18 = vadd.f32 1.0, %v4211_v32  ;;  %v2579_v32 = vand.u32 2147483647, %v2569_v10 }
 0x532   :  { %v2564_v36 = vadd.f32 %v2563_v45, %v2544_v24 }
 0x533   :  { %v4213_v44 = vpop.eup %4212  ;;  %4214 = vrcp.f32 %v2588_v18  ;;  %vm2594_vm0 = vweird.f32 %v2588_v18  ;;  %vm2580_vm1 = vcmp.eq.f32.partialorder %v2579_v32, 8.507059e+37 }
 0x534   :  { %v4035_v42 = vmul.f32 -1.442695, %v2564_v36  ;;  %v2571_v52 = vmul.f32 %v4213_v44, %v2569_v10  ;;  %vm2576_vm12 = vweird.f32 %v4213_v44  ;;  %v2600_v36 = vand.u32 2147483648, %v2588_v18  ;;  %v2670_v10 = vpop.f32.mrf.mxu1 }
 0x535   :  { %vm2577_vm14 = vmor %vm2575_vm13, %vm2576_vm12 }
 0x536   :  { %4216 = vpow2.f32 %v4035_v42  ;;  %v2572_v30 = vsub.f32 1.0, %v2571_v52  ;;  %v2598_v52 = vand.u32 2147483647, %v2588_v18 }
 0x537   :  { %4218 = vtanh.f32 %v2524_v21 }
 0x538   :  { %v2573_v3 = vmul.f32 %v4213_v44, %v2572_v30  ;;  %v2582_v30 = vor.u32 1.1754944e-38, %v2581_v62  ;;  %vm2599_vm3 = vcmp.eq.f32.partialorder %v2598_v52, 8.507059e+37 }
 0x539   :  { %v4215_v31 = vpop.eup %4214 }
 0x53a   :  { %v2590_v8 = vmul.f32 %v4215_v31, %v2588_v18  ;;  %v2574_v20 = vadd.f32 %v4213_v44, %v2573_v3  ;;  %vm2595_vm15 = vweird.f32 %v4215_v31  ;;  %v2710_v18 = vpop.f32.mrf.mxu3 }
 0x53b   :  { %vm2596_vm2 = vmor %vm2594_vm0, %vm2595_vm15 }
 0x53c   :  { %v4217_v58 = vpop.eup %4216  ;;  %v2591_v45 = vsub.f32 1.0, %v2590_v8  ;;  %v2578_v42 = vsel %vm2577_vm14, %v4213_v44, %v2574_v20 }
 0x53d   :  { %v2608_v24 = vadd.f32 1.0, %v4217_v58  ;;  %v2601_v58 = vor.u32 1.1754944e-38, %v2600_v36  ;;  %v2583_v8 = vsel %vm2580_vm1, %v2582_v30, %v2578_v42  ;;  %v4219_v22 = vpop.eup %4218 }
 0x53e   :  { %v2592_v11 = vmul.f32 %v4215_v31, %v2591_v45  ;;  %v2625_v20 = vmul.f32 %v4219_v22, %v2583_v8 }
 0x53f   :  { %4220 = vrcp.f32 %v2608_v24  ;;  %v2620_v52 = vand.u32 2147483648, %v2608_v24  ;;  %vm2614_vm5 = vweird.f32 %v2608_v24 }
 0x540   :  { %v2593_v3 = vadd.f32 %v4215_v31, %v2592_v11 }
 0x541   :  { %v2650_v59 = vpop.f32.mrf.mxu0  ;;  %v2621_v22 = vor.u32 1.1754944e-38, %v2620_v52  ;;  %v8775_v52 = vld [vmem:[#allocation9 + $0x348] sm:$0xff] }
 0x542   :  { %v2651_v19 = vadd.f32 %v2650_v59, %v10675_v9  ;;  %v2597_v21 = vsel %vm2596_vm2, %v4215_v31, %v2593_v3  ;;  %11485 = vst [vmem:[#allocation41_spill] sm:$0xff] %v8775_v52 }
 0x543   :  { %v2602_v51 = vsel %vm2599_vm3, %v2601_v58, %v2597_v21  ;;  %v8736_v21 = vld [vmem:[#allocation9 + $0x3e0] sm:$0xff] }
 0x544   :  { %v2671_v45 = vadd.f32 %v2670_v10, %v2651_v19  ;;  %v2624_v44 = vmul.f32 %v2602_v51, %v8284_v37  ;;  %v2618_v19 = vand.u32 2147483647, %v2608_v24 }
 0x545   :  { %v4221_v16 = vpop.eup %4220 }
 0x546   :  { %v2610_v1 = vmul.f32 %v4221_v16, %v2608_v24  ;;  %v8733_v32 = vadd.f32 %v2625_v20, %v2624_v44  ;;  %v4036_v36 = vmul.f32 -1.442695, %v2671_v45  ;;  %vm2615_vm4 = vweird.f32 %v4221_v16  ;;  %v8739_v24 = vld [vmem:[#allocation9 + $0x3e8] sm:$0xff] }
 0x547   :  { %v2690_v62 = vpop.f32.mrf.mxu2  ;;  %vm2616_vm6 = vmor %vm2614_vm5, %vm2615_vm4  ;;  %vm2619_vm7 = vcmp.eq.f32.partialorder %v2618_v19, 8.507059e+37  ;;  %v8747_v44 = vld [vmem:[#allocation9 + $0x3c8] sm:$0xff]  ;;  %v8780_v19 = vld [vmem:[#allocation9 + $0x320] sm:$0xff] }
 0x548   :  { %v2691_v59 = vadd.f32 %v2690_v62, %v10676_v33  ;;  %v2611_v11 = vsub.f32 1.0, %v2610_v1  ;;  %4222 = vtanh.f32 %v8733_v32  ;;  %v8752_v62 = vld [vmem:[#allocation9 + $0x3a0] sm:$0xff]  ;;  %11486 = vst [vmem:[#allocation46_spill] sm:$0xff] %v8780_v19 }
 0x549   :  { %4224 = vpow2.f32 %v4036_v36  ;;  %v8766_v36 = vld [vmem:[#allocation9 + $0x360] sm:$0xff] }
 0x54a   :  { %v2711_v42 = vadd.f32 %v2710_v18, %v2691_v59  ;;  %v2612_v31 = vmul.f32 %v4221_v16, %v2611_v11  ;;  %v8755_v59 = vld [vmem:[#allocation9 + $0x3a8] sm:$0xff]  ;;  %v8759_v18 = vld [vmem:[#allocation9 + $0x380] sm:$0xff]  ;;  %11482 = vst [vmem:[#allocation42_spill] sm:$0xff] %v8766_v36 }
 0x54b   :  { %11479 = vst [vmem:[#allocation35_spill] sm:$0xff] %v8755_v59  ;;  %v8762_v11 = vld [vmem:[#allocation9 + $0x388] sm:$0xff] }
 0x54c   :  { %v4037_v30 = vmul.f32 -1.442695, %v2711_v42  ;;  %v2613_v37 = vadd.f32 %v4221_v16, %v2612_v31  ;;  %11480 = vst [vmem:[#allocation40_spill] sm:$0xff] %v8759_v18  ;;  %v8769_v42 = vld [vmem:[#allocation9 + $0x368] sm:$0xff]  ;;  %v8772_v31 = vld [vmem:[#allocation9 + $0x340] sm:$0xff] }
 0x54d   :  { %11481 = vst [vmem:[#allocation37_spill] sm:$0xff] %v8762_v11 }
 0x54e   :  { %4226 = vpow2.f32 %v4037_v30  ;;  %v2617_v51 = vsel %vm2616_vm6, %v4221_v16, %v2613_v37  ;;  %v4223_v3 = vpop.eup %4222  ;;  %v8744_v16 = vld [vmem:[#allocation9 + $0x3c0] sm:$0xff]  ;;  %11483 = vst [vmem:[#allocation39_spill] sm:$0xff] %v8769_v42  ;;  %v8783_v37 = vld [vmem:[#allocation9 + $0x328] sm:$0xff] }
 0x54f   :  { %v2622_v58 = vsel %vm2619_vm7, %v2621_v22, %v2617_v51  ;;  %v4225_v8 = vpop.eup %4224  ;;  %11484 = vst [vmem:[#allocation44_spill] sm:$0xff] %v8772_v31  ;;  %v8788_v22 = vld [vmem:[#allocation9 + $0x300] sm:$0xff] }
 0x550   :  { %v2628_v1 = vmul.f32 %v4223_v3, %v2622_v58  ;;  %v8742_v45 = vadd.f32 1.0, %v4225_v8  ;;  %11487 = vst [vmem:[#allocation43_spill] sm:$0xff] %v8783_v37  ;;  %v8791_v3 = vld [vmem:[#allocation9 + $0x308] sm:$0xff] }
 0x551   :  { %11488 = vst [vmem:[#allocation48_spill] sm:$0xff] %v8788_v22 }
 0x552   :  { %2630 = vst [vmem:[#allocation15 + $0x8] sm:$0x3] %v2628_v1  ;;  %2892 = vmatmul.f32.vlgmr.msra.gmra.mxu1 %v2628_v1  ;;  %2932 = vmatmul.f32.vlgmr.msra.gmra.mxu3 %v2628_v1  ;;  %4228 = vrcp.f32 %v8742_v45  ;;  %vm2802_vm10 = vweird.f32 %v8742_v45 }
 0x553   :  { %3103 = vmatpush.msra.mxu1 %v8736_v21  ;;  %3143 = vmatpush.msra.mxu3 %v8739_v24  ;;  %11489 = vst [vmem:[#allocation45_spill] sm:$0xff] %v8791_v3 }
 0x554   :  { %v4227_v10 = vpop.eup %4226 }
 0x555   :  { %3104 = vmatpush.msra.mxu1 %v8744_v16  ;;  %3144 = vmatpush.msra.mxu3 %v8747_v44  ;;  %v8750_v20 = vadd.f32 1.0, %v4227_v10  ;;  %v8798_v10 = vld [vmem:[#allocation9 + $0x2e0] sm:$0xff] }
 0x556   :  { %11490 = vst [vmem:[#allocation50_spill] sm:$0xff] %v8798_v10 }
 0x557   :  { %3105 = vmatpush.msra.mxu1 %v8752_v62  ;;  %3145 = vmatpush.msra.mxu3 %v8755_v59  ;;  %4230 = vrcp.f32 %v8750_v20  ;;  %v8818_v59 = vld [vmem:[#allocation9 + $0x280] sm:$0xff]  ;;  %vm2821_vm11 = vweird.f32 %v8750_v20 }
 0x558   :  { %v8778_v30 = vpop.eup %4228  ;;  %11495 = vst [vmem:[#allocation51_spill] sm:$0xff] %v8818_v59 }
 0x559   :  { %3106 = vmatpush.msra.mxu1 %v8759_v18  ;;  %3146 = vmatpush.msra.mxu3 %v8762_v11  ;;  %v2798_v58 = vmul.f32 %v8778_v30, %v8742_v45  ;;  %v8812_v11 = vld [vmem:[#allocation9 + $0x2a0] sm:$0xff]  ;;  %v2750_v18 = vpop.f32.mrf.mxu1  ;;  %vm2803_vm8 = vweird.f32 %v8778_v30 }
 0x55a   :  { %2972 = vmatmul.f32.vlgmr.msrb.gmra.mxu1 %v2628_v1  ;;  %3012 = vmatmul.f32.vlgmr.msrb.gmra.mxu3 %v2628_v1  ;;  %11493 = vst [vmem:[#allocation49_spill] sm:$0xff] %v8812_v11  ;;  %vm8852_vm12 = vmor %vm2802_vm10, %vm2803_vm8 }
 0x55b   :  { %3107 = vmatpush.msra.mxu1 %v8766_v36  ;;  %3147 = vmatpush.msra.mxu3 %v8769_v42  ;;  %v2790_v42 = vpop.f32.mrf.mxu3  ;;  %v2799_v36 = vsub.f32 1.0, %v2798_v58 }
 0x55d   :  { %3108 = vmatpush.msra.mxu1 %v8772_v31  ;;  %3148 = vmatpush.msra.mxu3 %v8775_v52  ;;  %v8786_v51 = vpop.eup %4230 }
 0x55e   :  { %v2817_v1 = vmul.f32 %v8786_v51, %v8750_v20  ;;  %vm2822_vm9 = vweird.f32 %v8786_v51 }
 0x55f   :  { %3109 = vmatpush.msra.mxu1 %v8780_v19  ;;  %3149 = vmatpush.msra.mxu3 %v8783_v37  ;;  %v8801_v37 = vld [vmem:[#allocation9 + $0x2e8] sm:$0xff]  ;;  %v8804_v19 = vld [vmem:[#allocation9 + $0x2c0] sm:$0xff]  ;;  %vm8866_vm13 = vmor %vm2821_vm11, %vm2822_vm9 }
 0x560   :  { %11491 = vst [vmem:[#allocation47_spill] sm:$0xff] %v8801_v37 }
 0x561   :  { %3110 = vmatpush.msra.mxu1 %v8788_v22  ;;  %3150 = vmatpush.msra.mxu3 %v8791_v3  ;;  %v2730_v8 = vpop.f32.mrf.mxu0  ;;  %11492 = vst [vmem:[#allocation52_spill] sm:$0xff] %v8804_v19  ;;  %v8807_v3 = vld [vmem:[#allocation9 + $0x2c8] sm:$0xff] }
 0x562   :  { %v2731_v52 = vadd.f32 %v2730_v8, %v11297_v47  ;;  %v8821_v8 = vld [vmem:[#allocation9 + $0x288] sm:$0xff]  ;;  %v8882_v47 = vld [vmem:[#allocation9 + $0x3d0] sm:$0xff] }
 0x563   :  { %3111 = vmatpush.msra.mxu1 %v8798_v10  ;;  %3151 = vmatpush.msra.mxu3 %v8801_v37  ;;  %v2818_v10 = vsub.f32 1.0, %v2817_v1  ;;  %v8815_v37 = vld [vmem:[#allocation9 + $0x2a8] sm:$0xff]  ;;  %11496 = vst [vmem:[#allocation56_spill] sm:$0xff] %v8821_v8 }
 0x564   :  { %11494 = vst [vmem:[#allocation54_spill] sm:$0xff] %v8815_v37 }
 0x565   :  { %3112 = vmatpush.msra.mxu1 %v8804_v19  ;;  %3152 = vmatpush.msra.mxu3 %v8807_v3  ;;  %v2819_v1 = vmul.f32 %v8786_v51, %v2818_v10  ;;  %v2827_v10 = vand.u32 2147483648, %v8750_v20 }
 0x567   :  { %v2770_v22 = vpop.f32.mrf.mxu2  ;;  %3113 = vmatpush.msra.mxu1 %v8812_v11  ;;  %3153 = vmatpush.msra.mxu3 %v8815_v37  ;;  %v2800_v11 = vmul.f32 %v8778_v30, %v2799_v36  ;;  %v2820_v36 = vadd.f32 %v8786_v51, %v2819_v1  ;;  %v2825_v1 = vand.u32 2147483647, %v8750_v20 }
 0x568   :  { %v2771_v31 = vadd.f32 %v2770_v22, %v11298_v4  ;;  %v2751_v22 = vadd.f32 %v2750_v18, %v2731_v52  ;;  %v8826_v4 = vld [vmem:[#allocation9 + $0x260] sm:$0xff] }
 0x569   :  { %3114 = vmatpush.msra.mxu1 %v8818_v59  ;;  %3154 = vmatpush.msra.mxu3 %v8821_v8  ;;  %11497 = vst [vmem:[#allocation53_spill] sm:$0xff] %v8826_v4  ;;  %v8835_v8 = vld [vmem:[#allocation9 + $0x248] sm:$0xff]  ;;  %v2801_v18 = vadd.f32 %v8778_v30, %v2800_v11  ;;  %v8842_v52 = vld [vmem:[#allocation9 + $0x220] sm:$0xff]  ;;  %v2828_v59 = vor.u32 1.1754944e-38, %v2827_v10  ;;  %vm2826_vm15 = vcmp.eq.f32.partialorder %v2825_v1, 8.507059e+37  ;;  %v8888_v11 = vld [vmem:[#allocation9 + $0x3b0] sm:$0xff] }
 0x56a   :  { %v2791_v19 = vadd.f32 %v2790_v42, %v2771_v31  ;;  %v8829_v42 = vld [vmem:[#allocation9 + $0x268] sm:$0xff]  ;;  %v8832_v31 = vld [vmem:[#allocation9 + $0x240] sm:$0xff]  ;;  %11500 = vst [vmem:[#allocation59_spill] sm:$0xff] %v8835_v8  ;;  %v8912_v1 = vld [vmem:[#allocation9 + $0x358] sm:$0xff] }
 0x56b   :  { %3115 = vmatpush.msra.mxu1 %v8826_v4  ;;  %11498 = vst [vmem:[#allocation55_spill] sm:$0xff] %v8829_v42  ;;  %3155 = vmatpush.msra.mxu3 %v8829_v42  ;;  %v8870_v42 = vld [vmem:[#allocation9 + $0x3f0] sm:$0xff]  ;;  %v2805_v20 = vsel %vm8852_vm12, %v8778_v30, %v2801_v18 }
 0x56c   :  { %v4038_v58 = vmul.f32 -1.442695, %v2791_v19  ;;  %11499 = vst [vmem:[#allocation63_spill] sm:$0xff] %v8832_v31  ;;  %v8845_v19 = vld [vmem:[#allocation9 + $0x228] sm:$0xff] }
 0x56d   :  { %3116 = vmatpush.msra.mxu1 %v8832_v31  ;;  %3156 = vmatpush.msra.mxu3 %v8835_v8  ;;  %11501 = vst [vmem:[#allocation65_spill] sm:$0xff] %v8842_v52  ;;  %v8894_v31 = vld [vmem:[#allocation9 + $0x390] sm:$0xff] }
 0x56e   :  { %4232 = vpow2.f32 %v4038_v58  ;;  %11502 = vst [vmem:[#allocation62_spill] sm:$0xff] %v8845_v19  ;;  %v2806_v58 = vand.u32 2147483647, %v8742_v45 }
 0x56f   :  { %4234 = vtanh.f32 %v2751_v22  ;;  %3117 = vmatpush.msra.mxu1 %v8842_v52  ;;  %3157 = vmatpush.msra.mxu3 %v8845_v19  ;;  %v2808_v22 = vand.u32 2147483648, %v8742_v45  ;;  %v8858_v52 = vld [vmem:[#allocation9 + $0x200] sm:$0xff]  ;;  %v8861_v19 = vld [vmem:[#allocation9 + $0x208] sm:$0xff]  ;;  %11509 = vst [vmem:[#allocation69_spill] sm:$0xff] %v8870_v42  ;;  %v8873_v45 = vld [vmem:[#allocation9 + $0x3f8] sm:$0xff] }
 0x570   :  { %11505 = vst [vmem:[#allocation67_spill] sm:$0xff] %v8858_v52  ;;  %vm2807_vm14 = vcmp.eq.f32.partialorder %v2806_v58, 8.507059e+37  ;;  %v8909_v58 = vld [vmem:[#allocation9 + $0x350] sm:$0xff] }
 0x571   :  { %3118 = vmatpush.msra.mxu1 %v8858_v52  ;;  %11506 = vst [vmem:[#allocation64_spill] sm:$0xff] %v8861_v19  ;;  %3158 = vmatpush.msra.mxu3 %v8861_v19  ;;  %v2824_v19 = vsel %vm8866_vm13, %v8786_v51, %v2820_v36  ;;  %v2809_v37 = vor.u32 1.1754944e-38, %v2808_v22  ;;  %v8891_v51 = vld [vmem:[#allocation9 + $0x3b8] sm:$0xff] }
 0x572   :  { %v2829_v18 = vsel %vm2826_vm15, %v2828_v59, %v2824_v19  ;;  %v8897_v36 = vld [vmem:[#allocation9 + $0x398] sm:$0xff]  ;;  %v8901_v59 = vld [vmem:[#allocation9 + $0x370] sm:$0xff]  ;;  %11512 = vst [vmem:[#allocation68_spill] sm:$0xff] %v8909_v58 }
 0x573   :  { %3183 = vmatpush.msrb.mxu1 %v8870_v42  ;;  %3223 = vmatpush.msrb.mxu3 %v8873_v45  ;;  %v8885_v42 = vld [vmem:[#allocation9 + $0x3d8] sm:$0xff]  ;;  %v2810_v30 = vsel %vm2807_vm14, %v2809_v37, %v2805_v20  ;;  %v2851_v37 = vmul.f32 %v2829_v18, %v8375_v34  ;;  %11510 = vst [vmem:[#allocation66_spill] sm:$0xff] %v8901_v59  ;;  %v8915_v20 = vld [vmem:[#allocation9 + $0x330] sm:$0xff] }
 0x574   :  { %v4233_v8 = vpop.eup %4232  ;;  %v8904_v19 = vld [vmem:[#allocation9 + $0x378] sm:$0xff]  ;;  %11513 = vst [vmem:[#allocation73_spill] sm:$0xff] %v8912_v1 }
 0x575   :  { %v2835_v52 = vadd.f32 1.0, %v4233_v8  ;;  %v4235_v4 = vpop.eup %4234  ;;  %3184 = vmatpush.msrb.mxu1 %v8882_v47  ;;  %3224 = vmatpush.msrb.mxu3 %v8885_v42  ;;  %11511 = vst [vmem:[#allocation71_spill] sm:$0xff] %v8904_v19 }
 0x576   :  { %v2852_v8 = vmul.f32 %v4235_v4, %v2810_v30  ;;  %11514 = vst [vmem:[#allocation70_spill] sm:$0xff] %v8915_v20  ;;  %v8918_v30 = vld [vmem:[#allocation9 + $0x338] sm:$0xff] }
 0x577   :  { %4236 = vrcp.f32 %v2835_v52  ;;  %3185 = vmatpush.msrb.mxu1 %v8888_v11  ;;  %3225 = vmatpush.msrb.mxu3 %v8891_v51  ;;  %11515 = vst [vmem:[#allocation75_spill] sm:$0xff] %v8918_v30  ;;  %v2847_v18 = vand.u32 2147483648, %v2835_v52  ;;  %vm2841_vm1 = vweird.f32 %v2835_v52 }
 0x578   :  { %v8907_v4 = vadd.f32 %v2852_v8, %v2851_v37  ;;  %v2845_v37 = vand.u32 2147483647, %v2835_v52 }
 0x579   :  { %3186 = vmatpush.msrb.mxu1 %v8894_v31  ;;  %3226 = vmatpush.msrb.mxu3 %v8897_v36 }
 0x57a   :  { %4238 = vtanh.f32 %v8907_v4  ;;  %vm2846_vm3 = vcmp.eq.f32.partialorder %v2845_v37, 8.507059e+37  ;;  %v9087_v37 = vld [vmem:[#allocation12 + $0x288] sm:$0xff] }
 0x57b   :  { %3187 = vmatpush.msrb.mxu1 %v8901_v59  ;;  %3227 = vmatpush.msrb.mxu3 %v8904_v19  ;;  %v8934_v59 = vld [vmem:[#allocation9 + $0x2d0] sm:$0xff]  ;;  %11538 = vst [vmem:[#allocation135_spill] sm:$0xff] %v9087_v37 }
 0x57d   :  { %v4237_v10 = vpop.eup %4236  ;;  %3188 = vmatpush.msrb.mxu1 %v8909_v58  ;;  %3228 = vmatpush.msrb.mxu3 %v8912_v1  ;;  %v8922_v58 = vld [vmem:[#allocation9 + $0x310] sm:$0xff]  ;;  %v8925_v1 = vld [vmem:[#allocation9 + $0x318] sm:$0xff] }
 0x57e   :  { %v2837_v22 = vmul.f32 %v4237_v10, %v2835_v52  ;;  %vm2842_vm0 = vweird.f32 %v4237_v10  ;;  %11516 = vst [vmem:[#allocation72_spill] sm:$0xff] %v8922_v58 }
 0x57f   :  { %3189 = vmatpush.msrb.mxu1 %v8915_v20  ;;  %3229 = vmatpush.msrb.mxu3 %v8918_v30  ;;  %11517 = vst [vmem:[#allocation77_spill] sm:$0xff] %v8925_v1  ;;  %v8928_v20 = vld [vmem:[#allocation9 + $0x2f0] sm:$0xff]  ;;  %v8931_v30 = vld [vmem:[#allocation9 + $0x2f8] sm:$0xff]  ;;  %vm2843_vm2 = vmor %vm2841_vm1, %vm2842_vm0 }
 0x580   :  { %v2838_v34 = vsub.f32 1.0, %v2837_v22  ;;  %11518 = vst [vmem:[#allocation119_spill] sm:$0xff] %v8928_v20  ;;  %v4239_v52 = vpop.eup %4238 }
 0x581   :  { %3190 = vmatpush.msrb.mxu1 %v8922_v58  ;;  %3230 = vmatpush.msrb.mxu3 %v8925_v1  ;;  %11519 = vst [vmem:[#allocation120_spill] sm:$0xff] %v8931_v30  ;;  %v8937_v58 = vld [vmem:[#allocation9 + $0x2d8] sm:$0xff] }
 0x582   :  { %v2839_v8 = vmul.f32 %v4237_v10, %v2838_v34  ;;  %v2848_v34 = vor.u32 1.1754944e-38, %v2847_v18  ;;  %v8957_v18 = vld [vmem:[#allocation9 + $0x270] sm:$0xff] }
 0x583   :  { %3191 = vmatpush.msrb.mxu1 %v8928_v20  ;;  %3231 = vmatpush.msrb.mxu3 %v8931_v30  ;;  %v8940_v20 = vld [vmem:[#allocation9 + $0x2b0] sm:$0xff]  ;;  %v8943_v30 = vld [vmem:[#allocation9 + $0x2b8] sm:$0xff] }
 0x584   :  { %v2840_v22 = vadd.f32 %v4237_v10, %v2839_v8 }
 0x585   :  { %3192 = vmatpush.msrb.mxu1 %v8934_v59  ;;  %3232 = vmatpush.msrb.mxu3 %v8937_v58 }
 0x586   :  { %v2844_v19 = vsel %vm2843_vm2, %v4237_v10, %v2840_v22  ;;  %v8953_v10 = vld [vmem:[#allocation9 + $0x298] sm:$0xff]  ;;  %v11539_v22 = vld [vmem:[#allocation110_spill] sm:$0xff] }
 0x587   :  { %v2849_v8 = vsel %vm2846_vm3, %v2848_v34, %v2844_v19  ;;  %3193 = vmatpush.msrb.mxu1 %v8940_v20  ;;  %3233 = vmatpush.msrb.mxu3 %v8943_v30  ;;  %v8949_v19 = vld [vmem:[#allocation9 + $0x290] sm:$0xff] }
 0x588   :  { %v2855_v1 = vmul.f32 %v4239_v52, %v2849_v8  ;;  %v11540_v34 = vld [vmem:[#allocation111_spill] sm:$0xff]  ;;  %v9092_v52 = vld [vmem:[#allocation12 + $0x260] sm:$0xff] }
 0x589   :  { %3194 = vmatpush.msrb.mxu1 %v8949_v19  ;;  %3234 = vmatpush.msrb.mxu3 %v8953_v10  ;;  %11541 = vst [vmem:[#allocation136_spill] sm:$0xff] %v9092_v52  ;;  %v9095_v8 = vld [vmem:[#allocation12 + $0x268] sm:$0xff] }
 0x58a   :  { %2872 = vmatmul.f32.vlgmr.msra.gmra.mxu0 %v2855_v1  ;;  %2912 = vmatmul.f32.vlgmr.msra.gmra.mxu2 %v2855_v1  ;;  %11542 = vst [vmem:[#allocation137_spill] sm:$0xff] %v9095_v8 }
 0x58b   :  { %3083 = vmatpush.msra.mxu0 %v8392_v57  ;;  %3119 = vmatmul.f32.vlgmr.msra.gmra.mxu1 %v2855_v1  ;;  %v8961_v57 = vld [vmem:[#allocation9 + $0x278] sm:$0xff] }
 0x58c   :  { %3123 = vmatpush.msra.mxu2 %v8395_v12  ;;  %3159 = vmatmul.f32.vlgmr.msra.gmra.mxu3 %v2855_v1  ;;  %v8965_v12 = vld [vmem:[#allocation9 + $0x250] sm:$0xff] }
 0x58d   :  { %3084 = vmatpush.msra.mxu0 %v8398_v41  ;;  %3195 = vmatpush.msrb.mxu1 %v8957_v18  ;;  %v8969_v41 = vld [vmem:[#allocation9 + $0x258] sm:$0xff] }
 0x58e   :  { %3124 = vmatpush.msra.mxu2 %v8402_v27  ;;  %3235 = vmatpush.msrb.mxu3 %v8961_v57  ;;  %v8974_v27 = vld [vmem:[#allocation9 + $0x230] sm:$0xff] }
 0x58f   :  { %3085 = vmatpush.msra.mxu0 %v8406_v15  ;;  %3196 = vmatpush.msrb.mxu1 %v8965_v12  ;;  %v8977_v15 = vld [vmem:[#allocation9 + $0x238] sm:$0xff] }
 0x590   :  { %3125 = vmatpush.msra.mxu2 %v8410_v49  ;;  %3236 = vmatpush.msrb.mxu3 %v8969_v41  ;;  %v8982_v49 = vld [vmem:[#allocation9 + $0x210] sm:$0xff] }
 0x591   :  { %3086 = vmatpush.msra.mxu0 %v8414_v29  ;;  %3197 = vmatpush.msrb.mxu1 %v8974_v27  ;;  %v8985_v29 = vld [vmem:[#allocation9 + $0x218] sm:$0xff] }
 0x592   :  { %3126 = vmatpush.msra.mxu2 %v8418_v39  ;;  %2952 = vmatmul.f32.vlgmr.msrb.gmra.mxu0 %v2855_v1  ;;  %v8990_v39 = vld [vmem:[#allocation12 + $0x3e0] sm:$0xff] }
 0x593   :  { %2992 = vmatmul.f32.vlgmr.msrb.gmra.mxu2 %v2855_v1  ;;  %3087 = vmatpush.msra.mxu0 %v8421_v0  ;;  %v8993_v0 = vld [vmem:[#allocation12 + $0x3e8] sm:$0xff] }
 0x594   :  { %3127 = vmatpush.msra.mxu2 %v8424_v53  ;;  %3237 = vmatpush.msrb.mxu3 %v8977_v15  ;;  %v8998_v53 = vld [vmem:[#allocation12 + $0x3c0] sm:$0xff] }
 0x595   :  { %3088 = vmatpush.msra.mxu0 %v8428_v7  ;;  %3198 = vmatpush.msrb.mxu1 %v8982_v49  ;;  %v9001_v7 = vld [vmem:[#allocation12 + $0x3c8] sm:$0xff] }
 0x596   :  { %3128 = vmatpush.msra.mxu2 %v8432_v23  ;;  %3238 = vmatpush.msrb.mxu3 %v8985_v29  ;;  %v9006_v23 = vld [vmem:[#allocation12 + $0x3a0] sm:$0xff] }
 0x597   :  { %3199 = vmatmul.f32.vlgmr.msrb.gmra.mxu1 %v2855_v1  ;;  %3239 = vmatmul.f32.vlgmr.msrb.gmra.mxu3 %v2855_v1  ;;  %v9084_v1 = vld [vmem:[#allocation12 + $0x280] sm:$0xff] }
 0x598   :  { %3089 = vmatpush.msra.mxu0 %v8436_v40  ;;  %3129 = vmatpush.msra.mxu2 %v8439_v2  ;;  %v9009_v40 = vld [vmem:[#allocation12 + $0x3a8] sm:$0xff]  ;;  %v9014_v2 = vld [vmem:[#allocation12 + $0x380] sm:$0xff]  ;;  %11537 = vst [vmem:[#allocation134_spill] sm:$0xff] %v9084_v1 }
 0x599   :  { %3326 = vmatpush.msra.mxu1 %v8990_v39  ;;  %3366 = vmatpush.msra.mxu3 %v8993_v0 }
 0x59a   :  { %3090 = vmatpush.msra.mxu0 %v8444_v6  ;;  %3130 = vmatpush.msra.mxu2 %v8447_v54  ;;  %v9017_v6 = vld [vmem:[#allocation12 + $0x388] sm:$0xff]  ;;  %v9022_v54 = vld [vmem:[#allocation12 + $0x360] sm:$0xff] }
 0x59b   :  { %3327 = vmatpush.msra.mxu1 %v8998_v53  ;;  %3367 = vmatpush.msra.mxu3 %v9001_v7 }
 0x59c   :  { %3091 = vmatpush.msra.mxu0 %v8452_v50  ;;  %3131 = vmatpush.msra.mxu2 %v8455_v38  ;;  %v9025_v50 = vld [vmem:[#allocation12 + $0x368] sm:$0xff]  ;;  %v9030_v38 = vld [vmem:[#allocation12 + $0x340] sm:$0xff] }
 0x59d   :  { %3328 = vmatpush.msra.mxu1 %v9006_v23  ;;  %3368 = vmatpush.msra.mxu3 %v9009_v40  ;;  %11520 = vst [vmem:[#allocation121_spill] sm:$0xff] %v9025_v50 }
 0x59e   :  { %3092 = vmatpush.msra.mxu0 %v8460_v5  ;;  %3132 = vmatpush.msra.mxu2 %v8463_v28  ;;  %11521 = vst [vmem:[#allocation122_spill] sm:$0xff] %v9030_v38  ;;  %v9033_v5 = vld [vmem:[#allocation12 + $0x348] sm:$0xff]  ;;  %v9038_v28 = vld [vmem:[#allocation12 + $0x320] sm:$0xff] }
 0x59f   :  { %3329 = vmatpush.msra.mxu1 %v9014_v2  ;;  %3369 = vmatpush.msra.mxu3 %v9017_v6  ;;  %11522 = vst [vmem:[#allocation123_spill] sm:$0xff] %v9033_v5 }
 0x5a0   :  { %3093 = vmatpush.msra.mxu0 %v8468_v17  ;;  %3133 = vmatpush.msra.mxu2 %v8471_v14  ;;  %11523 = vst [vmem:[#allocation124_spill] sm:$0xff] %v9038_v28  ;;  %v9041_v17 = vld [vmem:[#allocation12 + $0x328] sm:$0xff]  ;;  %v9046_v14 = vld [vmem:[#allocation12 + $0x300] sm:$0xff] }
 0x5a1   :  { %3330 = vmatpush.msra.mxu1 %v9022_v54  ;;  %3370 = vmatpush.msra.mxu3 %v9025_v50  ;;  %11524 = vst [vmem:[#allocation125_spill] sm:$0xff] %v9041_v17 }
 0x5a2   :  { %3094 = vmatpush.msra.mxu0 %v8476_v25  ;;  %3134 = vmatpush.msra.mxu2 %v8479_v46  ;;  %11525 = vst [vmem:[#allocation126_spill] sm:$0xff] %v9046_v14  ;;  %v9049_v25 = vld [vmem:[#allocation12 + $0x308] sm:$0xff]  ;;  %v9054_v46 = vld [vmem:[#allocation6 + $0xc] sm:$0x3] }
 0x5a3   :  { %3331 = vmatpush.msra.mxu1 %v9030_v38  ;;  %3371 = vmatpush.msra.mxu3 %v9033_v5  ;;  %11526 = vst [vmem:[#allocation127_spill] sm:$0xff] %v9049_v25 }
 0x5a4   :  { %3095 = vmatpush.msra.mxu0 %v8484_v60  ;;  %3135 = vmatpush.msra.mxu2 %v8487_v55  ;;  %v9056_v60 = vld [vmem:[#allocation12 + $0x2e0] sm:$0xff]  ;;  %v9059_v55 = vld [vmem:[#allocation12 + $0x2e8] sm:$0xff] }
 0x5a5   :  { %3332 = vmatpush.msra.mxu1 %v9038_v28  ;;  %3372 = vmatpush.msra.mxu3 %v9041_v17  ;;  %11527 = vst [vmem:[#allocation128_spill] sm:$0xff] %v9056_v60 }
 0x5a6   :  { %3096 = vmatpush.msra.mxu0 %v8492_v48  ;;  %3136 = vmatpush.msra.mxu2 %v8495_v56  ;;  %11528 = vst [vmem:[#allocation129_spill] sm:$0xff] %v9059_v55  ;;  %v9068_v48 = vld [vmem:[#allocation12 + $0x2c0] sm:$0xff]  ;;  %v9071_v56 = vld [vmem:[#allocation12 + $0x2c8] sm:$0xff] }
 0x5a7   :  { %3333 = vmatpush.msra.mxu1 %v9046_v14  ;;  %3373 = vmatpush.msra.mxu3 %v9049_v25  ;;  %11529 = vst [vmem:[#allocation130_spill] sm:$0xff] %v9068_v48 }
 0x5a8   :  { %3097 = vmatpush.msra.mxu0 %v8500_v43  ;;  %3137 = vmatpush.msra.mxu2 %v8503_v63  ;;  %11530 = vst [vmem:[#allocation131_spill] sm:$0xff] %v9071_v56  ;;  %v11531_v43 = vld [vmem:[#allocation104_spill] sm:$0xff]  ;;  %v11532_v63 = vld [vmem:[#allocation105_spill] sm:$0xff] }
 0x5a9   :  { %3334 = vmatpush.msra.mxu1 %v9056_v60  ;;  %3374 = vmatpush.msra.mxu3 %v9059_v55 }
 0x5aa   :  { %3098 = vmatpush.msra.mxu0 %v8510_v61  ;;  %3138 = vmatpush.msra.mxu2 %v8513_v35  ;;  %v9076_v61 = vld [vmem:[#allocation12 + $0x2a0] sm:$0xff]  ;;  %v9079_v35 = vld [vmem:[#allocation12 + $0x2a8] sm:$0xff] }
 0x5ab   :  { %3099 = vmatmul.f32.vlgmr.msra.gmra.mxu0 %v9054_v46  ;;  %3139 = vmatmul.f32.vlgmr.msra.gmra.mxu2 %v9054_v46  ;;  %11533 = vst [vmem:[#allocation132_spill] sm:$0xff] %v9076_v61 }
 0x5ac   :  { %3163 = vmatpush.msrb.mxu0 %v8518_v26  ;;  %3203 = vmatpush.msrb.mxu2 %v8521_v13  ;;  %11534 = vst [vmem:[#allocation133_spill] sm:$0xff] %v9079_v35  ;;  %v11535_v26 = vld [vmem:[#allocation106_spill] sm:$0xff]  ;;  %v11536_v13 = vld [vmem:[#allocation107_spill] sm:$0xff] }
 0x5ad   :  { %3335 = vmatpush.msra.mxu1 %v9068_v48  ;;  %3375 = vmatpush.msra.mxu3 %v9071_v56 }
 0x5ae   :  { %3164 = vmatpush.msrb.mxu0 %v11531_v43  ;;  %3204 = vmatpush.msrb.mxu2 %v11532_v63  ;;  %v11543_v43 = vld [vmem:[#allocation112_spill] sm:$0xff]  ;;  %v11544_v63 = vld [vmem:[#allocation113_spill] sm:$0xff] }
 0x5af   :  { %3336 = vmatpush.msra.mxu1 %v9076_v61  ;;  %3376 = vmatpush.msra.mxu3 %v9079_v35 }
 0x5b0   :  { %3165 = vmatpush.msrb.mxu0 %v11535_v26  ;;  %3205 = vmatpush.msrb.mxu2 %v11536_v13  ;;  %v9100_v26 = vld [vmem:[#allocation12 + $0x240] sm:$0xff]  ;;  %v9103_v13 = vld [vmem:[#allocation12 + $0x248] sm:$0xff] }
 0x5b1   :  { %3337 = vmatpush.msra.mxu1 %v9084_v1  ;;  %3377 = vmatpush.msra.mxu3 %v9087_v37  ;;  %11545 = vst [vmem:[#allocation138_spill] sm:$0xff] %v9100_v26  ;;  %v9425_v37 = vld [vmem:[#allocation12 + $0x10] sm:$0xff] }
 0x5b2   :  { %3166 = vmatpush.msrb.mxu0 %v11539_v22  ;;  %3206 = vmatpush.msrb.mxu2 %v11540_v34  ;;  %11546 = vst [vmem:[#allocation139_spill] sm:$0xff] %v9103_v13  ;;  %v11547_v22 = vld [vmem:[#allocation114_spill] sm:$0xff]  ;;  %v11548_v34 = vld [vmem:[#allocation115_spill] sm:$0xff] }
 0x5b3   :  { %3338 = vmatpush.msra.mxu1 %v9092_v52  ;;  %3378 = vmatpush.msra.mxu3 %v9095_v8  ;;  %v9108_v52 = vld [vmem:[#allocation12 + $0x220] sm:$0xff]  ;;  %v9111_v8 = vld [vmem:[#allocation12 + $0x228] sm:$0xff] }
 0x5b4   :  { %3167 = vmatpush.msrb.mxu0 %v11543_v43  ;;  %3207 = vmatpush.msrb.mxu2 %v11544_v63  ;;  %11549 = vst [vmem:[#allocation140_spill] sm:$0xff] %v9108_v52  ;;  %v11551_v43 = vld [vmem:[#allocation116_spill] sm:$0xff] }
 0x5b5   :  { %3339 = vmatpush.msra.mxu1 %v9100_v26  ;;  %3379 = vmatpush.msra.mxu3 %v9103_v13  ;;  %11550 = vst [vmem:[#allocation141_spill] sm:$0xff] %v9111_v8  ;;  %v11552_v63 = vld [vmem:[#allocation108_spill] sm:$0xff]  ;;  %v9116_v26 = vld [vmem:[#allocation12 + $0x200] sm:$0xff]  ;;  %v9119_v13 = vld [vmem:[#allocation12 + $0x208] sm:$0xff] }
 0x5b6   :  { %3168 = vmatpush.msrb.mxu0 %v11547_v22  ;;  %3208 = vmatpush.msrb.mxu2 %v11548_v34  ;;  %11553 = vst [vmem:[#allocation142_spill] sm:$0xff] %v9116_v26  ;;  %v11555_v22 = vld [vmem:[#allocation109_spill] sm:$0xff]  ;;  %v11556_v34 = vld [vmem:[#allocation22_spill] sm:$0xff] }
 0x5b7   :  { %3340 = vmatpush.msra.mxu1 %v9108_v52  ;;  %3380 = vmatpush.msra.mxu3 %v9111_v8  ;;  %11554 = vst [vmem:[#allocation143_spill] sm:$0xff] %v9119_v13  ;;  %v9124_v52 = vld [vmem:[#allocation12 + $0x3f0] sm:$0xff]  ;;  %v9127_v8 = vld [vmem:[#allocation12 + $0x3f8] sm:$0xff] }
 0x5b8   :  { %3169 = vmatpush.msrb.mxu0 %v11551_v43  ;;  %3209 = vmatpush.msrb.mxu2 %v11552_v63  ;;  %11557 = vst [vmem:[#allocation144_spill] sm:$0xff] %v9124_v52  ;;  %v11559_v43 = vld [vmem:[#allocation20_spill] sm:$0xff] }
 0x5b9   :  { %3341 = vmatpush.msra.mxu1 %v9116_v26  ;;  %3381 = vmatpush.msra.mxu3 %v9119_v13  ;;  %11558 = vst [vmem:[#allocation145_spill] sm:$0xff] %v9127_v8  ;;  %v11560_v63 = vld [vmem:[#allocation24_spill] sm:$0xff] }
 0x5ba   :  { %3170 = vmatpush.msrb.mxu0 %v11555_v22  ;;  %3210 = vmatpush.msrb.mxu2 %v11556_v34  ;;  %v9132_v26 = vld [vmem:[#allocation12 + $0x3d0] sm:$0xff]  ;;  %v9135_v13 = vld [vmem:[#allocation12 + $0x3d8] sm:$0xff] }
 0x5bb   :  { %3406 = vmatpush.msrb.mxu1 %v9124_v52  ;;  %3446 = vmatpush.msrb.mxu3 %v9127_v8  ;;  %11561 = vst [vmem:[#allocation146_spill] sm:$0xff] %v9132_v26  ;;  %v11563_v22 = vld [vmem:[#allocation21_spill] sm:$0xff]  ;;  %v11564_v34 = vld [vmem:[#allocation23_spill] sm:$0xff] }
 0x5bc   :  { %3171 = vmatpush.msrb.mxu0 %v11559_v43  ;;  %3211 = vmatpush.msrb.mxu2 %v11560_v63  ;;  %11562 = vst [vmem:[#allocation147_spill] sm:$0xff] %v9135_v13  ;;  %v9140_v52 = vld [vmem:[#allocation12 + $0x3b0] sm:$0xff]  ;;  %v9143_v8 = vld [vmem:[#allocation12 + $0x3b8] sm:$0xff] }
 0x5bd   :  { %3407 = vmatpush.msrb.mxu1 %v9132_v26  ;;  %3447 = vmatpush.msrb.mxu3 %v9135_v13  ;;  %11565 = vst [vmem:[#allocation148_spill] sm:$0xff] %v9140_v52  ;;  %v11567_v43 = vld [vmem:[#allocation25_spill] sm:$0xff]  ;;  %v11568_v63 = vld [vmem:[#allocation28_spill] sm:$0xff] }
 0x5be   :  { %3172 = vmatpush.msrb.mxu0 %v11563_v22  ;;  %3212 = vmatpush.msrb.mxu2 %v11564_v34  ;;  %11566 = vst [vmem:[#allocation149_spill] sm:$0xff] %v9143_v8  ;;  %v9148_v26 = vld [vmem:[#allocation12 + $0x390] sm:$0xff]  ;;  %v9151_v13 = vld [vmem:[#allocation12 + $0x398] sm:$0xff]  ;;  %v11571_v22 = vld [vmem:[#allocation26_spill] sm:$0xff] }
 0x5bf   :  { %3408 = vmatpush.msrb.mxu1 %v9140_v52  ;;  %3448 = vmatpush.msrb.mxu3 %v9143_v8  ;;  %11569 = vst [vmem:[#allocation150_spill] sm:$0xff] %v9148_v26  ;;  %v11572_v34 = vld [vmem:[#allocation30_spill] sm:$0xff]  ;;  %v9156_v52 = vld [vmem:[#allocation12 + $0x370] sm:$0xff]  ;;  %v9159_v8 = vld [vmem:[#allocation12 + $0x378] sm:$0xff] }
 0x5c0   :  { %3173 = vmatpush.msrb.mxu0 %v11567_v43  ;;  %3213 = vmatpush.msrb.mxu2 %v11568_v63  ;;  %11570 = vst [vmem:[#allocation151_spill] sm:$0xff] %v9151_v13  ;;  %v11575_v43 = vld [vmem:[#allocation27_spill] sm:$0xff]  ;;  %v11576_v63 = vld [vmem:[#allocation32_spill] sm:$0xff] }
 0x5c1   :  { %3409 = vmatpush.msrb.mxu1 %v9148_v26  ;;  %3449 = vmatpush.msrb.mxu3 %v9151_v13  ;;  %11573 = vst [vmem:[#allocation152_spill] sm:$0xff] %v9156_v52  ;;  %v9164_v26 = vld [vmem:[#allocation12 + $0x350] sm:$0xff]  ;;  %v9167_v13 = vld [vmem:[#allocation12 + $0x358] sm:$0xff] }
 0x5c2   :  { %3174 = vmatpush.msrb.mxu0 %v11571_v22  ;;  %3214 = vmatpush.msrb.mxu2 %v11572_v34  ;;  %11574 = vst [vmem:[#allocation153_spill] sm:$0xff] %v9159_v8  ;;  %v11579_v22 = vld [vmem:[#allocation29_spill] sm:$0xff]  ;;  %v11580_v34 = vld [vmem:[#allocation34_spill] sm:$0xff] }
 0x5c3   :  { %3410 = vmatpush.msrb.mxu1 %v9156_v52  ;;  %3450 = vmatpush.msrb.mxu3 %v9159_v8  ;;  %11577 = vst [vmem:[#allocation154_spill] sm:$0xff] %v9164_v26  ;;  %v9172_v52 = vld [vmem:[#allocation12 + $0x330] sm:$0xff]  ;;  %v9175_v8 = vld [vmem:[#allocation12 + $0x338] sm:$0xff] }
 0x5c4   :  { %3175 = vmatpush.msrb.mxu0 %v11575_v43  ;;  %3215 = vmatpush.msrb.mxu2 %v11576_v63  ;;  %11578 = vst [vmem:[#allocation155_spill] sm:$0xff] %v9167_v13  ;;  %v11583_v43 = vld [vmem:[#allocation31_spill] sm:$0xff]  ;;  %v11584_v63 = vld [vmem:[#allocation36_spill] sm:$0xff] }
 0x5c5   :  { %3411 = vmatpush.msrb.mxu1 %v9164_v26  ;;  %3451 = vmatpush.msrb.mxu3 %v9167_v13  ;;  %11581 = vst [vmem:[#allocation156_spill] sm:$0xff] %v9172_v52  ;;  %v9180_v26 = vld [vmem:[#allocation12 + $0x310] sm:$0xff]  ;;  %v9183_v13 = vld [vmem:[#allocation12 + $0x318] sm:$0xff] }
 0x5c6   :  { %3176 = vmatpush.msrb.mxu0 %v11579_v22  ;;  %3216 = vmatpush.msrb.mxu2 %v11580_v34  ;;  %11582 = vst [vmem:[#allocation157_spill] sm:$0xff] %v9175_v8  ;;  %v11587_v22 = vld [vmem:[#allocation33_spill] sm:$0xff]  ;;  %v11588_v34 = vld [vmem:[#allocation38_spill] sm:$0xff] }
 0x5c7   :  { %3412 = vmatpush.msrb.mxu1 %v9172_v52  ;;  %3452 = vmatpush.msrb.mxu3 %v9175_v8  ;;  %11585 = vst [vmem:[#allocation158_spill] sm:$0xff] %v9180_v26  ;;  %v9190_v8 = vld [vmem:[#allocation12 + $0x2f0] sm:$0xff] }
 0x5c8   :  { %3177 = vmatpush.msrb.mxu0 %v11583_v43  ;;  %3217 = vmatpush.msrb.mxu2 %v11584_v63  ;;  %11586 = vst [vmem:[#allocation159_spill] sm:$0xff] %v9183_v13  ;;  %v9193_v43 = vld [vmem:[#allocation12 + $0x2f8] sm:$0xff]  ;;  %v9196_v63 = vld [vmem:[#allocation12 + $0x1e0] sm:$0xff]  ;;  %v9419_v52 = vld [vmem:[#allocation12 + $0x30] sm:$0xff] }
 0x5c9   :  { %3413 = vmatpush.msrb.mxu1 %v9180_v26  ;;  %3453 = vmatpush.msrb.mxu3 %v9183_v13  ;;  %11589 = vst [vmem:[#allocation160_spill] sm:$0xff] %v9190_v8  ;;  %v9199_v13 = vld [vmem:[#allocation12 + $0x1e8] sm:$0xff] }
 0x5ca   :  { %3178 = vmatpush.msrb.mxu0 %v11587_v22  ;;  %3218 = vmatpush.msrb.mxu2 %v11588_v34  ;;  %11590 = vst [vmem:[#allocation161_spill] sm:$0xff] %v9193_v43  ;;  %v9202_v22 = vld [vmem:[#allocation12 + $0x2d0] sm:$0xff]  ;;  %v9208_v34 = vld [vmem:[#allocation12 + $0x1c0] sm:$0xff] }
 0x5cb   :  { %3179 = vmatmul.f32.vlgmr.msrb.gmra.mxu0 %v9054_v46  ;;  %3219 = vmatmul.f32.vlgmr.msrb.gmra.mxu2 %v9054_v46  ;;  %11591 = vst [vmem:[#allocation162_spill] sm:$0xff] %v9196_v63  ;;  %v9205_v46 = vld [vmem:[#allocation12 + $0x2d8] sm:$0xff] }
 0x5cc   :  { %3414 = vmatpush.msrb.mxu1 %v9190_v8  ;;  %3454 = vmatpush.msrb.mxu3 %v9193_v43  ;;  %11592 = vst [vmem:[#allocation163_spill] sm:$0xff] %v9199_v13  ;;  %v9211_v43 = vld [vmem:[#allocation12 + $0x1c8] sm:$0xff]  ;;  %v9412_v8 = vld [vmem:[#allocation12 + $0x50] sm:$0xff] }
 0x5cd   :  { %3306 = vmatpush.msra.mxu0 %v9196_v63  ;;  %3346 = vmatpush.msra.mxu2 %v9199_v13  ;;  %11593 = vst [vmem:[#allocation164_spill] sm:$0xff] %v9202_v22  ;;  %v9214_v63 = vld [vmem:[#allocation12 + $0x2b0] sm:$0xff]  ;;  %v9217_v13 = vld [vmem:[#allocation12 + $0x2b8] sm:$0xff] }
 0x5ce   :  { %3415 = vmatpush.msrb.mxu1 %v9202_v22  ;;  %11594 = vst [vmem:[#allocation165_spill] sm:$0xff] %v9205_v46  ;;  %3455 = vmatpush.msrb.mxu3 %v9205_v46  ;;  %v9220_v22 = vld [vmem:[#allocation12 + $0x1a0] sm:$0xff]  ;;  %v9223_v46 = vld [vmem:[#allocation12 + $0x1a8] sm:$0xff] }
 0x5cf   :  { %11595 = vst [vmem:[#allocation166_spill] sm:$0xff] %v9208_v34  ;;  %3307 = vmatpush.msra.mxu0 %v9208_v34  ;;  %3347 = vmatpush.msra.mxu2 %v9211_v43  ;;  %v9226_v34 = vld [vmem:[#allocation12 + $0x290] sm:$0xff] }
 0x5d0   :  { %11596 = vst [vmem:[#allocation167_spill] sm:$0xff] %v9211_v43  ;;  %3416 = vmatpush.msrb.mxu1 %v9214_v63  ;;  %3456 = vmatpush.msrb.mxu3 %v9217_v13  ;;  %v9229_v43 = vld [vmem:[#allocation12 + $0x298] sm:$0xff] }
 0x5d1   :  { %11597 = vst [vmem:[#allocation168_spill] sm:$0xff] %v9214_v63  ;;  %3308 = vmatpush.msra.mxu0 %v9220_v22  ;;  %3348 = vmatpush.msra.mxu2 %v9223_v46  ;;  %v9232_v63 = vld [vmem:[#allocation12 + $0x180] sm:$0xff] }
 0x5d2   :  { %11598 = vst [vmem:[#allocation169_spill] sm:$0xff] %v9217_v13  ;;  %3417 = vmatpush.msrb.mxu1 %v9226_v34  ;;  %3457 = vmatpush.msrb.mxu3 %v9229_v43  ;;  %v9235_v13 = vld [vmem:[#allocation12 + $0x188] sm:$0xff] }
 0x5d3   :  { %11599 = vst [vmem:[#allocation170_spill] sm:$0xff] %v9220_v22  ;;  %3309 = vmatpush.msra.mxu0 %v9232_v63  ;;  %3349 = vmatpush.msra.mxu2 %v9235_v13  ;;  %v9238_v22 = vld [vmem:[#allocation12 + $0x270] sm:$0xff] }
 0x5d4   :  { %11600 = vst [vmem:[#allocation171_spill] sm:$0xff] %v9223_v46  ;;  %3418 = vmatpush.msrb.mxu1 %v9238_v22  ;;  %v9241_v46 = vld [vmem:[#allocation12 + $0x278] sm:$0xff] }
 0x5d5   :  { %11601 = vst [vmem:[#allocation172_spill] sm:$0xff] %v9226_v34  ;;  %3458 = vmatpush.msrb.mxu3 %v9241_v46  ;;  %v9244_v34 = vld [vmem:[#allocation12 + $0x160] sm:$0xff]  ;;  %v2933_v35 = vpop.f32.mrf.mxu3 }
 0x5d6   :  { %11602 = vst [vmem:[#allocation173_spill] sm:$0xff] %v9229_v43  ;;  %3310 = vmatpush.msra.mxu0 %v9244_v34  ;;  %v9247_v43 = vld [vmem:[#allocation12 + $0x168] sm:$0xff] }
 0x5d7   :  { %11603 = vst [vmem:[#allocation174_spill] sm:$0xff] %v9232_v63  ;;  %3350 = vmatpush.msra.mxu2 %v9247_v43  ;;  %v9250_v63 = vld [vmem:[#allocation12 + $0x250] sm:$0xff] }
 0x5d8   :  { %11604 = vst [vmem:[#allocation175_spill] sm:$0xff] %v9235_v13  ;;  %3419 = vmatpush.msrb.mxu1 %v9250_v63  ;;  %v9253_v13 = vld [vmem:[#allocation12 + $0x258] sm:$0xff] }
 0x5d9   :  { %11605 = vst [vmem:[#allocation176_spill] sm:$0xff] %v9238_v22  ;;  %3459 = vmatpush.msrb.mxu3 %v9253_v13  ;;  %v9256_v22 = vld [vmem:[#allocation12 + $0x140] sm:$0xff] }
 0x5da   :  { %11606 = vst [vmem:[#allocation177_spill] sm:$0xff] %v9241_v46  ;;  %3311 = vmatpush.msra.mxu0 %v9256_v22  ;;  %v9259_v46 = vld [vmem:[#allocation12 + $0x148] sm:$0xff] }
 0x5db   :  { %11607 = vst [vmem:[#allocation178_spill] sm:$0xff] %v9244_v34  ;;  %3351 = vmatpush.msra.mxu2 %v9259_v46  ;;  %v9262_v34 = vld [vmem:[#allocation12 + $0x230] sm:$0xff] }
 0x5dc   :  { %11608 = vst [vmem:[#allocation179_spill] sm:$0xff] %v9247_v43  ;;  %3420 = vmatpush.msrb.mxu1 %v9262_v34  ;;  %v9265_v43 = vld [vmem:[#allocation12 + $0x238] sm:$0xff] }
 0x5dd   :  { %11609 = vst [vmem:[#allocation180_spill] sm:$0xff] %v9250_v63  ;;  %3460 = vmatpush.msrb.mxu3 %v9265_v43  ;;  %v9268_v63 = vld [vmem:[#allocation12 + $0x120] sm:$0xff] }
 0x5de   :  { %11610 = vst [vmem:[#allocation181_spill] sm:$0xff] %v9253_v13  ;;  %3312 = vmatpush.msra.mxu0 %v9268_v63  ;;  %v9271_v13 = vld [vmem:[#allocation12 + $0x128] sm:$0xff] }
 0x5df   :  { %11611 = vst [vmem:[#allocation182_spill] sm:$0xff] %v9256_v22  ;;  %3352 = vmatpush.msra.mxu2 %v9271_v13  ;;  %v9274_v22 = vld [vmem:[#allocation12 + $0x210] sm:$0xff] }
 0x5e0   :  { %11612 = vst [vmem:[#allocation183_spill] sm:$0xff] %v9259_v46  ;;  %3421 = vmatpush.msrb.mxu1 %v9274_v22  ;;  %v9277_v46 = vld [vmem:[#allocation12 + $0x218] sm:$0xff] }
 0x5e1   :  { %11613 = vst [vmem:[#allocation78_spill] sm:$0xff] %v9262_v34  ;;  %3461 = vmatpush.msrb.mxu3 %v9277_v46  ;;  %v9280_v34 = vld [vmem:[#allocation12 + $0x100] sm:$0xff] }
 0x5e2   :  { %11614 = vst [vmem:[#allocation80_spill] sm:$0xff] %v9265_v43  ;;  %3313 = vmatpush.msra.mxu0 %v9280_v34  ;;  %v9283_v43 = vld [vmem:[#allocation12 + $0x108] sm:$0xff] }
 0x5e3   :  { %11615 = vst [vmem:[#allocation84_spill] sm:$0xff] %v9268_v63  ;;  %3353 = vmatpush.msra.mxu2 %v9283_v43  ;;  %v9286_v63 = vld [vmem:[#allocation12 + $0xe0] sm:$0xff] }
 0x5e4   :  { %11616 = vst [vmem:[#allocation82_spill] sm:$0xff] %v9271_v13  ;;  %3314 = vmatpush.msra.mxu0 %v9286_v63  ;;  %v9289_v13 = vld [vmem:[#allocation12 + $0xe8] sm:$0xff] }
 0x5e5   :  { %11617 = vst [vmem:[#allocation86_spill] sm:$0xff] %v9274_v22  ;;  %3354 = vmatpush.msra.mxu2 %v9289_v13  ;;  %v9292_v22 = vld [vmem:[#allocation12 + $0xc0] sm:$0xff] }
 0x5e6   :  { %11618 = vst [vmem:[#allocation83_spill] sm:$0xff] %v9277_v46  ;;  %3315 = vmatpush.msra.mxu0 %v9292_v22  ;;  %v9295_v46 = vld [vmem:[#allocation12 + $0xc8] sm:$0xff] }
 0x5e7   :  { %11619 = vst [vmem:[#allocation88_spill] sm:$0xff] %v9280_v34  ;;  %3355 = vmatpush.msra.mxu2 %v9295_v46  ;;  %v9298_v34 = vld [vmem:[#allocation12 + $0xa0] sm:$0xff] }
 0x5e8   :  { %11620 = vst [vmem:[#allocation57_spill] sm:$0xff] %v9283_v43  ;;  %3316 = vmatpush.msra.mxu0 %v9298_v34  ;;  %v9301_v43 = vld [vmem:[#allocation12 + $0xa8] sm:$0xff] }
 0x5e9   :  { %11621 = vst [vmem:[#allocation58_spill] sm:$0xff] %v9286_v63  ;;  %3356 = vmatpush.msra.mxu2 %v9301_v43  ;;  %v9304_v63 = vld [vmem:[#allocation12 + $0x80] sm:$0xff] }
 0x5ea   :  { %11622 = vst [vmem:[#allocation85_spill] sm:$0xff] %v9289_v13  ;;  %3317 = vmatpush.msra.mxu0 %v9304_v63  ;;  %v9307_v13 = vld [vmem:[#allocation12 + $0x88] sm:$0xff] }
 0x5eb   :  { %11623 = vst [vmem:[#allocation60_spill] sm:$0xff] %v9292_v22  ;;  %3357 = vmatpush.msra.mxu2 %v9307_v13  ;;  %v9310_v22 = vld [vmem:[#allocation12 + $0x60] sm:$0xff] }
 0x5ec   :  { %11624 = vst [vmem:[#allocation89_spill] sm:$0xff] %v9295_v46  ;;  %3318 = vmatpush.msra.mxu0 %v9310_v22  ;;  %v9313_v46 = vld [vmem:[#allocation12 + $0x68] sm:$0xff] }
 0x5ed   :  { %11625 = vst [vmem:[#allocation61_spill] sm:$0xff] %v9298_v34  ;;  %3358 = vmatpush.msra.mxu2 %v9313_v46  ;;  %v9316_v34 = vld [vmem:[#allocation12 + $0x40] sm:$0xff] }
 0x5ee   :  { %11626 = vst [vmem:[#allocation87_spill] sm:$0xff] %v9301_v43  ;;  %3319 = vmatpush.msra.mxu0 %v9316_v34  ;;  %v9319_v43 = vld [vmem:[#allocation12 + $0x48] sm:$0xff] }
 0x5ef   :  { %11627 = vst [vmem:[#allocation90_spill] sm:$0xff] %v9304_v63  ;;  %3359 = vmatpush.msra.mxu2 %v9319_v43  ;;  %v9322_v63 = vld [vmem:[#allocation12 + $0x20] sm:$0xff] }
 0x5f0   :  { %11628 = vst [vmem:[#allocation92_spill] sm:$0xff] %v9307_v13  ;;  %3320 = vmatpush.msra.mxu0 %v9322_v63  ;;  %v9325_v13 = vld [vmem:[#allocation12 + $0x28] sm:$0xff] }
 0x5f1   :  { %11629 = vst [vmem:[#allocation91_spill] sm:$0xff] %v9310_v22  ;;  %3360 = vmatpush.msra.mxu2 %v9325_v13  ;;  %v9328_v22 = vld [vmem:[#allocation12] sm:$0xff] }
 0x5f2   :  { %11630 = vst [vmem:[#allocation95_spill] sm:$0xff] %v9313_v46  ;;  %3321 = vmatpush.msra.mxu0 %v9328_v22  ;;  %v9331_v46 = vld [vmem:[#allocation12 + $0x8] sm:$0xff] }
 0x5f3   :  { %11631 = vst [vmem:[#allocation93_spill] sm:$0xff] %v9316_v34  ;;  %3361 = vmatpush.msra.mxu2 %v9331_v46  ;;  %v9334_v34 = vld [vmem:[#allocation12 + $0x1f0] sm:$0xff] }
 0x5f4   :  { %11632 = vst [vmem:[#allocation96_spill] sm:$0xff] %v9319_v43  ;;  %3386 = vmatpush.msrb.mxu0 %v9334_v34  ;;  %v9337_v43 = vld [vmem:[#allocation12 + $0x1f8] sm:$0xff] }
 0x5f5   :  { %11633 = vst [vmem:[#allocation94_spill] sm:$0xff] %v9322_v63  ;;  %3426 = vmatpush.msrb.mxu2 %v9337_v43  ;;  %v9340_v63 = vld [vmem:[#allocation12 + $0x1d0] sm:$0xff] }
 0x5f6   :  { %11634 = vst [vmem:[#allocation97_spill] sm:$0xff] %v9325_v13  ;;  %3387 = vmatpush.msrb.mxu0 %v9340_v63  ;;  %v9343_v13 = vld [vmem:[#allocation12 + $0x1d8] sm:$0xff] }
 0x5f7   :  { %11635 = vst [vmem:[#allocation99_spill] sm:$0xff] %v9328_v22  ;;  %3427 = vmatpush.msrb.mxu2 %v9343_v13  ;;  %v9346_v22 = vld [vmem:[#allocation12 + $0x1b0] sm:$0xff] }
 0x5f8   :  { %11636 = vst [vmem:[#allocation98_spill] sm:$0xff] %v9331_v46  ;;  %3388 = vmatpush.msrb.mxu0 %v9346_v22  ;;  %v9349_v46 = vld [vmem:[#allocation12 + $0x1b8] sm:$0xff] }
 0x5f9   :  { %11637 = vst [vmem:[#allocation100_spill] sm:$0xff] %v9334_v34  ;;  %3428 = vmatpush.msrb.mxu2 %v9349_v46  ;;  %v9352_v34 = vld [vmem:[#allocation12 + $0x190] sm:$0xff] }
 0x5fa   :  { %11638 = vst [vmem:[#allocation101_spill] sm:$0xff] %v9337_v43  ;;  %3389 = vmatpush.msrb.mxu0 %v9352_v34  ;;  %v9355_v43 = vld [vmem:[#allocation12 + $0x198] sm:$0xff] }
 0x5fb   :  { %11639 = vst [vmem:[#allocation102_spill] sm:$0xff] %v9340_v63  ;;  %3429 = vmatpush.msrb.mxu2 %v9355_v43  ;;  %v9358_v63 = vld [vmem:[#allocation12 + $0x170] sm:$0xff] }
 0x5fc   :  { %11640 = vst [vmem:[#allocation103_spill] sm:$0xff] %v9343_v13  ;;  %3390 = vmatpush.msrb.mxu0 %v9358_v63  ;;  %v9361_v13 = vld [vmem:[#allocation12 + $0x178] sm:$0xff] }
 0x5fd   :  { %11641 = vst [vmem:[#allocation104_spill] sm:$0xff] %v9346_v22  ;;  %3430 = vmatpush.msrb.mxu2 %v9361_v13  ;;  %v9364_v22 = vld [vmem:[#allocation12 + $0x150] sm:$0xff] }
 0x5fe   :  { %11642 = vst [vmem:[#allocation105_spill] sm:$0xff] %v9349_v46  ;;  %3391 = vmatpush.msrb.mxu0 %v9364_v22  ;;  %v9367_v46 = vld [vmem:[#allocation12 + $0x158] sm:$0xff] }
 0x5ff   :  { %11643 = vst [vmem:[#allocation106_spill] sm:$0xff] %v9352_v34  ;;  %3431 = vmatpush.msrb.mxu2 %v9367_v46  ;;  %v9370_v34 = vld [vmem:[#allocation12 + $0x130] sm:$0xff] }
 0x600   :  { %11644 = vst [vmem:[#allocation107_spill] sm:$0xff] %v9355_v43  ;;  %3392 = vmatpush.msrb.mxu0 %v9370_v34  ;;  %v9373_v43 = vld [vmem:[#allocation12 + $0x138] sm:$0xff] }
 0x601   :  { %11645 = vst [vmem:[#allocation110_spill] sm:$0xff] %v9358_v63  ;;  %3432 = vmatpush.msrb.mxu2 %v9373_v43  ;;  %v9376_v63 = vld [vmem:[#allocation12 + $0x110] sm:$0xff] }
 0x602   :  { %11646 = vst [vmem:[#allocation111_spill] sm:$0xff] %v9361_v13  ;;  %3393 = vmatpush.msrb.mxu0 %v9376_v63  ;;  %v9379_v13 = vld [vmem:[#allocation12 + $0x118] sm:$0xff] }
 0x603   :  { %11647 = vst [vmem:[#allocation112_spill] sm:$0xff] %v9364_v22  ;;  %3433 = vmatpush.msrb.mxu2 %v9379_v13  ;;  %v9382_v22 = vld [vmem:[#allocation12 + $0xf0] sm:$0xff] }
 0x604   :  { %11648 = vst [vmem:[#allocation113_spill] sm:$0xff] %v9367_v46  ;;  %3394 = vmatpush.msrb.mxu0 %v9382_v22  ;;  %v9385_v46 = vld [vmem:[#allocation12 + $0xf8] sm:$0xff] }
 0x605   :  { %11649 = vst [vmem:[#allocation114_spill] sm:$0xff] %v9370_v34  ;;  %3434 = vmatpush.msrb.mxu2 %v9385_v46  ;;  %v9388_v34 = vld [vmem:[#allocation12 + $0xd0] sm:$0xff] }
 0x606   :  { %11650 = vst [vmem:[#allocation115_spill] sm:$0xff] %v9373_v43  ;;  %3395 = vmatpush.msrb.mxu0 %v9388_v34  ;;  %v9391_v43 = vld [vmem:[#allocation12 + $0xd8] sm:$0xff] }
 0x607   :  { %11651 = vst [vmem:[#allocation116_spill] sm:$0xff] %v9376_v63  ;;  %3435 = vmatpush.msrb.mxu2 %v9391_v43  ;;  %v9394_v63 = vld [vmem:[#allocation12 + $0xb0] sm:$0xff] }
 0x608   :  { %11652 = vst [vmem:[#allocation108_spill] sm:$0xff] %v9379_v13  ;;  %3396 = vmatpush.msrb.mxu0 %v9394_v63  ;;  %v9397_v13 = vld [vmem:[#allocation12 + $0xb8] sm:$0xff] }
 0x609   :  { %11653 = vst [vmem:[#allocation109_spill] sm:$0xff] %v9382_v22  ;;  %3436 = vmatpush.msrb.mxu2 %v9397_v13  ;;  %v9400_v22 = vld [vmem:[#allocation12 + $0x90] sm:$0xff] }
 0x60a   :  { %11654 = vst [vmem:[#allocation22_spill] sm:$0xff] %v9385_v46  ;;  %3397 = vmatpush.msrb.mxu0 %v9400_v22  ;;  %v9403_v46 = vld [vmem:[#allocation12 + $0x98] sm:$0xff] }
 0x60b   :  { %11655 = vst [vmem:[#allocation20_spill] sm:$0xff] %v9388_v34  ;;  %3437 = vmatpush.msrb.mxu2 %v9403_v46  ;;  %v9406_v34 = vld [vmem:[#allocation12 + $0x70] sm:$0xff] }
 0x60c   :  { %11656 = vst [vmem:[#allocation24_spill] sm:$0xff] %v9391_v43  ;;  %3398 = vmatpush.msrb.mxu0 %v9406_v34  ;;  %v9409_v43 = vld [vmem:[#allocation12 + $0x78] sm:$0xff] }
 0x60d   :  { %11657 = vst [vmem:[#allocation21_spill] sm:$0xff] %v9394_v63  ;;  %3438 = vmatpush.msrb.mxu2 %v9409_v43  ;;  %v2873_v63 = vpop.f32.mrf.mxu0 }
 0x60e   :  { %11658 = vst [vmem:[#allocation23_spill] sm:$0xff] %v9397_v13  ;;  %3399 = vmatpush.msrb.mxu0 %v9412_v8  ;;  %v9415_v13 = vld [vmem:[#allocation12 + $0x58] sm:$0xff] }
 0x60f   :  { %11659 = vst [vmem:[#allocation25_spill] sm:$0xff] %v9400_v22  ;;  %3439 = vmatpush.msrb.mxu2 %v9415_v13  ;;  %v11665_v22 = vld [vmem:[#allocation74_spill] sm:$0xff] }
 0x610   :  { %11660 = vst [vmem:[#allocation28_spill] sm:$0xff] %v9403_v46  ;;  %v2874_v26 = vadd.f32 %v2873_v63, %v11665_v22  ;;  %v2893_v46 = vpop.f32.mrf.mxu1  ;;  %3400 = vmatpush.msrb.mxu0 %v9419_v52  ;;  %v2913_v63 = vpop.f32.mrf.mxu2  ;;  %v11670_v22 = vld [vmem:[#allocation79_spill] sm:$0xff] }
 0x611   :  { %11661 = vst [vmem:[#allocation26_spill] sm:$0xff] %v9406_v34  ;;  %v9422_v34 = vld [vmem:[#allocation12 + $0x38] sm:$0xff]  ;;  %v2914_v1 = vadd.f32 %v2913_v63, %v11670_v22 }
 0x612   :  { %11662 = vst [vmem:[#allocation30_spill] sm:$0xff] %v9409_v43  ;;  %3440 = vmatpush.msrb.mxu2 %v9422_v34  ;;  %v2894_v43 = vadd.f32 %v2893_v46, %v2874_v26  ;;  %3401 = vmatpush.msrb.mxu0 %v9425_v37  ;;  %v11671_v46 = vld [vmem:[#allocation76_spill] sm:$0xff]  ;;  %v11672_v63 = vld [vmem:[#allocation81_spill] sm:$0xff] }
 0x613   :  { %11663 = vst [vmem:[#allocation27_spill] sm:$0xff] %v9412_v8  ;;  %v9428_v8 = vld [vmem:[#allocation12 + $0x18] sm:$0xff] }
 0x614   :  { %11664 = vst [vmem:[#allocation32_spill] sm:$0xff] %v9415_v13  ;;  %3441 = vmatpush.msrb.mxu2 %v9428_v8  ;;  %v4039_v13 = vmul.f32 -1.442695, %v2894_v43 }
 0x615   :  { %11666 = vst [vmem:[#allocation29_spill] sm:$0xff] %v9419_v52  ;;  %v2934_v52 = vadd.f32 %v2933_v35, %v2914_v1 }
 0x616   :  { %11667 = vst [vmem:[#allocation34_spill] sm:$0xff] %v9422_v34  ;;  %4240 = vpow2.f32 %v4039_v13 }
 0x617   :  { %11668 = vst [vmem:[#allocation31_spill] sm:$0xff] %v9425_v37  ;;  %v4040_v61 = vmul.f32 -1.442695, %v2934_v52  ;;  %v3013_v37 = vpop.f32.mrf.mxu3 }
 0x618   :  { %11669 = vst [vmem:[#allocation36_spill] sm:$0xff] %v9428_v8  ;;  %v2993_v26 = vpop.f32.mrf.mxu2  ;;  %v2953_v8 = vpop.f32.mrf.mxu0 }
 0x619   :  { %4242 = vpow2.f32 %v4040_v61  ;;  %v2994_v48 = vadd.f32 %v2993_v26, %v11671_v46  ;;  %v2954_v22 = vadd.f32 %v2953_v8, %v11672_v63  ;;  %v2973_v1 = vpop.f32.mrf.mxu1 }
 0x61b   :  { %v3014_v60 = vadd.f32 %v3013_v37, %v2994_v48  ;;  %v2974_v61 = vadd.f32 %v2973_v1, %v2954_v22 }
 0x61c   :  { %v4241_v56 = vpop.eup %4240 }
 0x61d   :  { %v3019_v34 = vadd.f32 1.0, %v4241_v56  ;;  %v4041_v43 = vmul.f32 -1.442695, %v3014_v60 }
 0x61f   :  { %4244 = vrcp.f32 %v3019_v34  ;;  %v4243_v55 = vpop.eup %4242  ;;  %v3031_v46 = vand.u32 2147483648, %v3019_v34  ;;  %vm3025_vm5 = vweird.f32 %v3019_v34  ;;  %v3029_v60 = vand.u32 2147483647, %v3019_v34 }
 0x620   :  { %v3038_v25 = vadd.f32 1.0, %v4243_v55 }
 0x621   :  { %v3032_v22 = vor.u32 1.1754944e-38, %v3031_v46  ;;  %vm3030_vm9 = vcmp.eq.f32.partialorder %v3029_v60, 8.507059e+37 }
 0x622   :  { %4246 = vrcp.f32 %v3038_v25  ;;  %v3050_v37 = vand.u32 2147483648, %v3038_v25  ;;  %vm3044_vm8 = vweird.f32 %v3038_v25 }
 0x623   :  { %4248 = vpow2.f32 %v4041_v43 }
 0x624   :  { %4250 = vtanh.f32 %v2974_v61 }
 0x625   :  { %v4245_v14 = vpop.eup %4244 }
 0x626   :  { %v3021_v13 = vmul.f32 %v4245_v14, %v3019_v34  ;;  %vm3026_vm4 = vweird.f32 %v4245_v14  ;;  %v3120_v34 = vpop.f32.mrf.mxu1 }
 0x627   :  { %vm3027_vm6 = vmor %vm3025_vm5, %vm3026_vm4 }
 0x628   :  { %v3022_v35 = vsub.f32 1.0, %v3021_v13  ;;  %v4247_v52 = vpop.eup %4246  ;;  %v3048_v13 = vand.u32 2147483647, %v3038_v25 }
 0x629   :  { %v4249_v17 = vpop.eup %4248  ;;  %v3040_v28 = vmul.f32 %v4247_v52, %v3038_v25  ;;  %vm3045_vm7 = vweird.f32 %v4247_v52 }
 0x62a   :  { %v3023_v56 = vmul.f32 %v4245_v14, %v3022_v35  ;;  %v3058_v48 = vadd.f32 1.0, %v4249_v17  ;;  %v3100_v35 = vpop.f32.mrf.mxu0  ;;  %vm3046_vm10 = vmor %vm3044_vm8, %vm3045_vm7  ;;  %v3051_v17 = vor.u32 1.1754944e-38, %v3050_v37  ;;  %v4251_v63 = vpop.eup %4250  ;;  %vm3049_vm11 = vcmp.eq.f32.partialorder %v3048_v13, 8.507059e+37 }
 0x62b   :  { %v3041_v55 = vsub.f32 1.0, %v3040_v28 }
 0x62c   :  { %v3024_v26 = vadd.f32 %v4245_v14, %v3023_v56  ;;  %4252 = vrcp.f32 %v3058_v48  ;;  %v3101_v56 = vadd.f32 %v3100_v35, %v10675_v9  ;;  %v3160_v35 = vpop.f32.mrf.mxu3  ;;  %v3070_v37 = vand.u32 2147483648, %v3058_v48 }
 0x62d   :  { %v3042_v8 = vmul.f32 %v4247_v52, %v3041_v55  ;;  %vm3064_vm13 = vweird.f32 %v3058_v48 }
 0x62e   :  { %v3028_v43 = vsel %vm3027_vm6, %v4245_v14, %v3024_v26  ;;  %v3121_v55 = vadd.f32 %v3120_v34, %v3101_v56  ;;  %v3140_v50 = vpop.f32.mrf.mxu2 }
 0x62f   :  { %v3043_v1 = vadd.f32 %v4247_v52, %v3042_v8  ;;  %v3033_v28 = vsel %vm3030_vm9, %v3032_v22, %v3028_v43  ;;  %v3141_v8 = vadd.f32 %v3140_v50, %v10676_v33  ;;  %v3068_v22 = vand.u32 2147483647, %v3058_v48 }
 0x630   :  { %v3075_v26 = vmul.f32 %v4251_v63, %v3033_v28  ;;  %v4042_v43 = vmul.f32 -1.442695, %v3121_v55  ;;  %v3071_v63 = vor.u32 1.1754944e-38, %v3070_v37  ;;  %v11674_v55 = vld [vmem:[#allocation40_spill] sm:$0xff]  ;;  %v11684_v37 = vld [vmem:[#allocation50_spill] sm:$0xff] }
 0x631   :  { %v3047_v61 = vsel %vm3046_vm10, %v4247_v52, %v3043_v1  ;;  %v3161_v13 = vadd.f32 %v3160_v35, %v3141_v8  ;;  %vm3069_vm15 = vcmp.eq.f32.partialorder %v3068_v22, 8.507059e+37  ;;  %v11682_v8 = vld [vmem:[#allocation48_spill] sm:$0xff]  ;;  %v11683_v35 = vld [vmem:[#allocation45_spill] sm:$0xff] }
 0x632   :  { %v4253_v5 = vpop.eup %4252  ;;  %v3052_v38 = vsel %vm3049_vm11, %v3051_v17, %v3047_v61  ;;  %v11673_v61 = vld [vmem:[#allocation35_spill] sm:$0xff] }
 0x633   :  { %v3074_v14 = vmul.f32 %v3052_v38, %v8733_v32  ;;  %v3060_v46 = vmul.f32 %v4253_v5, %v3058_v48  ;;  %vm3065_vm12 = vweird.f32 %v4253_v5  ;;  %v4043_v1 = vmul.f32 -1.442695, %v3161_v13 }
 0x634   :  { %vm3066_vm14 = vmor %vm3064_vm13, %vm3065_vm12 }
 0x635   :  { %v9436_v25 = vadd.f32 %v3075_v26, %v3074_v14  ;;  %v3061_v60 = vsub.f32 1.0, %v3060_v46  ;;  %v11675_v14 = vld [vmem:[#allocation37_spill] sm:$0xff]  ;;  %v11681_v26 = vld [vmem:[#allocation43_spill] sm:$0xff] }
 0x637   :  { %4254 = vtanh.f32 %v9436_v25  ;;  %v3062_v52 = vmul.f32 %v4253_v5, %v3061_v60 }
 0x638   :  { %4256 = vpow2.f32 %v4042_v43  ;;  %v11685_v43 = vld [vmem:[#allocation47_spill] sm:$0xff] }
 0x639   :  { %v3063_v32 = vadd.f32 %v4253_v5, %v3062_v52  ;;  %4258 = vpow2.f32 %v4043_v1  ;;  %v11686_v1 = vld [vmem:[#allocation52_spill] sm:$0xff] }
 0x63b   :  { %v3067_v38 = vsel %vm3066_vm14, %v4253_v5, %v3063_v32 }
 0x63c   :  { %v3072_v50 = vsel %vm3069_vm15, %v3071_v63, %v3067_v38  ;;  %v11687_v38 = vld [vmem:[#allocation117_spill] sm:$0xff] }
 0x63d   :  { %v4255_v56 = vpop.eup %4254 }
 0x63e   :  { %v3078_v17 = vmul.f32 %v4255_v56, %v3072_v50  ;;  %v4257_v28 = vpop.eup %4256  ;;  %v11688_v56 = vld [vmem:[#allocation118_spill] sm:$0xff] }
 0x63f   :  { %v4259_v48 = vpop.eup %4258  ;;  %v9444_v5 = vadd.f32 1.0, %v4257_v28  ;;  %v11690_v28 = vld [vmem:[#allocation54_spill] sm:$0xff] }
 0x640   :  { %3080 = vst [vmem:[#allocation15 + $0xa] sm:$0x3] %v3078_v17  ;;  %3342 = vmatmul.f32.vlgmr.msra.gmra.mxu1 %v3078_v17  ;;  %3382 = vmatmul.f32.vlgmr.msra.gmra.mxu3 %v3078_v17  ;;  %v9446_v34 = vadd.f32 1.0, %v4259_v48  ;;  %v3240_v48 = vpop.f32.mrf.mxu3 }
 0x641   :  { %3553 = vmatpush.msra.mxu1 %v8736_v21  ;;  %3593 = vmatpush.msra.mxu3 %v8739_v24  ;;  %4260 = vrcp.f32 %v9444_v5  ;;  %v11676_v21 = vld [vmem:[#allocation42_spill] sm:$0xff]  ;;  %v11677_v24 = vld [vmem:[#allocation39_spill] sm:$0xff]  ;;  %vm3252_vm2 = vweird.f32 %v9444_v5 }
 0x642   :  { %4262 = vrcp.f32 %v9446_v34  ;;  %vm3271_vm3 = vweird.f32 %v9446_v34 }
 0x643   :  { %3554 = vmatpush.msra.mxu1 %v8744_v16  ;;  %3594 = vmatpush.msra.mxu3 %v8747_v44  ;;  %v11678_v16 = vld [vmem:[#allocation44_spill] sm:$0xff]  ;;  %v11679_v44 = vld [vmem:[#allocation41_spill] sm:$0xff] }
 0x645   :  { %3555 = vmatpush.msra.mxu1 %v8752_v62  ;;  %3595 = vmatpush.msra.mxu3 %v11673_v61  ;;  %v11680_v62 = vld [vmem:[#allocation46_spill] sm:$0xff] }
 0x647   :  { %3556 = vmatpush.msra.mxu1 %v11674_v55  ;;  %3596 = vmatpush.msra.mxu3 %v11675_v14  ;;  %v9460_v46 = vpop.eup %4260 }
 0x648   :  { %3422 = vmatmul.f32.vlgmr.msrb.gmra.mxu1 %v3078_v17  ;;  %3462 = vmatmul.f32.vlgmr.msrb.gmra.mxu3 %v3078_v17  ;;  %v9462_v60 = vpop.eup %4262  ;;  %v3248_v52 = vmul.f32 %v9460_v46, %v9444_v5  ;;  %v3180_v22 = vpop.f32.mrf.mxu0  ;;  %v11689_v17 = vld [vmem:[#allocation49_spill] sm:$0xff]  ;;  %vm3253_vm0 = vweird.f32 %v9460_v46 }
 0x649   :  { %3557 = vmatpush.msra.mxu1 %v11676_v21  ;;  %3597 = vmatpush.msra.mxu3 %v11677_v24  ;;  %v3267_v13 = vmul.f32 %v9462_v60, %v9446_v34  ;;  %v3181_v63 = vadd.f32 %v3180_v22, %v11687_v38  ;;  %v11691_v21 = vld [vmem:[#allocation51_spill] sm:$0xff]  ;;  %v11692_v24 = vld [vmem:[#allocation56_spill] sm:$0xff]  ;;  %vm3272_vm1 = vweird.f32 %v9462_v60  ;;  %vm9498_vm4 = vmor %vm3252_vm2, %vm3253_vm0 }
 0x64a   :  { %v3249_v61 = vsub.f32 1.0, %v3248_v52  ;;  %v11697_v52 = vld [vmem:[#allocation65_spill] sm:$0xff]  ;;  %vm9508_vm5 = vmor %vm3271_vm3, %vm3272_vm1 }
 0x64b   :  { %3558 = vmatpush.msra.mxu1 %v11678_v16  ;;  %3598 = vmatpush.msra.mxu3 %v11679_v44  ;;  %v3268_v55 = vsub.f32 1.0, %v3267_v13  ;;  %v3200_v16 = vpop.f32.mrf.mxu1  ;;  %v11698_v13 = vld [vmem:[#allocation62_spill] sm:$0xff] }
 0x64c   :  { %v3201_v44 = vadd.f32 %v3200_v16, %v3181_v63  ;;  %v3258_v63 = vand.u32 2147483648, %v9444_v5 }
 0x64d   :  { %3559 = vmatpush.msra.mxu1 %v11680_v62  ;;  %3599 = vmatpush.msra.mxu3 %v11681_v26  ;;  %v11693_v62 = vld [vmem:[#allocation53_spill] sm:$0xff]  ;;  %v11694_v26 = vld [vmem:[#allocation55_spill] sm:$0xff] }
 0x64e   :  { %v3220_v32 = vpop.f32.mrf.mxu2 }
 0x64f   :  { %3560 = vmatpush.msra.mxu1 %v11682_v8  ;;  %3600 = vmatpush.msra.mxu3 %v11683_v35  ;;  %v3221_v50 = vadd.f32 %v3220_v32, %v11688_v56  ;;  %v3269_v8 = vmul.f32 %v9462_v60, %v3268_v55  ;;  %v3250_v35 = vmul.f32 %v9460_v46, %v3249_v61  ;;  %v3277_v32 = vand.u32 2147483648, %v9446_v34  ;;  %v11703_v55 = vld [vmem:[#allocation69_spill] sm:$0xff] }
 0x650   :  { %v3275_v61 = vand.u32 2147483647, %v9446_v34 }
 0x651   :  { %3561 = vmatpush.msra.mxu1 %v11684_v37  ;;  %3601 = vmatpush.msra.mxu3 %v11685_v43  ;;  %v3241_v14 = vadd.f32 %v3240_v48, %v3221_v50  ;;  %v11695_v37 = vld [vmem:[#allocation63_spill] sm:$0xff]  ;;  %v3251_v22 = vadd.f32 %v9460_v46, %v3250_v35  ;;  %v3256_v48 = vand.u32 2147483647, %v9444_v5  ;;  %v3278_v16 = vor.u32 1.1754944e-38, %v3277_v32  ;;  %v11708_v35 = vld [vmem:[#allocation68_spill] sm:$0xff] }
 0x652   :  { %v11696_v43 = vld [vmem:[#allocation59_spill] sm:$0xff]  ;;  %vm3276_vm7 = vcmp.eq.f32.partialorder %v3275_v61, 8.507059e+37  ;;  %v11715_v32 = vld [vmem:[#allocation120_spill] sm:$0xff] }
 0x653   :  { %3562 = vmatpush.msra.mxu1 %v11686_v1  ;;  %3602 = vmatpush.msra.mxu3 %v8807_v3  ;;  %v4044_v3 = vmul.f32 -1.442695, %v3241_v14  ;;  %v3270_v1 = vadd.f32 %v9462_v60, %v3269_v8  ;;  %v11699_v50 = vld [vmem:[#allocation67_spill] sm:$0xff]  ;;  %vm3257_vm6 = vcmp.eq.f32.partialorder %v3256_v48, 8.507059e+37 }
 0x655   :  { %3563 = vmatpush.msra.mxu1 %v11689_v17  ;;  %3603 = vmatpush.msra.mxu3 %v11690_v28  ;;  %4264 = vpow2.f32 %v4044_v3  ;;  %v11700_v17 = vld [vmem:[#allocation64_spill] sm:$0xff]  ;;  %v3274_v5 = vsel %vm9508_vm5, %v9462_v60, %v3270_v1  ;;  %v11707_v60 = vld [vmem:[#allocation71_spill] sm:$0xff] }
 0x656   :  { %4266 = vtanh.f32 %v3201_v44  ;;  %v3259_v44 = vor.u32 1.1754944e-38, %v3258_v63  ;;  %v3279_v3 = vsel %vm3276_vm7, %v3278_v16, %v3274_v5  ;;  %v11714_v1 = vld [vmem:[#allocation119_spill] sm:$0xff]  ;;  %v5106_v5 = vld [vmem:[#allocation9 + $0xc0] sm:$0xff] }
 0x657   :  { %3564 = vmatpush.msra.mxu1 %v11691_v21  ;;  %3604 = vmatpush.msra.mxu3 %v11692_v24  ;;  %v3255_v24 = vsel %vm9498_vm4, %v9460_v46, %v3251_v22  ;;  %v5097_v21 = vld [vmem:[#allocation9 + $0x168] sm:$0xff]  ;;  %v5112_v16 = vld [vmem:[#allocation9 + $0x60] sm:$0xff] }
 0x658   :  { %v3260_v46 = vsel %vm3257_vm6, %v3259_v44, %v3255_v24  ;;  %v5102_v24 = vld [vmem:[#allocation9 + $0x100] sm:$0xff] }
 0x659   :  { %3565 = vmatpush.msra.mxu1 %v11693_v62  ;;  %3605 = vmatpush.msra.mxu3 %v11694_v26  ;;  %v11720_v44 = vld [vmem:[#allocation125_spill] sm:$0xff] }
 0x65b   :  { %3566 = vmatpush.msra.mxu1 %v11695_v37  ;;  %3606 = vmatpush.msra.mxu3 %v11696_v43  ;;  %v4265_v14 = vpop.eup %4264  ;;  %v11710_v37 = vld [vmem:[#allocation70_spill] sm:$0xff]  ;;  %v11711_v43 = vld [vmem:[#allocation75_spill] sm:$0xff] }
 0x65c   :  { %v3285_v34 = vadd.f32 1.0, %v4265_v14  ;;  %v5095_v14 = vld [vmem:[#allocation9 + $0x188] sm:$0xff] }
 0x65d   :  { %3567 = vmatpush.msra.mxu1 %v11697_v52  ;;  %3607 = vmatpush.msra.mxu3 %v11698_v13  ;;  %v11713_v52 = vld [vmem:[#allocation77_spill] sm:$0xff] }
 0x65e   :  { %4268 = vrcp.f32 %v3285_v34  ;;  %v3295_v22 = vand.u32 2147483647, %v3285_v34  ;;  %vm3291_vm9 = vweird.f32 %v3285_v34 }
 0x65f   :  { %3568 = vmatpush.msra.mxu1 %v11699_v50  ;;  %3608 = vmatpush.msra.mxu3 %v11700_v17 }
 0x660   :  { %vm3296_vm11 = vcmp.eq.f32.partialorder %v3295_v22, 8.507059e+37  ;;  %v11728_v22 = vld [vmem:[#allocation133_spill] sm:$0xff] }
 0x661   :  { %3633 = vmatpush.msrb.mxu1 %v11703_v55  ;;  %3673 = vmatpush.msrb.mxu3 %v8873_v45  ;;  %v4267_v45 = vpop.eup %4266  ;;  %v5088_v55 = vld [vmem:[#allocation9 + $0x1e0] sm:$0xff] }
 0x662   :  { %v3302_v62 = vmul.f32 %v4267_v45, %v3260_v46  ;;  %v11718_v45 = vld [vmem:[#allocation123_spill] sm:$0xff]  ;;  %v5114_v46 = vld [vmem:[#allocation9 + $0x40] sm:$0xff] }
 0x663   :  { %3634 = vmatpush.msrb.mxu1 %v8882_v47  ;;  %3674 = vmatpush.msrb.mxu3 %v8885_v42  ;;  %v3301_v47 = vmul.f32 %v3279_v3, %v8907_v4  ;;  %v11706_v42 = vld [vmem:[#allocation66_spill] sm:$0xff]  ;;  %v11712_v4 = vld [vmem:[#allocation72_spill] sm:$0xff] }
 0x664   :  { %v4269_v26 = vpop.eup %4268  ;;  %v11721_v3 = vld [vmem:[#allocation126_spill] sm:$0xff] }
 0x665   :  { %3635 = vmatpush.msrb.mxu1 %v8888_v11  ;;  %3675 = vmatpush.msrb.mxu3 %v8891_v51  ;;  %v9527_v8 = vadd.f32 %v3302_v62, %v3301_v47  ;;  %v11709_v11 = vld [vmem:[#allocation73_spill] sm:$0xff]  ;;  %v3287_v51 = vmul.f32 %v4269_v26, %v3285_v34  ;;  %vm3292_vm8 = vweird.f32 %v4269_v26  ;;  %v11722_v62 = vld [vmem:[#allocation127_spill] sm:$0xff] }
 0x666   :  { %vm3293_vm10 = vmor %vm3291_vm9, %vm3292_vm8  ;;  %v5116_v47 = vld [vmem:[#allocation9 + $0x20] sm:$0xff] }
 0x667   :  { %3636 = vmatpush.msrb.mxu1 %v8894_v31  ;;  %3676 = vmatpush.msrb.mxu3 %v8897_v36  ;;  %v3288_v31 = vsub.f32 1.0, %v3287_v51  ;;  %4270 = vtanh.f32 %v9527_v8  ;;  %v3297_v36 = vand.u32 2147483648, %v3285_v34  ;;  %v5110_v34 = vld [vmem:[#allocation9 + $0x80] sm:$0xff]  ;;  %v5119_v51 = vld [vmem:[#allocation9 + $0x8] sm:$0xff] }
 0x669   :  { %3637 = vmatpush.msrb.mxu1 %v11706_v42  ;;  %3677 = vmatpush.msrb.mxu3 %v11707_v60  ;;  %v3289_v13 = vmul.f32 %v4269_v26, %v3288_v31  ;;  %v3298_v50 = vor.u32 1.1754944e-38, %v3297_v36  ;;  %v5117_v42 = vld [vmem:[#allocation9 + $0x28] sm:$0xff]  ;;  %v9568_v60 = vld [vmem:[#allocation6 + $0xe] sm:$0x3]  ;;  %v11726_v36 = vld [vmem:[#allocation131_spill] sm:$0xff] }
 0x66a   :  { %v11725_v31 = vld [vmem:[#allocation130_spill] sm:$0xff] }
 0x66b   :  { %3638 = vmatpush.msrb.mxu1 %v11708_v35  ;;  %3678 = vmatpush.msrb.mxu3 %v11709_v11  ;;  %v3290_v63 = vadd.f32 %v4269_v26, %v3289_v13  ;;  %v11724_v35 = vld [vmem:[#allocation129_spill] sm:$0xff]  ;;  %v11727_v13 = vld [vmem:[#allocation132_spill] sm:$0xff] }
 0x66c   :  { %v5118_v11 = vld [vmem:[#allocation9] sm:$0xff] }
 0x66d   :  { %3639 = vmatpush.msrb.mxu1 %v11710_v37  ;;  %3679 = vmatpush.msrb.mxu3 %v11711_v43  ;;  %v3294_v17 = vsel %vm3293_vm10, %v4269_v26, %v3290_v63  ;;  %v4271_v28 = vpop.eup %4270  ;;  %v11723_v26 = vld [vmem:[#allocation128_spill] sm:$0xff]  ;;  %v5120_v37 = vld [vmem:[#allocation9 + $0x1f0] sm:$0xff]  ;;  %v11729_v63 = vld [vmem:[#allocation134_spill] sm:$0xff] }
 0x66e   :  { %v3299_v48 = vsel %vm3296_vm11, %v3298_v50, %v3294_v17  ;;  %v5121_v43 = vld [vmem:[#allocation9 + $0x1f8] sm:$0xff]  ;;  %v11730_v50 = vld [vmem:[#allocation135_spill] sm:$0xff] }
 0x66f   :  { %3640 = vmatpush.msrb.mxu1 %v11712_v4  ;;  %3680 = vmatpush.msrb.mxu3 %v11713_v52  ;;  %v3305_v61 = vmul.f32 %v4271_v28, %v3299_v48  ;;  %v5122_v4 = vld [vmem:[#allocation9 + $0x1d0] sm:$0xff]  ;;  %v5123_v52 = vld [vmem:[#allocation9 + $0x1d8] sm:$0xff] }
 0x670   :  { %v5126_v17 = vld [vmem:[#allocation9 + $0x190] sm:$0xff]  ;;  %v5127_v28 = vld [vmem:[#allocation9 + $0x198] sm:$0xff] }
 0x671   :  { %3641 = vmatpush.msrb.mxu1 %v11714_v1  ;;  %3681 = vmatpush.msrb.mxu3 %v11715_v32  ;;  %v5124_v1 = vld [vmem:[#allocation9 + $0x1b0] sm:$0xff]  ;;  %v5125_v32 = vld [vmem:[#allocation9 + $0x1b8] sm:$0xff] }
 0x672   :  { %3322 = vmatmul.f32.vlgmr.msra.gmra.mxu0 %v3305_v61  ;;  %3362 = vmatmul.f32.vlgmr.msra.gmra.mxu2 %v3305_v61  ;;  %v11731_v48 = vld [vmem:[#allocation136_spill] sm:$0xff] }
 0x673   :  { %3642 = vmatpush.msrb.mxu1 %v8934_v59  ;;  %3682 = vmatpush.msrb.mxu3 %v8937_v58  ;;  %v5089_v59 = vld [vmem:[#allocation9 + $0x1e8] sm:$0xff]  ;;  %v5090_v58 = vld [vmem:[#allocation9 + $0x1c0] sm:$0xff] }
 0x674   :  { %3533 = vmatpush.msra.mxu0 %v5088_v55  ;;  %3569 = vmatmul.f32.vlgmr.msra.gmra.mxu1 %v3305_v61  ;;  %v5128_v55 = vld [vmem:[#allocation9 + $0x170] sm:$0xff] }
 0x675   :  { %3643 = vmatpush.msrb.mxu1 %v8940_v20  ;;  %3683 = vmatpush.msrb.mxu3 %v8943_v30  ;;  %v5091_v20 = vld [vmem:[#allocation9 + $0x1c8] sm:$0xff]  ;;  %v5092_v30 = vld [vmem:[#allocation9 + $0x1a0] sm:$0xff] }
 0x676   :  { %3573 = vmatpush.msra.mxu2 %v5089_v59  ;;  %3609 = vmatmul.f32.vlgmr.msra.gmra.mxu3 %v3305_v61  ;;  %v5129_v59 = vld [vmem:[#allocation9 + $0x178] sm:$0xff] }
 0x677   :  { %3644 = vmatpush.msrb.mxu1 %v8949_v19  ;;  %3684 = vmatpush.msrb.mxu3 %v8953_v10  ;;  %v5093_v19 = vld [vmem:[#allocation9 + $0x1a8] sm:$0xff]  ;;  %v5094_v10 = vld [vmem:[#allocation9 + $0x180] sm:$0xff] }
 0x678   :  { %3534 = vmatpush.msra.mxu0 %v5090_v58  ;;  %3574 = vmatpush.msra.mxu2 %v5091_v20  ;;  %v11733_v58 = vld [vmem:[#allocation138_spill] sm:$0xff]  ;;  %v11734_v20 = vld [vmem:[#allocation139_spill] sm:$0xff] }
 0x679   :  { %3645 = vmatpush.msrb.mxu1 %v8957_v18  ;;  %3685 = vmatpush.msrb.mxu3 %v8961_v57  ;;  %v5096_v18 = vld [vmem:[#allocation9 + $0x160] sm:$0xff] }
 0x67a   :  { %3535 = vmatpush.msra.mxu0 %v5092_v30  ;;  %3575 = vmatpush.msra.mxu2 %v5093_v19  ;;  %v5098_v57 = vld [vmem:[#allocation9 + $0x140] sm:$0xff]  ;;  %v5130_v30 = vld [vmem:[#allocation9 + $0x150] sm:$0xff]  ;;  %v5131_v19 = vld [vmem:[#allocation9 + $0x158] sm:$0xff] }
 0x67b   :  { %3646 = vmatpush.msrb.mxu1 %v8965_v12  ;;  %3686 = vmatpush.msrb.mxu3 %v8969_v41  ;;  %v5099_v12 = vld [vmem:[#allocation9 + $0x148] sm:$0xff]  ;;  %v5100_v41 = vld [vmem:[#allocation9 + $0x120] sm:$0xff] }
 0x67c   :  { %3536 = vmatpush.msra.mxu0 %v5094_v10  ;;  %3576 = vmatpush.msra.mxu2 %v5095_v14  ;;  %v11735_v10 = vld [vmem:[#allocation140_spill] sm:$0xff]  ;;  %v11736_v14 = vld [vmem:[#allocation141_spill] sm:$0xff] }
 0x67d   :  { %3647 = vmatpush.msrb.mxu1 %v8974_v27  ;;  %3402 = vmatmul.f32.vlgmr.msrb.gmra.mxu0 %v3305_v61  ;;  %v5101_v27 = vld [vmem:[#allocation9 + $0x128] sm:$0xff] }
 0x67e   :  { %3442 = vmatmul.f32.vlgmr.msrb.gmra.mxu2 %v3305_v61  ;;  %3537 = vmatpush.msra.mxu0 %v5096_v18  ;;  %v5132_v18 = vld [vmem:[#allocation9 + $0x130] sm:$0xff] }
 0x67f   :  { %3577 = vmatpush.msra.mxu2 %v5097_v21  ;;  %3687 = vmatpush.msrb.mxu3 %v8977_v15  ;;  %v5103_v15 = vld [vmem:[#allocation9 + $0x108] sm:$0xff]  ;;  %v5133_v21 = vld [vmem:[#allocation9 + $0x138] sm:$0xff] }
 0x680   :  { %3538 = vmatpush.msra.mxu0 %v5098_v57  ;;  %3648 = vmatpush.msrb.mxu1 %v8982_v49  ;;  %v5104_v49 = vld [vmem:[#allocation9 + $0xe0] sm:$0xff]  ;;  %v11737_v57 = vld [vmem:[#allocation142_spill] sm:$0xff] }
 0x681   :  { %3578 = vmatpush.msra.mxu2 %v5099_v12  ;;  %3688 = vmatpush.msrb.mxu3 %v8985_v29  ;;  %v5105_v29 = vld [vmem:[#allocation9 + $0xe8] sm:$0xff]  ;;  %v11738_v12 = vld [vmem:[#allocation143_spill] sm:$0xff] }
 0x682   :  { %3649 = vmatmul.f32.vlgmr.msrb.gmra.mxu1 %v3305_v61  ;;  %3689 = vmatmul.f32.vlgmr.msrb.gmra.mxu3 %v3305_v61  ;;  %v11732_v61 = vld [vmem:[#allocation137_spill] sm:$0xff] }
 0x683   :  { %3539 = vmatpush.msra.mxu0 %v5100_v41  ;;  %3579 = vmatpush.msra.mxu2 %v5101_v27  ;;  %v5134_v41 = vld [vmem:[#allocation9 + $0x110] sm:$0xff]  ;;  %v5135_v27 = vld [vmem:[#allocation9 + $0x118] sm:$0xff] }
 0x684   :  { %3776 = vmatpush.msra.mxu1 %v8990_v39  ;;  %3816 = vmatpush.msra.mxu3 %v8993_v0  ;;  %v5107_v39 = vld [vmem:[#allocation9 + $0xc8] sm:$0xff]  ;;  %v5108_v0 = vld [vmem:[#allocation9 + $0xa0] sm:$0xff] }
 0x685   :  { %3540 = vmatpush.msra.mxu0 %v5102_v24  ;;  %3580 = vmatpush.msra.mxu2 %v5103_v15  ;;  %v11739_v24 = vld [vmem:[#allocation144_spill] sm:$0xff]  ;;  %v11740_v15 = vld [vmem:[#allocation145_spill] sm:$0xff] }
 0x686   :  { %3777 = vmatpush.msra.mxu1 %v8998_v53  ;;  %3817 = vmatpush.msra.mxu3 %v9001_v7  ;;  %v5109_v53 = vld [vmem:[#allocation9 + $0xa8] sm:$0xff]  ;;  %v11716_v7 = vld [vmem:[#allocation121_spill] sm:$0xff] }
 0x687   :  { %3541 = vmatpush.msra.mxu0 %v5104_v49  ;;  %3581 = vmatpush.msra.mxu2 %v5105_v29  ;;  %v5136_v49 = vld [vmem:[#allocation9 + $0xf0] sm:$0xff]  ;;  %v5137_v29 = vld [vmem:[#allocation9 + $0xf8] sm:$0xff] }
 0x688   :  { %3778 = vmatpush.msra.mxu1 %v9006_v23  ;;  %3818 = vmatpush.msra.mxu3 %v9009_v40  ;;  %v5111_v23 = vld [vmem:[#allocation9 + $0x88] sm:$0xff] }
 0x689   :  { %3542 = vmatpush.msra.mxu0 %v5106_v5  ;;  %3582 = vmatpush.msra.mxu2 %v5107_v39  ;;  %v11717_v40 = vld [vmem:[#allocation122_spill] sm:$0xff]  ;;  %v11742_v39 = vld [vmem:[#allocation147_spill] sm:$0xff] }
 0x68a   :  { %3779 = vmatpush.msra.mxu1 %v9014_v2  ;;  %3819 = vmatpush.msra.mxu3 %v9017_v6  ;;  %v5113_v2 = vld [vmem:[#allocation9 + $0x68] sm:$0xff]  ;;  %v11719_v6 = vld [vmem:[#allocation124_spill] sm:$0xff] }
 0x68b   :  { %3543 = vmatpush.msra.mxu0 %v5108_v0  ;;  %3583 = vmatpush.msra.mxu2 %v5109_v53  ;;  %v11741_v5 = vld [vmem:[#allocation146_spill] sm:$0xff]  ;;  %v5138_v0 = vld [vmem:[#allocation9 + $0xd0] sm:$0xff]  ;;  %v5139_v53 = vld [vmem:[#allocation9 + $0xd8] sm:$0xff] }
 0x68c   :  { %3780 = vmatpush.msra.mxu1 %v9022_v54  ;;  %3820 = vmatpush.msra.mxu3 %v11716_v7  ;;  %v5115_v54 = vld [vmem:[#allocation9 + $0x48] sm:$0xff]  ;;  %v11743_v7 = vld [vmem:[#allocation148_spill] sm:$0xff] }
 0x68d   :  { %3544 = vmatpush.msra.mxu0 %v5110_v34  ;;  %3584 = vmatpush.msra.mxu2 %v5111_v23  ;;  %v11744_v34 = vld [vmem:[#allocation149_spill] sm:$0xff]  ;;  %v5140_v23 = vld [vmem:[#allocation9 + $0xb0] sm:$0xff] }
 0x68e   :  { %3781 = vmatpush.msra.mxu1 %v11717_v40  ;;  %3821 = vmatpush.msra.mxu3 %v11718_v45  ;;  %v5141_v40 = vld [vmem:[#allocation9 + $0xb8] sm:$0xff]  ;;  %v11745_v45 = vld [vmem:[#allocation150_spill] sm:$0xff] }
 0x68f   :  { %3545 = vmatpush.msra.mxu0 %v5112_v16  ;;  %3585 = vmatpush.msra.mxu2 %v5113_v2  ;;  %v11746_v16 = vld [vmem:[#allocation151_spill] sm:$0xff] }
 0x690   :  { %3782 = vmatpush.msra.mxu1 %v11719_v6  ;;  %3822 = vmatpush.msra.mxu3 %v11720_v44  ;;  %v5142_v2 = vld [vmem:[#allocation9 + $0x90] sm:$0xff]  ;;  %v5143_v6 = vld [vmem:[#allocation9 + $0x98] sm:$0xff] }
 0x691   :  { %3546 = vmatpush.msra.mxu0 %v5114_v46  ;;  %3586 = vmatpush.msra.mxu2 %v5115_v54  ;;  %v11747_v44 = vld [vmem:[#allocation152_spill] sm:$0xff]  ;;  %v11748_v46 = vld [vmem:[#allocation153_spill] sm:$0xff]  ;;  %v5144_v54 = vld [vmem:[#allocation9 + $0x70] sm:$0xff] }
 0x692   :  { %3783 = vmatpush.msra.mxu1 %v11721_v3  ;;  %3823 = vmatpush.msra.mxu3 %v11722_v62  ;;  %v5145_v3 = vld [vmem:[#allocation9 + $0x78] sm:$0xff]  ;;  %v11749_v62 = vld [vmem:[#allocation154_spill] sm:$0xff] }
 0x693   :  { %3547 = vmatpush.msra.mxu0 %v5116_v47  ;;  %3587 = vmatpush.msra.mxu2 %v5117_v42  ;;  %v11750_v47 = vld [vmem:[#allocation155_spill] sm:$0xff] }
 0x694   :  { %3784 = vmatpush.msra.mxu1 %v11723_v26  ;;  %3824 = vmatpush.msra.mxu3 %v11724_v35  ;;  %v5146_v42 = vld [vmem:[#allocation9 + $0x50] sm:$0xff]  ;;  %v5147_v26 = vld [vmem:[#allocation9 + $0x58] sm:$0xff] }
 0x695   :  { %3548 = vmatpush.msra.mxu0 %v5118_v11  ;;  %3588 = vmatpush.msra.mxu2 %v5119_v51  ;;  %v11751_v35 = vld [vmem:[#allocation156_spill] sm:$0xff]  ;;  %v11752_v11 = vld [vmem:[#allocation157_spill] sm:$0xff]  ;;  %v5148_v51 = vld [vmem:[#allocation9 + $0x30] sm:$0xff] }
 0x696   :  { %3549 = vmatmul.f32.vlgmr.msra.gmra.mxu0 %v9568_v60  ;;  %3589 = vmatmul.f32.vlgmr.msra.gmra.mxu2 %v9568_v60 }
 0x697   :  { %3613 = vmatpush.msrb.mxu0 %v5120_v37  ;;  %3653 = vmatpush.msrb.mxu2 %v5121_v43  ;;  %v5149_v37 = vld [vmem:[#allocation9 + $0x38] sm:$0xff]  ;;  %v11753_v43 = vld [vmem:[#allocation158_spill] sm:$0xff] }
 0x698   :  { %3785 = vmatpush.msra.mxu1 %v11725_v31  ;;  %3825 = vmatpush.msra.mxu3 %v11726_v36  ;;  %v11754_v31 = vld [vmem:[#allocation159_spill] sm:$0xff] }
 0x699   :  { %3614 = vmatpush.msrb.mxu0 %v5122_v4  ;;  %3654 = vmatpush.msrb.mxu2 %v5123_v52  ;;  %v5150_v36 = vld [vmem:[#allocation9 + $0x10] sm:$0xff]  ;;  %v5151_v4 = vld [vmem:[#allocation9 + $0x18] sm:$0xff] }
 0x69a   :  { %3786 = vmatpush.msra.mxu1 %v11727_v13  ;;  %3826 = vmatpush.msra.mxu3 %v11728_v22  ;;  %v11755_v52 = vld [vmem:[#allocation160_spill] sm:$0xff]  ;;  %v11756_v13 = vld [vmem:[#allocation161_spill] sm:$0xff]  ;;  %v11757_v22 = vld [vmem:[#allocation162_spill] sm:$0xff] }
 0x69b   :  { %3615 = vmatpush.msrb.mxu0 %v5124_v1  ;;  %3655 = vmatpush.msrb.mxu2 %v5125_v32  ;;  %v11758_v1 = vld [vmem:[#allocation163_spill] sm:$0xff]  ;;  %v11759_v32 = vld [vmem:[#allocation164_spill] sm:$0xff] }
 0x69c   :  { %3787 = vmatpush.msra.mxu1 %v11729_v63  ;;  %3827 = vmatpush.msra.mxu3 %v11730_v50  ;;  %v11760_v63 = vld [vmem:[#allocation165_spill] sm:$0xff]  ;;  %v11761_v50 = vld [vmem:[#allocation166_spill] sm:$0xff] }
 0x69d   :  { %3616 = vmatpush.msrb.mxu0 %v5126_v17  ;;  %3656 = vmatpush.msrb.mxu2 %v5127_v28  ;;  %v11762_v17 = vld [vmem:[#allocation167_spill] sm:$0xff]  ;;  %v11763_v28 = vld [vmem:[#allocation168_spill] sm:$0xff] }
 0x69e   :  { %3788 = vmatpush.msra.mxu1 %v11731_v48  ;;  %3828 = vmatpush.msra.mxu3 %v11732_v61  ;;  %v11764_v48 = vld [vmem:[#allocation169_spill] sm:$0xff]  ;;  %v11766_v61 = vld [vmem:[#allocation171_spill] sm:$0xff] }
 0x69f   :  { %3617 = vmatpush.msrb.mxu0 %v5128_v55  ;;  %3657 = vmatpush.msrb.mxu2 %v5129_v59  ;;  %v11767_v55 = vld [vmem:[#allocation172_spill] sm:$0xff]  ;;  %v11768_v59 = vld [vmem:[#allocation173_spill] sm:$0xff] }
 0x6a0   :  { %3789 = vmatpush.msra.mxu1 %v11733_v58  ;;  %3829 = vmatpush.msra.mxu3 %v11734_v20  ;;  %v11769_v58 = vld [vmem:[#allocation174_spill] sm:$0xff]  ;;  %v11770_v20 = vld [vmem:[#allocation175_spill] sm:$0xff] }
 0x6a1   :  { %3618 = vmatpush.msrb.mxu0 %v5130_v30  ;;  %3658 = vmatpush.msrb.mxu2 %v5131_v19  ;;  %v11771_v30 = vld [vmem:[#allocation176_spill] sm:$0xff]  ;;  %v11772_v19 = vld [vmem:[#allocation177_spill] sm:$0xff] }
 0x6a2   :  { %3790 = vmatpush.msra.mxu1 %v11735_v10  ;;  %3830 = vmatpush.msra.mxu3 %v11736_v14  ;;  %v11773_v10 = vld [vmem:[#allocation178_spill] sm:$0xff]  ;;  %v11774_v14 = vld [vmem:[#allocation179_spill] sm:$0xff] }
 0x6a3   :  { %3619 = vmatpush.msrb.mxu0 %v5132_v18  ;;  %3659 = vmatpush.msrb.mxu2 %v5133_v21  ;;  %v11775_v18 = vld [vmem:[#allocation180_spill] sm:$0xff]  ;;  %v11776_v21 = vld [vmem:[#allocation181_spill] sm:$0xff] }
 0x6a4   :  { %3791 = vmatpush.msra.mxu1 %v11737_v57  ;;  %3831 = vmatpush.msra.mxu3 %v11738_v12  ;;  %v11777_v57 = vld [vmem:[#allocation182_spill] sm:$0xff]  ;;  %v11778_v12 = vld [vmem:[#allocation183_spill] sm:$0xff] }
 0x6a5   :  { %3620 = vmatpush.msrb.mxu0 %v5134_v41  ;;  %3660 = vmatpush.msrb.mxu2 %v5135_v27  ;;  %v11779_v41 = vld [vmem:[#allocation78_spill] sm:$0xff]  ;;  %v11780_v27 = vld [vmem:[#allocation80_spill] sm:$0xff] }
 0x6a6   :  { %3856 = vmatpush.msrb.mxu1 %v11739_v24  ;;  %3896 = vmatpush.msrb.mxu3 %v11740_v15  ;;  %v11781_v24 = vld [vmem:[#allocation84_spill] sm:$0xff]  ;;  %v11782_v15 = vld [vmem:[#allocation82_spill] sm:$0xff] }
 0x6a7   :  { %3621 = vmatpush.msrb.mxu0 %v5136_v49  ;;  %3661 = vmatpush.msrb.mxu2 %v5137_v29  ;;  %v11783_v49 = vld [vmem:[#allocation86_spill] sm:$0xff]  ;;  %v11784_v29 = vld [vmem:[#allocation83_spill] sm:$0xff] }
 0x6a8   :  { %3857 = vmatpush.msrb.mxu1 %v11741_v5  ;;  %3897 = vmatpush.msrb.mxu3 %v11742_v39  ;;  %v11785_v5 = vld [vmem:[#allocation88_spill] sm:$0xff]  ;;  %v11786_v39 = vld [vmem:[#allocation57_spill] sm:$0xff] }
 0x6a9   :  { %3622 = vmatpush.msrb.mxu0 %v5138_v0  ;;  %3662 = vmatpush.msrb.mxu2 %v5139_v53  ;;  %v11787_v0 = vld [vmem:[#allocation58_spill] sm:$0xff]  ;;  %v11788_v53 = vld [vmem:[#allocation85_spill] sm:$0xff] }
 0x6aa   :  { %3858 = vmatpush.msrb.mxu1 %v11743_v7  ;;  %3898 = vmatpush.msrb.mxu3 %v11744_v34  ;;  %v11789_v7 = vld [vmem:[#allocation60_spill] sm:$0xff]  ;;  %v11790_v34 = vld [vmem:[#allocation89_spill] sm:$0xff] }
 0x6ab   :  { %3623 = vmatpush.msrb.mxu0 %v5140_v23  ;;  %3663 = vmatpush.msrb.mxu2 %v5141_v40  ;;  %v11791_v23 = vld [vmem:[#allocation61_spill] sm:$0xff]  ;;  %v11792_v40 = vld [vmem:[#allocation87_spill] sm:$0xff] }
 0x6ac   :  { %3859 = vmatpush.msrb.mxu1 %v11745_v45  ;;  %3899 = vmatpush.msrb.mxu3 %v11746_v16  ;;  %v11793_v45 = vld [vmem:[#allocation90_spill] sm:$0xff]  ;;  %v11794_v16 = vld [vmem:[#allocation92_spill] sm:$0xff] }
 0x6ad   :  { %3624 = vmatpush.msrb.mxu0 %v5142_v2  ;;  %3664 = vmatpush.msrb.mxu2 %v5143_v6  ;;  %v11795_v2 = vld [vmem:[#allocation91_spill] sm:$0xff] }
 0x6ae   :  { %3860 = vmatpush.msrb.mxu1 %v11747_v44  ;;  %3900 = vmatpush.msrb.mxu3 %v11748_v46  ;;  %v11796_v6 = vld [vmem:[#allocation95_spill] sm:$0xff]  ;;  %v11797_v44 = vld [vmem:[#allocation93_spill] sm:$0xff]  ;;  %v11798_v46 = vld [vmem:[#allocation96_spill] sm:$0xff] }
 0x6af   :  { %3625 = vmatpush.msrb.mxu0 %v5144_v54  ;;  %3665 = vmatpush.msrb.mxu2 %v5145_v3  ;;  %v11799_v54 = vld [vmem:[#allocation94_spill] sm:$0xff]  ;;  %v11800_v3 = vld [vmem:[#allocation97_spill] sm:$0xff] }
 0x6b0   :  { %3861 = vmatpush.msrb.mxu1 %v11749_v62  ;;  %3901 = vmatpush.msrb.mxu3 %v11750_v47  ;;  %v11801_v62 = vld [vmem:[#allocation99_spill] sm:$0xff]  ;;  %v11802_v47 = vld [vmem:[#allocation98_spill] sm:$0xff] }
 0x6b1   :  { %3626 = vmatpush.msrb.mxu0 %v5146_v42  ;;  %3666 = vmatpush.msrb.mxu2 %v5147_v26  ;;  %v11803_v42 = vld [vmem:[#allocation100_spill] sm:$0xff]  ;;  %v11804_v26 = vld [vmem:[#allocation101_spill] sm:$0xff] }
 0x6b2   :  { %3862 = vmatpush.msrb.mxu1 %v11751_v35  ;;  %3902 = vmatpush.msrb.mxu3 %v11752_v11  ;;  %v11805_v35 = vld [vmem:[#allocation102_spill] sm:$0xff]  ;;  %v11806_v11 = vld [vmem:[#allocation103_spill] sm:$0xff] }
 0x6b3   :  { %3627 = vmatpush.msrb.mxu0 %v5148_v51  ;;  %3667 = vmatpush.msrb.mxu2 %v5149_v37  ;;  %v11807_v51 = vld [vmem:[#allocation104_spill] sm:$0xff]  ;;  %v11808_v37 = vld [vmem:[#allocation105_spill] sm:$0xff] }
 0x6b4   :  { %3863 = vmatpush.msrb.mxu1 %v11753_v43  ;;  %3903 = vmatpush.msrb.mxu3 %v11754_v31  ;;  %v11809_v43 = vld [vmem:[#allocation106_spill] sm:$0xff]  ;;  %v11810_v31 = vld [vmem:[#allocation107_spill] sm:$0xff] }
 0x6b5   :  { %3628 = vmatpush.msrb.mxu0 %v5150_v36  ;;  %3668 = vmatpush.msrb.mxu2 %v5151_v4  ;;  %v11811_v36 = vld [vmem:[#allocation110_spill] sm:$0xff]  ;;  %v11812_v4 = vld [vmem:[#allocation111_spill] sm:$0xff] }
 0x6b6   :  { %3629 = vmatmul.f32.vlgmr.msrb.gmra.mxu0 %v9568_v60  ;;  %3669 = vmatmul.f32.vlgmr.msrb.gmra.mxu2 %v9568_v60  ;;  %v11765_v60 = vld [vmem:[#allocation170_spill] sm:$0xff] }
 0x6b7   :  { %3864 = vmatpush.msrb.mxu1 %v11755_v52  ;;  %3904 = vmatpush.msrb.mxu3 %v11756_v13  ;;  %v11813_v52 = vld [vmem:[#allocation112_spill] sm:$0xff]  ;;  %v11814_v13 = vld [vmem:[#allocation113_spill] sm:$0xff] }
 0x6b8   :  { %3756 = vmatpush.msra.mxu0 %v11757_v22  ;;  %3796 = vmatpush.msra.mxu2 %v11758_v1  ;;  %v11815_v22 = vld [vmem:[#allocation114_spill] sm:$0xff]  ;;  %v11816_v1 = vld [vmem:[#allocation115_spill] sm:$0xff] }
 0x6b9   :  { %3865 = vmatpush.msrb.mxu1 %v11759_v32  ;;  %3905 = vmatpush.msrb.mxu3 %v11760_v63  ;;  %v11817_v32 = vld [vmem:[#allocation116_spill] sm:$0xff] }
 0x6ba   :  { %3757 = vmatpush.msra.mxu0 %v11761_v50  ;;  %3797 = vmatpush.msra.mxu2 %v11762_v17  ;;  %v11818_v63 = vld [vmem:[#allocation108_spill] sm:$0xff]  ;;  %v11819_v50 = vld [vmem:[#allocation109_spill] sm:$0xff]  ;;  %v11820_v17 = vld [vmem:[#allocation22_spill] sm:$0xff] }
 0x6bb   :  { %3866 = vmatpush.msrb.mxu1 %v11763_v28  ;;  %3906 = vmatpush.msrb.mxu3 %v11764_v48  ;;  %v11821_v28 = vld [vmem:[#allocation20_spill] sm:$0xff] }
 0x6bc   :  { %3758 = vmatpush.msra.mxu0 %v11765_v60  ;;  %3798 = vmatpush.msra.mxu2 %v11766_v61  ;;  %v11822_v48 = vld [vmem:[#allocation24_spill] sm:$0xff]  ;;  %v11823_v60 = vld [vmem:[#allocation21_spill] sm:$0xff]  ;;  %v11824_v61 = vld [vmem:[#allocation23_spill] sm:$0xff] }
 0x6bd   :  { %3867 = vmatpush.msrb.mxu1 %v11767_v55  ;;  %3907 = vmatpush.msrb.mxu3 %v11768_v59  ;;  %v11825_v55 = vld [vmem:[#allocation25_spill] sm:$0xff]  ;;  %v11826_v59 = vld [vmem:[#allocation28_spill] sm:$0xff] }
 0x6be   :  { %3759 = vmatpush.msra.mxu0 %v11769_v58  ;;  %3799 = vmatpush.msra.mxu2 %v11770_v20  ;;  %v11827_v58 = vld [vmem:[#allocation26_spill] sm:$0xff] }
 0x6bf   :  { %3868 = vmatpush.msrb.mxu1 %v11771_v30  ;;  %3908 = vmatpush.msrb.mxu3 %v11772_v19  ;;  %v11828_v20 = vld [vmem:[#allocation30_spill] sm:$0xff]  ;;  %v11829_v30 = vld [vmem:[#allocation27_spill] sm:$0xff]  ;;  %v11830_v19 = vld [vmem:[#allocation32_spill] sm:$0xff] }
 0x6c0   :  { %3760 = vmatpush.msra.mxu0 %v11773_v10  ;;  %3800 = vmatpush.msra.mxu2 %v11774_v14  ;;  %v11831_v14 = vld [vmem:[#allocation74_spill] sm:$0xff] }
 0x6c1   :  { %3869 = vmatpush.msrb.mxu1 %v11775_v18  ;;  %3909 = vmatpush.msrb.mxu3 %v11776_v21  ;;  %v11832_v21 = vld [vmem:[#allocation29_spill] sm:$0xff] }
 0x6c2   :  { %3761 = vmatpush.msra.mxu0 %v11777_v57  ;;  %3801 = vmatpush.msra.mxu2 %v11778_v12  ;;  %v11833_v57 = vld [vmem:[#allocation34_spill] sm:$0xff]  ;;  %v3343_v12 = vpop.f32.mrf.mxu1 }
 0x6c3   :  { %3870 = vmatpush.msrb.mxu1 %v11779_v41  ;;  %3910 = vmatpush.msrb.mxu3 %v11780_v27  ;;  %v11834_v27 = vld [vmem:[#allocation31_spill] sm:$0xff] }
 0x6c4   :  { %3762 = vmatpush.msra.mxu0 %v11781_v24  ;;  %3802 = vmatpush.msra.mxu2 %v11782_v15  ;;  %v11835_v24 = vld [vmem:[#allocation36_spill] sm:$0xff] }
 0x6c5   :  { %3871 = vmatpush.msrb.mxu1 %v11783_v49  ;;  %3911 = vmatpush.msrb.mxu3 %v11784_v29  ;;  %v11836_v29 = vld [vmem:[#allocation79_spill] sm:$0xff] }
 0x6c6   :  { %3763 = vmatpush.msra.mxu0 %v11785_v5  ;;  %3803 = vmatpush.msra.mxu2 %v11786_v39  ;;  %v3383_v39 = vpop.f32.mrf.mxu3 }
 0x6c8   :  { %3764 = vmatpush.msra.mxu0 %v11787_v0  ;;  %3804 = vmatpush.msra.mxu2 %v11788_v53 }
 0x6ca   :  { %3765 = vmatpush.msra.mxu0 %v11789_v7  ;;  %3805 = vmatpush.msra.mxu2 %v11790_v34 }
 0x6cc   :  { %3766 = vmatpush.msra.mxu0 %v11791_v23  ;;  %3806 = vmatpush.msra.mxu2 %v11792_v40  ;;  %v11837_v40 = vld [vmem:[#allocation76_spill] sm:$0xff] }
 0x6ce   :  { %3767 = vmatpush.msra.mxu0 %v11793_v45  ;;  %3807 = vmatpush.msra.mxu2 %v11794_v16  ;;  %v3463_v16 = vpop.f32.mrf.mxu3 }
 0x6d0   :  { %3768 = vmatpush.msra.mxu0 %v11795_v2  ;;  %3808 = vmatpush.msra.mxu2 %v11796_v6 }
 0x6d2   :  { %3769 = vmatpush.msra.mxu0 %v11797_v44  ;;  %3809 = vmatpush.msra.mxu2 %v11798_v46 }
 0x6d4   :  { %3770 = vmatpush.msra.mxu0 %v11799_v54  ;;  %3810 = vmatpush.msra.mxu2 %v11800_v3 }
 0x6d6   :  { %3771 = vmatpush.msra.mxu0 %v11801_v62  ;;  %3811 = vmatpush.msra.mxu2 %v11802_v47  ;;  %v11838_v47 = vld [vmem:[#allocation81_spill] sm:$0xff] }
 0x6d8   :  { %3836 = vmatpush.msrb.mxu0 %v11803_v42  ;;  %3876 = vmatpush.msrb.mxu2 %v11804_v26 }
 0x6da   :  { %3837 = vmatpush.msrb.mxu0 %v11805_v35  ;;  %3877 = vmatpush.msrb.mxu2 %v11806_v11  ;;  %v3423_v35 = vpop.f32.mrf.mxu1 }
 0x6dc   :  { %3838 = vmatpush.msrb.mxu0 %v11807_v51  ;;  %3878 = vmatpush.msrb.mxu2 %v11808_v37 }
 0x6de   :  { %3839 = vmatpush.msrb.mxu0 %v11809_v43  ;;  %3879 = vmatpush.msrb.mxu2 %v11810_v31 }
 0x6e0   :  { %3840 = vmatpush.msrb.mxu0 %v11811_v36  ;;  %3880 = vmatpush.msrb.mxu2 %v11812_v4 }
 0x6e2   :  { %3841 = vmatpush.msrb.mxu0 %v11813_v52  ;;  %3881 = vmatpush.msrb.mxu2 %v11814_v13 }
 0x6e4   :  { %3842 = vmatpush.msrb.mxu0 %v11815_v22  ;;  %3882 = vmatpush.msrb.mxu2 %v11816_v1 }
 0x6e6   :  { %3843 = vmatpush.msrb.mxu0 %v11817_v32  ;;  %3883 = vmatpush.msrb.mxu2 %v11818_v63 }
 0x6e8   :  { %3844 = vmatpush.msrb.mxu0 %v11819_v50  ;;  %3884 = vmatpush.msrb.mxu2 %v11820_v17 }
 0x6ea   :  { %3845 = vmatpush.msrb.mxu0 %v11821_v28  ;;  %3885 = vmatpush.msrb.mxu2 %v11822_v48 }
 0x6ec   :  { %3846 = vmatpush.msrb.mxu0 %v11823_v60  ;;  %3886 = vmatpush.msrb.mxu2 %v11824_v61 }
 0x6ee   :  { %3847 = vmatpush.msrb.mxu0 %v11825_v55  ;;  %3887 = vmatpush.msrb.mxu2 %v11826_v59 }
 0x6ef   :  { %v3323_v10 = vpop.f32.mrf.mxu0 }
 0x6f0   :  { %3848 = vmatpush.msrb.mxu0 %v11827_v58  ;;  %3888 = vmatpush.msrb.mxu2 %v11828_v20  ;;  %v3324_v18 = vadd.f32 %v3323_v10, %v11831_v14 }
 0x6f1   :  { %v3570_v61 = vpop.f32.mrf.mxu1 }
 0x6f2   :  { %3849 = vmatpush.msrb.mxu0 %v11829_v30  ;;  %3889 = vmatpush.msrb.mxu2 %v11830_v19  ;;  %v3344_v41 = vadd.f32 %v3343_v12, %v3324_v18 }
 0x6f4   :  { %3850 = vmatpush.msrb.mxu0 %v11832_v21  ;;  %3890 = vmatpush.msrb.mxu2 %v11833_v57  ;;  %v4045_v15 = vmul.f32 -1.442695, %v3344_v41 }
 0x6f5   :  { %v3363_v49 = vpop.f32.mrf.mxu2 }
 0x6f6   :  { %3851 = vmatpush.msrb.mxu0 %v11834_v27  ;;  %3891 = vmatpush.msrb.mxu2 %v11835_v24  ;;  %4272 = vpow2.f32 %v4045_v15  ;;  %v3364_v5 = vadd.f32 %v3363_v49, %v11836_v29 }
 0x6f8   :  { %v3384_v0 = vadd.f32 %v3383_v39, %v3364_v5 }
 0x6f9   :  { %v3610_v24 = vpop.f32.mrf.mxu3 }
 0x6fa   :  { %v4046_v53 = vmul.f32 -1.442695, %v3384_v0  ;;  %v3403_v46 = vpop.f32.mrf.mxu0 }
 0x6fb   :  { %v3404_v42 = vadd.f32 %v3403_v46, %v11838_v47 }
 0x6fc   :  { %v4273_v7 = vpop.eup %4272  ;;  %4274 = vpow2.f32 %v4046_v53 }
 0x6fd   :  { %v3469_v34 = vadd.f32 1.0, %v4273_v7  ;;  %v3424_v11 = vadd.f32 %v3423_v35, %v3404_v42 }
 0x6ff   :  { %4276 = vrcp.f32 %v3469_v34  ;;  %v3481_v4 = vand.u32 2147483648, %v3469_v34  ;;  %vm3475_vm13 = vweird.f32 %v3469_v34  ;;  %v3479_v22 = vand.u32 2147483647, %v3469_v34 }
 0x701   :  { %v3443_v23 = vpop.f32.mrf.mxu2  ;;  %v3482_v48 = vor.u32 1.1754944e-38, %v3481_v4  ;;  %vm3480_vm1 = vcmp.eq.f32.partialorder %v3479_v22, 8.507059e+37 }
 0x702   :  { %v3444_v45 = vadd.f32 %v3443_v23, %v11837_v40  ;;  %v4275_v2 = vpop.eup %4274 }
 0x703   :  { %v3488_v44 = vadd.f32 1.0, %v4275_v2 }
 0x704   :  { %v3464_v6 = vadd.f32 %v3463_v16, %v3444_v45 }
 0x705   :  { %v4277_v3 = vpop.eup %4276  ;;  %4278 = vrcp.f32 %v3488_v44  ;;  %v3500_v1 = vand.u32 2147483648, %v3488_v44  ;;  %v3498_v17 = vand.u32 2147483647, %v3488_v44  ;;  %vm3494_vm0 = vweird.f32 %v3488_v44 }
 0x706   :  { %v4047_v54 = vmul.f32 -1.442695, %v3464_v6  ;;  %v3471_v62 = vmul.f32 %v4277_v3, %v3469_v34  ;;  %vm3476_vm12 = vweird.f32 %v4277_v3 }
 0x707   :  { %vm9690_vm14 = vmor %vm3475_vm13, %vm3476_vm12  ;;  %v3501_v59 = vor.u32 1.1754944e-38, %v3500_v1  ;;  %vm3499_vm3 = vcmp.eq.f32.partialorder %v3498_v17, 8.507059e+37 }
 0x708   :  { %4280 = vpow2.f32 %v4047_v54  ;;  %v3472_v26 = vsub.f32 1.0, %v3471_v62 }
 0x709   :  { %4282 = vtanh.f32 %v3424_v11 }
 0x70a   :  { %v3473_v51 = vmul.f32 %v4277_v3, %v3472_v26 }
 0x70b   :  { %v4279_v37 = vpop.eup %4278 }
 0x70c   :  { %v3490_v31 = vmul.f32 %v4279_v37, %v3488_v44  ;;  %v3474_v36 = vadd.f32 %v4277_v3, %v3473_v51  ;;  %vm3495_vm15 = vweird.f32 %v4279_v37 }
 0x70d   :  { %vm3496_vm2 = vmor %vm3494_vm0, %vm3495_vm15 }
 0x70e   :  { %v4281_v43 = vpop.eup %4280  ;;  %v3491_v13 = vsub.f32 1.0, %v3490_v31  ;;  %v3478_v50 = vsel %vm9690_vm14, %v4277_v3, %v3474_v36  ;;  %v3650_v31 = vpop.f32.mrf.mxu1 }
 0x70f   :  { %v3508_v52 = vadd.f32 1.0, %v4281_v43  ;;  %v3483_v58 = vsel %vm3480_vm1, %v3482_v48, %v3478_v50  ;;  %v4283_v30 = vpop.eup %4282 }
 0x710   :  { %v3492_v63 = vmul.f32 %v4279_v37, %v3491_v13  ;;  %v3525_v12 = vmul.f32 %v4283_v30, %v3483_v58 }
 0x711   :  { %4284 = vrcp.f32 %v3508_v52  ;;  %v3520_v0 = vand.u32 2147483648, %v3508_v52  ;;  %v3518_v7 = vand.u32 2147483647, %v3508_v52  ;;  %vm3514_vm5 = vweird.f32 %v3508_v52 }
 0x712   :  { %v3493_v55 = vadd.f32 %v4279_v37, %v3492_v63 }
 0x713   :  { %v3550_v28 = vpop.f32.mrf.mxu0  ;;  %vm3519_vm7 = vcmp.eq.f32.partialorder %v3518_v7, 8.507059e+37 }
 0x714   :  { %v3551_v60 = vadd.f32 %v3550_v28, %v10675_v9  ;;  %v3497_v19 = vsel %vm3496_vm2, %v4279_v37, %v3493_v55  ;;  %v3690_v28 = vpop.f32.mrf.mxu3 }
 0x715   :  { %v3502_v18 = vsel %vm3499_vm3, %v3501_v59, %v3497_v19 }
 0x716   :  { %v3571_v20 = vadd.f32 %v3570_v61, %v3551_v60  ;;  %v3524_v57 = vmul.f32 %v3502_v18, %v9436_v25 }
 0x717   :  { %v4285_v10 = vpop.eup %4284 }
 0x718   :  { %v4048_v21 = vmul.f32 -1.442695, %v3571_v20  ;;  %v3510_v41 = vmul.f32 %v4285_v10, %v3508_v52  ;;  %v9699_v15 = vadd.f32 %v3525_v12, %v3524_v57  ;;  %vm3515_vm4 = vweird.f32 %v4285_v10 }
 0x719   :  { %v3590_v27 = vpop.f32.mrf.mxu2  ;;  %vm3516_vm6 = vmor %vm3514_vm5, %vm3515_vm4 }
 0x71a   :  { %4286 = vpow2.f32 %v4048_v21  ;;  %v3591_v9 = vadd.f32 %v3590_v27, %v10676_v33  ;;  %v3511_v49 = vsub.f32 1.0, %v3510_v41  ;;  %v3521_v33 = vor.u32 1.1754944e-38, %v3520_v0 }
 0x71b   :  { %4288 = vtanh.f32 %v9699_v15 }
 0x71c   :  { %v3611_v5 = vadd.f32 %v3610_v24, %v3591_v9  ;;  %v3512_v39 = vmul.f32 %v4285_v10, %v3511_v49 }
 0x71e   :  { %v4049_v53 = vmul.f32 -1.442695, %v3611_v5  ;;  %v3513_v25 = vadd.f32 %v4285_v10, %v3512_v39 }
 0x720   :  { %v4287_v34 = vpop.eup %4286  ;;  %4290 = vpow2.f32 %v4049_v53  ;;  %v3517_v45 = vsel %vm3516_vm6, %v4285_v10, %v3513_v25 }
 0x721   :  { %v3696_v23 = vadd.f32 1.0, %v4287_v34  ;;  %v4289_v16 = vpop.eup %4288  ;;  %v3522_v2 = vsel %vm3519_vm7, %v3521_v33, %v3517_v45 }
 0x722   :  { %v3528_v6 = vmul.f32 %v4289_v16, %v3522_v2 }
 0x723   :  { %4292 = vrcp.f32 %v3696_v23  ;;  %v3708_v1 = vand.u32 2147483648, %v3696_v23  ;;  %vm3702_vm12 = vweird.f32 %v3696_v23  ;;  %v3706_v32 = vand.u32 2147483647, %v3696_v23 }
 0x724   :  { %3530 = vst [vmem:[#allocation15 + $0xc] sm:$0x3] %v3528_v6  ;;  %3792 = vmatmul.f32.vlgmr.msra.gmra.mxu1 %v3528_v6  ;;  %3832 = vmatmul.f32.vlgmr.msra.gmra.mxu3 %v3528_v6 }
 0x725   :  { %v3709_v60 = vor.u32 1.1754944e-38, %v3708_v1  ;;  %vm3707_vm15 = vcmp.eq.f32.partialorder %v3706_v32, 8.507059e+37 }
 0x726   :  { %v4291_v44 = vpop.eup %4290 }
 0x727   :  { %v3715_v46 = vadd.f32 1.0, %v4291_v44 }
 0x729   :  { %v4293_v54 = vpop.eup %4292  ;;  %4294 = vrcp.f32 %v3715_v46  ;;  %v3727_v36 = vand.u32 2147483648, %v3715_v46  ;;  %vm3721_vm9 = vweird.f32 %v3715_v46  ;;  %v3725_v22 = vand.u32 2147483647, %v3715_v46 }
 0x72a   :  { %v3698_v3 = vmul.f32 %v4293_v54, %v3696_v23  ;;  %vm3703_vm10 = vweird.f32 %v4293_v54 }
 0x72b   :  { %v3728_v17 = vor.u32 1.1754944e-38, %v3727_v36  ;;  %vm3704_vm13 = vmor %vm3702_vm12, %vm3703_vm10  ;;  %vm3726_vm14 = vcmp.eq.f32.partialorder %v3725_v22, 8.507059e+37 }
 0x72c   :  { %3872 = vmatmul.f32.vlgmr.msrb.gmra.mxu1 %v3528_v6  ;;  %3912 = vmatmul.f32.vlgmr.msrb.gmra.mxu3 %v3528_v6  ;;  %v3699_v42 = vsub.f32 1.0, %v3698_v3 }
 0x72e   :  { %v3700_v51 = vmul.f32 %v4293_v54, %v3699_v42 }
 0x72f   :  { %v4295_v62 = vpop.eup %4294 }
 0x730   :  { %v3717_v26 = vmul.f32 %v4295_v62, %v3715_v46  ;;  %vm3722_vm8 = vweird.f32 %v4295_v62  ;;  %v3701_v13 = vadd.f32 %v4293_v54, %v3700_v51 }
 0x731   :  { %vm3723_vm11 = vmor %vm3721_vm9, %vm3722_vm8 }
 0x732   :  { %v3718_v35 = vsub.f32 1.0, %v3717_v26  ;;  %v3705_v48 = vsel %vm3704_vm13, %v4293_v54, %v3701_v13 }
 0x733   :  { %v3630_v11 = vpop.f32.mrf.mxu0  ;;  %v3710_v58 = vsel %vm3707_vm15, %v3709_v60, %v3705_v48 }
 0x734   :  { %v3719_v37 = vmul.f32 %v4295_v62, %v3718_v35  ;;  %v3631_v43 = vadd.f32 %v3630_v11, %v11687_v38 }
 0x736   :  { %v3651_v4 = vadd.f32 %v3650_v31, %v3631_v43  ;;  %v3720_v52 = vadd.f32 %v4295_v62, %v3719_v37 }
 0x738   :  { %4296 = vtanh.f32 %v3651_v4  ;;  %v3724_v63 = vsel %vm3723_vm11, %v4295_v62, %v3720_v52 }
 0x739   :  { %v3670_v50 = vpop.f32.mrf.mxu2  ;;  %v3729_v61 = vsel %vm3726_vm14, %v3728_v17, %v3724_v63 }
 0x73a   :  { %v3671_v38 = vadd.f32 %v3670_v50, %v11688_v56  ;;  %v3751_v30 = vmul.f32 %v3729_v61, %v9527_v8 }
 0x73c   :  { %v3691_v55 = vadd.f32 %v3690_v28, %v3671_v38 }
 0x73e   :  { %v4297_v59 = vpop.eup %4296  ;;  %v4050_v20 = vmul.f32 -1.442695, %v3691_v55 }
 0x73f   :  { %v3752_v19 = vmul.f32 %v4297_v59, %v3710_v58 }
 0x740   :  { %4298 = vpow2.f32 %v4050_v20 }
 0x741   :  { %v3753_v10 = vadd.f32 %v3752_v19, %v3751_v30 }
 0x743   :  { %3982 = vst [vmem:[#allocation3] sm:$0x3] %v3753_v10 }
 0x746   :  { %v4299_v18 = vpop.eup %4298 }
 0x747   :  { %v3735_v21 = vadd.f32 1.0, %v4299_v18 }
 0x749   :  { %4300 = vrcp.f32 %v3735_v21  ;;  %v3747_v41 = vand.u32 2147483648, %v3735_v21  ;;  %v3745_v9 = vand.u32 2147483647, %v3735_v21  ;;  %vm3741_vm1 = vweird.f32 %v3735_v21 }
 0x74a   :  { %4302 = vtanh.f32 %v3753_v10 }
 0x74b   :  { %v3748_v49 = vor.u32 1.1754944e-38, %v3747_v41  ;;  %vm3746_vm3 = vcmp.eq.f32.partialorder %v3745_v9, 8.507059e+37 }
 0x74f   :  { %v4301_v56 = vpop.eup %4300 }
 0x750   :  { %v3737_v57 = vmul.f32 %v4301_v56, %v3735_v21  ;;  %vm3742_vm0 = vweird.f32 %v4301_v56  ;;  %v4303_v5 = vpop.eup %4302 }
 0x751   :  { %vm3743_vm2 = vmor %vm3741_vm1, %vm3742_vm0 }
 0x752   :  { %v3738_v12 = vsub.f32 1.0, %v3737_v57 }
 0x754   :  { %v3739_v27 = vmul.f32 %v4301_v56, %v3738_v12 }
 0x756   :  { %v3740_v24 = vadd.f32 %v4301_v56, %v3739_v27 }
 0x758   :  { %v3744_v8 = vsel %vm3743_vm2, %v4301_v56, %v3740_v24 }
 0x759   :  { %v3749_v39 = vsel %vm3746_vm3, %v3748_v49, %v3744_v8 }
 0x75a   :  { %v3755_v0 = vmul.f32 %v4303_v5, %v3749_v39 }
 0x75c   :  { %3772 = vmatmul.f32.vlgmr.msra.gmra.mxu0 %v3755_v0  ;;  %3981 = vst [vmem:[#allocation2] sm:$0x3] %v3755_v0  ;;  %3812 = vmatmul.f32.vlgmr.msra.gmra.mxu2 %v3755_v0 }
 0x764   :  { %3852 = vmatmul.f32.vlgmr.msrb.gmra.mxu0 %v3755_v0  ;;  %3892 = vmatmul.f32.vlgmr.msrb.gmra.mxu2 %v3755_v0 }
 0x7a1   :  { %v3793_v25 = vpop.f32.mrf.mxu1 }
 0x7a7   :  { %v3833_v45 = vpop.f32.mrf.mxu3 }
 0x7a9   :  { %v3873_v36 = vpop.f32.mrf.mxu1 }
 0x7af   :  { %v3913_v62 = vpop.f32.mrf.mxu3 }
 0x7d9   :  { %v3773_v53 = vpop.f32.mrf.mxu0 }
 0x7da   :  { %v3774_v7 = vadd.f32 %v3773_v53, %v11831_v14 }
 0x7dc   :  { %v3794_v34 = vadd.f32 %v3793_v25, %v3774_v7 }
 0x7de   :  { %v4051_v23 = vmul.f32 -1.442695, %v3794_v34 }
 0x7df   :  { %v3813_v33 = vpop.f32.mrf.mxu2 }
 0x7e0   :  { %4304 = vpow2.f32 %v4051_v23  ;;  %v3814_v16 = vadd.f32 %v3813_v33, %v11836_v29 }
 0x7e1   :  { %v3853_v11 = vpop.f32.mrf.mxu0 }
 0x7e2   :  { %v3834_v2 = vadd.f32 %v3833_v45, %v3814_v16  ;;  %v3854_v29 = vadd.f32 %v3853_v11, %v11838_v47 }
 0x7e4   :  { %v4052_v6 = vmul.f32 -1.442695, %v3834_v2  ;;  %v3874_v13 = vadd.f32 %v3873_v36, %v3854_v29 }
 0x7e6   :  { %v4305_v44 = vpop.eup %4304  ;;  %4306 = vpow2.f32 %v4052_v6 }
 0x7e7   :  { %v3919_v46 = vadd.f32 1.0, %v4305_v44  ;;  %v3893_v54 = vpop.f32.mrf.mxu2 }
 0x7e8   :  { %v3894_v3 = vadd.f32 %v3893_v54, %v11837_v40 }
 0x7e9   :  { %4308 = vrcp.f32 %v3919_v46  ;;  %v3931_v32 = vand.u32 2147483648, %v3919_v46  ;;  %vm3925_vm5 = vweird.f32 %v3919_v46  ;;  %v3929_v50 = vand.u32 2147483647, %v3919_v46 }
 0x7ea   :  { %v3914_v42 = vadd.f32 %v3913_v62, %v3894_v3 }
 0x7eb   :  { %v3932_v48 = vor.u32 1.1754944e-38, %v3931_v32  ;;  %vm3930_vm9 = vcmp.eq.f32.partialorder %v3929_v50, 8.507059e+37 }
 0x7ec   :  { %v4307_v14 = vpop.eup %4306  ;;  %v4053_v26 = vmul.f32 -1.442695, %v3914_v42 }
 0x7ed   :  { %v3938_v35 = vadd.f32 1.0, %v4307_v14 }
 0x7ee   :  { %4310 = vpow2.f32 %v4053_v26 }
 0x7ef   :  { %v4309_v51 = vpop.eup %4308  ;;  %4312 = vrcp.f32 %v3938_v35  ;;  %v3950_v17 = vand.u32 2147483648, %v3938_v35  ;;  %v3948_v28 = vand.u32 2147483647, %v3938_v35  ;;  %vm3944_vm8 = vweird.f32 %v3938_v35 }
 0x7f0   :  { %v3921_v37 = vmul.f32 %v4309_v51, %v3919_v46  ;;  %vm3926_vm4 = vweird.f32 %v4309_v51 }
 0x7f1   :  { %vm3927_vm6 = vmor %vm3925_vm5, %vm3926_vm4  ;;  %v3951_v55 = vor.u32 1.1754944e-38, %v3950_v17  ;;  %vm3949_vm11 = vcmp.eq.f32.partialorder %v3948_v28, 8.507059e+37 }
 0x7f2   :  { %v3922_v43 = vsub.f32 1.0, %v3921_v37 }
 0x7f4   :  { %v4311_v31 = vpop.eup %4310  ;;  %v3923_v4 = vmul.f32 %v4309_v51, %v3922_v43 }
 0x7f5   :  { %v4313_v52 = vpop.eup %4312  ;;  %v3958_v40 = vadd.f32 1.0, %v4311_v31 }
 0x7f6   :  { %v3940_v22 = vmul.f32 %v4313_v52, %v3938_v35  ;;  %v3924_v1 = vadd.f32 %v4309_v51, %v3923_v4  ;;  %vm3945_vm7 = vweird.f32 %v4313_v52 }
 0x7f7   :  { %4314 = vrcp.f32 %v3958_v40  ;;  %vm3946_vm10 = vmor %vm3944_vm8, %vm3945_vm7  ;;  %v3970_v41 = vand.u32 2147483648, %v3958_v40  ;;  %vm3964_vm13 = vweird.f32 %v3958_v40  ;;  %v3968_v27 = vand.u32 2147483647, %v3958_v40 }
 0x7f8   :  { %v3941_v63 = vsub.f32 1.0, %v3940_v22  ;;  %4316 = vtanh.f32 %v3874_v13  ;;  %v3928_v47 = vsel %vm3927_vm6, %v4309_v51, %v3924_v1 }
 0x7f9   :  { %v3933_v59 = vsel %vm3930_vm9, %v3932_v48, %v3928_v47  ;;  %v3971_v24 = vor.u32 1.1754944e-38, %v3970_v41  ;;  %vm3969_vm15 = vcmp.eq.f32.partialorder %v3968_v27, 8.507059e+37 }
 0x7fa   :  { %v3942_v38 = vmul.f32 %v4313_v52, %v3941_v63 }
 0x7fc   :  { %v3943_v60 = vadd.f32 %v4313_v52, %v3942_v38 }
 0x7fd   :  { %v4315_v61 = vpop.eup %4314 }
 0x7fe   :  { %v3947_v58 = vsel %vm3946_vm10, %v4313_v52, %v3943_v60  ;;  %v3960_v20 = vmul.f32 %v4315_v61, %v3958_v40  ;;  %v4317_v30 = vpop.eup %4316  ;;  %vm3965_vm12 = vweird.f32 %v4315_v61 }
 0x7ff   :  { %v3952_v19 = vsel %vm3949_vm11, %v3951_v55, %v3947_v58  ;;  %v3975_v18 = vmul.f32 %v4317_v30, %v3933_v59  ;;  %vm3966_vm14 = vmor %vm3964_vm13, %vm3965_vm12 }
 0x800   :  { %v3974_v10 = vmul.f32 %v3952_v19, %v9699_v15  ;;  %v3961_v21 = vsub.f32 1.0, %v3960_v20 }
 0x802   :  { %v3976_v56 = vadd.f32 %v3975_v18, %v3974_v10  ;;  %v3962_v57 = vmul.f32 %v4315_v61, %v3961_v21 }
 0x804   :  { %4318 = vtanh.f32 %v3976_v56  ;;  %3984 = vst [vmem:[#allocation5] sm:$0x3] %v3976_v56  ;;  %v3963_v12 = vadd.f32 %v4315_v61, %v3962_v57 }
 0x806   :  { %v3967_v9 = vsel %vm3966_vm14, %v4315_v61, %v3963_v12 }
 0x807   :  { %v3972_v49 = vsel %vm3969_vm15, %v3971_v24, %v3967_v9 }
 0x80a   :  { %v4319_v15 = vpop.eup %4318 }
 0x80b   :  { %v3978_v8 = vmul.f32 %v4319_v15, %v3972_v49 }
 0x80d   :  { %3980 = vst [vmem:[#allocation15 + $0xe] sm:$0x3] %v3978_v8 }
 0x80e   :  { %3983 = vst [vmem:[#allocation4] sm:$0x3] %v3978_v8  ;;  %3997 = dma.vmem_to_hbm [thread:$0]  %s3990_s4, 256, %s3992_s20, [#allocation8], %s5306_s27, %s5306_s27, %s5309_s11  }
 0x80f   :  { %5302 = dma.done.wait [#allocation8], 256  }
 0x810   :  { %5303 = vsyncadd [#allocation8], 4294967040 }
 0x811   :  { %4002 = vsyncpa [#allocation7], 1 }
 0x812   :  { %4003 = vsyncpa [#allocation10], 1 }
 0x813   :  { %4004 = vsyncpa [#allocation13], 1 }
 0x814   :  { %4005 = vsyncpa [#allocation8], 1 }

</bundles_post_ra>
